<compile_context>
chip_gen: v7x
topology: tpu7x:2x2x1
jax: 0.10.0
libtpu: 0.0.40
codegen_flags: <defaults>
</compile_context>

<pallas_src>
import math

import jax
import jax.numpy as jnp
from jax.experimental import pallas as pl
from jax.experimental.pallas import tpu as pltpu

EPS = 1e-5
ACT_DT = jnp.bfloat16            # activation / weight storage dtype (halves HBM bytes)
TL_MAX = 256                     # sequence rows per tile (multiple of 8)
TM_MAX = 256                     # flattened rows per tile for the im2col path
VMEM_LIMIT = 32 * 1024 * 1024    # safe on v5e / v6e / v7x


def _round_up(a, b):
    return (a + b - 1) // b * b


def _tile_len(L, tmax=TL_MAX):
    """Pick a sublane tile length (multiple of 8, or == L when L < 8) + padded L."""
    if L < 8:
        return L, L
    TL = min(tmax, _round_up(L, 8))
    return TL, _round_up(L, TL)


def _cparams(n_axes):
    return pltpu.CompilerParams(
        dimension_semantics=("parallel",) * n_axes,
        vmem_limit_bytes=VMEM_LIMIT)


# ----------------------------------------------------------------------------- #
# Pallas kernels
# ----------------------------------------------------------------------------- #
def _make_conv_taps_kernel(K, TL, n_l_tiles, l_valid):
    """Stride-1 Conv1d as K shifted matmuls over a VMEM-resident padded sequence.

    Also emits per-tile partial sum / sum-of-squares of the f32 conv output
    (restricted to the first `l_valid` output rows) for the two-pass BatchNorm.
    """
    needs_mask = (n_l_tiles * TL) != l_valid

    def kernel(xp_ref, w_ref, y_ref, s1_ref, s2_ref):
        # xp_ref: (Lpad, Cin) bf16 (full padded sequence of this batch, resident)
        # w_ref : (K, Cin, Cout) bf16
        # y_ref : (TL, Cout)        s1/s2_ref: (1, Cout) f32 partials
        if n_l_tiles == 1:
            l0 = 0                                        # fully static slices
        else:
            l0 = pl.multiple_of(pl.program_id(1) * TL, 8)
        cout = y_ref.shape[-1]
        acc = jnp.zeros((TL, cout), jnp.float32)
        for k in range(K):                                # K static shifted matmuls
            xwin = xp_ref[pl.ds(l0 + k, TL), :]           # (TL, Cin)
            acc = acc + jnp.dot(xwin, w_ref[k],
                                preferred_element_type=jnp.float32)
        y_ref[...] = acc.astype(y_ref.dtype)
        if needs_mask:                                    # exclude padded output rows
            rows = l0 + jax.lax.broadcasted_iota(jnp.int32, (TL, 1), 0)
            acc = jnp.where(rows < l_valid, acc, 0.0)
        s1_ref[...] = jnp.sum(acc, axis=0, keepdims=True)
        s2_ref[...] = jnp.sum(acc * acc, axis=0, keepdims=True)

    return kernel


def _conv_matmul_kernel(p_ref, w_ref, y_ref, s1_ref, s2_ref):
    # Row-tiled im2col matmul (only for the three small strided down-convs and
    # the tiny deep layers with L < 8).
    acc = jnp.dot(p_ref[...], w_ref[...], preferred_element_type=jnp.float32)
    y_ref[...] = acc.astype(y_ref.dtype)
    s1_ref[...] = jnp.sum(acc, axis=0, keepdims=True)
    s2_ref[...] = jnp.sum(acc * acc, axis=0, keepdims=True)


def _make_affine_kernel(relu):
    # BatchNorm pass B (y * scale + shift, optional ReLU) -- scale/shift computed
    # from the pass-A partial statistics in the wrapper.
    def kernel(y_ref, sc_ref, sh_ref, o_ref):
        v = y_ref[...].astype(jnp.float32) * sc_ref[...] + sh_ref[...]
        if relu:
            v = jnp.maximum(v, 0.0)
        o_ref[...] = v.astype(o_ref.dtype)
    return kernel


def _se_add_kernel(xs_ref, h_ref, g_ref, o_ref):
    # re_block tail: out = x_skip + h + sigmoid-gate (gate broadcast along L)
    v = xs_ref[...].astype(jnp.float32) + h_ref[...].astype(jnp.float32) + g_ref[...]
    o_ref[...] = v.astype(o_ref.dtype)


# ----------------------------------------------------------------------------- #
# Pallas wrappers
# ----------------------------------------------------------------------------- #
def conv1d_s1(x_nlc, w_kco, K):
    """stride=1, padding=3 Conv1d (no bias), K taps fused in-kernel."""
    N, L, Cin = x_nlc.shape
    Cout = w_kco.shape[-1]
    L_out = L                      # padding=3 is length-preserving only for K=7
    TL, Lp = _tile_len(L_out)
    nLt = Lp // TL
    pad = 3
    xp = jnp.pad(x_nlc, ((0, 0), (pad, pad + (Lp - L)), (0, 0)))
    Lpad = Lp + 2 * pad
    kernel = _make_conv_taps_kernel(K, TL, nLt, L_out)
    y, s1, s2 = pl.pallas_call(
        kernel,
        grid=(N, nLt),
        in_specs=[
            pl.BlockSpec((None, Lpad, Cin), lambda n, t: (n, 0, 0)),
            pl.BlockSpec((K, Cin, Cout), lambda n, t: (0, 0, 0)),
        ],
        out_specs=[
            pl.BlockSpec((None, TL, Cout), lambda n, t: (n, t, 0)),
            pl.BlockSpec((None, None, 1, Cout), lambda n, t: (n, t, 0, 0)),
            pl.BlockSpec((None, None, 1, Cout), lambda n, t: (n, t, 0, 0)),
        ],
        out_shape=[
            jax.ShapeDtypeStruct((N, Lp, Cout), ACT_DT),
            jax.ShapeDtypeStruct((N, nLt, 1, Cout), jnp.float32),
            jax.ShapeDtypeStruct((N, nLt, 1, Cout), jnp.float32),
        ],
        compiler_params=_cparams(2),
    )(xp, w_kco)
    return y, s1, s2, L_out


def conv1d_strided(x_nlc, w_kco, K, stride):
    """General Conv1d (padding=3) via wrapper im2col + row-tiled matmul kernel."""
    N, L, Cin = x_nlc.shape
    Cout = w_kco.shape[-1]
    pad = 3
    L_out = (L + 2 * pad - K) // stride + 1
    xp = jnp.pad(x_nlc, ((0, 0), (pad, pad), (0, 0)))
    idx = jnp.arange(L_out)[:, None] * stride + jnp.arange(K)[None, :]
    patches = xp[:, idx, :].reshape(N * L_out, K * Cin)
    M = N * L_out
    TM = min(TM_MAX, _round_up(M, 8))
    Mp = _round_up(M, TM)
    if Mp != M:
        patches = jnp.pad(patches, ((0, Mp - M), (0, 0)))
    nmt = Mp // TM
    w2d = w_kco.reshape(K * Cin, Cout)
    y, s1, s2 = pl.pallas_call(
        _conv_matmul_kernel,
        grid=(nmt,),
        in_specs=[
            pl.BlockSpec((TM, K * Cin), lambda i: (i, 0)),
            pl.BlockSpec((K * Cin, Cout), lambda i: (0, 0)),
        ],
        out_specs=[
            pl.BlockSpec((TM, Cout), lambda i: (i, 0)),
            pl.BlockSpec((None, 1, Cout), lambda i: (i, 0, 0)),
            pl.BlockSpec((None, 1, Cout), lambda i: (i, 0, 0)),
        ],
        out_shape=[
            jax.ShapeDtypeStruct((Mp, Cout), ACT_DT),
            jax.ShapeDtypeStruct((nmt, 1, Cout), jnp.float32),
            jax.ShapeDtypeStruct((nmt, 1, Cout), jnp.float32),
        ],
        compiler_params=_cparams(1),
    )(patches, w2d)
    return y, s1, s2, L_out


def affine_act_3d(y, scale, shift, relu, out_dtype=ACT_DT):
    N, Lp, C = y.shape
    TL = Lp if Lp < 8 else min(TL_MAX, Lp)
    nLt = Lp // TL
    return pl.pallas_call(
        _make_affine_kernel(relu),
        grid=(N, nLt),
        in_specs=[
            pl.BlockSpec((None, TL, C), lambda n, t: (n, t, 0)),
            pl.BlockSpec((1, C), lambda n, t: (0, 0)),
            pl.BlockSpec((1, C), lambda n, t: (0, 0)),
        ],
        out_specs=pl.BlockSpec((None, TL, C), lambda n, t: (n, t, 0)),
        out_shape=jax.ShapeDtypeStruct((N, Lp, C), out_dtype),
        compiler_params=_cparams(2),
    )(y, scale, shift)


def affine_act_2d(y, scale, shift, relu, out_dtype=ACT_DT):
    Mp, C = y.shape
    TM = Mp if Mp < 8 else min(TM_MAX, Mp)
    nmt = Mp // TM
    return pl.pallas_call(
        _make_affine_kernel(relu),
        grid=(nmt,),
        in_specs=[
            pl.BlockSpec((TM, C), lambda i: (i, 0)),
            pl.BlockSpec((1, C), lambda i: (0, 0)),
            pl.BlockSpec((1, C), lambda i: (0, 0)),
        ],
        out_specs=pl.BlockSpec((TM, C), lambda i: (i, 0)),
        out_shape=jax.ShapeDtypeStruct((Mp, C), out_dtype),
        compiler_params=_cparams(1),
    )(y, scale, shift)


def se_residual_add(x_skip, h, gate):
    """out = x_skip + h + gate (gate broadcast along L); all (N, L, C)."""
    N, L, C = h.shape
    TL, Lp = _tile_len(L)
    if Lp != L:
        x_skip = jnp.pad(x_skip, ((0, 0), (0, Lp - L), (0, 0)))
        h = jnp.pad(h, ((0, 0), (0, Lp - L), (0, 0)))
    nLt = Lp // TL
    out = pl.pallas_call(
        _se_add_kernel,
        grid=(N, nLt),
        in_specs=[
            pl.BlockSpec((None, TL, C), lambda n, t: (n, t, 0)),
            pl.BlockSpec((None, TL, C), lambda n, t: (n, t, 0)),
            pl.BlockSpec((None, 1, C), lambda n, t: (n, 0, 0)),
        ],
        out_specs=pl.BlockSpec((None, TL, C), lambda n, t: (n, t, 0)),
        out_shape=jax.ShapeDtypeStruct((N, Lp, C), ACT_DT),
        compiler_params=_cparams(2),
    )(x_skip, h, gate)
    return out[:, :L, :]


# ----------------------------------------------------------------------------- #
# Module application (conbr / re_block / down_layer / pools)
# ----------------------------------------------------------------------------- #
def _conv_nobias(x_nlc, w_kco, K, stride):
    N, L, _ = x_nlc.shape
    if stride == 1 and K == 7 and L >= 8:
        y, s1, s2, L_out = conv1d_s1(x_nlc, w_kco, K)
        return y, s1, s2, L_out, '3d'
    y, s1, s2, L_out = conv1d_strided(x_nlc, w_kco, K, stride)
    return y, s1, s2, L_out, '2d'


def _bn_scale_shift(s1, s2, cnt, gamma, beta):
    C = s1.shape[-1]
    ssum = jnp.sum(s1.reshape(-1, C), axis=0)
    ssq = jnp.sum(s2.reshape(-1, C), axis=0)
    mean = ssum / cnt
    var = jnp.maximum(ssq / cnt - mean * mean, 0.0)   # biased var, as torch BN
    inv = jax.lax.rsqrt(var + EPS)
    scale = gamma * inv
    shift = beta - mean * scale
    return scale.reshape(1, C), shift.reshape(1, C)


def _finish(y, layout, scale, shift, relu, N, L_out, Cout, out_dtype=ACT_DT):
    if layout == '3d':
        h = affine_act_3d(y, scale, shift, relu, out_dtype)
        return h[:, :L_out, :]
    h = affine_act_2d(y, scale, shift, relu, out_dtype)
    return h[:N * L_out].reshape(N, L_out, Cout)


def conbr_apply(x_nlc, p, stride, K):
    # conbr_block: Conv1d -> BatchNorm1d (batch stats) -> ReLU (bias cancelled by BN)
    N = x_nlc.shape[0]
    Cout = p['w'].shape[-1]
    y, s1, s2, L_out, layout = _conv_nobias(x_nlc, p['w'], K, stride)
    scale, shift = _bn_scale_shift(s1, s2, N * L_out, p['gamma'], p['beta'])
    return _finish(y, layout, scale, shift, True, N, L_out, Cout)


def outconv_apply(x_nlc, p, K):
    # outcov: plain Conv1d (bias, no BN/ReLU), f32 output
    N = x_nlc.shape[0]
    Cout = p['w'].shape[-1]
    y, _s1, _s2, L_out, layout = _conv_nobias(x_nlc, p['w'], K, 1)
    scale = jnp.ones((1, Cout), jnp.float32)
    shift = p['b'].astype(jnp.float32).reshape(1, Cout)
    return _finish(y, layout, scale, shift, False, N, L_out, Cout, out_dtype=jnp.float32)


def re_block_apply(x, p, K):
    h = conbr_apply(x, p['cbr1'], 1, K)
    h = conbr_apply(h, p['cbr2'], 1, K)
    # se_block gate: global avg pool -> 1x1 conv -> ReLU -> 1x1 conv -> sigmoid.
    # A few hundred FLOPs with output widths 1-4 (pathological MXU shapes); done
    # as plain-JAX glue.  The residual/gate add is a fused Pallas kernel.
    se = p['se']
    hm = jnp.mean(h.astype(jnp.float32), axis=1)                    # (N, C)
    z = jnp.maximum(hm @ se['w1'] + se['b1'], 0.0)                  # (N, C//8)
    g = jax.nn.sigmoid(z @ se['w2'] + se['b2'])                     # (N, C)
    return se_residual_add(x, h, g[:, None, :])


def down_layer_apply(x, p, stride, K):
    x = conbr_apply(x, p['cbr'], stride, K)
    for rp in p['re']:
        x = re_block_apply(x, rp, K)
    return x


def avgpool_apply(x_nlc, Kp, stride):
    # nn.AvgPool1d(kernel_size=Kp, stride=stride, padding=0) -- simple VPU mean
    # (no block-diagonal matmul / dead weights).
    N, L, C = x_nlc.shape
    L_out = (L - Kp) // stride + 1
    idx = jnp.arange(L_out)[:, None] * stride + jnp.arange(Kp)[None, :]
    return jnp.mean(x_nlc[:, idx, :], axis=2)


# ----------------------------------------------------------------------------- #
# Deterministic parameter construction (synthetic, PyTorch-like fan-in init)
# ----------------------------------------------------------------------------- #
def _uniform(key, shape, bound):
    return jax.random.uniform(key, shape, jnp.float32, -bound, bound)


def make_conbr_params(key, cin, cout, K):
    kw, _kb = jax.random.split(key)
    bound = 1.0 / math.sqrt(cin * K)
    # PyTorch Conv1d weight (Cout, Cin, K) -> ours (K, Cin, Cout)
    w = _uniform(kw, (cout, cin, K), bound).transpose(2, 1, 0)
    # Conv bias is cancelled exactly by BatchNorm's mean subtraction -> dropped.
    return {'w': w.astype(ACT_DT),
            'gamma': jnp.ones((cout,), jnp.float32),
            'beta': jnp.zeros((cout,), jnp.float32)}


def make_outconv_params(key, cin, cout, K):
    kw, kb = jax.random.split(key)
    bound = 1.0 / math.sqrt(cin * K)
    w = _uniform(kw, (cout, cin, K), bound).transpose(2, 1, 0)
    return {'w': w.astype(ACT_DT), 'b': _uniform(kb, (cout,), bound)}


def make_se_params(key, c):
    cr = max(c // 8, 1)
    k1, k2, k3, k4 = jax.random.split(key, 4)
    bd1 = 1.0 / math.sqrt(c)
    bd2 = 1.0 / math.sqrt(cr)
    # se_block.fc / fc2 exist in the PyTorch module but are unused in forward.
    return {'w1': _uniform(k1, (c, cr), bd1), 'b1': _uniform(k2, (cr,), bd1),
            'w2': _uniform(k3, (cr, c), bd2), 'b2': _uniform(k4, (c,), bd2)}


def make_down_layer_params(key, cin, cout, K, depth):
    keys = jax.random.split(key, 1 + depth)
    p = {'cbr': make_conbr_params(keys[0], cin, cout, K), 're': []}
    for i in range(depth):
        kk = jax.random.split(keys[1 + i], 3)
        p['re'].append({'cbr1': make_conbr_params(kk[0], cout, cout, K),
                        'cbr2': make_conbr_params(kk[1], cout, cout, K),
                        'se': make_se_params(kk[2], cout)})
    return p


def build_unet1d_params(key, input_dim, layer_n, K, depth=2):
    keys = jax.random.split(key, 8)
    return {
        'layer1': make_down_layer_params(keys[0], input_dim, layer_n, K, depth),
        'layer2': make_down_layer_params(keys[1], layer_n, layer_n * 2, K, depth),
        'layer3': make_down_layer_params(keys[2], layer_n * 2 + input_dim, layer_n * 3, K, depth),
        'layer4': make_down_layer_params(keys[3], layer_n * 3 + input_dim, layer_n * 4, K, depth),
        # layer5 exists in the PyTorch module but is never used in forward -> omitted
        'cbr_up1': make_conbr_params(keys[4], layer_n * 7, layer_n * 3, K),
        'cbr_up2': make_conbr_params(keys[5], layer_n * 5, layer_n * 2, K),
        'cbr_up3': make_conbr_params(keys[6], layer_n * 3, layer_n, K),
        'outcov': make_outconv_params(keys[7], layer_n, 1, K),
    }


# ----------------------------------------------------------------------------- #
# Full forward pass (mirrors UNET_1D.forward)
# ----------------------------------------------------------------------------- #
def unet1d_forward(params, x_ncl, input_dim, K):
    x32 = jnp.transpose(x_ncl, (0, 2, 1))                        # NCL -> NLC (f32)
    pool_x1 = avgpool_apply(x32, input_dim, 4).astype(ACT_DT)
    pool_x2 = avgpool_apply(x32, input_dim, 16).astype(ACT_DT)
    # AvgPool1D3's output is computed but never consumed in the reference forward
    # (dead code) -> omitted.

    x = x32.astype(ACT_DT)
    out_0 = down_layer_apply(x, params['layer1'], 1, K)
    out_1 = down_layer_apply(out_0, params['layer2'], 4, K)
    out_2 = down_layer_apply(jnp.concatenate([out_1, pool_x1], -1),
                             params['layer3'], 4, K)
    x4 = down_layer_apply(jnp.concatenate([out_2, pool_x2], -1),
                          params['layer4'], 4, K)

    # TODO(synk): the nearest x4 upsample + channel concat could be folded into the
    # conv index mapping to avoid materializing them; kept as cheap jnp glue here.
    up = jnp.repeat(x4, 4, axis=1)                               # Upsample(scale=4, nearest)
    up = conbr_apply(jnp.concatenate([up, out_2], -1), params['cbr_up1'], 1, K)
    up = jnp.repeat(up, 4, axis=1)
    up = conbr_apply(jnp.concatenate([up, out_1], -1), params['cbr_up2'], 1, K)
    up = jnp.repeat(up, 4, axis=1)
    up = conbr_apply(jnp.concatenate([up, out_0], -1), params['cbr_up3'], 1, K)

    out = outconv_apply(up, params['outcov'], K)                 # (N, L, 1) f32
    return jnp.transpose(out, (0, 2, 1))                         # (N, 1, L)


# ----------------------------------------------------------------------------- #
if __name__ == "__main__":
    # UNET_1D(input_dim=4, layer_n=8, kernel_size=7, depth=2); kernel_size=7 is the
    # only value for which padding=3 keeps the sequence length (as the module assumes).
    input_dim, layer_n, kernel_size, depth = 4, 8, 7, 2
    N, L = 2, 64                                                 # L must be a multiple of 64

    key = jax.random.PRNGKey(0)
    kp, kx = jax.random.split(key)
    params = build_unet1d_params(kp, input_dim, layer_n, kernel_size, depth)
    x = jax.random.normal(kx, (N, input_dim, L), jnp.float32)    # PyTorch NCL input

    fwd = jax.jit(lambda p, xx: unet1d_forward(p, xx, input_dim, kernel_size))
    out = fwd(params, x)
    jax.block_until_ready(out)

    assert out.shape == (N, 1, L), out.shape
    assert bool(jnp.all(jnp.isfinite(out)))
    print("KERNEL_OK")
</pallas_src>

<mosaic_0001>
module attributes {stable_mosaic.version = 11 : i64} {
  func.func @kernel(%arg0: i32, %arg1: i32, %arg2: memref<1x70x4xbf16, #tpu.memory_space<vmem>>, %arg3: memref<7x4x8xbf16, #tpu.memory_space<vmem>>, %arg4: memref<1x64x8xbf16, #tpu.memory_space<vmem>>, %arg5: memref<1x1x1x8xf32, #tpu.memory_space<vmem>>, %arg6: memref<1x1x1x8xf32, #tpu.memory_space<vmem>>) attributes {dimension_semantics = [#tpu.dimension_semantics<parallel>, #tpu.dimension_semantics<parallel>], iteration_bounds = array<i64: 2, 1>, scalar_prefetch = 0 : i64, scratch_operands = 0 : i64, tpu.core_type = #tpu.core_type<tc>, window_params = [{transform_indices = @transform_0, window_bounds = array<i64: 1, 70, 4>}, {pipeline_mode = #tpu.pipeline_mode<synchronous>, transform_indices = @transform_1, window_bounds = array<i64: 7, 4, 8>}, {transform_indices = @transform_2, window_bounds = array<i64: 1, 64, 8>}, {transform_indices = @transform_3, window_bounds = array<i64: 1, 1, 1, 8>}, {transform_indices = @transform_4, window_bounds = array<i64: 1, 1, 1, 8>}]} {
    %cst = arith.constant 0.000000e+00 : f32
    %0 = vector.broadcast %cst : f32 to vector<64x8xf32>
    %c0 = arith.constant 0 : index
    %c0_0 = arith.constant 0 : index
    %c0_1 = arith.constant 0 : index
    %1 = vector.load %arg2[%c0, %c0_0, %c0_1] : memref<1x70x4xbf16, #tpu.memory_space<vmem>>, vector<1x64x4xbf16>
    %2 = vector.shape_cast %1 : vector<1x64x4xbf16> to vector<64x4xbf16>
    %c0_2 = arith.constant 0 : index
    %c0_3 = arith.constant 0 : index
    %c0_4 = arith.constant 0 : index
    %3 = vector.load %arg3[%c0_2, %c0_3, %c0_4] : memref<7x4x8xbf16, #tpu.memory_space<vmem>>, vector<1x4x8xbf16>
    %4 = vector.shape_cast %3 : vector<1x4x8xbf16> to vector<4x8xbf16>
    %cst_5 = arith.constant dense<0.000000e+00> : vector<64x8xf32>
    %5 = tpu.matmul %2, %4, %cst_5 {dimension_numbers = #tpu.dot_dimension_numbers<[1], [0], [0], [1], [0, 0, 1, 1], [], []>} : vector<64x4xbf16>, vector<4x8xbf16>, vector<64x8xf32> -> vector<64x8xf32>
    %6 = arith.addf %0, %5 : vector<64x8xf32>
    %c0_6 = arith.constant 0 : index
    %c1 = arith.constant 1 : index
    %c0_7 = arith.constant 0 : index
    %7 = vector.load %arg2[%c0_6, %c1, %c0_7] : memref<1x70x4xbf16, #tpu.memory_space<vmem>>, vector<1x64x4xbf16>
    %8 = vector.shape_cast %7 : vector<1x64x4xbf16> to vector<64x4xbf16>
    %c1_8 = arith.constant 1 : index
    %c0_9 = arith.constant 0 : index
    %c0_10 = arith.constant 0 : index
    %9 = vector.load %arg3[%c1_8, %c0_9, %c0_10] : memref<7x4x8xbf16, #tpu.memory_space<vmem>>, vector<1x4x8xbf16>
    %10 = vector.shape_cast %9 : vector<1x4x8xbf16> to vector<4x8xbf16>
    %cst_11 = arith.constant dense<0.000000e+00> : vector<64x8xf32>
    %11 = tpu.matmul %8, %10, %cst_11 {dimension_numbers = #tpu.dot_dimension_numbers<[1], [0], [0], [1], [0, 0, 1, 1], [], []>} : vector<64x4xbf16>, vector<4x8xbf16>, vector<64x8xf32> -> vector<64x8xf32>
    %12 = arith.addf %6, %11 : vector<64x8xf32>
    %c0_12 = arith.constant 0 : index
    %c2 = arith.constant 2 : index
    %c0_13 = arith.constant 0 : index
    %13 = vector.load %arg2[%c0_12, %c2, %c0_13] : memref<1x70x4xbf16, #tpu.memory_space<vmem>>, vector<1x64x4xbf16>
    %14 = vector.shape_cast %13 : vector<1x64x4xbf16> to vector<64x4xbf16>
    %c2_14 = arith.constant 2 : index
    %c0_15 = arith.constant 0 : index
    %c0_16 = arith.constant 0 : index
    %15 = vector.load %arg3[%c2_14, %c0_15, %c0_16] : memref<7x4x8xbf16, #tpu.memory_space<vmem>>, vector<1x4x8xbf16>
    %16 = vector.shape_cast %15 : vector<1x4x8xbf16> to vector<4x8xbf16>
    %cst_17 = arith.constant dense<0.000000e+00> : vector<64x8xf32>
    %17 = tpu.matmul %14, %16, %cst_17 {dimension_numbers = #tpu.dot_dimension_numbers<[1], [0], [0], [1], [0, 0, 1, 1], [], []>} : vector<64x4xbf16>, vector<4x8xbf16>, vector<64x8xf32> -> vector<64x8xf32>
    %18 = arith.addf %12, %17 : vector<64x8xf32>
    %c0_18 = arith.constant 0 : index
    %c3 = arith.constant 3 : index
    %c0_19 = arith.constant 0 : index
    %19 = vector.load %arg2[%c0_18, %c3, %c0_19] : memref<1x70x4xbf16, #tpu.memory_space<vmem>>, vector<1x64x4xbf16>
    %20 = vector.shape_cast %19 : vector<1x64x4xbf16> to vector<64x4xbf16>
    %c3_20 = arith.constant 3 : index
    %c0_21 = arith.constant 0 : index
    %c0_22 = arith.constant 0 : index
    %21 = vector.load %arg3[%c3_20, %c0_21, %c0_22] : memref<7x4x8xbf16, #tpu.memory_space<vmem>>, vector<1x4x8xbf16>
    %22 = vector.shape_cast %21 : vector<1x4x8xbf16> to vector<4x8xbf16>
    %cst_23 = arith.constant dense<0.000000e+00> : vector<64x8xf32>
    %23 = tpu.matmul %20, %22, %cst_23 {dimension_numbers = #tpu.dot_dimension_numbers<[1], [0], [0], [1], [0, 0, 1, 1], [], []>} : vector<64x4xbf16>, vector<4x8xbf16>, vector<64x8xf32> -> vector<64x8xf32>
    %24 = arith.addf %18, %23 : vector<64x8xf32>
    %c0_24 = arith.constant 0 : index
    %c4 = arith.constant 4 : index
    %c0_25 = arith.constant 0 : index
    %25 = vector.load %arg2[%c0_24, %c4, %c0_25] : memref<1x70x4xbf16, #tpu.memory_space<vmem>>, vector<1x64x4xbf16>
    %26 = vector.shape_cast %25 : vector<1x64x4xbf16> to vector<64x4xbf16>
    %c4_26 = arith.constant 4 : index
    %c0_27 = arith.constant 0 : index
    %c0_28 = arith.constant 0 : index
    %27 = vector.load %arg3[%c4_26, %c0_27, %c0_28] : memref<7x4x8xbf16, #tpu.memory_space<vmem>>, vector<1x4x8xbf16>
    %28 = vector.shape_cast %27 : vector<1x4x8xbf16> to vector<4x8xbf16>
    %cst_29 = arith.constant dense<0.000000e+00> : vector<64x8xf32>
    %29 = tpu.matmul %26, %28, %cst_29 {dimension_numbers = #tpu.dot_dimension_numbers<[1], [0], [0], [1], [0, 0, 1, 1], [], []>} : vector<64x4xbf16>, vector<4x8xbf16>, vector<64x8xf32> -> vector<64x8xf32>
    %30 = arith.addf %24, %29 : vector<64x8xf32>
    %c0_30 = arith.constant 0 : index
    %c5 = arith.constant 5 : index
    %c0_31 = arith.constant 0 : index
    %31 = vector.load %arg2[%c0_30, %c5, %c0_31] : memref<1x70x4xbf16, #tpu.memory_space<vmem>>, vector<1x64x4xbf16>
    %32 = vector.shape_cast %31 : vector<1x64x4xbf16> to vector<64x4xbf16>
    %c5_32 = arith.constant 5 : index
    %c0_33 = arith.constant 0 : index
    %c0_34 = arith.constant 0 : index
    %33 = vector.load %arg3[%c5_32, %c0_33, %c0_34] : memref<7x4x8xbf16, #tpu.memory_space<vmem>>, vector<1x4x8xbf16>
    %34 = vector.shape_cast %33 : vector<1x4x8xbf16> to vector<4x8xbf16>
    %cst_35 = arith.constant dense<0.000000e+00> : vector<64x8xf32>
    %35 = tpu.matmul %32, %34, %cst_35 {dimension_numbers = #tpu.dot_dimension_numbers<[1], [0], [0], [1], [0, 0, 1, 1], [], []>} : vector<64x4xbf16>, vector<4x8xbf16>, vector<64x8xf32> -> vector<64x8xf32>
    %36 = arith.addf %30, %35 : vector<64x8xf32>
    %c0_36 = arith.constant 0 : index
    %c6 = arith.constant 6 : index
    %c0_37 = arith.constant 0 : index
    %37 = vector.load %arg2[%c0_36, %c6, %c0_37] : memref<1x70x4xbf16, #tpu.memory_space<vmem>>, vector<1x64x4xbf16>
    %38 = vector.shape_cast %37 : vector<1x64x4xbf16> to vector<64x4xbf16>
    %c6_38 = arith.constant 6 : index
    %c0_39 = arith.constant 0 : index
    %c0_40 = arith.constant 0 : index
    %39 = vector.load %arg3[%c6_38, %c0_39, %c0_40] : memref<7x4x8xbf16, #tpu.memory_space<vmem>>, vector<1x4x8xbf16>
    %40 = vector.shape_cast %39 : vector<1x4x8xbf16> to vector<4x8xbf16>
    %cst_41 = arith.constant dense<0.000000e+00> : vector<64x8xf32>
    %41 = tpu.matmul %38, %40, %cst_41 {dimension_numbers = #tpu.dot_dimension_numbers<[1], [0], [0], [1], [0, 0, 1, 1], [], []>} : vector<64x4xbf16>, vector<4x8xbf16>, vector<64x8xf32> -> vector<64x8xf32>
    %42 = arith.addf %36, %41 : vector<64x8xf32>
    %43 = arith.truncf %42 : vector<64x8xf32> to vector<64x8xbf16>
    %c0_42 = arith.constant 0 : index
    %c0_43 = arith.constant 0 : index
    %c0_44 = arith.constant 0 : index
    %44 = vector.load %arg4[%c0_42, %c0_43, %c0_44] : memref<1x64x8xbf16, #tpu.memory_space<vmem>>, vector<1x64x8xbf16>
    %45 = vector.shape_cast %44 : vector<1x64x8xbf16> to vector<64x8xbf16>
    %46 = vector.shape_cast %43 : vector<64x8xbf16> to vector<1x64x8xbf16>
    tpu.vector_store %arg4[%c0_42, %c0_43, %c0_44], %46 {strides = array<i32>} : memref<1x64x8xbf16, #tpu.memory_space<vmem>>, vector<1x64x8xbf16>,
    %cst_45 = arith.constant dense<0.000000e+00> : vector<8xf32>
    %47 = vector.multi_reduction <add>, %42, %cst_45 [0] : vector<64x8xf32> to vector<8xf32>
    %48 = vector.shape_cast %47 : vector<8xf32> to vector<1x8xf32>
    %c0_46 = arith.constant 0 : index
    %c0_47 = arith.constant 0 : index
    %c0_48 = arith.constant 0 : index
    %c0_49 = arith.constant 0 : index
    %49 = vector.load %arg5[%c0_46, %c0_47, %c0_48, %c0_49] : memref<1x1x1x8xf32, #tpu.memory_space<vmem>>, vector<1x1x1x8xf32>
    %50 = vector.shape_cast %49 : vector<1x1x1x8xf32> to vector<1x8xf32>
    %51 = vector.shape_cast %48 : vector<1x8xf32> to vector<1x1x1x8xf32>
    tpu.vector_store %arg5[%c0_46, %c0_47, %c0_48, %c0_49], %51 {strides = array<i32>} : memref<1x1x1x8xf32, #tpu.memory_space<vmem>>, vector<1x1x1x8xf32>,
    %52 = arith.mulf %42, %42 : vector<64x8xf32>
    %cst_50 = arith.constant dense<0.000000e+00> : vector<8xf32>
    %53 = vector.multi_reduction <add>, %52, %cst_50 [0] : vector<64x8xf32> to vector<8xf32>
    %54 = vector.shape_cast %53 : vector<8xf32> to vector<1x8xf32>
    %c0_51 = arith.constant 0 : index
    %c0_52 = arith.constant 0 : index
    %c0_53 = arith.constant 0 : index
    %c0_54 = arith.constant 0 : index
    %55 = vector.load %arg6[%c0_51, %c0_52, %c0_53, %c0_54] : memref<1x1x1x8xf32, #tpu.memory_space<vmem>>, vector<1x1x1x8xf32>
    %56 = vector.shape_cast %55 : vector<1x1x1x8xf32> to vector<1x8xf32>
    %57 = vector.shape_cast %54 : vector<1x8xf32> to vector<1x1x1x8xf32>
    tpu.vector_store %arg6[%c0_51, %c0_52, %c0_53, %c0_54], %57 {strides = array<i32>} : memref<1x1x1x8xf32, #tpu.memory_space<vmem>>, vector<1x1x1x8xf32>,
    return
  }
  func.func @transform_0(%arg0: i32, %arg1: i32) -> (i32, i32, i32) {
    %c0_i32 = arith.constant 0 : i32
    %c0_i32_0 = arith.constant 0 : i32
    %c0_i32_1 = arith.constant 0 : i32
    return %arg0, %c0_i32, %c0_i32_0 : i32, i32, i32
  }
  func.func @transform_1(%arg0: i32, %arg1: i32) -> (i32, i32, i32) {
    %c0_i32 = arith.constant 0 : i32
    %c0_i32_0 = arith.constant 0 : i32
    %c0_i32_1 = arith.constant 0 : i32
    %c0_i32_2 = arith.constant 0 : i32
    return %c0_i32, %c0_i32_0, %c0_i32_1 : i32, i32, i32
  }
  func.func @transform_2(%arg0: i32, %arg1: i32) -> (i32, i32, i32) {
    %c0_i32 = arith.constant 0 : i32
    %c0_i32_0 = arith.constant 0 : i32
    return %arg0, %arg1, %c0_i32 : i32, i32, i32
  }
  func.func @transform_3(%arg0: i32, %arg1: i32) -> (i32, i32, i32, i32) {
    %c0_i32 = arith.constant 0 : i32
    %c0_i32_0 = arith.constant 0 : i32
    %c0_i32_1 = arith.constant 0 : i32
    return %arg0, %arg1, %c0_i32, %c0_i32_0 : i32, i32, i32, i32
  }
  func.func @transform_4(%arg0: i32, %arg1: i32) -> (i32, i32, i32, i32) {
    %c0_i32 = arith.constant 0 : i32
    %c0_i32_0 = arith.constant 0 : i32
    %c0_i32_1 = arith.constant 0 : i32
    return %arg0, %arg1, %c0_i32, %c0_i32_0 : i32, i32, i32, i32
  }
}

module attributes {stable_mosaic.version = 11 : i64} {
  func.func @kernel(%arg0: i32, %arg1: i32, %arg2: memref<1x64x8xbf16, #tpu.memory_space<vmem>>, %arg3: memref<1x8xf32, #tpu.memory_space<vmem>>, %arg4: memref<1x8xf32, #tpu.memory_space<vmem>>, %arg5: memref<1x64x8xbf16, #tpu.memory_space<vmem>>) attributes {dimension_semantics = [#tpu.dimension_semantics<parallel>, #tpu.dimension_semantics<parallel>], iteration_bounds = array<i64: 2, 1>, scalar_prefetch = 0 : i64, scratch_operands = 0 : i64, tpu.core_type = #tpu.core_type<tc>, window_params = [{transform_indices = @transform_0, window_bounds = array<i64: 1, 64, 8>}, {pipeline_mode = #tpu.pipeline_mode<synchronous>, transform_indices = @transform_1, window_bounds = array<i64: 1, 8>}, {pipeline_mode = #tpu.pipeline_mode<synchronous>, transform_indices = @transform_2, window_bounds = array<i64: 1, 8>}, {transform_indices = @transform_3, window_bounds = array<i64: 1, 64, 8>}]} {
    %c0 = arith.constant 0 : index
    %c0_0 = arith.constant 0 : index
    %c0_1 = arith.constant 0 : index
    %0 = vector.load %arg2[%c0, %c0_0, %c0_1] : memref<1x64x8xbf16, #tpu.memory_space<vmem>>, vector<1x64x8xbf16>
    %1 = vector.shape_cast %0 : vector<1x64x8xbf16> to vector<64x8xbf16>
    %2 = arith.extf %1 : vector<64x8xbf16> to vector<64x8xf32>
    %c0_2 = arith.constant 0 : index
    %c0_3 = arith.constant 0 : index
    %3 = vector.load %arg3[%c0_2, %c0_3] : memref<1x8xf32, #tpu.memory_space<vmem>>, vector<1x8xf32>
    %4 = vector.broadcast %3 : vector<1x8xf32> to vector<64x8xf32>
    %5 = arith.mulf %2, %4 : vector<64x8xf32>
    %c0_4 = arith.constant 0 : index
    %c0_5 = arith.constant 0 : index
    %6 = vector.load %arg4[%c0_4, %c0_5] : memref<1x8xf32, #tpu.memory_space<vmem>>, vector<1x8xf32>
    %7 = vector.broadcast %6 : vector<1x8xf32> to vector<64x8xf32>
    %8 = arith.addf %5, %7 : vector<64x8xf32>
    %cst = arith.constant 0.000000e+00 : f32
    %9 = vector.broadcast %cst : f32 to vector<64x8xf32>
    %10 = arith.maximumf %8, %9 : vector<64x8xf32>
    %11 = arith.truncf %10 : vector<64x8xf32> to vector<64x8xbf16>
    %c0_6 = arith.constant 0 : index
    %c0_7 = arith.constant 0 : index
    %c0_8 = arith.constant 0 : index
    %12 = vector.load %arg5[%c0_6, %c0_7, %c0_8] : memref<1x64x8xbf16, #tpu.memory_space<vmem>>, vector<1x64x8xbf16>
    %13 = vector.shape_cast %12 : vector<1x64x8xbf16> to vector<64x8xbf16>
    %14 = vector.shape_cast %11 : vector<64x8xbf16> to vector<1x64x8xbf16>
    tpu.vector_store %arg5[%c0_6, %c0_7, %c0_8], %14 {strides = array<i32>} : memref<1x64x8xbf16, #tpu.memory_space<vmem>>, vector<1x64x8xbf16>,
    return
  }
  func.func @transform_0(%arg0: i32, %arg1: i32) -> (i32, i32, i32) {
    %c0_i32 = arith.constant 0 : i32
    %c0_i32_0 = arith.constant 0 : i32
    return %arg0, %arg1, %c0_i32 : i32, i32, i32
  }
  func.func @transform_1(%arg0: i32, %arg1: i32) -> (i32, i32) {
    %c0_i32 = arith.constant 0 : i32
    %c0_i32_0 = arith.constant 0 : i32
    %c0_i32_1 = arith.constant 0 : i32
    return %c0_i32, %c0_i32_0 : i32, i32
  }
  func.func @transform_2(%arg0: i32, %arg1: i32) -> (i32, i32) {
    %c0_i32 = arith.constant 0 : i32
    %c0_i32_0 = arith.constant 0 : i32
    %c0_i32_1 = arith.constant 0 : i32
    return %c0_i32, %c0_i32_0 : i32, i32
  }
  func.func @transform_3(%arg0: i32, %arg1: i32) -> (i32, i32, i32) {
    %c0_i32 = arith.constant 0 : i32
    %c0_i32_0 = arith.constant 0 : i32
    return %arg0, %arg1, %c0_i32 : i32, i32, i32
  }
}

module attributes {stable_mosaic.version = 11 : i64} {
  func.func @kernel(%arg0: i32, %arg1: i32, %arg2: memref<1x70x8xbf16, #tpu.memory_space<vmem>>, %arg3: memref<7x8x8xbf16, #tpu.memory_space<vmem>>, %arg4: memref<1x64x8xbf16, #tpu.memory_space<vmem>>, %arg5: memref<1x1x1x8xf32, #tpu.memory_space<vmem>>, %arg6: memref<1x1x1x8xf32, #tpu.memory_space<vmem>>) attributes {dimension_semantics = [#tpu.dimension_semantics<parallel>, #tpu.dimension_semantics<parallel>], iteration_bounds = array<i64: 2, 1>, scalar_prefetch = 0 : i64, scratch_operands = 0 : i64, tpu.core_type = #tpu.core_type<tc>, window_params = [{transform_indices = @transform_0, window_bounds = array<i64: 1, 70, 8>}, {pipeline_mode = #tpu.pipeline_mode<synchronous>, transform_indices = @transform_1, window_bounds = array<i64: 7, 8, 8>}, {transform_indices = @transform_2, window_bounds = array<i64: 1, 64, 8>}, {transform_indices = @transform_3, window_bounds = array<i64: 1, 1, 1, 8>}, {transform_indices = @transform_4, window_bounds = array<i64: 1, 1, 1, 8>}]} {
    %cst = arith.constant 0.000000e+00 : f32
    %0 = vector.broadcast %cst : f32 to vector<64x8xf32>
    %c0 = arith.constant 0 : index
    %c0_0 = arith.constant 0 : index
    %c0_1 = arith.constant 0 : index
    %1 = vector.load %arg2[%c0, %c0_0, %c0_1] : memref<1x70x8xbf16, #tpu.memory_space<vmem>>, vector<1x64x8xbf16>
    %2 = vector.shape_cast %1 : vector<1x64x8xbf16> to vector<64x8xbf16>
    %c0_2 = arith.constant 0 : index
    %c0_3 = arith.constant 0 : index
    %c0_4 = arith.constant 0 : index
    %3 = vector.load %arg3[%c0_2, %c0_3, %c0_4] : memref<7x8x8xbf16, #tpu.memory_space<vmem>>, vector<1x8x8xbf16>
    %4 = vector.shape_cast %3 : vector<1x8x8xbf16> to vector<8x8xbf16>
    %cst_5 = arith.constant dense<0.000000e+00> : vector<64x8xf32>
    %5 = tpu.matmul %2, %4, %cst_5 {dimension_numbers = #tpu.dot_dimension_numbers<[1], [0], [0], [1], [0, 0, 1, 1], [], []>} : vector<64x8xbf16>, vector<8x8xbf16>, vector<64x8xf32> -> vector<64x8xf32>
    %6 = arith.addf %0, %5 : vector<64x8xf32>
    %c0_6 = arith.constant 0 : index
    %c1 = arith.constant 1 : index
    %c0_7 = arith.constant 0 : index
    %7 = vector.load %arg2[%c0_6, %c1, %c0_7] : memref<1x70x8xbf16, #tpu.memory_space<vmem>>, vector<1x64x8xbf16>
    %8 = vector.shape_cast %7 : vector<1x64x8xbf16> to vector<64x8xbf16>
    %c1_8 = arith.constant 1 : index
    %c0_9 = arith.constant 0 : index
    %c0_10 = arith.constant 0 : index
    %9 = vector.load %arg3[%c1_8, %c0_9, %c0_10] : memref<7x8x8xbf16, #tpu.memory_space<vmem>>, vector<1x8x8xbf16>
    %10 = vector.shape_cast %9 : vector<1x8x8xbf16> to vector<8x8xbf16>
    %cst_11 = arith.constant dense<0.000000e+00> : vector<64x8xf32>
    %11 = tpu.matmul %8, %10, %cst_11 {dimension_numbers = #tpu.dot_dimension_numbers<[1], [0], [0], [1], [0, 0, 1, 1], [], []>} : vector<64x8xbf16>, vector<8x8xbf16>, vector<64x8xf32> -> vector<64x8xf32>
    %12 = arith.addf %6, %11 : vector<64x8xf32>
    %c0_12 = arith.constant 0 : index
    %c2 = arith.constant 2 : index
    %c0_13 = arith.constant 0 : index
    %13 = vector.load %arg2[%c0_12, %c2, %c0_13] : memref<1x70x8xbf16, #tpu.memory_space<vmem>>, vector<1x64x8xbf16>
    %14 = vector.shape_cast %13 : vector<1x64x8xbf16> to vector<64x8xbf16>
    %c2_14 = arith.constant 2 : index
    %c0_15 = arith.constant 0 : index
    %c0_16 = arith.constant 0 : index
    %15 = vector.load %arg3[%c2_14, %c0_15, %c0_16] : memref<7x8x8xbf16, #tpu.memory_space<vmem>>, vector<1x8x8xbf16>
    %16 = vector.shape_cast %15 : vector<1x8x8xbf16> to vector<8x8xbf16>
    %cst_17 = arith.constant dense<0.000000e+00> : vector<64x8xf32>
    %17 = tpu.matmul %14, %16, %cst_17 {dimension_numbers = #tpu.dot_dimension_numbers<[1], [0], [0], [1], [0, 0, 1, 1], [], []>} : vector<64x8xbf16>, vector<8x8xbf16>, vector<64x8xf32> -> vector<64x8xf32>
    %18 = arith.addf %12, %17 : vector<64x8xf32>
    %c0_18 = arith.constant 0 : index
    %c3 = arith.constant 3 : index
    %c0_19 = arith.constant 0 : index
    %19 = vector.load %arg2[%c0_18, %c3, %c0_19] : memref<1x70x8xbf16, #tpu.memory_space<vmem>>, vector<1x64x8xbf16>
    %20 = vector.shape_cast %19 : vector<1x64x8xbf16> to vector<64x8xbf16>
    %c3_20 = arith.constant 3 : index
    %c0_21 = arith.constant 0 : index
    %c0_22 = arith.constant 0 : index
    %21 = vector.load %arg3[%c3_20, %c0_21, %c0_22] : memref<7x8x8xbf16, #tpu.memory_space<vmem>>, vector<1x8x8xbf16>
    %22 = vector.shape_cast %21 : vector<1x8x8xbf16> to vector<8x8xbf16>
    %cst_23 = arith.constant dense<0.000000e+00> : vector<64x8xf32>
    %23 = tpu.matmul %20, %22, %cst_23 {dimension_numbers = #tpu.dot_dimension_numbers<[1], [0], [0], [1], [0, 0, 1, 1], [], []>} : vector<64x8xbf16>, vector<8x8xbf16>, vector<64x8xf32> -> vector<64x8xf32>
    %24 = arith.addf %18, %23 : vector<64x8xf32>
    %c0_24 = arith.constant 0 : index
    %c4 = arith.constant 4 : index
    %c0_25 = arith.constant 0 : index
    %25 = vector.load %arg2[%c0_24, %c4, %c0_25] : memref<1x70x8xbf16, #tpu.memory_space<vmem>>, vector<1x64x8xbf16>
    %26 = vector.shape_cast %25 : vector<1x64x8xbf16> to vector<64x8xbf16>
    %c4_26 = arith.constant 4 : index
    %c0_27 = arith.constant 0 : index
    %c0_28 = arith.constant 0 : index
    %27 = vector.load %arg3[%c4_26, %c0_27, %c0_28] : memref<7x8x8xbf16, #tpu.memory_space<vmem>>, vector<1x8x8xbf16>
    %28 = vector.shape_cast %27 : vector<1x8x8xbf16> to vector<8x8xbf16>
    %cst_29 = arith.constant dense<0.000000e+00> : vector<64x8xf32>
    %29 = tpu.matmul %26, %28, %cst_29 {dimension_numbers = #tpu.dot_dimension_numbers<[1], [0], [0], [1], [0, 0, 1, 1], [], []>} : vector<64x8xbf16>, vector<8x8xbf16>, vector<64x8xf32> -> vector<64x8xf32>
    %30 = arith.addf %24, %29 : vector<64x8xf32>
    %c0_30 = arith.constant 0 : index
    %c5 = arith.constant 5 : index
    %c0_31 = arith.constant 0 : index
    %31 = vector.load %arg2[%c0_30, %c5, %c0_31] : memref<1x70x8xbf16, #tpu.memory_space<vmem>>, vector<1x64x8xbf16>
    %32 = vector.shape_cast %31 : vector<1x64x8xbf16> to vector<64x8xbf16>
    %c5_32 = arith.constant 5 : index
    %c0_33 = arith.constant 0 : index
    %c0_34 = arith.constant 0 : index
    %33 = vector.load %arg3[%c5_32, %c0_33, %c0_34] : memref<7x8x8xbf16, #tpu.memory_space<vmem>>, vector<1x8x8xbf16>
    %34 = vector.shape_cast %33 : vector<1x8x8xbf16> to vector<8x8xbf16>
    %cst_35 = arith.constant dense<0.000000e+00> : vector<64x8xf32>
    %35 = tpu.matmul %32, %34, %cst_35 {dimension_numbers = #tpu.dot_dimension_numbers<[1], [0], [0], [1], [0, 0, 1, 1], [], []>} : vector<64x8xbf16>, vector<8x8xbf16>, vector<64x8xf32> -> vector<64x8xf32>
    %36 = arith.addf %30, %35 : vector<64x8xf32>
    %c0_36 = arith.constant 0 : index
    %c6 = arith.constant 6 : index
    %c0_37 = arith.constant 0 : index
    %37 = vector.load %arg2[%c0_36, %c6, %c0_37] : memref<1x70x8xbf16, #tpu.memory_space<vmem>>, vector<1x64x8xbf16>
    %38 = vector.shape_cast %37 : vector<1x64x8xbf16> to vector<64x8xbf16>
    %c6_38 = arith.constant 6 : index
    %c0_39 = arith.constant 0 : index
    %c0_40 = arith.constant 0 : index
    %39 = vector.load %arg3[%c6_38, %c0_39, %c0_40] : memref<7x8x8xbf16, #tpu.memory_space<vmem>>, vector<1x8x8xbf16>
    %40 = vector.shape_cast %39 : vector<1x8x8xbf16> to vector<8x8xbf16>
    %cst_41 = arith.constant dense<0.000000e+00> : vector<64x8xf32>
    %41 = tpu.matmul %38, %40, %cst_41 {dimension_numbers = #tpu.dot_dimension_numbers<[1], [0], [0], [1], [0, 0, 1, 1], [], []>} : vector<64x8xbf16>, vector<8x8xbf16>, vector<64x8xf32> -> vector<64x8xf32>
    %42 = arith.addf %36, %41 : vector<64x8xf32>
    %43 = arith.truncf %42 : vector<64x8xf32> to vector<64x8xbf16>
    %c0_42 = arith.constant 0 : index
    %c0_43 = arith.constant 0 : index
    %c0_44 = arith.constant 0 : index
    %44 = vector.load %arg4[%c0_42, %c0_43, %c0_44] : memref<1x64x8xbf16, #tpu.memory_space<vmem>>, vector<1x64x8xbf16>
    %45 = vector.shape_cast %44 : vector<1x64x8xbf16> to vector<64x8xbf16>
    %46 = vector.shape_cast %43 : vector<64x8xbf16> to vector<1x64x8xbf16>
    tpu.vector_store %arg4[%c0_42, %c0_43, %c0_44], %46 {strides = array<i32>} : memref<1x64x8xbf16, #tpu.memory_space<vmem>>, vector<1x64x8xbf16>,
    %cst_45 = arith.constant dense<0.000000e+00> : vector<8xf32>
    %47 = vector.multi_reduction <add>, %42, %cst_45 [0] : vector<64x8xf32> to vector<8xf32>
    %48 = vector.shape_cast %47 : vector<8xf32> to vector<1x8xf32>
    %c0_46 = arith.constant 0 : index
    %c0_47 = arith.constant 0 : index
    %c0_48 = arith.constant 0 : index
    %c0_49 = arith.constant 0 : index
    %49 = vector.load %arg5[%c0_46, %c0_47, %c0_48, %c0_49] : memref<1x1x1x8xf32, #tpu.memory_space<vmem>>, vector<1x1x1x8xf32>
    %50 = vector.shape_cast %49 : vector<1x1x1x8xf32> to vector<1x8xf32>
    %51 = vector.shape_cast %48 : vector<1x8xf32> to vector<1x1x1x8xf32>
    tpu.vector_store %arg5[%c0_46, %c0_47, %c0_48, %c0_49], %51 {strides = array<i32>} : memref<1x1x1x8xf32, #tpu.memory_space<vmem>>, vector<1x1x1x8xf32>,
    %52 = arith.mulf %42, %42 : vector<64x8xf32>
    %cst_50 = arith.constant dense<0.000000e+00> : vector<8xf32>
    %53 = vector.multi_reduction <add>, %52, %cst_50 [0] : vector<64x8xf32> to vector<8xf32>
    %54 = vector.shape_cast %53 : vector<8xf32> to vector<1x8xf32>
    %c0_51 = arith.constant 0 : index
    %c0_52 = arith.constant 0 : index
    %c0_53 = arith.constant 0 : index
    %c0_54 = arith.constant 0 : index
    %55 = vector.load %arg6[%c0_51, %c0_52, %c0_53, %c0_54] : memref<1x1x1x8xf32, #tpu.memory_space<vmem>>, vector<1x1x1x8xf32>
    %56 = vector.shape_cast %55 : vector<1x1x1x8xf32> to vector<1x8xf32>
    %57 = vector.shape_cast %54 : vector<1x8xf32> to vector<1x1x1x8xf32>
    tpu.vector_store %arg6[%c0_51, %c0_52, %c0_53, %c0_54], %57 {strides = array<i32>} : memref<1x1x1x8xf32, #tpu.memory_space<vmem>>, vector<1x1x1x8xf32>,
    return
  }
  func.func @transform_0(%arg0: i32, %arg1: i32) -> (i32, i32, i32) {
    %c0_i32 = arith.constant 0 : i32
    %c0_i32_0 = arith.constant 0 : i32
    %c0_i32_1 = arith.constant 0 : i32
    return %arg0, %c0_i32, %c0_i32_0 : i32, i32, i32
  }
  func.func @transform_1(%arg0: i32, %arg1: i32) -> (i32, i32, i32) {
    %c0_i32 = arith.constant 0 : i32
    %c0_i32_0 = arith.constant 0 : i32
    %c0_i32_1 = arith.constant 0 : i32
    %c0_i32_2 = arith.constant 0 : i32
    return %c0_i32, %c0_i32_0, %c0_i32_1 : i32, i32, i32
  }
  func.func @transform_2(%arg0: i32, %arg1: i32) -> (i32, i32, i32) {
    %c0_i32 = arith.constant 0 : i32
    %c0_i32_0 = arith.constant 0 : i32
    return %arg0, %arg1, %c0_i32 : i32, i32, i32
  }
  func.func @transform_3(%arg0: i32, %arg1: i32) -> (i32, i32, i32, i32) {
    %c0_i32 = arith.constant 0 : i32
    %c0_i32_0 = arith.constant 0 : i32
    %c0_i32_1 = arith.constant 0 : i32
    return %arg0, %arg1, %c0_i32, %c0_i32_0 : i32, i32, i32, i32
  }
  func.func @transform_4(%arg0: i32, %arg1: i32) -> (i32, i32, i32, i32) {
    %c0_i32 = arith.constant 0 : i32
    %c0_i32_0 = arith.constant 0 : i32
    %c0_i32_1 = arith.constant 0 : i32
    return %arg0, %arg1, %c0_i32, %c0_i32_0 : i32, i32, i32, i32
  }
}

module attributes {stable_mosaic.version = 11 : i64} {
  func.func @_se_add_kernel(%arg0: i32, %arg1: i32, %arg2: memref<1x64x8xbf16, #tpu.memory_space<vmem>>, %arg3: memref<1x64x8xbf16, #tpu.memory_space<vmem>>, %arg4: memref<1x1x8xf32, #tpu.memory_space<vmem>>, %arg5: memref<1x64x8xbf16, #tpu.memory_space<vmem>>) attributes {dimension_semantics = [#tpu.dimension_semantics<parallel>, #tpu.dimension_semantics<parallel>], iteration_bounds = array<i64: 2, 1>, scalar_prefetch = 0 : i64, scratch_operands = 0 : i64, tpu.core_type = #tpu.core_type<tc>, window_params = [{transform_indices = @transform_0, window_bounds = array<i64: 1, 64, 8>}, {transform_indices = @transform_1, window_bounds = array<i64: 1, 64, 8>}, {transform_indices = @transform_2, window_bounds = array<i64: 1, 1, 8>}, {transform_indices = @transform_3, window_bounds = array<i64: 1, 64, 8>}]} {
    %c0 = arith.constant 0 : index
    %c0_0 = arith.constant 0 : index
    %c0_1 = arith.constant 0 : index
    %0 = vector.load %arg2[%c0, %c0_0, %c0_1] : memref<1x64x8xbf16, #tpu.memory_space<vmem>>, vector<1x64x8xbf16>
    %1 = vector.shape_cast %0 : vector<1x64x8xbf16> to vector<64x8xbf16>
    %2 = arith.extf %1 : vector<64x8xbf16> to vector<64x8xf32>
    %c0_2 = arith.constant 0 : index
    %c0_3 = arith.constant 0 : index
    %c0_4 = arith.constant 0 : index
    %3 = vector.load %arg3[%c0_2, %c0_3, %c0_4] : memref<1x64x8xbf16, #tpu.memory_space<vmem>>, vector<1x64x8xbf16>
    %4 = vector.shape_cast %3 : vector<1x64x8xbf16> to vector<64x8xbf16>
    %5 = arith.extf %4 : vector<64x8xbf16> to vector<64x8xf32>
    %6 = arith.addf %2, %5 : vector<64x8xf32>
    %c0_5 = arith.constant 0 : index
    %c0_6 = arith.constant 0 : index
    %c0_7 = arith.constant 0 : index
    %7 = vector.load %arg4[%c0_5, %c0_6, %c0_7] : memref<1x1x8xf32, #tpu.memory_space<vmem>>, vector<1x1x8xf32>
    %8 = vector.shape_cast %7 : vector<1x1x8xf32> to vector<1x8xf32>
    %9 = vector.broadcast %8 : vector<1x8xf32> to vector<64x8xf32>
    %10 = arith.addf %6, %9 : vector<64x8xf32>
    %11 = arith.truncf %10 : vector<64x8xf32> to vector<64x8xbf16>
    %c0_8 = arith.constant 0 : index
    %c0_9 = arith.constant 0 : index
    %c0_10 = arith.constant 0 : index
    %12 = vector.load %arg5[%c0_8, %c0_9, %c0_10] : memref<1x64x8xbf16, #tpu.memory_space<vmem>>, vector<1x64x8xbf16>
    %13 = vector.shape_cast %12 : vector<1x64x8xbf16> to vector<64x8xbf16>
    %14 = vector.shape_cast %11 : vector<64x8xbf16> to vector<1x64x8xbf16>
    tpu.vector_store %arg5[%c0_8, %c0_9, %c0_10], %14 {strides = array<i32>} : memref<1x64x8xbf16, #tpu.memory_space<vmem>>, vector<1x64x8xbf16>,
    return
  }
  func.func @transform_0(%arg0: i32, %arg1: i32) -> (i32, i32, i32) {
    %c0_i32 = arith.constant 0 : i32
    %c0_i32_0 = arith.constant 0 : i32
    return %arg0, %arg1, %c0_i32 : i32, i32, i32
  }
  func.func @transform_1(%arg0: i32, %arg1: i32) -> (i32, i32, i32) {
    %c0_i32 = arith.constant 0 : i32
    %c0_i32_0 = arith.constant 0 : i32
    return %arg0, %arg1, %c0_i32 : i32, i32, i32
  }
  func.func @transform_2(%arg0: i32, %arg1: i32) -> (i32, i32, i32) {
    %c0_i32 = arith.constant 0 : i32
    %c0_i32_0 = arith.constant 0 : i32
    %c0_i32_1 = arith.constant 0 : i32
    return %arg0, %c0_i32, %c0_i32_0 : i32, i32, i32
  }
  func.func @transform_3(%arg0: i32, %arg1: i32) -> (i32, i32, i32) {
    %c0_i32 = arith.constant 0 : i32
    %c0_i32_0 = arith.constant 0 : i32
    return %arg0, %arg1, %c0_i32 : i32, i32, i32
  }
}

module attributes {stable_mosaic.version = 11 : i64} {
  func.func @_conv_matmul_kernel(%arg0: i32, %arg1: memref<32x56xbf16, #tpu.memory_space<vmem>>, %arg2: memref<56x16xbf16, #tpu.memory_space<vmem>>, %arg3: memref<32x16xbf16, #tpu.memory_space<vmem>>, %arg4: memref<1x1x16xf32, #tpu.memory_space<vmem>>, %arg5: memref<1x1x16xf32, #tpu.memory_space<vmem>>) attributes {dimension_semantics = [#tpu.dimension_semantics<parallel>], iteration_bounds = array<i64: 1>, scalar_prefetch = 0 : i64, scratch_operands = 0 : i64, tpu.core_type = #tpu.core_type<tc>, window_params = [{transform_indices = @transform_0, window_bounds = array<i64: 32, 56>}, {pipeline_mode = #tpu.pipeline_mode<synchronous>, transform_indices = @transform_1, window_bounds = array<i64: 56, 16>}, {transform_indices = @transform_2, window_bounds = array<i64: 32, 16>}, {transform_indices = @transform_3, window_bounds = array<i64: 1, 1, 16>}, {transform_indices = @transform_4, window_bounds = array<i64: 1, 1, 16>}]} {
    %c0 = arith.constant 0 : index
    %c0_0 = arith.constant 0 : index
    %0 = vector.load %arg1[%c0, %c0_0] : memref<32x56xbf16, #tpu.memory_space<vmem>>, vector<32x56xbf16>
    %c0_1 = arith.constant 0 : index
    %c0_2 = arith.constant 0 : index
    %1 = vector.load %arg2[%c0_1, %c0_2] : memref<56x16xbf16, #tpu.memory_space<vmem>>, vector<56x16xbf16>
    %cst = arith.constant dense<0.000000e+00> : vector<32x16xf32>
    %2 = tpu.matmul %0, %1, %cst {dimension_numbers = #tpu.dot_dimension_numbers<[1], [0], [0], [1], [0, 0, 1, 1], [], []>} : vector<32x56xbf16>, vector<56x16xbf16>, vector<32x16xf32> -> vector<32x16xf32>
    %3 = arith.truncf %2 : vector<32x16xf32> to vector<32x16xbf16>
    %c0_3 = arith.constant 0 : index
    %c0_4 = arith.constant 0 : index
    %4 = vector.load %arg3[%c0_3, %c0_4] : memref<32x16xbf16, #tpu.memory_space<vmem>>, vector<32x16xbf16>
    tpu.vector_store %arg3[%c0_3, %c0_4], %3 {strides = array<i32>} : memref<32x16xbf16, #tpu.memory_space<vmem>>, vector<32x16xbf16>,
    %cst_5 = arith.constant dense<0.000000e+00> : vector<16xf32>
    %5 = vector.multi_reduction <add>, %2, %cst_5 [0] : vector<32x16xf32> to vector<16xf32>
    %6 = vector.shape_cast %5 : vector<16xf32> to vector<1x16xf32>
    %c0_6 = arith.constant 0 : index
    %c0_7 = arith.constant 0 : index
    %c0_8 = arith.constant 0 : index
    %7 = vector.load %arg4[%c0_6, %c0_7, %c0_8] : memref<1x1x16xf32, #tpu.memory_space<vmem>>, vector<1x1x16xf32>
    %8 = vector.shape_cast %7 : vector<1x1x16xf32> to vector<1x16xf32>
    %9 = vector.shape_cast %6 : vector<1x16xf32> to vector<1x1x16xf32>
    tpu.vector_store %arg4[%c0_6, %c0_7, %c0_8], %9 {strides = array<i32>} : memref<1x1x16xf32, #tpu.memory_space<vmem>>, vector<1x1x16xf32>,
    %10 = arith.mulf %2, %2 : vector<32x16xf32>
    %cst_9 = arith.constant dense<0.000000e+00> : vector<16xf32>
    %11 = vector.multi_reduction <add>, %10, %cst_9 [0] : vector<32x16xf32> to vector<16xf32>
    %12 = vector.shape_cast %11 : vector<16xf32> to vector<1x16xf32>
    %c0_10 = arith.constant 0 : index
    %c0_11 = arith.constant 0 : index
    %c0_12 = arith.constant 0 : index
    %13 = vector.load %arg5[%c0_10, %c0_11, %c0_12] : memref<1x1x16xf32, #tpu.memory_space<vmem>>, vector<1x1x16xf32>
    %14 = vector.shape_cast %13 : vector<1x1x16xf32> to vector<1x16xf32>
    %15 = vector.shape_cast %12 : vector<1x16xf32> to vector<1x1x16xf32>
    tpu.vector_store %arg5[%c0_10, %c0_11, %c0_12], %15 {strides = array<i32>} : memref<1x1x16xf32, #tpu.memory_space<vmem>>, vector<1x1x16xf32>,
    return
  }
  func.func @transform_0(%arg0: i32) -> (i32, i32) {
    %c0_i32 = arith.constant 0 : i32
    %c0_i32_0 = arith.constant 0 : i32
    return %arg0, %c0_i32 : i32, i32
  }
  func.func @transform_1(%arg0: i32) -> (i32, i32) {
    %c0_i32 = arith.constant 0 : i32
    %c0_i32_0 = arith.constant 0 : i32
    %c0_i32_1 = arith.constant 0 : i32
    return %c0_i32, %c0_i32_0 : i32, i32
  }
  func.func @transform_2(%arg0: i32) -> (i32, i32) {
    %c0_i32 = arith.constant 0 : i32
    %c0_i32_0 = arith.constant 0 : i32
    return %arg0, %c0_i32 : i32, i32
  }
  func.func @transform_3(%arg0: i32) -> (i32, i32, i32) {
    %c0_i32 = arith.constant 0 : i32
    %c0_i32_0 = arith.constant 0 : i32
    %c0_i32_1 = arith.constant 0 : i32
    return %arg0, %c0_i32, %c0_i32_0 : i32, i32, i32
  }
  func.func @transform_4(%arg0: i32) -> (i32, i32, i32) {
    %c0_i32 = arith.constant 0 : i32
    %c0_i32_0 = arith.constant 0 : i32
    %c0_i32_1 = arith.constant 0 : i32
    return %arg0, %c0_i32, %c0_i32_0 : i32, i32, i32
  }
}

module attributes {stable_mosaic.version = 11 : i64} {
  func.func @kernel(%arg0: i32, %arg1: i32, %arg2: memref<1x22x16xbf16, #tpu.memory_space<vmem>>, %arg3: memref<7x16x16xbf16, #tpu.memory_space<vmem>>, %arg4: memref<1x16x16xbf16, #tpu.memory_space<vmem>>, %arg5: memref<1x1x1x16xf32, #tpu.memory_space<vmem>>, %arg6: memref<1x1x1x16xf32, #tpu.memory_space<vmem>>) attributes {dimension_semantics = [#tpu.dimension_semantics<parallel>, #tpu.dimension_semantics<parallel>], iteration_bounds = array<i64: 2, 1>, scalar_prefetch = 0 : i64, scratch_operands = 0 : i64, tpu.core_type = #tpu.core_type<tc>, window_params = [{transform_indices = @transform_0, window_bounds = array<i64: 1, 22, 16>}, {pipeline_mode = #tpu.pipeline_mode<synchronous>, transform_indices = @transform_1, window_bounds = array<i64: 7, 16, 16>}, {transform_indices = @transform_2, window_bounds = array<i64: 1, 16, 16>}, {transform_indices = @transform_3, window_bounds = array<i64: 1, 1, 1, 16>}, {transform_indices = @transform_4, window_bounds = array<i64: 1, 1, 1, 16>}]} {
    %cst = arith.constant 0.000000e+00 : f32
    %0 = vector.broadcast %cst : f32 to vector<16x16xf32>
    %c0 = arith.constant 0 : index
    %c0_0 = arith.constant 0 : index
    %c0_1 = arith.constant 0 : index
    %1 = vector.load %arg2[%c0, %c0_0, %c0_1] : memref<1x22x16xbf16, #tpu.memory_space<vmem>>, vector<1x16x16xbf16>
    %2 = vector.shape_cast %1 : vector<1x16x16xbf16> to vector<16x16xbf16>
    %c0_2 = arith.constant 0 : index
    %c0_3 = arith.constant 0 : index
    %c0_4 = arith.constant 0 : index
    %3 = vector.load %arg3[%c0_2, %c0_3, %c0_4] : memref<7x16x16xbf16, #tpu.memory_space<vmem>>, vector<1x16x16xbf16>
    %4 = vector.shape_cast %3 : vector<1x16x16xbf16> to vector<16x16xbf16>
    %cst_5 = arith.constant dense<0.000000e+00> : vector<16x16xf32>
    %5 = tpu.matmul %2, %4, %cst_5 {dimension_numbers = #tpu.dot_dimension_numbers<[1], [0], [0], [1], [0, 0, 1, 1], [], []>} : vector<16x16xbf16>, vector<16x16xbf16>, vector<16x16xf32> -> vector<16x16xf32>
    %6 = arith.addf %0, %5 : vector<16x16xf32>
    %c0_6 = arith.constant 0 : index
    %c1 = arith.constant 1 : index
    %c0_7 = arith.constant 0 : index
    %7 = vector.load %arg2[%c0_6, %c1, %c0_7] : memref<1x22x16xbf16, #tpu.memory_space<vmem>>, vector<1x16x16xbf16>
    %8 = vector.shape_cast %7 : vector<1x16x16xbf16> to vector<16x16xbf16>
    %c1_8 = arith.constant 1 : index
    %c0_9 = arith.constant 0 : index
    %c0_10 = arith.constant 0 : index
    %9 = vector.load %arg3[%c1_8, %c0_9, %c0_10] : memref<7x16x16xbf16, #tpu.memory_space<vmem>>, vector<1x16x16xbf16>
    %10 = vector.shape_cast %9 : vector<1x16x16xbf16> to vector<16x16xbf16>
    %cst_11 = arith.constant dense<0.000000e+00> : vector<16x16xf32>
    %11 = tpu.matmul %8, %10, %cst_11 {dimension_numbers = #tpu.dot_dimension_numbers<[1], [0], [0], [1], [0, 0, 1, 1], [], []>} : vector<16x16xbf16>, vector<16x16xbf16>, vector<16x16xf32> -> vector<16x16xf32>
    %12 = arith.addf %6, %11 : vector<16x16xf32>
    %c0_12 = arith.constant 0 : index
    %c2 = arith.constant 2 : index
    %c0_13 = arith.constant 0 : index
    %13 = vector.load %arg2[%c0_12, %c2, %c0_13] : memref<1x22x16xbf16, #tpu.memory_space<vmem>>, vector<1x16x16xbf16>
    %14 = vector.shape_cast %13 : vector<1x16x16xbf16> to vector<16x16xbf16>
    %c2_14 = arith.constant 2 : index
    %c0_15 = arith.constant 0 : index
    %c0_16 = arith.constant 0 : index
    %15 = vector.load %arg3[%c2_14, %c0_15, %c0_16] : memref<7x16x16xbf16, #tpu.memory_space<vmem>>, vector<1x16x16xbf16>
    %16 = vector.shape_cast %15 : vector<1x16x16xbf16> to vector<16x16xbf16>
    %cst_17 = arith.constant dense<0.000000e+00> : vector<16x16xf32>
    %17 = tpu.matmul %14, %16, %cst_17 {dimension_numbers = #tpu.dot_dimension_numbers<[1], [0], [0], [1], [0, 0, 1, 1], [], []>} : vector<16x16xbf16>, vector<16x16xbf16>, vector<16x16xf32> -> vector<16x16xf32>
    %18 = arith.addf %12, %17 : vector<16x16xf32>
    %c0_18 = arith.constant 0 : index
    %c3 = arith.constant 3 : index
    %c0_19 = arith.constant 0 : index
    %19 = vector.load %arg2[%c0_18, %c3, %c0_19] : memref<1x22x16xbf16, #tpu.memory_space<vmem>>, vector<1x16x16xbf16>
    %20 = vector.shape_cast %19 : vector<1x16x16xbf16> to vector<16x16xbf16>
    %c3_20 = arith.constant 3 : index
    %c0_21 = arith.constant 0 : index
    %c0_22 = arith.constant 0 : index
    %21 = vector.load %arg3[%c3_20, %c0_21, %c0_22] : memref<7x16x16xbf16, #tpu.memory_space<vmem>>, vector<1x16x16xbf16>
    %22 = vector.shape_cast %21 : vector<1x16x16xbf16> to vector<16x16xbf16>
    %cst_23 = arith.constant dense<0.000000e+00> : vector<16x16xf32>
    %23 = tpu.matmul %20, %22, %cst_23 {dimension_numbers = #tpu.dot_dimension_numbers<[1], [0], [0], [1], [0, 0, 1, 1], [], []>} : vector<16x16xbf16>, vector<16x16xbf16>, vector<16x16xf32> -> vector<16x16xf32>
    %24 = arith.addf %18, %23 : vector<16x16xf32>
    %c0_24 = arith.constant 0 : index
    %c4 = arith.constant 4 : index
    %c0_25 = arith.constant 0 : index
    %25 = vector.load %arg2[%c0_24, %c4, %c0_25] : memref<1x22x16xbf16, #tpu.memory_space<vmem>>, vector<1x16x16xbf16>
    %26 = vector.shape_cast %25 : vector<1x16x16xbf16> to vector<16x16xbf16>
    %c4_26 = arith.constant 4 : index
    %c0_27 = arith.constant 0 : index
    %c0_28 = arith.constant 0 : index
    %27 = vector.load %arg3[%c4_26, %c0_27, %c0_28] : memref<7x16x16xbf16, #tpu.memory_space<vmem>>, vector<1x16x16xbf16>
    %28 = vector.shape_cast %27 : vector<1x16x16xbf16> to vector<16x16xbf16>
    %cst_29 = arith.constant dense<0.000000e+00> : vector<16x16xf32>
    %29 = tpu.matmul %26, %28, %cst_29 {dimension_numbers = #tpu.dot_dimension_numbers<[1], [0], [0], [1], [0, 0, 1, 1], [], []>} : vector<16x16xbf16>, vector<16x16xbf16>, vector<16x16xf32> -> vector<16x16xf32>
    %30 = arith.addf %24, %29 : vector<16x16xf32>
    %c0_30 = arith.constant 0 : index
    %c5 = arith.constant 5 : index
    %c0_31 = arith.constant 0 : index
    %31 = vector.load %arg2[%c0_30, %c5, %c0_31] : memref<1x22x16xbf16, #tpu.memory_space<vmem>>, vector<1x16x16xbf16>
    %32 = vector.shape_cast %31 : vector<1x16x16xbf16> to vector<16x16xbf16>
    %c5_32 = arith.constant 5 : index
    %c0_33 = arith.constant 0 : index
    %c0_34 = arith.constant 0 : index
    %33 = vector.load %arg3[%c5_32, %c0_33, %c0_34] : memref<7x16x16xbf16, #tpu.memory_space<vmem>>, vector<1x16x16xbf16>
    %34 = vector.shape_cast %33 : vector<1x16x16xbf16> to vector<16x16xbf16>
    %cst_35 = arith.constant dense<0.000000e+00> : vector<16x16xf32>
    %35 = tpu.matmul %32, %34, %cst_35 {dimension_numbers = #tpu.dot_dimension_numbers<[1], [0], [0], [1], [0, 0, 1, 1], [], []>} : vector<16x16xbf16>, vector<16x16xbf16>, vector<16x16xf32> -> vector<16x16xf32>
    %36 = arith.addf %30, %35 : vector<16x16xf32>
    %c0_36 = arith.constant 0 : index
    %c6 = arith.constant 6 : index
    %c0_37 = arith.constant 0 : index
    %37 = vector.load %arg2[%c0_36, %c6, %c0_37] : memref<1x22x16xbf16, #tpu.memory_space<vmem>>, vector<1x16x16xbf16>
    %38 = vector.shape_cast %37 : vector<1x16x16xbf16> to vector<16x16xbf16>
    %c6_38 = arith.constant 6 : index
    %c0_39 = arith.constant 0 : index
    %c0_40 = arith.constant 0 : index
    %39 = vector.load %arg3[%c6_38, %c0_39, %c0_40] : memref<7x16x16xbf16, #tpu.memory_space<vmem>>, vector<1x16x16xbf16>
    %40 = vector.shape_cast %39 : vector<1x16x16xbf16> to vector<16x16xbf16>
    %cst_41 = arith.constant dense<0.000000e+00> : vector<16x16xf32>
    %41 = tpu.matmul %38, %40, %cst_41 {dimension_numbers = #tpu.dot_dimension_numbers<[1], [0], [0], [1], [0, 0, 1, 1], [], []>} : vector<16x16xbf16>, vector<16x16xbf16>, vector<16x16xf32> -> vector<16x16xf32>
    %42 = arith.addf %36, %41 : vector<16x16xf32>
    %43 = arith.truncf %42 : vector<16x16xf32> to vector<16x16xbf16>
    %c0_42 = arith.constant 0 : index
    %c0_43 = arith.constant 0 : index
    %c0_44 = arith.constant 0 : index
    %44 = vector.load %arg4[%c0_42, %c0_43, %c0_44] : memref<1x16x16xbf16, #tpu.memory_space<vmem>>, vector<1x16x16xbf16>
    %45 = vector.shape_cast %44 : vector<1x16x16xbf16> to vector<16x16xbf16>
    %46 = vector.shape_cast %43 : vector<16x16xbf16> to vector<1x16x16xbf16>
    tpu.vector_store %arg4[%c0_42, %c0_43, %c0_44], %46 {strides = array<i32>} : memref<1x16x16xbf16, #tpu.memory_space<vmem>>, vector<1x16x16xbf16>,
    %cst_45 = arith.constant dense<0.000000e+00> : vector<16xf32>
    %47 = vector.multi_reduction <add>, %42, %cst_45 [0] : vector<16x16xf32> to vector<16xf32>
    %48 = vector.shape_cast %47 : vector<16xf32> to vector<1x16xf32>
    %c0_46 = arith.constant 0 : index
    %c0_47 = arith.constant 0 : index
    %c0_48 = arith.constant 0 : index
    %c0_49 = arith.constant 0 : index
    %49 = vector.load %arg5[%c0_46, %c0_47, %c0_48, %c0_49] : memref<1x1x1x16xf32, #tpu.memory_space<vmem>>, vector<1x1x1x16xf32>
    %50 = vector.shape_cast %49 : vector<1x1x1x16xf32> to vector<1x16xf32>
    %51 = vector.shape_cast %48 : vector<1x16xf32> to vector<1x1x1x16xf32>
    tpu.vector_store %arg5[%c0_46, %c0_47, %c0_48, %c0_49], %51 {strides = array<i32>} : memref<1x1x1x16xf32, #tpu.memory_space<vmem>>, vector<1x1x1x16xf32>,
    %52 = arith.mulf %42, %42 : vector<16x16xf32>
    %cst_50 = arith.constant dense<0.000000e+00> : vector<16xf32>
    %53 = vector.multi_reduction <add>, %52, %cst_50 [0] : vector<16x16xf32> to vector<16xf32>
    %54 = vector.shape_cast %53 : vector<16xf32> to vector<1x16xf32>
    %c0_51 = arith.constant 0 : index
    %c0_52 = arith.constant 0 : index
    %c0_53 = arith.constant 0 : index
    %c0_54 = arith.constant 0 : index
    %55 = vector.load %arg6[%c0_51, %c0_52, %c0_53, %c0_54] : memref<1x1x1x16xf32, #tpu.memory_space<vmem>>, vector<1x1x1x16xf32>
    %56 = vector.shape_cast %55 : vector<1x1x1x16xf32> to vector<1x16xf32>
    %57 = vector.shape_cast %54 : vector<1x16xf32> to vector<1x1x1x16xf32>
    tpu.vector_store %arg6[%c0_51, %c0_52, %c0_53, %c0_54], %57 {strides = array<i32>} : memref<1x1x1x16xf32, #tpu.memory_space<vmem>>, vector<1x1x1x16xf32>,
    return
  }
  func.func @transform_0(%arg0: i32, %arg1: i32) -> (i32, i32, i32) {
    %c0_i32 = arith.constant 0 : i32
    %c0_i32_0 = arith.constant 0 : i32
    %c0_i32_1 = arith.constant 0 : i32
    return %arg0, %c0_i32, %c0_i32_0 : i32, i32, i32
  }
  func.func @transform_1(%arg0: i32, %arg1: i32) -> (i32, i32, i32) {
    %c0_i32 = arith.constant 0 : i32
    %c0_i32_0 = arith.constant 0 : i32
    %c0_i32_1 = arith.constant 0 : i32
    %c0_i32_2 = arith.constant 0 : i32
    return %c0_i32, %c0_i32_0, %c0_i32_1 : i32, i32, i32
  }
  func.func @transform_2(%arg0: i32, %arg1: i32) -> (i32, i32, i32) {
    %c0_i32 = arith.constant 0 : i32
    %c0_i32_0 = arith.constant 0 : i32
    return %arg0, %arg1, %c0_i32 : i32, i32, i32
  }
  func.func @transform_3(%arg0: i32, %arg1: i32) -> (i32, i32, i32, i32) {
    %c0_i32 = arith.constant 0 : i32
    %c0_i32_0 = arith.constant 0 : i32
    %c0_i32_1 = arith.constant 0 : i32
    return %arg0, %arg1, %c0_i32, %c0_i32_0 : i32, i32, i32, i32
  }
  func.func @transform_4(%arg0: i32, %arg1: i32) -> (i32, i32, i32, i32) {
    %c0_i32 = arith.constant 0 : i32
    %c0_i32_0 = arith.constant 0 : i32
    %c0_i32_1 = arith.constant 0 : i32
    return %arg0, %arg1, %c0_i32, %c0_i32_0 : i32, i32, i32, i32
  }
}

module attributes {stable_mosaic.version = 11 : i64} {
  func.func @kernel(%arg0: i32, %arg1: memref<32x16xbf16, #tpu.memory_space<vmem>>, %arg2: memref<1x16xf32, #tpu.memory_space<vmem>>, %arg3: memref<1x16xf32, #tpu.memory_space<vmem>>, %arg4: memref<32x16xbf16, #tpu.memory_space<vmem>>) attributes {dimension_semantics = [#tpu.dimension_semantics<parallel>], iteration_bounds = array<i64: 1>, scalar_prefetch = 0 : i64, scratch_operands = 0 : i64, tpu.core_type = #tpu.core_type<tc>, window_params = [{transform_indices = @transform_0, window_bounds = array<i64: 32, 16>}, {pipeline_mode = #tpu.pipeline_mode<synchronous>, transform_indices = @transform_1, window_bounds = array<i64: 1, 16>}, {pipeline_mode = #tpu.pipeline_mode<synchronous>, transform_indices = @transform_2, window_bounds = array<i64: 1, 16>}, {transform_indices = @transform_3, window_bounds = array<i64: 32, 16>}]} {
    %c0 = arith.constant 0 : index
    %c0_0 = arith.constant 0 : index
    %0 = vector.load %arg1[%c0, %c0_0] : memref<32x16xbf16, #tpu.memory_space<vmem>>, vector<32x16xbf16>
    %1 = arith.extf %0 : vector<32x16xbf16> to vector<32x16xf32>
    %c0_1 = arith.constant 0 : index
    %c0_2 = arith.constant 0 : index
    %2 = vector.load %arg2[%c0_1, %c0_2] : memref<1x16xf32, #tpu.memory_space<vmem>>, vector<1x16xf32>
    %3 = vector.broadcast %2 : vector<1x16xf32> to vector<32x16xf32>
    %4 = arith.mulf %1, %3 : vector<32x16xf32>
    %c0_3 = arith.constant 0 : index
    %c0_4 = arith.constant 0 : index
    %5 = vector.load %arg3[%c0_3, %c0_4] : memref<1x16xf32, #tpu.memory_space<vmem>>, vector<1x16xf32>
    %6 = vector.broadcast %5 : vector<1x16xf32> to vector<32x16xf32>
    %7 = arith.addf %4, %6 : vector<32x16xf32>
    %cst = arith.constant 0.000000e+00 : f32
    %8 = vector.broadcast %cst : f32 to vector<32x16xf32>
    %9 = arith.maximumf %7, %8 : vector<32x16xf32>
    %10 = arith.truncf %9 : vector<32x16xf32> to vector<32x16xbf16>
    %c0_5 = arith.constant 0 : index
    %c0_6 = arith.constant 0 : index
    %11 = vector.load %arg4[%c0_5, %c0_6] : memref<32x16xbf16, #tpu.memory_space<vmem>>, vector<32x16xbf16>
    tpu.vector_store %arg4[%c0_5, %c0_6], %10 {strides = array<i32>} : memref<32x16xbf16, #tpu.memory_space<vmem>>, vector<32x16xbf16>,
    return
  }
  func.func @transform_0(%arg0: i32) -> (i32, i32) {
    %c0_i32 = arith.constant 0 : i32
    %c0_i32_0 = arith.constant 0 : i32
    return %arg0, %c0_i32 : i32, i32
  }
  func.func @transform_1(%arg0: i32) -> (i32, i32) {
    %c0_i32 = arith.constant 0 : i32
    %c0_i32_0 = arith.constant 0 : i32
    %c0_i32_1 = arith.constant 0 : i32
    return %c0_i32, %c0_i32_0 : i32, i32
  }
  func.func @transform_2(%arg0: i32) -> (i32, i32) {
    %c0_i32 = arith.constant 0 : i32
    %c0_i32_0 = arith.constant 0 : i32
    %c0_i32_1 = arith.constant 0 : i32
    return %c0_i32, %c0_i32_0 : i32, i32
  }
  func.func @transform_3(%arg0: i32) -> (i32, i32) {
    %c0_i32 = arith.constant 0 : i32
    %c0_i32_0 = arith.constant 0 : i32
    return %arg0, %c0_i32 : i32, i32
  }
}

module attributes {stable_mosaic.version = 11 : i64} {
  func.func @kernel(%arg0: i32, %arg1: i32, %arg2: memref<1x16x16xbf16, #tpu.memory_space<vmem>>, %arg3: memref<1x16xf32, #tpu.memory_space<vmem>>, %arg4: memref<1x16xf32, #tpu.memory_space<vmem>>, %arg5: memref<1x16x16xbf16, #tpu.memory_space<vmem>>) attributes {dimension_semantics = [#tpu.dimension_semantics<parallel>, #tpu.dimension_semantics<parallel>], iteration_bounds = array<i64: 2, 1>, scalar_prefetch = 0 : i64, scratch_operands = 0 : i64, tpu.core_type = #tpu.core_type<tc>, window_params = [{transform_indices = @transform_0, window_bounds = array<i64: 1, 16, 16>}, {pipeline_mode = #tpu.pipeline_mode<synchronous>, transform_indices = @transform_1, window_bounds = array<i64: 1, 16>}, {pipeline_mode = #tpu.pipeline_mode<synchronous>, transform_indices = @transform_2, window_bounds = array<i64: 1, 16>}, {transform_indices = @transform_3, window_bounds = array<i64: 1, 16, 16>}]} {
    %c0 = arith.constant 0 : index
    %c0_0 = arith.constant 0 : index
    %c0_1 = arith.constant 0 : index
    %0 = vector.load %arg2[%c0, %c0_0, %c0_1] : memref<1x16x16xbf16, #tpu.memory_space<vmem>>, vector<1x16x16xbf16>
    %1 = vector.shape_cast %0 : vector<1x16x16xbf16> to vector<16x16xbf16>
    %2 = arith.extf %1 : vector<16x16xbf16> to vector<16x16xf32>
    %c0_2 = arith.constant 0 : index
    %c0_3 = arith.constant 0 : index
    %3 = vector.load %arg3[%c0_2, %c0_3] : memref<1x16xf32, #tpu.memory_space<vmem>>, vector<1x16xf32>
    %4 = vector.broadcast %3 : vector<1x16xf32> to vector<16x16xf32>
    %5 = arith.mulf %2, %4 : vector<16x16xf32>
    %c0_4 = arith.constant 0 : index
    %c0_5 = arith.constant 0 : index
    %6 = vector.load %arg4[%c0_4, %c0_5] : memref<1x16xf32, #tpu.memory_space<vmem>>, vector<1x16xf32>
    %7 = vector.broadcast %6 : vector<1x16xf32> to vector<16x16xf32>
    %8 = arith.addf %5, %7 : vector<16x16xf32>
    %cst = arith.constant 0.000000e+00 : f32
    %9 = vector.broadcast %cst : f32 to vector<16x16xf32>
    %10 = arith.maximumf %8, %9 : vector<16x16xf32>
    %11 = arith.truncf %10 : vector<16x16xf32> to vector<16x16xbf16>
    %c0_6 = arith.constant 0 : index
    %c0_7 = arith.constant 0 : index
    %c0_8 = arith.constant 0 : index
    %12 = vector.load %arg5[%c0_6, %c0_7, %c0_8] : memref<1x16x16xbf16, #tpu.memory_space<vmem>>, vector<1x16x16xbf16>
    %13 = vector.shape_cast %12 : vector<1x16x16xbf16> to vector<16x16xbf16>
    %14 = vector.shape_cast %11 : vector<16x16xbf16> to vector<1x16x16xbf16>
    tpu.vector_store %arg5[%c0_6, %c0_7, %c0_8], %14 {strides = array<i32>} : memref<1x16x16xbf16, #tpu.memory_space<vmem>>, vector<1x16x16xbf16>,
    return
  }
  func.func @transform_0(%arg0: i32, %arg1: i32) -> (i32, i32, i32) {
    %c0_i32 = arith.constant 0 : i32
    %c0_i32_0 = arith.constant 0 : i32
    return %arg0, %arg1, %c0_i32 : i32, i32, i32
  }
  func.func @transform_1(%arg0: i32, %arg1: i32) -> (i32, i32) {
    %c0_i32 = arith.constant 0 : i32
    %c0_i32_0 = arith.constant 0 : i32
    %c0_i32_1 = arith.constant 0 : i32
    return %c0_i32, %c0_i32_0 : i32, i32
  }
  func.func @transform_2(%arg0: i32, %arg1: i32) -> (i32, i32) {
    %c0_i32 = arith.constant 0 : i32
    %c0_i32_0 = arith.constant 0 : i32
    %c0_i32_1 = arith.constant 0 : i32
    return %c0_i32, %c0_i32_0 : i32, i32
  }
  func.func @transform_3(%arg0: i32, %arg1: i32) -> (i32, i32, i32) {
    %c0_i32 = arith.constant 0 : i32
    %c0_i32_0 = arith.constant 0 : i32
    return %arg0, %arg1, %c0_i32 : i32, i32, i32
  }
}

module attributes {stable_mosaic.version = 11 : i64} {
  func.func @_se_add_kernel(%arg0: i32, %arg1: i32, %arg2: memref<1x16x16xbf16, #tpu.memory_space<vmem>>, %arg3: memref<1x16x16xbf16, #tpu.memory_space<vmem>>, %arg4: memref<1x1x16xf32, #tpu.memory_space<vmem>>, %arg5: memref<1x16x16xbf16, #tpu.memory_space<vmem>>) attributes {dimension_semantics = [#tpu.dimension_semantics<parallel>, #tpu.dimension_semantics<parallel>], iteration_bounds = array<i64: 2, 1>, scalar_prefetch = 0 : i64, scratch_operands = 0 : i64, tpu.core_type = #tpu.core_type<tc>, window_params = [{transform_indices = @transform_0, window_bounds = array<i64: 1, 16, 16>}, {transform_indices = @transform_1, window_bounds = array<i64: 1, 16, 16>}, {transform_indices = @transform_2, window_bounds = array<i64: 1, 1, 16>}, {transform_indices = @transform_3, window_bounds = array<i64: 1, 16, 16>}]} {
    %c0 = arith.constant 0 : index
    %c0_0 = arith.constant 0 : index
    %c0_1 = arith.constant 0 : index
    %0 = vector.load %arg2[%c0, %c0_0, %c0_1] : memref<1x16x16xbf16, #tpu.memory_space<vmem>>, vector<1x16x16xbf16>
    %1 = vector.shape_cast %0 : vector<1x16x16xbf16> to vector<16x16xbf16>
    %2 = arith.extf %1 : vector<16x16xbf16> to vector<16x16xf32>
    %c0_2 = arith.constant 0 : index
    %c0_3 = arith.constant 0 : index
    %c0_4 = arith.constant 0 : index
    %3 = vector.load %arg3[%c0_2, %c0_3, %c0_4] : memref<1x16x16xbf16, #tpu.memory_space<vmem>>, vector<1x16x16xbf16>
    %4 = vector.shape_cast %3 : vector<1x16x16xbf16> to vector<16x16xbf16>
    %5 = arith.extf %4 : vector<16x16xbf16> to vector<16x16xf32>
    %6 = arith.addf %2, %5 : vector<16x16xf32>
    %c0_5 = arith.constant 0 : index
    %c0_6 = arith.constant 0 : index
    %c0_7 = arith.constant 0 : index
    %7 = vector.load %arg4[%c0_5, %c0_6, %c0_7] : memref<1x1x16xf32, #tpu.memory_space<vmem>>, vector<1x1x16xf32>
    %8 = vector.shape_cast %7 : vector<1x1x16xf32> to vector<1x16xf32>
    %9 = vector.broadcast %8 : vector<1x16xf32> to vector<16x16xf32>
    %10 = arith.addf %6, %9 : vector<16x16xf32>
    %11 = arith.truncf %10 : vector<16x16xf32> to vector<16x16xbf16>
    %c0_8 = arith.constant 0 : index
    %c0_9 = arith.constant 0 : index
    %c0_10 = arith.constant 0 : index
    %12 = vector.load %arg5[%c0_8, %c0_9, %c0_10] : memref<1x16x16xbf16, #tpu.memory_space<vmem>>, vector<1x16x16xbf16>
    %13 = vector.shape_cast %12 : vector<1x16x16xbf16> to vector<16x16xbf16>
    %14 = vector.shape_cast %11 : vector<16x16xbf16> to vector<1x16x16xbf16>
    tpu.vector_store %arg5[%c0_8, %c0_9, %c0_10], %14 {strides = array<i32>} : memref<1x16x16xbf16, #tpu.memory_space<vmem>>, vector<1x16x16xbf16>,
    return
  }
  func.func @transform_0(%arg0: i32, %arg1: i32) -> (i32, i32, i32) {
    %c0_i32 = arith.constant 0 : i32
    %c0_i32_0 = arith.constant 0 : i32
    return %arg0, %arg1, %c0_i32 : i32, i32, i32
  }
  func.func @transform_1(%arg0: i32, %arg1: i32) -> (i32, i32, i32) {
    %c0_i32 = arith.constant 0 : i32
    %c0_i32_0 = arith.constant 0 : i32
    return %arg0, %arg1, %c0_i32 : i32, i32, i32
  }
  func.func @transform_2(%arg0: i32, %arg1: i32) -> (i32, i32, i32) {
    %c0_i32 = arith.constant 0 : i32
    %c0_i32_0 = arith.constant 0 : i32
    %c0_i32_1 = arith.constant 0 : i32
    return %arg0, %c0_i32, %c0_i32_0 : i32, i32, i32
  }
  func.func @transform_3(%arg0: i32, %arg1: i32) -> (i32, i32, i32) {
    %c0_i32 = arith.constant 0 : i32
    %c0_i32_0 = arith.constant 0 : i32
    return %arg0, %arg1, %c0_i32 : i32, i32, i32
  }
}

module attributes {stable_mosaic.version = 11 : i64} {
  func.func @_conv_matmul_kernel(%arg0: i32, %arg1: memref<8x140xbf16, #tpu.memory_space<vmem>>, %arg2: memref<140x24xbf16, #tpu.memory_space<vmem>>, %arg3: memref<8x24xbf16, #tpu.memory_space<vmem>>, %arg4: memref<1x1x24xf32, #tpu.memory_space<vmem>>, %arg5: memref<1x1x24xf32, #tpu.memory_space<vmem>>) attributes {dimension_semantics = [#tpu.dimension_semantics<parallel>], iteration_bounds = array<i64: 1>, scalar_prefetch = 0 : i64, scratch_operands = 0 : i64, tpu.core_type = #tpu.core_type<tc>, window_params = [{transform_indices = @transform_0, window_bounds = array<i64: 8, 140>}, {pipeline_mode = #tpu.pipeline_mode<synchronous>, transform_indices = @transform_1, window_bounds = array<i64: 140, 24>}, {transform_indices = @transform_2, window_bounds = array<i64: 8, 24>}, {transform_indices = @transform_3, window_bounds = array<i64: 1, 1, 24>}, {transform_indices = @transform_4, window_bounds = array<i64: 1, 1, 24>}]} {
    %c0 = arith.constant 0 : index
    %c0_0 = arith.constant 0 : index
    %0 = vector.load %arg1[%c0, %c0_0] : memref<8x140xbf16, #tpu.memory_space<vmem>>, vector<8x140xbf16>
    %c0_1 = arith.constant 0 : index
    %c0_2 = arith.constant 0 : index
    %1 = vector.load %arg2[%c0_1, %c0_2] : memref<140x24xbf16, #tpu.memory_space<vmem>>, vector<140x24xbf16>
    %cst = arith.constant dense<0.000000e+00> : vector<8x24xf32>
    %2 = tpu.matmul %0, %1, %cst {dimension_numbers = #tpu.dot_dimension_numbers<[1], [0], [0], [1], [0, 0, 1, 1], [], []>} : vector<8x140xbf16>, vector<140x24xbf16>, vector<8x24xf32> -> vector<8x24xf32>
    %3 = arith.truncf %2 : vector<8x24xf32> to vector<8x24xbf16>
    %c0_3 = arith.constant 0 : index
    %c0_4 = arith.constant 0 : index
    %4 = vector.load %arg3[%c0_3, %c0_4] : memref<8x24xbf16, #tpu.memory_space<vmem>>, vector<8x24xbf16>
    tpu.vector_store %arg3[%c0_3, %c0_4], %3 {strides = array<i32>} : memref<8x24xbf16, #tpu.memory_space<vmem>>, vector<8x24xbf16>,
    %cst_5 = arith.constant dense<0.000000e+00> : vector<24xf32>
    %5 = vector.multi_reduction <add>, %2, %cst_5 [0] : vector<8x24xf32> to vector<24xf32>
    %6 = vector.shape_cast %5 : vector<24xf32> to vector<1x24xf32>
    %c0_6 = arith.constant 0 : index
    %c0_7 = arith.constant 0 : index
    %c0_8 = arith.constant 0 : index
    %7 = vector.load %arg4[%c0_6, %c0_7, %c0_8] : memref<1x1x24xf32, #tpu.memory_space<vmem>>, vector<1x1x24xf32>
    %8 = vector.shape_cast %7 : vector<1x1x24xf32> to vector<1x24xf32>
    %9 = vector.shape_cast %6 : vector<1x24xf32> to vector<1x1x24xf32>
    tpu.vector_store %arg4[%c0_6, %c0_7, %c0_8], %9 {strides = array<i32>} : memref<1x1x24xf32, #tpu.memory_space<vmem>>, vector<1x1x24xf32>,
    %10 = arith.mulf %2, %2 : vector<8x24xf32>
    %cst_9 = arith.constant dense<0.000000e+00> : vector<24xf32>
    %11 = vector.multi_reduction <add>, %10, %cst_9 [0] : vector<8x24xf32> to vector<24xf32>
    %12 = vector.shape_cast %11 : vector<24xf32> to vector<1x24xf32>
    %c0_10 = arith.constant 0 : index
    %c0_11 = arith.constant 0 : index
    %c0_12 = arith.constant 0 : index
    %13 = vector.load %arg5[%c0_10, %c0_11, %c0_12] : memref<1x1x24xf32, #tpu.memory_space<vmem>>, vector<1x1x24xf32>
    %14 = vector.shape_cast %13 : vector<1x1x24xf32> to vector<1x24xf32>
    %15 = vector.shape_cast %12 : vector<1x24xf32> to vector<1x1x24xf32>
    tpu.vector_store %arg5[%c0_10, %c0_11, %c0_12], %15 {strides = array<i32>} : memref<1x1x24xf32, #tpu.memory_space<vmem>>, vector<1x1x24xf32>,
    return
  }
  func.func @transform_0(%arg0: i32) -> (i32, i32) {
    %c0_i32 = arith.constant 0 : i32
    %c0_i32_0 = arith.constant 0 : i32
    return %arg0, %c0_i32 : i32, i32
  }
  func.func @transform_1(%arg0: i32) -> (i32, i32) {
    %c0_i32 = arith.constant 0 : i32
    %c0_i32_0 = arith.constant 0 : i32
    %c0_i32_1 = arith.constant 0 : i32
    return %c0_i32, %c0_i32_0 : i32, i32
  }
  func.func @transform_2(%arg0: i32) -> (i32, i32) {
    %c0_i32 = arith.constant 0 : i32
    %c0_i32_0 = arith.constant 0 : i32
    return %arg0, %c0_i32 : i32, i32
  }
  func.func @transform_3(%arg0: i32) -> (i32, i32, i32) {
    %c0_i32 = arith.constant 0 : i32
    %c0_i32_0 = arith.constant 0 : i32
    %c0_i32_1 = arith.constant 0 : i32
    return %arg0, %c0_i32, %c0_i32_0 : i32, i32, i32
  }
  func.func @transform_4(%arg0: i32) -> (i32, i32, i32) {
    %c0_i32 = arith.constant 0 : i32
    %c0_i32_0 = arith.constant 0 : i32
    %c0_i32_1 = arith.constant 0 : i32
    return %arg0, %c0_i32, %c0_i32_0 : i32, i32, i32
  }
}

module attributes {stable_mosaic.version = 11 : i64} {
  func.func @kernel(%arg0: i32, %arg1: memref<8x24xbf16, #tpu.memory_space<vmem>>, %arg2: memref<1x24xf32, #tpu.memory_space<vmem>>, %arg3: memref<1x24xf32, #tpu.memory_space<vmem>>, %arg4: memref<8x24xbf16, #tpu.memory_space<vmem>>) attributes {dimension_semantics = [#tpu.dimension_semantics<parallel>], iteration_bounds = array<i64: 1>, scalar_prefetch = 0 : i64, scratch_operands = 0 : i64, tpu.core_type = #tpu.core_type<tc>, window_params = [{transform_indices = @transform_0, window_bounds = array<i64: 8, 24>}, {pipeline_mode = #tpu.pipeline_mode<synchronous>, transform_indices = @transform_1, window_bounds = array<i64: 1, 24>}, {pipeline_mode = #tpu.pipeline_mode<synchronous>, transform_indices = @transform_2, window_bounds = array<i64: 1, 24>}, {transform_indices = @transform_3, window_bounds = array<i64: 8, 24>}]} {
    %c0 = arith.constant 0 : index
    %c0_0 = arith.constant 0 : index
    %0 = vector.load %arg1[%c0, %c0_0] : memref<8x24xbf16, #tpu.memory_space<vmem>>, vector<8x24xbf16>
    %1 = arith.extf %0 : vector<8x24xbf16> to vector<8x24xf32>
    %c0_1 = arith.constant 0 : index
    %c0_2 = arith.constant 0 : index
    %2 = vector.load %arg2[%c0_1, %c0_2] : memref<1x24xf32, #tpu.memory_space<vmem>>, vector<1x24xf32>
    %3 = vector.broadcast %2 : vector<1x24xf32> to vector<8x24xf32>
    %4 = arith.mulf %1, %3 : vector<8x24xf32>
    %c0_3 = arith.constant 0 : index
    %c0_4 = arith.constant 0 : index
    %5 = vector.load %arg3[%c0_3, %c0_4] : memref<1x24xf32, #tpu.memory_space<vmem>>, vector<1x24xf32>
    %6 = vector.broadcast %5 : vector<1x24xf32> to vector<8x24xf32>
    %7 = arith.addf %4, %6 : vector<8x24xf32>
    %cst = arith.constant 0.000000e+00 : f32
    %8 = vector.broadcast %cst : f32 to vector<8x24xf32>
    %9 = arith.maximumf %7, %8 : vector<8x24xf32>
    %10 = arith.truncf %9 : vector<8x24xf32> to vector<8x24xbf16>
    %c0_5 = arith.constant 0 : index
    %c0_6 = arith.constant 0 : index
    %11 = vector.load %arg4[%c0_5, %c0_6] : memref<8x24xbf16, #tpu.memory_space<vmem>>, vector<8x24xbf16>
    tpu.vector_store %arg4[%c0_5, %c0_6], %10 {strides = array<i32>} : memref<8x24xbf16, #tpu.memory_space<vmem>>, vector<8x24xbf16>,
    return
  }
  func.func @transform_0(%arg0: i32) -> (i32, i32) {
    %c0_i32 = arith.constant 0 : i32
    %c0_i32_0 = arith.constant 0 : i32
    return %arg0, %c0_i32 : i32, i32
  }
  func.func @transform_1(%arg0: i32) -> (i32, i32) {
    %c0_i32 = arith.constant 0 : i32
    %c0_i32_0 = arith.constant 0 : i32
    %c0_i32_1 = arith.constant 0 : i32
    return %c0_i32, %c0_i32_0 : i32, i32
  }
  func.func @transform_2(%arg0: i32) -> (i32, i32) {
    %c0_i32 = arith.constant 0 : i32
    %c0_i32_0 = arith.constant 0 : i32
    %c0_i32_1 = arith.constant 0 : i32
    return %c0_i32, %c0_i32_0 : i32, i32
  }
  func.func @transform_3(%arg0: i32) -> (i32, i32) {
    %c0_i32 = arith.constant 0 : i32
    %c0_i32_0 = arith.constant 0 : i32
    return %arg0, %c0_i32 : i32, i32
  }
}

module attributes {stable_mosaic.version = 11 : i64} {
  func.func @_conv_matmul_kernel(%arg0: i32, %arg1: memref<8x168xbf16, #tpu.memory_space<vmem>>, %arg2: memref<168x24xbf16, #tpu.memory_space<vmem>>, %arg3: memref<8x24xbf16, #tpu.memory_space<vmem>>, %arg4: memref<1x1x24xf32, #tpu.memory_space<vmem>>, %arg5: memref<1x1x24xf32, #tpu.memory_space<vmem>>) attributes {dimension_semantics = [#tpu.dimension_semantics<parallel>], iteration_bounds = array<i64: 1>, scalar_prefetch = 0 : i64, scratch_operands = 0 : i64, tpu.core_type = #tpu.core_type<tc>, window_params = [{transform_indices = @transform_0, window_bounds = array<i64: 8, 168>}, {pipeline_mode = #tpu.pipeline_mode<synchronous>, transform_indices = @transform_1, window_bounds = array<i64: 168, 24>}, {transform_indices = @transform_2, window_bounds = array<i64: 8, 24>}, {transform_indices = @transform_3, window_bounds = array<i64: 1, 1, 24>}, {transform_indices = @transform_4, window_bounds = array<i64: 1, 1, 24>}]} {
    %c0 = arith.constant 0 : index
    %c0_0 = arith.constant 0 : index
    %0 = vector.load %arg1[%c0, %c0_0] : memref<8x168xbf16, #tpu.memory_space<vmem>>, vector<8x168xbf16>
    %c0_1 = arith.constant 0 : index
    %c0_2 = arith.constant 0 : index
    %1 = vector.load %arg2[%c0_1, %c0_2] : memref<168x24xbf16, #tpu.memory_space<vmem>>, vector<168x24xbf16>
    %cst = arith.constant dense<0.000000e+00> : vector<8x24xf32>
    %2 = tpu.matmul %0, %1, %cst {dimension_numbers = #tpu.dot_dimension_numbers<[1], [0], [0], [1], [0, 0, 1, 1], [], []>} : vector<8x168xbf16>, vector<168x24xbf16>, vector<8x24xf32> -> vector<8x24xf32>
    %3 = arith.truncf %2 : vector<8x24xf32> to vector<8x24xbf16>
    %c0_3 = arith.constant 0 : index
    %c0_4 = arith.constant 0 : index
    %4 = vector.load %arg3[%c0_3, %c0_4] : memref<8x24xbf16, #tpu.memory_space<vmem>>, vector<8x24xbf16>
    tpu.vector_store %arg3[%c0_3, %c0_4], %3 {strides = array<i32>} : memref<8x24xbf16, #tpu.memory_space<vmem>>, vector<8x24xbf16>,
    %cst_5 = arith.constant dense<0.000000e+00> : vector<24xf32>
    %5 = vector.multi_reduction <add>, %2, %cst_5 [0] : vector<8x24xf32> to vector<24xf32>
    %6 = vector.shape_cast %5 : vector<24xf32> to vector<1x24xf32>
    %c0_6 = arith.constant 0 : index
    %c0_7 = arith.constant 0 : index
    %c0_8 = arith.constant 0 : index
    %7 = vector.load %arg4[%c0_6, %c0_7, %c0_8] : memref<1x1x24xf32, #tpu.memory_space<vmem>>, vector<1x1x24xf32>
    %8 = vector.shape_cast %7 : vector<1x1x24xf32> to vector<1x24xf32>
    %9 = vector.shape_cast %6 : vector<1x24xf32> to vector<1x1x24xf32>
    tpu.vector_store %arg4[%c0_6, %c0_7, %c0_8], %9 {strides = array<i32>} : memref<1x1x24xf32, #tpu.memory_space<vmem>>, vector<1x1x24xf32>,
    %10 = arith.mulf %2, %2 : vector<8x24xf32>
    %cst_9 = arith.constant dense<0.000000e+00> : vector<24xf32>
    %11 = vector.multi_reduction <add>, %10, %cst_9 [0] : vector<8x24xf32> to vector<24xf32>
    %12 = vector.shape_cast %11 : vector<24xf32> to vector<1x24xf32>
    %c0_10 = arith.constant 0 : index
    %c0_11 = arith.constant 0 : index
    %c0_12 = arith.constant 0 : index
    %13 = vector.load %arg5[%c0_10, %c0_11, %c0_12] : memref<1x1x24xf32, #tpu.memory_space<vmem>>, vector<1x1x24xf32>
    %14 = vector.shape_cast %13 : vector<1x1x24xf32> to vector<1x24xf32>
    %15 = vector.shape_cast %12 : vector<1x24xf32> to vector<1x1x24xf32>
    tpu.vector_store %arg5[%c0_10, %c0_11, %c0_12], %15 {strides = array<i32>} : memref<1x1x24xf32, #tpu.memory_space<vmem>>, vector<1x1x24xf32>,
    return
  }
  func.func @transform_0(%arg0: i32) -> (i32, i32) {
    %c0_i32 = arith.constant 0 : i32
    %c0_i32_0 = arith.constant 0 : i32
    return %arg0, %c0_i32 : i32, i32
  }
  func.func @transform_1(%arg0: i32) -> (i32, i32) {
    %c0_i32 = arith.constant 0 : i32
    %c0_i32_0 = arith.constant 0 : i32
    %c0_i32_1 = arith.constant 0 : i32
    return %c0_i32, %c0_i32_0 : i32, i32
  }
  func.func @transform_2(%arg0: i32) -> (i32, i32) {
    %c0_i32 = arith.constant 0 : i32
    %c0_i32_0 = arith.constant 0 : i32
    return %arg0, %c0_i32 : i32, i32
  }
  func.func @transform_3(%arg0: i32) -> (i32, i32, i32) {
    %c0_i32 = arith.constant 0 : i32
    %c0_i32_0 = arith.constant 0 : i32
    %c0_i32_1 = arith.constant 0 : i32
    return %arg0, %c0_i32, %c0_i32_0 : i32, i32, i32
  }
  func.func @transform_4(%arg0: i32) -> (i32, i32, i32) {
    %c0_i32 = arith.constant 0 : i32
    %c0_i32_0 = arith.constant 0 : i32
    %c0_i32_1 = arith.constant 0 : i32
    return %arg0, %c0_i32, %c0_i32_0 : i32, i32, i32
  }
}

module attributes {stable_mosaic.version = 11 : i64} {
  func.func @_se_add_kernel(%arg0: i32, %arg1: i32, %arg2: memref<1x4x24xbf16, #tpu.memory_space<vmem>>, %arg3: memref<1x4x24xbf16, #tpu.memory_space<vmem>>, %arg4: memref<1x1x24xf32, #tpu.memory_space<vmem>>, %arg5: memref<1x4x24xbf16, #tpu.memory_space<vmem>>) attributes {dimension_semantics = [#tpu.dimension_semantics<parallel>, #tpu.dimension_semantics<parallel>], iteration_bounds = array<i64: 2, 1>, scalar_prefetch = 0 : i64, scratch_operands = 0 : i64, tpu.core_type = #tpu.core_type<tc>, window_params = [{transform_indices = @transform_0, window_bounds = array<i64: 1, 4, 24>}, {transform_indices = @transform_1, window_bounds = array<i64: 1, 4, 24>}, {transform_indices = @transform_2, window_bounds = array<i64: 1, 1, 24>}, {transform_indices = @transform_3, window_bounds = array<i64: 1, 4, 24>}]} {
    %c0 = arith.constant 0 : index
    %c0_0 = arith.constant 0 : index
    %c0_1 = arith.constant 0 : index
    %0 = vector.load %arg2[%c0, %c0_0, %c0_1] : memref<1x4x24xbf16, #tpu.memory_space<vmem>>, vector<1x4x24xbf16>
    %1 = vector.shape_cast %0 : vector<1x4x24xbf16> to vector<4x24xbf16>
    %2 = arith.extf %1 : vector<4x24xbf16> to vector<4x24xf32>
    %c0_2 = arith.constant 0 : index
    %c0_3 = arith.constant 0 : index
    %c0_4 = arith.constant 0 : index
    %3 = vector.load %arg3[%c0_2, %c0_3, %c0_4] : memref<1x4x24xbf16, #tpu.memory_space<vmem>>, vector<1x4x24xbf16>
    %4 = vector.shape_cast %3 : vector<1x4x24xbf16> to vector<4x24xbf16>
    %5 = arith.extf %4 : vector<4x24xbf16> to vector<4x24xf32>
    %6 = arith.addf %2, %5 : vector<4x24xf32>
    %c0_5 = arith.constant 0 : index
    %c0_6 = arith.constant 0 : index
    %c0_7 = arith.constant 0 : index
    %7 = vector.load %arg4[%c0_5, %c0_6, %c0_7] : memref<1x1x24xf32, #tpu.memory_space<vmem>>, vector<1x1x24xf32>
    %8 = vector.shape_cast %7 : vector<1x1x24xf32> to vector<1x24xf32>
    %9 = vector.broadcast %8 : vector<1x24xf32> to vector<4x24xf32>
    %10 = arith.addf %6, %9 : vector<4x24xf32>
    %11 = arith.truncf %10 : vector<4x24xf32> to vector<4x24xbf16>
    %c0_8 = arith.constant 0 : index
    %c0_9 = arith.constant 0 : index
    %c0_10 = arith.constant 0 : index
    %12 = vector.load %arg5[%c0_8, %c0_9, %c0_10] : memref<1x4x24xbf16, #tpu.memory_space<vmem>>, vector<1x4x24xbf16>
    %13 = vector.shape_cast %12 : vector<1x4x24xbf16> to vector<4x24xbf16>
    %14 = vector.shape_cast %11 : vector<4x24xbf16> to vector<1x4x24xbf16>
    tpu.vector_store %arg5[%c0_8, %c0_9, %c0_10], %14 {strides = array<i32>} : memref<1x4x24xbf16, #tpu.memory_space<vmem>>, vector<1x4x24xbf16>,
    return
  }
  func.func @transform_0(%arg0: i32, %arg1: i32) -> (i32, i32, i32) {
    %c0_i32 = arith.constant 0 : i32
    %c0_i32_0 = arith.constant 0 : i32
    return %arg0, %arg1, %c0_i32 : i32, i32, i32
  }
  func.func @transform_1(%arg0: i32, %arg1: i32) -> (i32, i32, i32) {
    %c0_i32 = arith.constant 0 : i32
    %c0_i32_0 = arith.constant 0 : i32
    return %arg0, %arg1, %c0_i32 : i32, i32, i32
  }
  func.func @transform_2(%arg0: i32, %arg1: i32) -> (i32, i32, i32) {
    %c0_i32 = arith.constant 0 : i32
    %c0_i32_0 = arith.constant 0 : i32
    %c0_i32_1 = arith.constant 0 : i32
    return %arg0, %c0_i32, %c0_i32_0 : i32, i32, i32
  }
  func.func @transform_3(%arg0: i32, %arg1: i32) -> (i32, i32, i32) {
    %c0_i32 = arith.constant 0 : i32
    %c0_i32_0 = arith.constant 0 : i32
    return %arg0, %arg1, %c0_i32 : i32, i32, i32
  }
}

module attributes {stable_mosaic.version = 11 : i64} {
  func.func @_conv_matmul_kernel(%arg0: i32, %arg1: memref<8x196xbf16, #tpu.memory_space<vmem>>, %arg2: memref<196x32xbf16, #tpu.memory_space<vmem>>, %arg3: memref<8x32xbf16, #tpu.memory_space<vmem>>, %arg4: memref<1x1x32xf32, #tpu.memory_space<vmem>>, %arg5: memref<1x1x32xf32, #tpu.memory_space<vmem>>) attributes {dimension_semantics = [#tpu.dimension_semantics<parallel>], iteration_bounds = array<i64: 1>, scalar_prefetch = 0 : i64, scratch_operands = 0 : i64, tpu.core_type = #tpu.core_type<tc>, window_params = [{transform_indices = @transform_0, window_bounds = array<i64: 8, 196>}, {pipeline_mode = #tpu.pipeline_mode<synchronous>, transform_indices = @transform_1, window_bounds = array<i64: 196, 32>}, {transform_indices = @transform_2, window_bounds = array<i64: 8, 32>}, {transform_indices = @transform_3, window_bounds = array<i64: 1, 1, 32>}, {transform_indices = @transform_4, window_bounds = array<i64: 1, 1, 32>}]} {
    %c0 = arith.constant 0 : index
    %c0_0 = arith.constant 0 : index
    %0 = vector.load %arg1[%c0, %c0_0] : memref<8x196xbf16, #tpu.memory_space<vmem>>, vector<8x196xbf16>
    %c0_1 = arith.constant 0 : index
    %c0_2 = arith.constant 0 : index
    %1 = vector.load %arg2[%c0_1, %c0_2] : memref<196x32xbf16, #tpu.memory_space<vmem>>, vector<196x32xbf16>
    %cst = arith.constant dense<0.000000e+00> : vector<8x32xf32>
    %2 = tpu.matmul %0, %1, %cst {dimension_numbers = #tpu.dot_dimension_numbers<[1], [0], [0], [1], [0, 0, 1, 1], [], []>} : vector<8x196xbf16>, vector<196x32xbf16>, vector<8x32xf32> -> vector<8x32xf32>
    %3 = arith.truncf %2 : vector<8x32xf32> to vector<8x32xbf16>
    %c0_3 = arith.constant 0 : index
    %c0_4 = arith.constant 0 : index
    %4 = vector.load %arg3[%c0_3, %c0_4] : memref<8x32xbf16, #tpu.memory_space<vmem>>, vector<8x32xbf16>
    tpu.vector_store %arg3[%c0_3, %c0_4], %3 {strides = array<i32>} : memref<8x32xbf16, #tpu.memory_space<vmem>>, vector<8x32xbf16>,
    %cst_5 = arith.constant dense<0.000000e+00> : vector<32xf32>
    %5 = vector.multi_reduction <add>, %2, %cst_5 [0] : vector<8x32xf32> to vector<32xf32>
    %6 = vector.shape_cast %5 : vector<32xf32> to vector<1x32xf32>
    %c0_6 = arith.constant 0 : index
    %c0_7 = arith.constant 0 : index
    %c0_8 = arith.constant 0 : index
    %7 = vector.load %arg4[%c0_6, %c0_7, %c0_8] : memref<1x1x32xf32, #tpu.memory_space<vmem>>, vector<1x1x32xf32>
    %8 = vector.shape_cast %7 : vector<1x1x32xf32> to vector<1x32xf32>
    %9 = vector.shape_cast %6 : vector<1x32xf32> to vector<1x1x32xf32>
    tpu.vector_store %arg4[%c0_6, %c0_7, %c0_8], %9 {strides = array<i32>} : memref<1x1x32xf32, #tpu.memory_space<vmem>>, vector<1x1x32xf32>,
    %10 = arith.mulf %2, %2 : vector<8x32xf32>
    %cst_9 = arith.constant dense<0.000000e+00> : vector<32xf32>
    %11 = vector.multi_reduction <add>, %10, %cst_9 [0] : vector<8x32xf32> to vector<32xf32>
    %12 = vector.shape_cast %11 : vector<32xf32> to vector<1x32xf32>
    %c0_10 = arith.constant 0 : index
    %c0_11 = arith.constant 0 : index
    %c0_12 = arith.constant 0 : index
    %13 = vector.load %arg5[%c0_10, %c0_11, %c0_12] : memref<1x1x32xf32, #tpu.memory_space<vmem>>, vector<1x1x32xf32>
    %14 = vector.shape_cast %13 : vector<1x1x32xf32> to vector<1x32xf32>
    %15 = vector.shape_cast %12 : vector<1x32xf32> to vector<1x1x32xf32>
    tpu.vector_store %arg5[%c0_10, %c0_11, %c0_12], %15 {strides = array<i32>} : memref<1x1x32xf32, #tpu.memory_space<vmem>>, vector<1x1x32xf32>,
    return
  }
  func.func @transform_0(%arg0: i32) -> (i32, i32) {
    %c0_i32 = arith.constant 0 : i32
    %c0_i32_0 = arith.constant 0 : i32
    return %arg0, %c0_i32 : i32, i32
  }
  func.func @transform_1(%arg0: i32) -> (i32, i32) {
    %c0_i32 = arith.constant 0 : i32
    %c0_i32_0 = arith.constant 0 : i32
    %c0_i32_1 = arith.constant 0 : i32
    return %c0_i32, %c0_i32_0 : i32, i32
  }
  func.func @transform_2(%arg0: i32) -> (i32, i32) {
    %c0_i32 = arith.constant 0 : i32
    %c0_i32_0 = arith.constant 0 : i32
    return %arg0, %c0_i32 : i32, i32
  }
  func.func @transform_3(%arg0: i32) -> (i32, i32, i32) {
    %c0_i32 = arith.constant 0 : i32
    %c0_i32_0 = arith.constant 0 : i32
    %c0_i32_1 = arith.constant 0 : i32
    return %arg0, %c0_i32, %c0_i32_0 : i32, i32, i32
  }
  func.func @transform_4(%arg0: i32) -> (i32, i32, i32) {
    %c0_i32 = arith.constant 0 : i32
    %c0_i32_0 = arith.constant 0 : i32
    %c0_i32_1 = arith.constant 0 : i32
    return %arg0, %c0_i32, %c0_i32_0 : i32, i32, i32
  }
}

module attributes {stable_mosaic.version = 11 : i64} {
  func.func @kernel(%arg0: i32, %arg1: memref<8x32xbf16, #tpu.memory_space<vmem>>, %arg2: memref<1x32xf32, #tpu.memory_space<vmem>>, %arg3: memref<1x32xf32, #tpu.memory_space<vmem>>, %arg4: memref<8x32xbf16, #tpu.memory_space<vmem>>) attributes {dimension_semantics = [#tpu.dimension_semantics<parallel>], iteration_bounds = array<i64: 1>, scalar_prefetch = 0 : i64, scratch_operands = 0 : i64, tpu.core_type = #tpu.core_type<tc>, window_params = [{transform_indices = @transform_0, window_bounds = array<i64: 8, 32>}, {pipeline_mode = #tpu.pipeline_mode<synchronous>, transform_indices = @transform_1, window_bounds = array<i64: 1, 32>}, {pipeline_mode = #tpu.pipeline_mode<synchronous>, transform_indices = @transform_2, window_bounds = array<i64: 1, 32>}, {transform_indices = @transform_3, window_bounds = array<i64: 8, 32>}]} {
    %c0 = arith.constant 0 : index
    %c0_0 = arith.constant 0 : index
    %0 = vector.load %arg1[%c0, %c0_0] : memref<8x32xbf16, #tpu.memory_space<vmem>>, vector<8x32xbf16>
    %1 = arith.extf %0 : vector<8x32xbf16> to vector<8x32xf32>
    %c0_1 = arith.constant 0 : index
    %c0_2 = arith.constant 0 : index
    %2 = vector.load %arg2[%c0_1, %c0_2] : memref<1x32xf32, #tpu.memory_space<vmem>>, vector<1x32xf32>
    %3 = vector.broadcast %2 : vector<1x32xf32> to vector<8x32xf32>
    %4 = arith.mulf %1, %3 : vector<8x32xf32>
    %c0_3 = arith.constant 0 : index
    %c0_4 = arith.constant 0 : index
    %5 = vector.load %arg3[%c0_3, %c0_4] : memref<1x32xf32, #tpu.memory_space<vmem>>, vector<1x32xf32>
    %6 = vector.broadcast %5 : vector<1x32xf32> to vector<8x32xf32>
    %7 = arith.addf %4, %6 : vector<8x32xf32>
    %cst = arith.constant 0.000000e+00 : f32
    %8 = vector.broadcast %cst : f32 to vector<8x32xf32>
    %9 = arith.maximumf %7, %8 : vector<8x32xf32>
    %10 = arith.truncf %9 : vector<8x32xf32> to vector<8x32xbf16>
    %c0_5 = arith.constant 0 : index
    %c0_6 = arith.constant 0 : index
    %11 = vector.load %arg4[%c0_5, %c0_6] : memref<8x32xbf16, #tpu.memory_space<vmem>>, vector<8x32xbf16>
    tpu.vector_store %arg4[%c0_5, %c0_6], %10 {strides = array<i32>} : memref<8x32xbf16, #tpu.memory_space<vmem>>, vector<8x32xbf16>,
    return
  }
  func.func @transform_0(%arg0: i32) -> (i32, i32) {
    %c0_i32 = arith.constant 0 : i32
    %c0_i32_0 = arith.constant 0 : i32
    return %arg0, %c0_i32 : i32, i32
  }
  func.func @transform_1(%arg0: i32) -> (i32, i32) {
    %c0_i32 = arith.constant 0 : i32
    %c0_i32_0 = arith.constant 0 : i32
    %c0_i32_1 = arith.constant 0 : i32
    return %c0_i32, %c0_i32_0 : i32, i32
  }
  func.func @transform_2(%arg0: i32) -> (i32, i32) {
    %c0_i32 = arith.constant 0 : i32
    %c0_i32_0 = arith.constant 0 : i32
    %c0_i32_1 = arith.constant 0 : i32
    return %c0_i32, %c0_i32_0 : i32, i32
  }
  func.func @transform_3(%arg0: i32) -> (i32, i32) {
    %c0_i32 = arith.constant 0 : i32
    %c0_i32_0 = arith.constant 0 : i32
    return %arg0, %c0_i32 : i32, i32
  }
}

module attributes {stable_mosaic.version = 11 : i64} {
  func.func @_conv_matmul_kernel(%arg0: i32, %arg1: memref<8x224xbf16, #tpu.memory_space<vmem>>, %arg2: memref<224x32xbf16, #tpu.memory_space<vmem>>, %arg3: memref<8x32xbf16, #tpu.memory_space<vmem>>, %arg4: memref<1x1x32xf32, #tpu.memory_space<vmem>>, %arg5: memref<1x1x32xf32, #tpu.memory_space<vmem>>) attributes {dimension_semantics = [#tpu.dimension_semantics<parallel>], iteration_bounds = array<i64: 1>, scalar_prefetch = 0 : i64, scratch_operands = 0 : i64, tpu.core_type = #tpu.core_type<tc>, window_params = [{transform_indices = @transform_0, window_bounds = array<i64: 8, 224>}, {pipeline_mode = #tpu.pipeline_mode<synchronous>, transform_indices = @transform_1, window_bounds = array<i64: 224, 32>}, {transform_indices = @transform_2, window_bounds = array<i64: 8, 32>}, {transform_indices = @transform_3, window_bounds = array<i64: 1, 1, 32>}, {transform_indices = @transform_4, window_bounds = array<i64: 1, 1, 32>}]} {
    %c0 = arith.constant 0 : index
    %c0_0 = arith.constant 0 : index
    %0 = vector.load %arg1[%c0, %c0_0] : memref<8x224xbf16, #tpu.memory_space<vmem>>, vector<8x224xbf16>
    %c0_1 = arith.constant 0 : index
    %c0_2 = arith.constant 0 : index
    %1 = vector.load %arg2[%c0_1, %c0_2] : memref<224x32xbf16, #tpu.memory_space<vmem>>, vector<224x32xbf16>
    %cst = arith.constant dense<0.000000e+00> : vector<8x32xf32>
    %2 = tpu.matmul %0, %1, %cst {dimension_numbers = #tpu.dot_dimension_numbers<[1], [0], [0], [1], [0, 0, 1, 1], [], []>} : vector<8x224xbf16>, vector<224x32xbf16>, vector<8x32xf32> -> vector<8x32xf32>
    %3 = arith.truncf %2 : vector<8x32xf32> to vector<8x32xbf16>
    %c0_3 = arith.constant 0 : index
    %c0_4 = arith.constant 0 : index
    %4 = vector.load %arg3[%c0_3, %c0_4] : memref<8x32xbf16, #tpu.memory_space<vmem>>, vector<8x32xbf16>
    tpu.vector_store %arg3[%c0_3, %c0_4], %3 {strides = array<i32>} : memref<8x32xbf16, #tpu.memory_space<vmem>>, vector<8x32xbf16>,
    %cst_5 = arith.constant dense<0.000000e+00> : vector<32xf32>
    %5 = vector.multi_reduction <add>, %2, %cst_5 [0] : vector<8x32xf32> to vector<32xf32>
    %6 = vector.shape_cast %5 : vector<32xf32> to vector<1x32xf32>
    %c0_6 = arith.constant 0 : index
    %c0_7 = arith.constant 0 : index
    %c0_8 = arith.constant 0 : index
    %7 = vector.load %arg4[%c0_6, %c0_7, %c0_8] : memref<1x1x32xf32, #tpu.memory_space<vmem>>, vector<1x1x32xf32>
    %8 = vector.shape_cast %7 : vector<1x1x32xf32> to vector<1x32xf32>
    %9 = vector.shape_cast %6 : vector<1x32xf32> to vector<1x1x32xf32>
    tpu.vector_store %arg4[%c0_6, %c0_7, %c0_8], %9 {strides = array<i32>} : memref<1x1x32xf32, #tpu.memory_space<vmem>>, vector<1x1x32xf32>,
    %10 = arith.mulf %2, %2 : vector<8x32xf32>
    %cst_9 = arith.constant dense<0.000000e+00> : vector<32xf32>
    %11 = vector.multi_reduction <add>, %10, %cst_9 [0] : vector<8x32xf32> to vector<32xf32>
    %12 = vector.shape_cast %11 : vector<32xf32> to vector<1x32xf32>
    %c0_10 = arith.constant 0 : index
    %c0_11 = arith.constant 0 : index
    %c0_12 = arith.constant 0 : index
    %13 = vector.load %arg5[%c0_10, %c0_11, %c0_12] : memref<1x1x32xf32, #tpu.memory_space<vmem>>, vector<1x1x32xf32>
    %14 = vector.shape_cast %13 : vector<1x1x32xf32> to vector<1x32xf32>
    %15 = vector.shape_cast %12 : vector<1x32xf32> to vector<1x1x32xf32>
    tpu.vector_store %arg5[%c0_10, %c0_11, %c0_12], %15 {strides = array<i32>} : memref<1x1x32xf32, #tpu.memory_space<vmem>>, vector<1x1x32xf32>,
    return
  }
  func.func @transform_0(%arg0: i32) -> (i32, i32) {
    %c0_i32 = arith.constant 0 : i32
    %c0_i32_0 = arith.constant 0 : i32
    return %arg0, %c0_i32 : i32, i32
  }
  func.func @transform_1(%arg0: i32) -> (i32, i32) {
    %c0_i32 = arith.constant 0 : i32
    %c0_i32_0 = arith.constant 0 : i32
    %c0_i32_1 = arith.constant 0 : i32
    return %c0_i32, %c0_i32_0 : i32, i32
  }
  func.func @transform_2(%arg0: i32) -> (i32, i32) {
    %c0_i32 = arith.constant 0 : i32
    %c0_i32_0 = arith.constant 0 : i32
    return %arg0, %c0_i32 : i32, i32
  }
  func.func @transform_3(%arg0: i32) -> (i32, i32, i32) {
    %c0_i32 = arith.constant 0 : i32
    %c0_i32_0 = arith.constant 0 : i32
    %c0_i32_1 = arith.constant 0 : i32
    return %arg0, %c0_i32, %c0_i32_0 : i32, i32, i32
  }
  func.func @transform_4(%arg0: i32) -> (i32, i32, i32) {
    %c0_i32 = arith.constant 0 : i32
    %c0_i32_0 = arith.constant 0 : i32
    %c0_i32_1 = arith.constant 0 : i32
    return %arg0, %c0_i32, %c0_i32_0 : i32, i32, i32
  }
}

module attributes {stable_mosaic.version = 11 : i64} {
  func.func @_se_add_kernel(%arg0: i32, %arg1: i32, %arg2: memref<1x1x32xbf16, #tpu.memory_space<vmem>>, %arg3: memref<1x1x32xbf16, #tpu.memory_space<vmem>>, %arg4: memref<1x1x32xf32, #tpu.memory_space<vmem>>, %arg5: memref<1x1x32xbf16, #tpu.memory_space<vmem>>) attributes {dimension_semantics = [#tpu.dimension_semantics<parallel>, #tpu.dimension_semantics<parallel>], iteration_bounds = array<i64: 2, 1>, scalar_prefetch = 0 : i64, scratch_operands = 0 : i64, tpu.core_type = #tpu.core_type<tc>, window_params = [{transform_indices = @transform_0, window_bounds = array<i64: 1, 1, 32>}, {transform_indices = @transform_1, window_bounds = array<i64: 1, 1, 32>}, {transform_indices = @transform_2, window_bounds = array<i64: 1, 1, 32>}, {transform_indices = @transform_3, window_bounds = array<i64: 1, 1, 32>}]} {
    %c0 = arith.constant 0 : index
    %c0_0 = arith.constant 0 : index
    %c0_1 = arith.constant 0 : index
    %0 = vector.load %arg2[%c0, %c0_0, %c0_1] : memref<1x1x32xbf16, #tpu.memory_space<vmem>>, vector<1x1x32xbf16>
    %1 = vector.shape_cast %0 : vector<1x1x32xbf16> to vector<1x32xbf16>
    %2 = arith.extf %1 : vector<1x32xbf16> to vector<1x32xf32>
    %c0_2 = arith.constant 0 : index
    %c0_3 = arith.constant 0 : index
    %c0_4 = arith.constant 0 : index
    %3 = vector.load %arg3[%c0_2, %c0_3, %c0_4] : memref<1x1x32xbf16, #tpu.memory_space<vmem>>, vector<1x1x32xbf16>
    %4 = vector.shape_cast %3 : vector<1x1x32xbf16> to vector<1x32xbf16>
    %5 = arith.extf %4 : vector<1x32xbf16> to vector<1x32xf32>
    %6 = arith.addf %2, %5 : vector<1x32xf32>
    %c0_5 = arith.constant 0 : index
    %c0_6 = arith.constant 0 : index
    %c0_7 = arith.constant 0 : index
    %7 = vector.load %arg4[%c0_5, %c0_6, %c0_7] : memref<1x1x32xf32, #tpu.memory_space<vmem>>, vector<1x1x32xf32>
    %8 = vector.shape_cast %7 : vector<1x1x32xf32> to vector<1x32xf32>
    %9 = arith.addf %6, %8 : vector<1x32xf32>
    %10 = arith.truncf %9 : vector<1x32xf32> to vector<1x32xbf16>
    %c0_8 = arith.constant 0 : index
    %c0_9 = arith.constant 0 : index
    %c0_10 = arith.constant 0 : index
    %11 = vector.load %arg5[%c0_8, %c0_9, %c0_10] : memref<1x1x32xbf16, #tpu.memory_space<vmem>>, vector<1x1x32xbf16>
    %12 = vector.shape_cast %11 : vector<1x1x32xbf16> to vector<1x32xbf16>
    %13 = vector.shape_cast %10 : vector<1x32xbf16> to vector<1x1x32xbf16>
    tpu.vector_store %arg5[%c0_8, %c0_9, %c0_10], %13 {strides = array<i32>} : memref<1x1x32xbf16, #tpu.memory_space<vmem>>, vector<1x1x32xbf16>,
    return
  }
  func.func @transform_0(%arg0: i32, %arg1: i32) -> (i32, i32, i32) {
    %c0_i32 = arith.constant 0 : i32
    %c0_i32_0 = arith.constant 0 : i32
    return %arg0, %arg1, %c0_i32 : i32, i32, i32
  }
  func.func @transform_1(%arg0: i32, %arg1: i32) -> (i32, i32, i32) {
    %c0_i32 = arith.constant 0 : i32
    %c0_i32_0 = arith.constant 0 : i32
    return %arg0, %arg1, %c0_i32 : i32, i32, i32
  }
  func.func @transform_2(%arg0: i32, %arg1: i32) -> (i32, i32, i32) {
    %c0_i32 = arith.constant 0 : i32
    %c0_i32_0 = arith.constant 0 : i32
    %c0_i32_1 = arith.constant 0 : i32
    return %arg0, %c0_i32, %c0_i32_0 : i32, i32, i32
  }
  func.func @transform_3(%arg0: i32, %arg1: i32) -> (i32, i32, i32) {
    %c0_i32 = arith.constant 0 : i32
    %c0_i32_0 = arith.constant 0 : i32
    return %arg0, %arg1, %c0_i32 : i32, i32, i32
  }
}

module attributes {stable_mosaic.version = 11 : i64} {
  func.func @_conv_matmul_kernel(%arg0: i32, %arg1: memref<8x392xbf16, #tpu.memory_space<vmem>>, %arg2: memref<392x24xbf16, #tpu.memory_space<vmem>>, %arg3: memref<8x24xbf16, #tpu.memory_space<vmem>>, %arg4: memref<1x1x24xf32, #tpu.memory_space<vmem>>, %arg5: memref<1x1x24xf32, #tpu.memory_space<vmem>>) attributes {dimension_semantics = [#tpu.dimension_semantics<parallel>], iteration_bounds = array<i64: 1>, scalar_prefetch = 0 : i64, scratch_operands = 0 : i64, tpu.core_type = #tpu.core_type<tc>, window_params = [{transform_indices = @transform_0, window_bounds = array<i64: 8, 392>}, {pipeline_mode = #tpu.pipeline_mode<synchronous>, transform_indices = @transform_1, window_bounds = array<i64: 392, 24>}, {transform_indices = @transform_2, window_bounds = array<i64: 8, 24>}, {transform_indices = @transform_3, window_bounds = array<i64: 1, 1, 24>}, {transform_indices = @transform_4, window_bounds = array<i64: 1, 1, 24>}]} {
    %c0 = arith.constant 0 : index
    %c0_0 = arith.constant 0 : index
    %0 = vector.load %arg1[%c0, %c0_0] : memref<8x392xbf16, #tpu.memory_space<vmem>>, vector<8x392xbf16>
    %c0_1 = arith.constant 0 : index
    %c0_2 = arith.constant 0 : index
    %1 = vector.load %arg2[%c0_1, %c0_2] : memref<392x24xbf16, #tpu.memory_space<vmem>>, vector<392x24xbf16>
    %cst = arith.constant dense<0.000000e+00> : vector<8x24xf32>
    %2 = tpu.matmul %0, %1, %cst {dimension_numbers = #tpu.dot_dimension_numbers<[1], [0], [0], [1], [0, 0, 1, 1], [], []>} : vector<8x392xbf16>, vector<392x24xbf16>, vector<8x24xf32> -> vector<8x24xf32>
    %3 = arith.truncf %2 : vector<8x24xf32> to vector<8x24xbf16>
    %c0_3 = arith.constant 0 : index
    %c0_4 = arith.constant 0 : index
    %4 = vector.load %arg3[%c0_3, %c0_4] : memref<8x24xbf16, #tpu.memory_space<vmem>>, vector<8x24xbf16>
    tpu.vector_store %arg3[%c0_3, %c0_4], %3 {strides = array<i32>} : memref<8x24xbf16, #tpu.memory_space<vmem>>, vector<8x24xbf16>,
    %cst_5 = arith.constant dense<0.000000e+00> : vector<24xf32>
    %5 = vector.multi_reduction <add>, %2, %cst_5 [0] : vector<8x24xf32> to vector<24xf32>
    %6 = vector.shape_cast %5 : vector<24xf32> to vector<1x24xf32>
    %c0_6 = arith.constant 0 : index
    %c0_7 = arith.constant 0 : index
    %c0_8 = arith.constant 0 : index
    %7 = vector.load %arg4[%c0_6, %c0_7, %c0_8] : memref<1x1x24xf32, #tpu.memory_space<vmem>>, vector<1x1x24xf32>
    %8 = vector.shape_cast %7 : vector<1x1x24xf32> to vector<1x24xf32>
    %9 = vector.shape_cast %6 : vector<1x24xf32> to vector<1x1x24xf32>
    tpu.vector_store %arg4[%c0_6, %c0_7, %c0_8], %9 {strides = array<i32>} : memref<1x1x24xf32, #tpu.memory_space<vmem>>, vector<1x1x24xf32>,
    %10 = arith.mulf %2, %2 : vector<8x24xf32>
    %cst_9 = arith.constant dense<0.000000e+00> : vector<24xf32>
    %11 = vector.multi_reduction <add>, %10, %cst_9 [0] : vector<8x24xf32> to vector<24xf32>
    %12 = vector.shape_cast %11 : vector<24xf32> to vector<1x24xf32>
    %c0_10 = arith.constant 0 : index
    %c0_11 = arith.constant 0 : index
    %c0_12 = arith.constant 0 : index
    %13 = vector.load %arg5[%c0_10, %c0_11, %c0_12] : memref<1x1x24xf32, #tpu.memory_space<vmem>>, vector<1x1x24xf32>
    %14 = vector.shape_cast %13 : vector<1x1x24xf32> to vector<1x24xf32>
    %15 = vector.shape_cast %12 : vector<1x24xf32> to vector<1x1x24xf32>
    tpu.vector_store %arg5[%c0_10, %c0_11, %c0_12], %15 {strides = array<i32>} : memref<1x1x24xf32, #tpu.memory_space<vmem>>, vector<1x1x24xf32>,
    return
  }
  func.func @transform_0(%arg0: i32) -> (i32, i32) {
    %c0_i32 = arith.constant 0 : i32
    %c0_i32_0 = arith.constant 0 : i32
    return %arg0, %c0_i32 : i32, i32
  }
  func.func @transform_1(%arg0: i32) -> (i32, i32) {
    %c0_i32 = arith.constant 0 : i32
    %c0_i32_0 = arith.constant 0 : i32
    %c0_i32_1 = arith.constant 0 : i32
    return %c0_i32, %c0_i32_0 : i32, i32
  }
  func.func @transform_2(%arg0: i32) -> (i32, i32) {
    %c0_i32 = arith.constant 0 : i32
    %c0_i32_0 = arith.constant 0 : i32
    return %arg0, %c0_i32 : i32, i32
  }
  func.func @transform_3(%arg0: i32) -> (i32, i32, i32) {
    %c0_i32 = arith.constant 0 : i32
    %c0_i32_0 = arith.constant 0 : i32
    %c0_i32_1 = arith.constant 0 : i32
    return %arg0, %c0_i32, %c0_i32_0 : i32, i32, i32
  }
  func.func @transform_4(%arg0: i32) -> (i32, i32, i32) {
    %c0_i32 = arith.constant 0 : i32
    %c0_i32_0 = arith.constant 0 : i32
    %c0_i32_1 = arith.constant 0 : i32
    return %arg0, %c0_i32, %c0_i32_0 : i32, i32, i32
  }
}

module attributes {stable_mosaic.version = 11 : i64} {
  func.func @kernel(%arg0: i32, %arg1: i32, %arg2: memref<1x22x40xbf16, #tpu.memory_space<vmem>>, %arg3: memref<7x40x16xbf16, #tpu.memory_space<vmem>>, %arg4: memref<1x16x16xbf16, #tpu.memory_space<vmem>>, %arg5: memref<1x1x1x16xf32, #tpu.memory_space<vmem>>, %arg6: memref<1x1x1x16xf32, #tpu.memory_space<vmem>>) attributes {dimension_semantics = [#tpu.dimension_semantics<parallel>, #tpu.dimension_semantics<parallel>], iteration_bounds = array<i64: 2, 1>, scalar_prefetch = 0 : i64, scratch_operands = 0 : i64, tpu.core_type = #tpu.core_type<tc>, window_params = [{transform_indices = @transform_0, window_bounds = array<i64: 1, 22, 40>}, {pipeline_mode = #tpu.pipeline_mode<synchronous>, transform_indices = @transform_1, window_bounds = array<i64: 7, 40, 16>}, {transform_indices = @transform_2, window_bounds = array<i64: 1, 16, 16>}, {transform_indices = @transform_3, window_bounds = array<i64: 1, 1, 1, 16>}, {transform_indices = @transform_4, window_bounds = array<i64: 1, 1, 1, 16>}]} {
    %cst = arith.constant 0.000000e+00 : f32
    %0 = vector.broadcast %cst : f32 to vector<16x16xf32>
    %c0 = arith.constant 0 : index
    %c0_0 = arith.constant 0 : index
    %c0_1 = arith.constant 0 : index
    %1 = vector.load %arg2[%c0, %c0_0, %c0_1] : memref<1x22x40xbf16, #tpu.memory_space<vmem>>, vector<1x16x40xbf16>
    %2 = vector.shape_cast %1 : vector<1x16x40xbf16> to vector<16x40xbf16>
    %c0_2 = arith.constant 0 : index
    %c0_3 = arith.constant 0 : index
    %c0_4 = arith.constant 0 : index
    %3 = vector.load %arg3[%c0_2, %c0_3, %c0_4] : memref<7x40x16xbf16, #tpu.memory_space<vmem>>, vector<1x40x16xbf16>
    %4 = vector.shape_cast %3 : vector<1x40x16xbf16> to vector<40x16xbf16>
    %cst_5 = arith.constant dense<0.000000e+00> : vector<16x16xf32>
    %5 = tpu.matmul %2, %4, %cst_5 {dimension_numbers = #tpu.dot_dimension_numbers<[1], [0], [0], [1], [0, 0, 1, 1], [], []>} : vector<16x40xbf16>, vector<40x16xbf16>, vector<16x16xf32> -> vector<16x16xf32>
    %6 = arith.addf %0, %5 : vector<16x16xf32>
    %c0_6 = arith.constant 0 : index
    %c1 = arith.constant 1 : index
    %c0_7 = arith.constant 0 : index
    %7 = vector.load %arg2[%c0_6, %c1, %c0_7] : memref<1x22x40xbf16, #tpu.memory_space<vmem>>, vector<1x16x40xbf16>
    %8 = vector.shape_cast %7 : vector<1x16x40xbf16> to vector<16x40xbf16>
    %c1_8 = arith.constant 1 : index
    %c0_9 = arith.constant 0 : index
    %c0_10 = arith.constant 0 : index
    %9 = vector.load %arg3[%c1_8, %c0_9, %c0_10] : memref<7x40x16xbf16, #tpu.memory_space<vmem>>, vector<1x40x16xbf16>
    %10 = vector.shape_cast %9 : vector<1x40x16xbf16> to vector<40x16xbf16>
    %cst_11 = arith.constant dense<0.000000e+00> : vector<16x16xf32>
    %11 = tpu.matmul %8, %10, %cst_11 {dimension_numbers = #tpu.dot_dimension_numbers<[1], [0], [0], [1], [0, 0, 1, 1], [], []>} : vector<16x40xbf16>, vector<40x16xbf16>, vector<16x16xf32> -> vector<16x16xf32>
    %12 = arith.addf %6, %11 : vector<16x16xf32>
    %c0_12 = arith.constant 0 : index
    %c2 = arith.constant 2 : index
    %c0_13 = arith.constant 0 : index
    %13 = vector.load %arg2[%c0_12, %c2, %c0_13] : memref<1x22x40xbf16, #tpu.memory_space<vmem>>, vector<1x16x40xbf16>
    %14 = vector.shape_cast %13 : vector<1x16x40xbf16> to vector<16x40xbf16>
    %c2_14 = arith.constant 2 : index
    %c0_15 = arith.constant 0 : index
    %c0_16 = arith.constant 0 : index
    %15 = vector.load %arg3[%c2_14, %c0_15, %c0_16] : memref<7x40x16xbf16, #tpu.memory_space<vmem>>, vector<1x40x16xbf16>
    %16 = vector.shape_cast %15 : vector<1x40x16xbf16> to vector<40x16xbf16>
    %cst_17 = arith.constant dense<0.000000e+00> : vector<16x16xf32>
    %17 = tpu.matmul %14, %16, %cst_17 {dimension_numbers = #tpu.dot_dimension_numbers<[1], [0], [0], [1], [0, 0, 1, 1], [], []>} : vector<16x40xbf16>, vector<40x16xbf16>, vector<16x16xf32> -> vector<16x16xf32>
    %18 = arith.addf %12, %17 : vector<16x16xf32>
    %c0_18 = arith.constant 0 : index
    %c3 = arith.constant 3 : index
    %c0_19 = arith.constant 0 : index
    %19 = vector.load %arg2[%c0_18, %c3, %c0_19] : memref<1x22x40xbf16, #tpu.memory_space<vmem>>, vector<1x16x40xbf16>
    %20 = vector.shape_cast %19 : vector<1x16x40xbf16> to vector<16x40xbf16>
    %c3_20 = arith.constant 3 : index
    %c0_21 = arith.constant 0 : index
    %c0_22 = arith.constant 0 : index
    %21 = vector.load %arg3[%c3_20, %c0_21, %c0_22] : memref<7x40x16xbf16, #tpu.memory_space<vmem>>, vector<1x40x16xbf16>
    %22 = vector.shape_cast %21 : vector<1x40x16xbf16> to vector<40x16xbf16>
    %cst_23 = arith.constant dense<0.000000e+00> : vector<16x16xf32>
    %23 = tpu.matmul %20, %22, %cst_23 {dimension_numbers = #tpu.dot_dimension_numbers<[1], [0], [0], [1], [0, 0, 1, 1], [], []>} : vector<16x40xbf16>, vector<40x16xbf16>, vector<16x16xf32> -> vector<16x16xf32>
    %24 = arith.addf %18, %23 : vector<16x16xf32>
    %c0_24 = arith.constant 0 : index
    %c4 = arith.constant 4 : index
    %c0_25 = arith.constant 0 : index
    %25 = vector.load %arg2[%c0_24, %c4, %c0_25] : memref<1x22x40xbf16, #tpu.memory_space<vmem>>, vector<1x16x40xbf16>
    %26 = vector.shape_cast %25 : vector<1x16x40xbf16> to vector<16x40xbf16>
    %c4_26 = arith.constant 4 : index
    %c0_27 = arith.constant 0 : index
    %c0_28 = arith.constant 0 : index
    %27 = vector.load %arg3[%c4_26, %c0_27, %c0_28] : memref<7x40x16xbf16, #tpu.memory_space<vmem>>, vector<1x40x16xbf16>
    %28 = vector.shape_cast %27 : vector<1x40x16xbf16> to vector<40x16xbf16>
    %cst_29 = arith.constant dense<0.000000e+00> : vector<16x16xf32>
    %29 = tpu.matmul %26, %28, %cst_29 {dimension_numbers = #tpu.dot_dimension_numbers<[1], [0], [0], [1], [0, 0, 1, 1], [], []>} : vector<16x40xbf16>, vector<40x16xbf16>, vector<16x16xf32> -> vector<16x16xf32>
    %30 = arith.addf %24, %29 : vector<16x16xf32>
    %c0_30 = arith.constant 0 : index
    %c5 = arith.constant 5 : index
    %c0_31 = arith.constant 0 : index
    %31 = vector.load %arg2[%c0_30, %c5, %c0_31] : memref<1x22x40xbf16, #tpu.memory_space<vmem>>, vector<1x16x40xbf16>
    %32 = vector.shape_cast %31 : vector<1x16x40xbf16> to vector<16x40xbf16>
    %c5_32 = arith.constant 5 : index
    %c0_33 = arith.constant 0 : index
    %c0_34 = arith.constant 0 : index
    %33 = vector.load %arg3[%c5_32, %c0_33, %c0_34] : memref<7x40x16xbf16, #tpu.memory_space<vmem>>, vector<1x40x16xbf16>
    %34 = vector.shape_cast %33 : vector<1x40x16xbf16> to vector<40x16xbf16>
    %cst_35 = arith.constant dense<0.000000e+00> : vector<16x16xf32>
    %35 = tpu.matmul %32, %34, %cst_35 {dimension_numbers = #tpu.dot_dimension_numbers<[1], [0], [0], [1], [0, 0, 1, 1], [], []>} : vector<16x40xbf16>, vector<40x16xbf16>, vector<16x16xf32> -> vector<16x16xf32>
    %36 = arith.addf %30, %35 : vector<16x16xf32>
    %c0_36 = arith.constant 0 : index
    %c6 = arith.constant 6 : index
    %c0_37 = arith.constant 0 : index
    %37 = vector.load %arg2[%c0_36, %c6, %c0_37] : memref<1x22x40xbf16, #tpu.memory_space<vmem>>, vector<1x16x40xbf16>
    %38 = vector.shape_cast %37 : vector<1x16x40xbf16> to vector<16x40xbf16>
    %c6_38 = arith.constant 6 : index
    %c0_39 = arith.constant 0 : index
    %c0_40 = arith.constant 0 : index
    %39 = vector.load %arg3[%c6_38, %c0_39, %c0_40] : memref<7x40x16xbf16, #tpu.memory_space<vmem>>, vector<1x40x16xbf16>
    %40 = vector.shape_cast %39 : vector<1x40x16xbf16> to vector<40x16xbf16>
    %cst_41 = arith.constant dense<0.000000e+00> : vector<16x16xf32>
    %41 = tpu.matmul %38, %40, %cst_41 {dimension_numbers = #tpu.dot_dimension_numbers<[1], [0], [0], [1], [0, 0, 1, 1], [], []>} : vector<16x40xbf16>, vector<40x16xbf16>, vector<16x16xf32> -> vector<16x16xf32>
    %42 = arith.addf %36, %41 : vector<16x16xf32>
    %43 = arith.truncf %42 : vector<16x16xf32> to vector<16x16xbf16>
    %c0_42 = arith.constant 0 : index
    %c0_43 = arith.constant 0 : index
    %c0_44 = arith.constant 0 : index
    %44 = vector.load %arg4[%c0_42, %c0_43, %c0_44] : memref<1x16x16xbf16, #tpu.memory_space<vmem>>, vector<1x16x16xbf16>
    %45 = vector.shape_cast %44 : vector<1x16x16xbf16> to vector<16x16xbf16>
    %46 = vector.shape_cast %43 : vector<16x16xbf16> to vector<1x16x16xbf16>
    tpu.vector_store %arg4[%c0_42, %c0_43, %c0_44], %46 {strides = array<i32>} : memref<1x16x16xbf16, #tpu.memory_space<vmem>>, vector<1x16x16xbf16>,
    %cst_45 = arith.constant dense<0.000000e+00> : vector<16xf32>
    %47 = vector.multi_reduction <add>, %42, %cst_45 [0] : vector<16x16xf32> to vector<16xf32>
    %48 = vector.shape_cast %47 : vector<16xf32> to vector<1x16xf32>
    %c0_46 = arith.constant 0 : index
    %c0_47 = arith.constant 0 : index
    %c0_48 = arith.constant 0 : index
    %c0_49 = arith.constant 0 : index
    %49 = vector.load %arg5[%c0_46, %c0_47, %c0_48, %c0_49] : memref<1x1x1x16xf32, #tpu.memory_space<vmem>>, vector<1x1x1x16xf32>
    %50 = vector.shape_cast %49 : vector<1x1x1x16xf32> to vector<1x16xf32>
    %51 = vector.shape_cast %48 : vector<1x16xf32> to vector<1x1x1x16xf32>
    tpu.vector_store %arg5[%c0_46, %c0_47, %c0_48, %c0_49], %51 {strides = array<i32>} : memref<1x1x1x16xf32, #tpu.memory_space<vmem>>, vector<1x1x1x16xf32>,
    %52 = arith.mulf %42, %42 : vector<16x16xf32>
    %cst_50 = arith.constant dense<0.000000e+00> : vector<16xf32>
    %53 = vector.multi_reduction <add>, %52, %cst_50 [0] : vector<16x16xf32> to vector<16xf32>
    %54 = vector.shape_cast %53 : vector<16xf32> to vector<1x16xf32>
    %c0_51 = arith.constant 0 : index
    %c0_52 = arith.constant 0 : index
    %c0_53 = arith.constant 0 : index
    %c0_54 = arith.constant 0 : index
    %55 = vector.load %arg6[%c0_51, %c0_52, %c0_53, %c0_54] : memref<1x1x1x16xf32, #tpu.memory_space<vmem>>, vector<1x1x1x16xf32>
    %56 = vector.shape_cast %55 : vector<1x1x1x16xf32> to vector<1x16xf32>
    %57 = vector.shape_cast %54 : vector<1x16xf32> to vector<1x1x1x16xf32>
    tpu.vector_store %arg6[%c0_51, %c0_52, %c0_53, %c0_54], %57 {strides = array<i32>} : memref<1x1x1x16xf32, #tpu.memory_space<vmem>>, vector<1x1x1x16xf32>,
    return
  }
  func.func @transform_0(%arg0: i32, %arg1: i32) -> (i32, i32, i32) {
    %c0_i32 = arith.constant 0 : i32
    %c0_i32_0 = arith.constant 0 : i32
    %c0_i32_1 = arith.constant 0 : i32
    return %arg0, %c0_i32, %c0_i32_0 : i32, i32, i32
  }
  func.func @transform_1(%arg0: i32, %arg1: i32) -> (i32, i32, i32) {
    %c0_i32 = arith.constant 0 : i32
    %c0_i32_0 = arith.constant 0 : i32
    %c0_i32_1 = arith.constant 0 : i32
    %c0_i32_2 = arith.constant 0 : i32
    return %c0_i32, %c0_i32_0, %c0_i32_1 : i32, i32, i32
  }
  func.func @transform_2(%arg0: i32, %arg1: i32) -> (i32, i32, i32) {
    %c0_i32 = arith.constant 0 : i32
    %c0_i32_0 = arith.constant 0 : i32
    return %arg0, %arg1, %c0_i32 : i32, i32, i32
  }
  func.func @transform_3(%arg0: i32, %arg1: i32) -> (i32, i32, i32, i32) {
    %c0_i32 = arith.constant 0 : i32
    %c0_i32_0 = arith.constant 0 : i32
    %c0_i32_1 = arith.constant 0 : i32
    return %arg0, %arg1, %c0_i32, %c0_i32_0 : i32, i32, i32, i32
  }
  func.func @transform_4(%arg0: i32, %arg1: i32) -> (i32, i32, i32, i32) {
    %c0_i32 = arith.constant 0 : i32
    %c0_i32_0 = arith.constant 0 : i32
    %c0_i32_1 = arith.constant 0 : i32
    return %arg0, %arg1, %c0_i32, %c0_i32_0 : i32, i32, i32, i32
  }
}

module attributes {stable_mosaic.version = 11 : i64} {
  func.func @kernel(%arg0: i32, %arg1: i32, %arg2: memref<1x70x24xbf16, #tpu.memory_space<vmem>>, %arg3: memref<7x24x8xbf16, #tpu.memory_space<vmem>>, %arg4: memref<1x64x8xbf16, #tpu.memory_space<vmem>>, %arg5: memref<1x1x1x8xf32, #tpu.memory_space<vmem>>, %arg6: memref<1x1x1x8xf32, #tpu.memory_space<vmem>>) attributes {dimension_semantics = [#tpu.dimension_semantics<parallel>, #tpu.dimension_semantics<parallel>], iteration_bounds = array<i64: 2, 1>, scalar_prefetch = 0 : i64, scratch_operands = 0 : i64, tpu.core_type = #tpu.core_type<tc>, window_params = [{transform_indices = @transform_0, window_bounds = array<i64: 1, 70, 24>}, {pipeline_mode = #tpu.pipeline_mode<synchronous>, transform_indices = @transform_1, window_bounds = array<i64: 7, 24, 8>}, {transform_indices = @transform_2, window_bounds = array<i64: 1, 64, 8>}, {transform_indices = @transform_3, window_bounds = array<i64: 1, 1, 1, 8>}, {transform_indices = @transform_4, window_bounds = array<i64: 1, 1, 1, 8>}]} {
    %cst = arith.constant 0.000000e+00 : f32
    %0 = vector.broadcast %cst : f32 to vector<64x8xf32>
    %c0 = arith.constant 0 : index
    %c0_0 = arith.constant 0 : index
    %c0_1 = arith.constant 0 : index
    %1 = vector.load %arg2[%c0, %c0_0, %c0_1] : memref<1x70x24xbf16, #tpu.memory_space<vmem>>, vector<1x64x24xbf16>
    %2 = vector.shape_cast %1 : vector<1x64x24xbf16> to vector<64x24xbf16>
    %c0_2 = arith.constant 0 : index
    %c0_3 = arith.constant 0 : index
    %c0_4 = arith.constant 0 : index
    %3 = vector.load %arg3[%c0_2, %c0_3, %c0_4] : memref<7x24x8xbf16, #tpu.memory_space<vmem>>, vector<1x24x8xbf16>
    %4 = vector.shape_cast %3 : vector<1x24x8xbf16> to vector<24x8xbf16>
    %cst_5 = arith.constant dense<0.000000e+00> : vector<64x8xf32>
    %5 = tpu.matmul %2, %4, %cst_5 {dimension_numbers = #tpu.dot_dimension_numbers<[1], [0], [0], [1], [0, 0, 1, 1], [], []>} : vector<64x24xbf16>, vector<24x8xbf16>, vector<64x8xf32> -> vector<64x8xf32>
    %6 = arith.addf %0, %5 : vector<64x8xf32>
    %c0_6 = arith.constant 0 : index
    %c1 = arith.constant 1 : index
    %c0_7 = arith.constant 0 : index
    %7 = vector.load %arg2[%c0_6, %c1, %c0_7] : memref<1x70x24xbf16, #tpu.memory_space<vmem>>, vector<1x64x24xbf16>
    %8 = vector.shape_cast %7 : vector<1x64x24xbf16> to vector<64x24xbf16>
    %c1_8 = arith.constant 1 : index
    %c0_9 = arith.constant 0 : index
    %c0_10 = arith.constant 0 : index
    %9 = vector.load %arg3[%c1_8, %c0_9, %c0_10] : memref<7x24x8xbf16, #tpu.memory_space<vmem>>, vector<1x24x8xbf16>
    %10 = vector.shape_cast %9 : vector<1x24x8xbf16> to vector<24x8xbf16>
    %cst_11 = arith.constant dense<0.000000e+00> : vector<64x8xf32>
    %11 = tpu.matmul %8, %10, %cst_11 {dimension_numbers = #tpu.dot_dimension_numbers<[1], [0], [0], [1], [0, 0, 1, 1], [], []>} : vector<64x24xbf16>, vector<24x8xbf16>, vector<64x8xf32> -> vector<64x8xf32>
    %12 = arith.addf %6, %11 : vector<64x8xf32>
    %c0_12 = arith.constant 0 : index
    %c2 = arith.constant 2 : index
    %c0_13 = arith.constant 0 : index
    %13 = vector.load %arg2[%c0_12, %c2, %c0_13] : memref<1x70x24xbf16, #tpu.memory_space<vmem>>, vector<1x64x24xbf16>
    %14 = vector.shape_cast %13 : vector<1x64x24xbf16> to vector<64x24xbf16>
    %c2_14 = arith.constant 2 : index
    %c0_15 = arith.constant 0 : index
    %c0_16 = arith.constant 0 : index
    %15 = vector.load %arg3[%c2_14, %c0_15, %c0_16] : memref<7x24x8xbf16, #tpu.memory_space<vmem>>, vector<1x24x8xbf16>
    %16 = vector.shape_cast %15 : vector<1x24x8xbf16> to vector<24x8xbf16>
    %cst_17 = arith.constant dense<0.000000e+00> : vector<64x8xf32>
    %17 = tpu.matmul %14, %16, %cst_17 {dimension_numbers = #tpu.dot_dimension_numbers<[1], [0], [0], [1], [0, 0, 1, 1], [], []>} : vector<64x24xbf16>, vector<24x8xbf16>, vector<64x8xf32> -> vector<64x8xf32>
    %18 = arith.addf %12, %17 : vector<64x8xf32>
    %c0_18 = arith.constant 0 : index
    %c3 = arith.constant 3 : index
    %c0_19 = arith.constant 0 : index
    %19 = vector.load %arg2[%c0_18, %c3, %c0_19] : memref<1x70x24xbf16, #tpu.memory_space<vmem>>, vector<1x64x24xbf16>
    %20 = vector.shape_cast %19 : vector<1x64x24xbf16> to vector<64x24xbf16>
    %c3_20 = arith.constant 3 : index
    %c0_21 = arith.constant 0 : index
    %c0_22 = arith.constant 0 : index
    %21 = vector.load %arg3[%c3_20, %c0_21, %c0_22] : memref<7x24x8xbf16, #tpu.memory_space<vmem>>, vector<1x24x8xbf16>
    %22 = vector.shape_cast %21 : vector<1x24x8xbf16> to vector<24x8xbf16>
    %cst_23 = arith.constant dense<0.000000e+00> : vector<64x8xf32>
    %23 = tpu.matmul %20, %22, %cst_23 {dimension_numbers = #tpu.dot_dimension_numbers<[1], [0], [0], [1], [0, 0, 1, 1], [], []>} : vector<64x24xbf16>, vector<24x8xbf16>, vector<64x8xf32> -> vector<64x8xf32>
    %24 = arith.addf %18, %23 : vector<64x8xf32>
    %c0_24 = arith.constant 0 : index
    %c4 = arith.constant 4 : index
    %c0_25 = arith.constant 0 : index
    %25 = vector.load %arg2[%c0_24, %c4, %c0_25] : memref<1x70x24xbf16, #tpu.memory_space<vmem>>, vector<1x64x24xbf16>
    %26 = vector.shape_cast %25 : vector<1x64x24xbf16> to vector<64x24xbf16>
    %c4_26 = arith.constant 4 : index
    %c0_27 = arith.constant 0 : index
    %c0_28 = arith.constant 0 : index
    %27 = vector.load %arg3[%c4_26, %c0_27, %c0_28] : memref<7x24x8xbf16, #tpu.memory_space<vmem>>, vector<1x24x8xbf16>
    %28 = vector.shape_cast %27 : vector<1x24x8xbf16> to vector<24x8xbf16>
    %cst_29 = arith.constant dense<0.000000e+00> : vector<64x8xf32>
    %29 = tpu.matmul %26, %28, %cst_29 {dimension_numbers = #tpu.dot_dimension_numbers<[1], [0], [0], [1], [0, 0, 1, 1], [], []>} : vector<64x24xbf16>, vector<24x8xbf16>, vector<64x8xf32> -> vector<64x8xf32>
    %30 = arith.addf %24, %29 : vector<64x8xf32>
    %c0_30 = arith.constant 0 : index
    %c5 = arith.constant 5 : index
    %c0_31 = arith.constant 0 : index
    %31 = vector.load %arg2[%c0_30, %c5, %c0_31] : memref<1x70x24xbf16, #tpu.memory_space<vmem>>, vector<1x64x24xbf16>
    %32 = vector.shape_cast %31 : vector<1x64x24xbf16> to vector<64x24xbf16>
    %c5_32 = arith.constant 5 : index
    %c0_33 = arith.constant 0 : index
    %c0_34 = arith.constant 0 : index
    %33 = vector.load %arg3[%c5_32, %c0_33, %c0_34] : memref<7x24x8xbf16, #tpu.memory_space<vmem>>, vector<1x24x8xbf16>
    %34 = vector.shape_cast %33 : vector<1x24x8xbf16> to vector<24x8xbf16>
    %cst_35 = arith.constant dense<0.000000e+00> : vector<64x8xf32>
    %35 = tpu.matmul %32, %34, %cst_35 {dimension_numbers = #tpu.dot_dimension_numbers<[1], [0], [0], [1], [0, 0, 1, 1], [], []>} : vector<64x24xbf16>, vector<24x8xbf16>, vector<64x8xf32> -> vector<64x8xf32>
    %36 = arith.addf %30, %35 : vector<64x8xf32>
    %c0_36 = arith.constant 0 : index
    %c6 = arith.constant 6 : index
    %c0_37 = arith.constant 0 : index
    %37 = vector.load %arg2[%c0_36, %c6, %c0_37] : memref<1x70x24xbf16, #tpu.memory_space<vmem>>, vector<1x64x24xbf16>
    %38 = vector.shape_cast %37 : vector<1x64x24xbf16> to vector<64x24xbf16>
    %c6_38 = arith.constant 6 : index
    %c0_39 = arith.constant 0 : index
    %c0_40 = arith.constant 0 : index
    %39 = vector.load %arg3[%c6_38, %c0_39, %c0_40] : memref<7x24x8xbf16, #tpu.memory_space<vmem>>, vector<1x24x8xbf16>
    %40 = vector.shape_cast %39 : vector<1x24x8xbf16> to vector<24x8xbf16>
    %cst_41 = arith.constant dense<0.000000e+00> : vector<64x8xf32>
    %41 = tpu.matmul %38, %40, %cst_41 {dimension_numbers = #tpu.dot_dimension_numbers<[1], [0], [0], [1], [0, 0, 1, 1], [], []>} : vector<64x24xbf16>, vector<24x8xbf16>, vector<64x8xf32> -> vector<64x8xf32>
    %42 = arith.addf %36, %41 : vector<64x8xf32>
    %43 = arith.truncf %42 : vector<64x8xf32> to vector<64x8xbf16>
    %c0_42 = arith.constant 0 : index
    %c0_43 = arith.constant 0 : index
    %c0_44 = arith.constant 0 : index
    %44 = vector.load %arg4[%c0_42, %c0_43, %c0_44] : memref<1x64x8xbf16, #tpu.memory_space<vmem>>, vector<1x64x8xbf16>
    %45 = vector.shape_cast %44 : vector<1x64x8xbf16> to vector<64x8xbf16>
    %46 = vector.shape_cast %43 : vector<64x8xbf16> to vector<1x64x8xbf16>
    tpu.vector_store %arg4[%c0_42, %c0_43, %c0_44], %46 {strides = array<i32>} : memref<1x64x8xbf16, #tpu.memory_space<vmem>>, vector<1x64x8xbf16>,
    %cst_45 = arith.constant dense<0.000000e+00> : vector<8xf32>
    %47 = vector.multi_reduction <add>, %42, %cst_45 [0] : vector<64x8xf32> to vector<8xf32>
    %48 = vector.shape_cast %47 : vector<8xf32> to vector<1x8xf32>
    %c0_46 = arith.constant 0 : index
    %c0_47 = arith.constant 0 : index
    %c0_48 = arith.constant 0 : index
    %c0_49 = arith.constant 0 : index
    %49 = vector.load %arg5[%c0_46, %c0_47, %c0_48, %c0_49] : memref<1x1x1x8xf32, #tpu.memory_space<vmem>>, vector<1x1x1x8xf32>
    %50 = vector.shape_cast %49 : vector<1x1x1x8xf32> to vector<1x8xf32>
    %51 = vector.shape_cast %48 : vector<1x8xf32> to vector<1x1x1x8xf32>
    tpu.vector_store %arg5[%c0_46, %c0_47, %c0_48, %c0_49], %51 {strides = array<i32>} : memref<1x1x1x8xf32, #tpu.memory_space<vmem>>, vector<1x1x1x8xf32>,
    %52 = arith.mulf %42, %42 : vector<64x8xf32>
    %cst_50 = arith.constant dense<0.000000e+00> : vector<8xf32>
    %53 = vector.multi_reduction <add>, %52, %cst_50 [0] : vector<64x8xf32> to vector<8xf32>
    %54 = vector.shape_cast %53 : vector<8xf32> to vector<1x8xf32>
    %c0_51 = arith.constant 0 : index
    %c0_52 = arith.constant 0 : index
    %c0_53 = arith.constant 0 : index
    %c0_54 = arith.constant 0 : index
    %55 = vector.load %arg6[%c0_51, %c0_52, %c0_53, %c0_54] : memref<1x1x1x8xf32, #tpu.memory_space<vmem>>, vector<1x1x1x8xf32>
    %56 = vector.shape_cast %55 : vector<1x1x1x8xf32> to vector<1x8xf32>
    %57 = vector.shape_cast %54 : vector<1x8xf32> to vector<1x1x1x8xf32>
    tpu.vector_store %arg6[%c0_51, %c0_52, %c0_53, %c0_54], %57 {strides = array<i32>} : memref<1x1x1x8xf32, #tpu.memory_space<vmem>>, vector<1x1x1x8xf32>,
    return
  }
  func.func @transform_0(%arg0: i32, %arg1: i32) -> (i32, i32, i32) {
    %c0_i32 = arith.constant 0 : i32
    %c0_i32_0 = arith.constant 0 : i32
    %c0_i32_1 = arith.constant 0 : i32
    return %arg0, %c0_i32, %c0_i32_0 : i32, i32, i32
  }
  func.func @transform_1(%arg0: i32, %arg1: i32) -> (i32, i32, i32) {
    %c0_i32 = arith.constant 0 : i32
    %c0_i32_0 = arith.constant 0 : i32
    %c0_i32_1 = arith.constant 0 : i32
    %c0_i32_2 = arith.constant 0 : i32
    return %c0_i32, %c0_i32_0, %c0_i32_1 : i32, i32, i32
  }
  func.func @transform_2(%arg0: i32, %arg1: i32) -> (i32, i32, i32) {
    %c0_i32 = arith.constant 0 : i32
    %c0_i32_0 = arith.constant 0 : i32
    return %arg0, %arg1, %c0_i32 : i32, i32, i32
  }
  func.func @transform_3(%arg0: i32, %arg1: i32) -> (i32, i32, i32, i32) {
    %c0_i32 = arith.constant 0 : i32
    %c0_i32_0 = arith.constant 0 : i32
    %c0_i32_1 = arith.constant 0 : i32
    return %arg0, %arg1, %c0_i32, %c0_i32_0 : i32, i32, i32, i32
  }
  func.func @transform_4(%arg0: i32, %arg1: i32) -> (i32, i32, i32, i32) {
    %c0_i32 = arith.constant 0 : i32
    %c0_i32_0 = arith.constant 0 : i32
    %c0_i32_1 = arith.constant 0 : i32
    return %arg0, %arg1, %c0_i32, %c0_i32_0 : i32, i32, i32, i32
  }
}

module attributes {stable_mosaic.version = 11 : i64} {
  func.func @kernel(%arg0: i32, %arg1: i32, %arg2: memref<1x70x8xbf16, #tpu.memory_space<vmem>>, %arg3: memref<7x8x1xbf16, #tpu.memory_space<vmem>>, %arg4: memref<1x64x1xbf16, #tpu.memory_space<vmem>>, %arg5: memref<1x1x1x1xf32, #tpu.memory_space<vmem>>, %arg6: memref<1x1x1x1xf32, #tpu.memory_space<vmem>>) attributes {dimension_semantics = [#tpu.dimension_semantics<parallel>, #tpu.dimension_semantics<parallel>], iteration_bounds = array<i64: 2, 1>, scalar_prefetch = 0 : i64, scratch_operands = 0 : i64, tpu.core_type = #tpu.core_type<tc>, window_params = [{transform_indices = @transform_0, window_bounds = array<i64: 1, 70, 8>}, {pipeline_mode = #tpu.pipeline_mode<synchronous>, transform_indices = @transform_1, window_bounds = array<i64: 7, 8, 1>}, {transform_indices = @transform_2, window_bounds = array<i64: 1, 64, 1>}, {transform_indices = @transform_3, window_bounds = array<i64: 1, 1, 1, 1>}, {transform_indices = @transform_4, window_bounds = array<i64: 1, 1, 1, 1>}]} {
    %cst = arith.constant 0.000000e+00 : f32
    %0 = vector.broadcast %cst : f32 to vector<64x1xf32>
    %c0 = arith.constant 0 : index
    %c0_0 = arith.constant 0 : index
    %c0_1 = arith.constant 0 : index
    %1 = vector.load %arg2[%c0, %c0_0, %c0_1] : memref<1x70x8xbf16, #tpu.memory_space<vmem>>, vector<1x64x8xbf16>
    %2 = vector.shape_cast %1 : vector<1x64x8xbf16> to vector<64x8xbf16>
    %c0_2 = arith.constant 0 : index
    %c0_3 = arith.constant 0 : index
    %c0_4 = arith.constant 0 : index
    %3 = vector.load %arg3[%c0_2, %c0_3, %c0_4] : memref<7x8x1xbf16, #tpu.memory_space<vmem>>, vector<1x8x1xbf16>
    %4 = vector.shape_cast %3 : vector<1x8x1xbf16> to vector<8x1xbf16>
    %cst_5 = arith.constant dense<0.000000e+00> : vector<64x1xf32>
    %5 = tpu.matmul %2, %4, %cst_5 {dimension_numbers = #tpu.dot_dimension_numbers<[1], [0], [0], [1], [0, 0, 1, 1], [], []>} : vector<64x8xbf16>, vector<8x1xbf16>, vector<64x1xf32> -> vector<64x1xf32>
    %6 = arith.addf %0, %5 : vector<64x1xf32>
    %c0_6 = arith.constant 0 : index
    %c1 = arith.constant 1 : index
    %c0_7 = arith.constant 0 : index
    %7 = vector.load %arg2[%c0_6, %c1, %c0_7] : memref<1x70x8xbf16, #tpu.memory_space<vmem>>, vector<1x64x8xbf16>
    %8 = vector.shape_cast %7 : vector<1x64x8xbf16> to vector<64x8xbf16>
    %c1_8 = arith.constant 1 : index
    %c0_9 = arith.constant 0 : index
    %c0_10 = arith.constant 0 : index
    %9 = vector.load %arg3[%c1_8, %c0_9, %c0_10] : memref<7x8x1xbf16, #tpu.memory_space<vmem>>, vector<1x8x1xbf16>
    %10 = vector.shape_cast %9 : vector<1x8x1xbf16> to vector<8x1xbf16>
    %cst_11 = arith.constant dense<0.000000e+00> : vector<64x1xf32>
    %11 = tpu.matmul %8, %10, %cst_11 {dimension_numbers = #tpu.dot_dimension_numbers<[1], [0], [0], [1], [0, 0, 1, 1], [], []>} : vector<64x8xbf16>, vector<8x1xbf16>, vector<64x1xf32> -> vector<64x1xf32>
    %12 = arith.addf %6, %11 : vector<64x1xf32>
    %c0_12 = arith.constant 0 : index
    %c2 = arith.constant 2 : index
    %c0_13 = arith.constant 0 : index
    %13 = vector.load %arg2[%c0_12, %c2, %c0_13] : memref<1x70x8xbf16, #tpu.memory_space<vmem>>, vector<1x64x8xbf16>
    %14 = vector.shape_cast %13 : vector<1x64x8xbf16> to vector<64x8xbf16>
    %c2_14 = arith.constant 2 : index
    %c0_15 = arith.constant 0 : index
    %c0_16 = arith.constant 0 : index
    %15 = vector.load %arg3[%c2_14, %c0_15, %c0_16] : memref<7x8x1xbf16, #tpu.memory_space<vmem>>, vector<1x8x1xbf16>
    %16 = vector.shape_cast %15 : vector<1x8x1xbf16> to vector<8x1xbf16>
    %cst_17 = arith.constant dense<0.000000e+00> : vector<64x1xf32>
    %17 = tpu.matmul %14, %16, %cst_17 {dimension_numbers = #tpu.dot_dimension_numbers<[1], [0], [0], [1], [0, 0, 1, 1], [], []>} : vector<64x8xbf16>, vector<8x1xbf16>, vector<64x1xf32> -> vector<64x1xf32>
    %18 = arith.addf %12, %17 : vector<64x1xf32>
    %c0_18 = arith.constant 0 : index
    %c3 = arith.constant 3 : index
    %c0_19 = arith.constant 0 : index
    %19 = vector.load %arg2[%c0_18, %c3, %c0_19] : memref<1x70x8xbf16, #tpu.memory_space<vmem>>, vector<1x64x8xbf16>
    %20 = vector.shape_cast %19 : vector<1x64x8xbf16> to vector<64x8xbf16>
    %c3_20 = arith.constant 3 : index
    %c0_21 = arith.constant 0 : index
    %c0_22 = arith.constant 0 : index
    %21 = vector.load %arg3[%c3_20, %c0_21, %c0_22] : memref<7x8x1xbf16, #tpu.memory_space<vmem>>, vector<1x8x1xbf16>
    %22 = vector.shape_cast %21 : vector<1x8x1xbf16> to vector<8x1xbf16>
    %cst_23 = arith.constant dense<0.000000e+00> : vector<64x1xf32>
    %23 = tpu.matmul %20, %22, %cst_23 {dimension_numbers = #tpu.dot_dimension_numbers<[1], [0], [0], [1], [0, 0, 1, 1], [], []>} : vector<64x8xbf16>, vector<8x1xbf16>, vector<64x1xf32> -> vector<64x1xf32>
    %24 = arith.addf %18, %23 : vector<64x1xf32>
    %c0_24 = arith.constant 0 : index
    %c4 = arith.constant 4 : index
    %c0_25 = arith.constant 0 : index
    %25 = vector.load %arg2[%c0_24, %c4, %c0_25] : memref<1x70x8xbf16, #tpu.memory_space<vmem>>, vector<1x64x8xbf16>
    %26 = vector.shape_cast %25 : vector<1x64x8xbf16> to vector<64x8xbf16>
    %c4_26 = arith.constant 4 : index
    %c0_27 = arith.constant 0 : index
    %c0_28 = arith.constant 0 : index
    %27 = vector.load %arg3[%c4_26, %c0_27, %c0_28] : memref<7x8x1xbf16, #tpu.memory_space<vmem>>, vector<1x8x1xbf16>
    %28 = vector.shape_cast %27 : vector<1x8x1xbf16> to vector<8x1xbf16>
    %cst_29 = arith.constant dense<0.000000e+00> : vector<64x1xf32>
    %29 = tpu.matmul %26, %28, %cst_29 {dimension_numbers = #tpu.dot_dimension_numbers<[1], [0], [0], [1], [0, 0, 1, 1], [], []>} : vector<64x8xbf16>, vector<8x1xbf16>, vector<64x1xf32> -> vector<64x1xf32>
    %30 = arith.addf %24, %29 : vector<64x1xf32>
    %c0_30 = arith.constant 0 : index
    %c5 = arith.constant 5 : index
    %c0_31 = arith.constant 0 : index
    %31 = vector.load %arg2[%c0_30, %c5, %c0_31] : memref<1x70x8xbf16, #tpu.memory_space<vmem>>, vector<1x64x8xbf16>
    %32 = vector.shape_cast %31 : vector<1x64x8xbf16> to vector<64x8xbf16>
    %c5_32 = arith.constant 5 : index
    %c0_33 = arith.constant 0 : index
    %c0_34 = arith.constant 0 : index
    %33 = vector.load %arg3[%c5_32, %c0_33, %c0_34] : memref<7x8x1xbf16, #tpu.memory_space<vmem>>, vector<1x8x1xbf16>
    %34 = vector.shape_cast %33 : vector<1x8x1xbf16> to vector<8x1xbf16>
    %cst_35 = arith.constant dense<0.000000e+00> : vector<64x1xf32>
    %35 = tpu.matmul %32, %34, %cst_35 {dimension_numbers = #tpu.dot_dimension_numbers<[1], [0], [0], [1], [0, 0, 1, 1], [], []>} : vector<64x8xbf16>, vector<8x1xbf16>, vector<64x1xf32> -> vector<64x1xf32>
    %36 = arith.addf %30, %35 : vector<64x1xf32>
    %c0_36 = arith.constant 0 : index
    %c6 = arith.constant 6 : index
    %c0_37 = arith.constant 0 : index
    %37 = vector.load %arg2[%c0_36, %c6, %c0_37] : memref<1x70x8xbf16, #tpu.memory_space<vmem>>, vector<1x64x8xbf16>
    %38 = vector.shape_cast %37 : vector<1x64x8xbf16> to vector<64x8xbf16>
    %c6_38 = arith.constant 6 : index
    %c0_39 = arith.constant 0 : index
    %c0_40 = arith.constant 0 : index
    %39 = vector.load %arg3[%c6_38, %c0_39, %c0_40] : memref<7x8x1xbf16, #tpu.memory_space<vmem>>, vector<1x8x1xbf16>
    %40 = vector.shape_cast %39 : vector<1x8x1xbf16> to vector<8x1xbf16>
    %cst_41 = arith.constant dense<0.000000e+00> : vector<64x1xf32>
    %41 = tpu.matmul %38, %40, %cst_41 {dimension_numbers = #tpu.dot_dimension_numbers<[1], [0], [0], [1], [0, 0, 1, 1], [], []>} : vector<64x8xbf16>, vector<8x1xbf16>, vector<64x1xf32> -> vector<64x1xf32>
    %42 = arith.addf %36, %41 : vector<64x1xf32>
    %43 = arith.truncf %42 : vector<64x1xf32> to vector<64x1xbf16>
    %c0_42 = arith.constant 0 : index
    %c0_43 = arith.constant 0 : index
    %c0_44 = arith.constant 0 : index
    %44 = vector.load %arg4[%c0_42, %c0_43, %c0_44] : memref<1x64x1xbf16, #tpu.memory_space<vmem>>, vector<1x64x1xbf16>
    %45 = vector.shape_cast %44 : vector<1x64x1xbf16> to vector<64x1xbf16>
    %46 = vector.shape_cast %43 : vector<64x1xbf16> to vector<1x64x1xbf16>
    tpu.vector_store %arg4[%c0_42, %c0_43, %c0_44], %46 {strides = array<i32>} : memref<1x64x1xbf16, #tpu.memory_space<vmem>>, vector<1x64x1xbf16>,
    %cst_45 = arith.constant dense<0.000000e+00> : vector<1xf32>
    %47 = vector.multi_reduction <add>, %42, %cst_45 [0] : vector<64x1xf32> to vector<1xf32>
    %48 = vector.shape_cast %47 : vector<1xf32> to vector<1x1xf32>
    %c0_46 = arith.constant 0 : index
    %c0_47 = arith.constant 0 : index
    %c0_48 = arith.constant 0 : index
    %c0_49 = arith.constant 0 : index
    %49 = vector.load %arg5[%c0_46, %c0_47, %c0_48, %c0_49] : memref<1x1x1x1xf32, #tpu.memory_space<vmem>>, vector<1x1x1x1xf32>
    %50 = vector.shape_cast %49 : vector<1x1x1x1xf32> to vector<1x1xf32>
    %51 = vector.shape_cast %48 : vector<1x1xf32> to vector<1x1x1x1xf32>
    tpu.vector_store %arg5[%c0_46, %c0_47, %c0_48, %c0_49], %51 {strides = array<i32>} : memref<1x1x1x1xf32, #tpu.memory_space<vmem>>, vector<1x1x1x1xf32>,
    %52 = arith.mulf %42, %42 : vector<64x1xf32>
    %cst_50 = arith.constant dense<0.000000e+00> : vector<1xf32>
    %53 = vector.multi_reduction <add>, %52, %cst_50 [0] : vector<64x1xf32> to vector<1xf32>
    %54 = vector.shape_cast %53 : vector<1xf32> to vector<1x1xf32>
    %c0_51 = arith.constant 0 : index
    %c0_52 = arith.constant 0 : index
    %c0_53 = arith.constant 0 : index
    %c0_54 = arith.constant 0 : index
    %55 = vector.load %arg6[%c0_51, %c0_52, %c0_53, %c0_54] : memref<1x1x1x1xf32, #tpu.memory_space<vmem>>, vector<1x1x1x1xf32>
    %56 = vector.shape_cast %55 : vector<1x1x1x1xf32> to vector<1x1xf32>
    %57 = vector.shape_cast %54 : vector<1x1xf32> to vector<1x1x1x1xf32>
    tpu.vector_store %arg6[%c0_51, %c0_52, %c0_53, %c0_54], %57 {strides = array<i32>} : memref<1x1x1x1xf32, #tpu.memory_space<vmem>>, vector<1x1x1x1xf32>,
    return
  }
  func.func @transform_0(%arg0: i32, %arg1: i32) -> (i32, i32, i32) {
    %c0_i32 = arith.constant 0 : i32
    %c0_i32_0 = arith.constant 0 : i32
    %c0_i32_1 = arith.constant 0 : i32
    return %arg0, %c0_i32, %c0_i32_0 : i32, i32, i32
  }
  func.func @transform_1(%arg0: i32, %arg1: i32) -> (i32, i32, i32) {
    %c0_i32 = arith.constant 0 : i32
    %c0_i32_0 = arith.constant 0 : i32
    %c0_i32_1 = arith.constant 0 : i32
    %c0_i32_2 = arith.constant 0 : i32
    return %c0_i32, %c0_i32_0, %c0_i32_1 : i32, i32, i32
  }
  func.func @transform_2(%arg0: i32, %arg1: i32) -> (i32, i32, i32) {
    %c0_i32 = arith.constant 0 : i32
    %c0_i32_0 = arith.constant 0 : i32
    return %arg0, %arg1, %c0_i32 : i32, i32, i32
  }
  func.func @transform_3(%arg0: i32, %arg1: i32) -> (i32, i32, i32, i32) {
    %c0_i32 = arith.constant 0 : i32
    %c0_i32_0 = arith.constant 0 : i32
    %c0_i32_1 = arith.constant 0 : i32
    return %arg0, %arg1, %c0_i32, %c0_i32_0 : i32, i32, i32, i32
  }
  func.func @transform_4(%arg0: i32, %arg1: i32) -> (i32, i32, i32, i32) {
    %c0_i32 = arith.constant 0 : i32
    %c0_i32_0 = arith.constant 0 : i32
    %c0_i32_1 = arith.constant 0 : i32
    return %arg0, %arg1, %c0_i32, %c0_i32_0 : i32, i32, i32, i32
  }
}

module attributes {stable_mosaic.version = 11 : i64} {
  func.func @kernel(%arg0: i32, %arg1: i32, %arg2: memref<1x64x1xbf16, #tpu.memory_space<vmem>>, %arg3: memref<1x1xf32, #tpu.memory_space<vmem>>, %arg4: memref<1x1xf32, #tpu.memory_space<vmem>>, %arg5: memref<1x64x1xf32, #tpu.memory_space<vmem>>) attributes {dimension_semantics = [#tpu.dimension_semantics<parallel>, #tpu.dimension_semantics<parallel>], iteration_bounds = array<i64: 2, 1>, scalar_prefetch = 0 : i64, scratch_operands = 0 : i64, tpu.core_type = #tpu.core_type<tc>, window_params = [{transform_indices = @transform_0, window_bounds = array<i64: 1, 64, 1>}, {pipeline_mode = #tpu.pipeline_mode<synchronous>, transform_indices = @transform_1, window_bounds = array<i64: 1, 1>}, {pipeline_mode = #tpu.pipeline_mode<synchronous>, transform_indices = @transform_2, window_bounds = array<i64: 1, 1>}, {transform_indices = @transform_3, window_bounds = array<i64: 1, 64, 1>}]} {
    %c0 = arith.constant 0 : index
    %c0_0 = arith.constant 0 : index
    %c0_1 = arith.constant 0 : index
    %0 = vector.load %arg2[%c0, %c0_0, %c0_1] : memref<1x64x1xbf16, #tpu.memory_space<vmem>>, vector<1x64x1xbf16>
    %1 = vector.shape_cast %0 : vector<1x64x1xbf16> to vector<64x1xbf16>
    %2 = arith.extf %1 : vector<64x1xbf16> to vector<64x1xf32>
    %c0_2 = arith.constant 0 : index
    %c0_3 = arith.constant 0 : index
    %3 = vector.load %arg3[%c0_2, %c0_3] : memref<1x1xf32, #tpu.memory_space<vmem>>, vector<1x1xf32>
    %4 = vector.broadcast %3 : vector<1x1xf32> to vector<64x1xf32>
    %5 = arith.mulf %2, %4 : vector<64x1xf32>
    %c0_4 = arith.constant 0 : index
    %c0_5 = arith.constant 0 : index
    %6 = vector.load %arg4[%c0_4, %c0_5] : memref<1x1xf32, #tpu.memory_space<vmem>>, vector<1x1xf32>
    %7 = vector.broadcast %6 : vector<1x1xf32> to vector<64x1xf32>
    %8 = arith.addf %5, %7 : vector<64x1xf32>
    %c0_6 = arith.constant 0 : index
    %c0_7 = arith.constant 0 : index
    %c0_8 = arith.constant 0 : index
    %9 = vector.load %arg5[%c0_6, %c0_7, %c0_8] : memref<1x64x1xf32, #tpu.memory_space<vmem>>, vector<1x64x1xf32>
    %10 = vector.shape_cast %9 : vector<1x64x1xf32> to vector<64x1xf32>
    %11 = vector.shape_cast %8 : vector<64x1xf32> to vector<1x64x1xf32>
    tpu.vector_store %arg5[%c0_6, %c0_7, %c0_8], %11 {strides = array<i32>} : memref<1x64x1xf32, #tpu.memory_space<vmem>>, vector<1x64x1xf32>,
    return
  }
  func.func @transform_0(%arg0: i32, %arg1: i32) -> (i32, i32, i32) {
    %c0_i32 = arith.constant 0 : i32
    %c0_i32_0 = arith.constant 0 : i32
    return %arg0, %arg1, %c0_i32 : i32, i32, i32
  }
  func.func @transform_1(%arg0: i32, %arg1: i32) -> (i32, i32) {
    %c0_i32 = arith.constant 0 : i32
    %c0_i32_0 = arith.constant 0 : i32
    %c0_i32_1 = arith.constant 0 : i32
    return %c0_i32, %c0_i32_0 : i32, i32
  }
  func.func @transform_2(%arg0: i32, %arg1: i32) -> (i32, i32) {
    %c0_i32 = arith.constant 0 : i32
    %c0_i32_0 = arith.constant 0 : i32
    %c0_i32_1 = arith.constant 0 : i32
    return %c0_i32, %c0_i32_0 : i32, i32
  }
  func.func @transform_3(%arg0: i32, %arg1: i32) -> (i32, i32, i32) {
    %c0_i32 = arith.constant 0 : i32
    %c0_i32_0 = arith.constant 0 : i32
    return %arg0, %arg1, %c0_i32 : i32, i32, i32
  }
}

</mosaic_0001>

<bundles_post_ra>
// kernel: _lambda_.57
= control target key start
LH: loop header
LB: loop body
LE: loop exit
PB: predicated region body
PF: predicated region fallthrough
CT: control target
= control target key end

     0   :  { %s510_s12 = smov 0   ;;  %s512_s13 = smov 0   ;;  %s564_s0 = inlined_call_operand.vmem [shape: bf16[2,64,8], index: 0, kind: input, shape index: {}]   ;;  %s565_s1 = inlined_call_operand.vmem [shape: f32[1,8], index: 1, kind: input, shape index: {}]   ;;  %s566_s2 = inlined_call_operand.vmem [shape: f32[1,8], index: 2, kind: input, shape index: {}]   ;;  %s567_s3 = inlined_call_operand.vmem [shape: bf16[2,64,8], index: 3, kind: output, shape index: {}]  }
   0x1   :  { %s514_s14 = smov 0  }
   0x2 LB: > { %s25_s15 = sadd.s32 1, %s484_s13  ;;  %p396_p0 = scmp.ge.s32.totalorder %s488_s14, 1  ;;  %s488_s14 = sphi %s514_s14, %s13_s14   ;;  %s484_s13 = sphi %s512_s13, %s569_s13   ;;  %s480_s12 = sphi %s510_s12, %s568_s12  }
   0x3   : > { %p27_p1 = scmp.ge.s32.totalorder %s25_s15, 2  ;;  %p158_p2 = scmp.lt.s32.totalorder %s488_s14, 3 }
   0x5   : > { %s571_s15 = smov (%p27_p1, %s25_s15), 0  ;;  %p159_p3 = pnand %p396_p0, %p158_p2 }
   0x6   : > { %p191_p4 = scmp.lt.s32.totalorder (!%p159_p3), %s480_s12, 1  ;;  %v401_v0 = vld [vmem:[%s565_s1] ss:$0 sm:$0xff] (!%p159_p3)  ;;  %vm296_vm0 = vcmask (!%p159_p3), 60416  }
   0x7   : > { %162 = sbr.rel (%p159_p3) target bundleno = 32 (0x20), region = 32  ;;  %v402_v9 = vld [vmem:[%s566_s2] ss:$0 sm:$0xff] (!%p159_p3) }
   0xe   : > { %s573_s12 = smov (!%p191_p4, %s480_s12), 1 }
   0xf   : > { %s413_s16 = sshll.u32 %s573_s12, 5 }
  0x10   : > { %s198_s19 = scalar_lea.vmem %s564_s0, %s413_s16  ;;  %s208_s26 = scalar_lea.vmem %s567_s3, %s413_s16 }
  0x11   : > { %v424_v1 = vld [vmem:[%s198_s19] sm:$0xff]   ;;  %v439_v2 = vld [vmem:[%s198_s19 + $0x8] sm:$0xff]   ;;  %v440_v3 = vld [vmem:[%s198_s19 + $0x10] sm:$0xff]  }
  0x12   : > { %v425_v4 = vunpack.c.l.bf16 %v424_v1  ;;  %v426_v5 = vunpack.c.h.bf16 %v424_v1  ;;  %v429_v6 = vunpack.c.l.bf16 %v439_v2  ;;  %v430_v7 = vunpack.c.h.bf16 %v439_v2  ;;  %v441_v8 = vld [vmem:[%s198_s19 + $0x18] sm:$0xff]  }
  0x13   : > { %v433_v10 = vunpack.c.l.bf16 %v440_v3  ;;  %v434_v11 = vunpack.c.h.bf16 %v440_v3  ;;  %v437_v12 = vunpack.c.l.bf16 %v441_v8  ;;  %v438_v13 = vunpack.c.h.bf16 %v441_v8 }
  0x14   : > { %v233_v14 = vmul.f32 %v425_v4, %v401_v0  ;;  %v234_v15 = vmul.f32 %v426_v5, %v401_v0  ;;  %v235_v16 = vmul.f32 %v429_v6, %v401_v0  ;;  %v236_v17 = vmul.f32 %v430_v7, %v401_v0 }
  0x15   : > { %v237_v18 = vmul.f32 %v433_v10, %v401_v0  ;;  %v238_v19 = vmul.f32 %v434_v11, %v401_v0  ;;  %v239_v20 = vmul.f32 %v437_v12, %v401_v0  ;;  %v240_v21 = vmul.f32 %v438_v13, %v401_v0 }
  0x16   : > { %v248_v22 = vadd.f32 %v402_v9, %v233_v14  ;;  %v249_v23 = vadd.f32 %v402_v9, %v234_v15  ;;  %v250_v24 = vadd.f32 %v402_v9, %v235_v16  ;;  %v251_v25 = vadd.f32 %v402_v9, %v236_v17 }
  0x17   : > { %v252_v26 = vadd.f32 %v402_v9, %v237_v18  ;;  %v253_v27 = vadd.f32 %v402_v9, %v238_v19  ;;  %v254_v28 = vadd.f32 %v402_v9, %v239_v20  ;;  %v255_v29 = vadd.f32 %v402_v9, %v240_v21 }
  0x18   : > { %v256_v30 = vmax.f32 %v248_v22, 0.0  ;;  %v257_v31 = vmax.f32 %v249_v23, 0.0  ;;  %v258_v32 = vmax.f32 %v250_v24, 0.0  ;;  %v259_v33 = vmax.f32 %v251_v25, 0.0 }
  0x19   : > { %v260_v34 = vmax.f32 %v252_v26, 0.0  ;;  %v261_v35 = vmax.f32 %v253_v27, 0.0  ;;  %v262_v36 = vmax.f32 %v254_v28, 0.0  ;;  %v263_v37 = vmax.f32 %v255_v29, 0.0 }
  0x1a   : > { %v415_v38 = vpack.c.bf16 %v256_v30, %v256_v30  ;;  %v416_v39 = vpack.c.bf16 %v257_v31, %v257_v31  ;;  %v417_v40 = vpack.c.bf16 %v258_v32, %v258_v32  ;;  %v418_v41 = vpack.c.bf16 %v259_v33, %v259_v33 }
  0x1b   : > { %v419_v42 = vpack.c.bf16 %v260_v34, %v260_v34  ;;  %v420_v43 = vpack.c.bf16 %v261_v35, %v261_v35  ;;  %v421_v44 = vpack.c.bf16 %v262_v36, %v262_v36  ;;  %v422_v45 = vpack.c.bf16 %v263_v37, %v263_v37 }
  0x1c   : > { %297 = vst.msk [vmem:[%s208_s26] sm:$0xf] %vm296_vm0, %v415_v38  ;;  %298 = vst.msk [vmem:[%s208_s26 + $0x4] sm:$0xf] %vm296_vm0, %v416_v39 }
  0x1d   : > { %299 = vst.msk [vmem:[%s208_s26 + $0x8] sm:$0xf] %vm296_vm0, %v417_v40  ;;  %300 = vst.msk [vmem:[%s208_s26 + $0xc] sm:$0xf] %vm296_vm0, %v418_v41 }
  0x1e   : > { %301 = vst.msk [vmem:[%s208_s26 + $0x10] sm:$0xf] %vm296_vm0, %v419_v42  ;;  %302 = vst.msk [vmem:[%s208_s26 + $0x14] sm:$0xf] %vm296_vm0, %v420_v43 }
  0x1f   : > { %303 = vst.msk [vmem:[%s208_s26 + $0x18] sm:$0xf] %vm296_vm0, %v421_v44  ;;  %304 = vst.msk [vmem:[%s208_s26 + $0x1c] sm:$0xf] %vm296_vm0, %v422_v45 }
  0x20 PF: > { %s13_s14 = sadd.s32 1, %s488_s14   ;;  %s568_s12 = smov %s484_s13 }
  0x21   : > { %p10_p5 = scmp.ge.s32.totalorder %s13_s14, 4   ;;  %s569_s13 = smov %s571_s15 }
  0x23   :  { %12 = sbr.rel (!%p10_p5) target bundleno = 2 (0x2), region = 62 }

// kernel: _lambda_.58
= control target key start
LH: loop header
LB: loop body
LE: loop exit
PB: predicated region body
PF: predicated region fallthrough
CT: control target
= control target key end

     0   :  { %s1608_s15 = smov 0   ;;  %s1610_s16 = smov 0   ;;  %s1885_s0 = inlined_call_operand.vmem [shape: bf16[2,70,8], index: 0, kind: input, shape index: {}]   ;;  %s1886_s1 = inlined_call_operand.vmem [shape: bf16[7,8,8], index: 1, kind: input, shape index: {}]   ;;  %s1887_s2 = inlined_call_operand.vmem [shape: bf16[2,64,8], index: 2, kind: output, shape index: {0}]   ;;  %s1888_s3 = inlined_call_operand.vmem [shape: f32[2,1,1,8], index: 3, kind: output, shape index: {1}]   ;;  %s1889_s4 = inlined_call_operand.vmem [shape: f32[2,1,1,8], index: 4, kind: output, shape index: {2}]  }
   0x1   :  { %s1612_s17 = smov 0  }
   0x2 LB: > { %s27_s18 = sadd.s32 1, %s1577_s16  ;;  %p1294_p0 = scmp.ge.s32.totalorder %s1581_s17, 1  ;;  %s1581_s17 = sphi %s1612_s17, %s15_s17   ;;  %s1577_s16 = sphi %s1610_s16, %s1891_s16   ;;  %s1573_s15 = sphi %s1608_s15, %s1890_s15  }
   0x3   : > { %p29_p1 = scmp.ge.s32.totalorder %s27_s18, 2  ;;  %p185_p2 = scmp.lt.s32.totalorder %s1581_s17, 3 }
   0x5   : > { %s1893_s18 = smov (%p29_p1, %s27_s18), 0  ;;  %p186_p3 = pnand %p1294_p0, %p185_p2 }
   0x6   : > { %v1298_v0 = vld [vmem:[%s1886_s1 + $0x4] sm:$0xf] (!%p186_p3)  ;;  %vm340_vm0 = vcmask (!%p186_p3), 1043456   ;;  %v1632_v1 = vld [vmem:[%s1886_s1 + $0xc] sm:$0xf] (!%p186_p3)  ;;  %p227_p4 = scmp.lt.s32.totalorder (!%p186_p3), %s1573_s15, 1 }
   0x7   : > { %189 = sbr.rel (%p186_p3) target bundleno = 321 (0x141), region = 28  ;;  %1516 = vmatprep.subr.msk.bf16.mxu1 (!%p186_p3), %vm340_vm0, %v1298_v0  ;;  %1519 = vmatprep.subr.msk.bf16.mxu0 (!%p186_p3), %vm340_vm0, %v1632_v1  ;;  %v342_v2 = vsel (!%p186_p3), %vm340_vm0, %v1298_v0, 0  ;;  %v1640_v3 = vsel (!%p186_p3), %vm340_vm0, %v1632_v1, 0  ;;  %v263_v4 = vld [vmem:[%s1886_s1] sm:$0xf] (!%p186_p3)  ;;  %vm327_vm2 = vcmask (!%p186_p3), 64512  }
   0x8   : > { %1397 = vmatpush3.bf16.msra.mxu1 (!%p186_p3), %v342_v2  ;;  %1427 = vmatpush3.bf16.msra.mxu0 (!%p186_p3), %v1640_v3  ;;  %v1324_v5 = vld [vmem:[%s1886_s1 + $0x10] sm:$0xf] (!%p186_p3)  ;;  %vm290_vm1 = vsmask.f32 (!%p186_p3), 7424  ;;  %vm595_vm3 = vsmask.f32 (!%p186_p3), 6400 }
   0x9   : > { %1517 = vmatprep.subr.msk.bf16.mxu1 (!%p186_p3), %vm340_vm0, %v263_v4  ;;  %1521 = vmatprep.subr.msk.bf16.mxu0 (!%p186_p3), %vm340_vm0, %v1324_v5  ;;  %v418_v11 = vsel (!%p186_p3), %vm340_vm0, %v263_v4, 0  ;;  %v742_v14 = vsel (!%p186_p3), %vm340_vm0, %v1324_v5, 0  ;;  %vm719_vm4 = vcmask (!%p186_p3), 1045504   ;;  %v1330_v51 = vld [vmem:[%s1886_s1 + $0x14] sm:$0xf] (!%p186_p3)  ;;  %vm491_vm6 = vcmask (!%p186_p3), 1046528  }
   0xa   : > { %v1312_v52 = vld [vmem:[%s1886_s1 + $0x8] sm:$0xf] (!%p186_p3)  ;;  %v866_v2 = vsel (!%p186_p3), %vm340_vm0, %v1330_v51, 0  ;;  %vm823_vm5 = vsmask.f32 (!%p186_p3), 5376  ;;  %vm947_vm7 = vcmask (!%p186_p3), 1044480  }
   0xb   : > { %vm1077_vm8 = vcmask (!%p186_p3), 60416   ;;  %vm1107_vm9 = vcmask (!%p186_p3), 57344  }
   0xe   : > { %s1895_s15 = smov (!%p227_p4, %s1573_s15), 1 }
   0xf   : > { %s1524_s27 = smul.u32 36, %s1895_s15  ;;  %s1352_s11 = sshll.u32 %s1895_s15, 5 }
  0x10   : > { %s1834_s14 = scalar_lea.vmem %s1887_s2, %s1352_s11  ;;  %s247_s21 = scalar_lea.vmem %s1888_s3, %s1895_s15 }
  0x11   : > { %s1657_s30 = scalar_lea.vmem %s1885_s0, %s1524_s27  ;;  %s253_s24 = scalar_lea.vmem %s1889_s4, %s1895_s15 }
  0x12   : > { %v255_v6 = vld [vmem:[%s1657_s30] sm:$0xf]  ;;  %v1661_v7 = vld [vmem:[%s1657_s30 + $0x4] sm:$0xf]  ;;  %v1667_v9 = vld [vmem:[%s1657_s30 + $0x8] sm:$0xff]  }
  0x13   : > { %v1664_v8 = vcombine.low %v255_v6, %v1661_v7  ;;  %v485_v10 = vld [vmem:[%s1657_s30] sm:$0xe]  ;;  %v1675_v13 = vld [vmem:[%s1657_s30 + $0x10] sm:$0xff]   ;;  %v1681_v17 = vshll.u32 %v1667_v9, 16  ;;  %v1684_v18 = vshrl.u32 %v1667_v9, 16  ;;  %v1698_v27 = vld [vmem:[%s1657_s30 + $0x18] sm:$0xff]  }
  0x14   : > { %v1672_v12 = vcombine.low %v485_v10, %v1661_v7  ;;  %v1689_v21 = vshll.u32 %v1675_v13, 16  ;;  %v1692_v22 = vshrl.u32 %v1675_v13, 16  ;;  %v1705_v36 = vld [vmem:[%s1657_s30 + $0x20] ss:$0 sps:$4 sm:$0x11]   ;;  %v1710_v40 = vshll.u32 %v1698_v27, 16 }
  0x15   : > { %v292_v15 = vshrl.u32 %v1664_v8, 16  ;;  %v294_v16 = vshll.u32 %v1664_v8, 16  ;;  %v301_v24 = vrot.slane %v1681_v17, 1  ;;  %v604_v25 = vrot.slane %v1684_v18, 1  ;;  %v713_v37 = vld [vmem:[%s1657_s30] sm:$0xc] }
  0x16   : > { %v597_v19 = vshrl.u32 %v1672_v12, 16  ;;  %v600_v20 = vshll.u32 %v1672_v12, 16  ;;  %v605_v26 = vrot.slane %v1681_v17, 2  ;;  %v309_v30 = vrot.slane %v1689_v21, 1 }
  0x17   : > { %v296_v23 = vrot.slane %v294_v16, 1  ;;  %v608_v31 = vrot.slane %v1692_v22, 1  ;;  %v305_v33 = vor.u32 %v1684_v18, %v301_v24  ;;  %v609_v35 = vrot.slane %v1689_v21, 2  ;;  %v1750_v63 = vld [vmem:[%s1657_s30 + $0x20] ss:$0 sps:$4 sm:$0x33]  }
  0x18   : > { %v599_v28 = vrot.slane %v597_v19, 1  ;;  %v602_v29 = vrot.slane %v600_v20, 2  ;;  %v606_v34 = vor.u32 %v605_v26, %v604_v25  ;;  %v313_v39 = vor.u32 %v1692_v22, %v309_v30 }
  0x19   : > { %v297_v32 = vor.u32 %v296_v23, %v292_v15  ;;  %v1713_v41 = vshrl.u32 %v1698_v27, 16  ;;  %v310_v43 = vsel %vm290_vm1, %v305_v33, %v309_v30  ;;  %v1717_v44 = vor.u32 %v609_v35, %v608_v31 }
  0x1a   : > { %v603_v38 = vor.u32 %v602_v29, %v599_v28  ;;  %v323_v45 = vshll.u32 %v1705_v36, 16  ;;  %v317_v47 = vrot.slane %v1710_v40, 1  ;;  %v1325_v48 = vcombine.low %v713_v37, %v1661_v7 }
  0x1b   : > { %v302_v42 = vsel %vm290_vm1, %v297_v32, %v301_v24  ;;  %v721_v49 = vrot.slane %v1667_v9, 2  ;;  %v611_v50 = vsel %vm595_vm3, %v606_v34, %v1717_v44  ;;  %v723_v59 = vrot.slane %v1675_v13, 2 }
  0x1c   : > { %1398 = vmatprep.mubr.msk.bf16.mxu1 %vm327_vm2, %v302_v42  ;;  %v607_v46 = vsel %vm595_vm3, %v603_v38, %v606_v34  ;;  %v318_v53 = vsel %vm290_vm1, %v313_v39, %v317_v47  ;;  %v321_v54 = vor.u32 %v1713_v41, %v317_v47  ;;  %v325_v55 = vrot.slane %v323_v45, 1 }
  0x1d   : > { %1428 = vmatprep.mubr.msk.bf16.mxu0 %vm327_vm2, %v607_v46  ;;  %1399 = vmatmul.mubr.msk.bf16.vlgmr.msra.gmra.mrb[0].mxu1 %vm327_vm2, %v310_v43  ;;  %v720_v56 = vrot.slane %v1325_v48, 2  ;;  %v725_v60 = vrot.slane %v1698_v27, 2  ;;  %v825_v61 = vshrl.u32 %v1325_v48, 16  ;;  %v828_v62 = vshll.u32 %v1325_v48, 16 }
  0x1e   : > { %1407 = vmatpush3.bf16.msra.mxu1 %v418_v11  ;;  %1429 = vmatmul.mubr.msk.bf16.vlgmr.msra.gmra.mrb[0].mxu0 %vm327_vm2, %v611_v50  ;;  %v326_v58 = vsel %vm290_vm1, %v321_v54, %v325_v55  ;;  %v724_v0 = vsel %vm719_vm4, %v721_v49, %v723_v59  ;;  %v832_v10 = vrot.slane %v1684_v18, 2  ;;  %v833_v11 = vrot.slane %v1681_v17, 3  ;;  %v1771_v18 = vld [vmem:[%s1657_s30 + $0x20] ss:$0 sps:$4 sm:$0x77]  }
  0x1f   : > { %1437 = vmatpush3.bf16.msra.mxu0 %v742_v14  ;;  %1402 = vmatprep.mubr.msk.bf16.mxu1 %vm327_vm2, %v318_v53  ;;  %v722_v57 = vsel %vm719_vm4, %v720_v56, %v721_v49  ;;  %v726_v4 = vsel %vm719_vm4, %v723_v59, %v725_v60  ;;  %v827_v5 = vrot.slane %v825_v61, 2  ;;  %v830_v6 = vrot.slane %v828_v62, 3  ;;  %v1336_v14 = vld [vmem:[%s1886_s1 + $0x18] sm:$0xf] }
  0x20   : > { %1522 = vmatprep.subr.msk.bf16.mxu0 %vm340_vm0, %v1330_v51  ;;  %1518 = vmatprep.subr.msk.bf16.mxu1 %vm340_vm0, %v1312_v52  ;;  %v514_v15 = vsel %vm340_vm0, %v1312_v52, 0  ;;  %v834_v19 = vor.u32 %v833_v11, %v832_v10  ;;  %v836_v20 = vrot.slane %v1692_v22, 2  ;;  %v837_v23 = vrot.slane %v1689_v21, 3 }
  0x21   : > { %1438 = vmatprep.mubr.msk.bf16.mxu0 %vm327_vm2, %v722_v57  ;;  %v831_v16 = vor.u32 %v830_v6, %v827_v5  ;;  %v492_v24 = vrot.slane %v1672_v12, 1  ;;  %v493_v25 = vrot.slane %v1667_v9, 1  ;;  %v840_v28 = vrot.slane %v1713_v41, 2 }
  0x22   : > { %v841_v29 = vrot.slane %v1710_v40, 3  ;;  %v838_v21 = vor.u32 %v837_v23, %v836_v20  ;;  %v845_v12 = vshrl.u32 %v1771_v18, 16  ;;  %v848_v30 = vshll.u32 %v1771_v18, 16 }
  0x23   : > { %v835_v26 = vsel %vm823_vm5, %v831_v16, %v834_v19  ;;  %v494_v22 = vsel %vm491_vm6, %v492_v24, %v493_v25  ;;  %v495_v32 = vrot.slane %v1675_v13, 1  ;;  %v497_v37 = vrot.slane %v1698_v27, 1 }
  0x24   : > { %v842_v31 = vor.u32 %v841_v29, %v840_v28  ;;  %v839_v33 = vsel %vm823_vm5, %v834_v19, %v838_v21  ;;  %v847_v34 = vrot.slane %v845_v12, 2  ;;  %v850_v35 = vrot.slane %v848_v30, 3 }
  0x25   : > { %1403 = vmatmul.mubr.msk.bf16.gmra.mrb[4].mxu1 %vm327_vm2, %v326_v58  ;;  %v970_v38 = vsel %vm340_vm0, %v1336_v14, 0  ;;  %v496_v43 = vsel %vm491_vm6, %v493_v25, %v495_v32  ;;  %v498_v46 = vsel %vm491_vm6, %v495_v32, %v497_v37  ;;  %v612_v47 = vrot.slane %v1713_v41, 1 }
  0x26   : > { %1408 = vmatprep.mubr.msk.bf16.mxu1 %vm327_vm2, %v1664_v8  ;;  %v727_v8 = vrot.slane %v1750_v63, 2  ;;  %v843_v39 = vsel %vm823_vm5, %v838_v21, %v842_v31  ;;  %v851_v45 = vor.u32 %v850_v35, %v847_v34  ;;  %v613_v48 = vrot.slane %v1710_v40, 2 }
  0x27   : > { %v949_v50 = vrot.slane %v1667_v9, 3  ;;  %v620_v41 = vshll.u32 %v1750_v63, 16  ;;  %v953_v54 = vrot.slane %v1698_v27, 3 }
  0x28   : > { %v728_v17 = vsel %vm719_vm4, %v725_v60, %v727_v8  ;;  %v852_v51 = vsel %vm823_vm5, %v842_v31, %v851_v45  ;;  %v614_v52 = vor.u32 %v613_v48, %v612_v47 }
  0x29   : > { %v622_v56 = vrot.slane %v620_v41, 2 }
  0x2a   : > { %1439 = vmatmul.mubr.msk.bf16.vlgmr.msra.gmra.mrb[0].mxu0 %vm327_vm2, %v724_v0 }
  0x2b   : > { %1447 = vmatpush3.bf16.msra.mxu0 %v866_v2  ;;  %1442 = vmatprep.mubr.msk.bf16.mxu0 %vm327_vm2, %v726_v4 }
  0x2c   : > { %1523 = vmatprep.subr.msk.bf16.mxu0 %vm340_vm0, %v1336_v14 }
  0x2d   : > { %1409 = vmatmul.mubr.msk.bf16.vlgmr.msra.gmra.mrb[0].mxu1 %vm327_vm2, %v1667_v9  ;;  %v617_v9 = vshrl.u32 %v1750_v63, 16 }
  0x2e   : > { %1417 = vmatpush3.bf16.msra.mxu1 %v514_v15  ;;  %1412 = vmatprep.mubr.msk.bf16.mxu1 %vm327_vm2, %v1675_v13 }
  0x2f   : > { %1520 = vmatprep.subr.msk.bf16.mxu1 %vm340_vm0, %v1632_v1  ;;  %v941_v1 = vld [vmem:[%s1657_s30] sm:$0x8]  ;;  %v619_v55 = vrot.slane %v617_v9, 1 }
  0x30   : > { %v1337_v42 = vcombine.low %v941_v1, %v1661_v7  ;;  %v499_v7 = vrot.slane %v1705_v36, 1  ;;  %v615_v36 = vsel %vm595_vm3, %v1717_v44, %v614_v52 }
  0x31   : > { %v623_v59 = vor.u32 %v622_v56, %v619_v55 }
  0x32   : > { %1443 = vmatmul.mubr.msk.bf16.gmra.mrb[4].mxu0 %vm327_vm2, %v728_v17  ;;  %v948_v49 = vrot.slane %v1337_v42, 3  ;;  %v500_v40 = vsel %vm491_vm6, %v497_v37, %v499_v7 }
  0x33   : > { %1448 = vmatprep.mubr.msk.bf16.mxu0 %vm327_vm2, %v835_v26 }
  0x34   : > { %v950_v53 = vsel %vm947_vm7, %v948_v49, %v949_v50 }
  0x35   : > { %1413 = vmatmul.mubr.msk.bf16.gmra.mrb[4].mxu1 %vm327_vm2, %v1698_v27  ;;  %v624_v27 = vsel %vm595_vm3, %v614_v52, %v623_v59 }
  0x36   : > { %1418 = vmatprep.mubr.msk.bf16.mxu1 %vm327_vm2, %v494_v22 }
  0x3a   : > { %1449 = vmatmul.mubr.msk.bf16.vlgmr.msra.gmra.mrb[0].mxu0 %vm327_vm2, %v839_v33 }
  0x3b   : > { %1457 = vmatpush3.bf16.msra.mxu0 %v970_v38  ;;  %1452 = vmatprep.mubr.msk.bf16.mxu0 %vm327_vm2, %v843_v39 }
  0x3d   : > { %1419 = vmatmul.mubr.msk.bf16.vlgmr.msra.gmra.mrb[0].mxu1 %vm327_vm2, %v496_v43 }
  0x3e   : > { %1467 = vmatpush3.bf16.msra.mxu1 %v1640_v3  ;;  %1422 = vmatprep.mubr.msk.bf16.mxu1 %vm327_vm2, %v498_v46  ;;  %v951_v3 = vrot.slane %v1675_v13, 3  ;;  %v955_v13 = vrot.slane %v1771_v18, 3 }
  0x40   : > { %v952_v57 = vsel %vm947_vm7, %v949_v50, %v951_v3  ;;  %v954_v58 = vsel %vm947_vm7, %v951_v3, %v953_v54  ;;  %v956_v44 = vsel %vm947_vm7, %v953_v54, %v955_v13 }
  0x42   : > { %1453 = vmatmul.mubr.msk.bf16.gmra.mrb[4].mxu0 %vm327_vm2, %v852_v51 }
  0x43   : > { %1458 = vmatprep.mubr.msk.bf16.mxu0 %vm327_vm2, %v950_v53 }
  0x45   : > { %1423 = vmatmul.mubr.msk.bf16.gmra.mrb[4].mxu1 %vm327_vm2, %v500_v40 }
  0x46   : > { %1432 = vmatprep.mubr.msk.bf16.mxu1 %vm327_vm2, %v615_v36 }
  0x4a   : > { %1459 = vmatmul.mubr.msk.bf16.vlgmr.msra.gmra.mrb[0].mxu0 %vm327_vm2, %v952_v57 }
  0x4b   : > { %1462 = vmatprep.mubr.msk.bf16.mxu0 %vm327_vm2, %v954_v58 }
  0x51   : > { %1433 = vmatmul.mubr.msk.bf16.vlgmr.msra.gmra.mrb[4].mxu1 %vm327_vm2, %v624_v27 }
  0x52   : > { %1463 = vmatmul.mubr.msk.bf16.gmra.mrb[4].mxu0 %vm327_vm2, %v956_v44 }
 0x110   : > { %v1420_v60 = vpop.f32.mrb[0].mxu1 }
 0x111   : > { %v550_v61 = vpop.f32.mrb[1].mxu1 }
 0x112   : > { %v1421_v62 = vpop.f32.mrb[2].mxu1 }
 0x113   : > { %v553_v63 = vpop.f32.mrb[3].mxu1 }
 0x11d   : > { %v1460_v0 = vpop.f32.mrb[0].mxu0 }
 0x11e   : > { %v1468_v2 = vadd.f32 %v1460_v0, %v1420_v60  ;;  %v1006_v4 = vpop.f32.mrb[1].mxu0 }
 0x11f   : > { %v1469_v5 = vadd.f32 %v1006_v4, %v550_v61  ;;  %v1461_v6 = vpop.f32.mrb[2].mxu0 }
 0x120   : > { %v1355_v10 = vpack.c.bf16 %v1468_v2, %v1468_v2  ;;  %v1470_v11 = vadd.f32 %v1461_v6, %v1421_v62  ;;  %v1009_v14 = vpop.f32.mrb[3].mxu0  ;;  %v1111_v19 = vmul.f32 %v1468_v2, %v1468_v2  ;;  %v1089_v29 = vsel %vm327_vm2, %v1468_v2, 0.0 }
 0x121   : > { %v1353_v8 = vpack.c.bf16 %v1469_v5, %v1469_v5  ;;  %v1109_v15 = vmul.f32 %v1469_v5, %v1469_v5  ;;  %v1471_v16 = vadd.f32 %v1009_v14, %v553_v63  ;;  %v1086_v18 = vsel %vm327_vm2, %v1469_v5, 0.0 }
 0x122   : > { %1080 = vst.msk [vmem:[%s1834_s14 + $0x8] sm:$0xf] %vm1077_vm8, %v1355_v10  ;;  %v1356_v17 = vpack.c.bf16 %v1470_v11, %v1470_v11  ;;  %v1112_v25 = vmul.f32 %v1470_v11, %v1470_v11  ;;  %v1120_v35 = vsel %vm327_vm2, %v1111_v19, 0.0  ;;  %v1091_v42 = vsel %vm327_vm2, %v1470_v11, 0.0 }
 0x123   : > { %1078 = vst.msk [vmem:[%s1834_s14] sm:$0xf] %vm1077_vm8, %v1353_v8  ;;  %v1354_v20 = vpack.c.bf16 %v1471_v16, %v1471_v16  ;;  %v1087_v23 = vsel %vm327_vm2, %v1471_v16, 0.0  ;;  %v1110_v24 = vmul.f32 %v1471_v16, %v1471_v16  ;;  %v1117_v21 = vsel %vm327_vm2, %v1109_v15, 0.0 }
 0x124   : > { %1081 = vst.msk [vmem:[%s1834_s14 + $0xc] sm:$0xf] %vm1077_vm8, %v1356_v17  ;;  %v1088_v26 = vadd.f32 %v1087_v23, %v1086_v18  ;;  %v1434_v28 = vpop.f32.mrb[4].mxu1  ;;  %v1122_v43 = vsel %vm327_vm2, %v1112_v25, 0.0 }
 0x125   : > { %1079 = vst.msk [vmem:[%s1834_s14 + $0x4] sm:$0xf] %vm1077_vm8, %v1354_v20  ;;  %v1118_v22 = vsel %vm327_vm2, %v1110_v24, 0.0  ;;  %v1464_v12 = vpop.f32.mrb[4].mxu0  ;;  %v690_v30 = vpop.f32.mrb[5].mxu1 }
 0x126   : > { %v1090_v31 = vadd.f32 %v1089_v29, %v1088_v26  ;;  %v1119_v1 = vadd.f32 %v1118_v22, %v1117_v21  ;;  %v1472_v32 = vadd.f32 %v1464_v12, %v1434_v28  ;;  %v1022_v33 = vpop.f32.mrb[5].mxu0  ;;  %v1435_v34 = vpop.f32.mrb[6].mxu1 }
 0x127   : > { %v1473_v37 = vadd.f32 %v1022_v33, %v690_v30  ;;  %v1465_v38 = vpop.f32.mrb[6].mxu0  ;;  %v693_v39 = vpop.f32.mrb[7].mxu1 }
 0x128   : > { %v1121_v45 = vadd.f32 %v1120_v35, %v1119_v1  ;;  %v1359_v46 = vpack.c.bf16 %v1472_v32, %v1472_v32  ;;  %v1025_v47 = vpop.f32.mrb[7].mxu0  ;;  %v1092_v49 = vadd.f32 %v1091_v42, %v1090_v31  ;;  %v1474_v52 = vadd.f32 %v1465_v38, %v1435_v34 }
 0x129   : > { %v1357_v48 = vpack.c.bf16 %v1473_v37, %v1473_v37  ;;  %v1093_v50 = vsel %vm327_vm2, %v1473_v37, 0.0  ;;  %v1113_v7 = vmul.f32 %v1473_v37, %v1473_v37  ;;  %v1475_v53 = vadd.f32 %v1025_v47, %v693_v39 }
 0x12a   : > { %1084 = vst.msk [vmem:[%s1834_s14 + $0x18] sm:$0xf] %vm1077_vm8, %v1359_v46  ;;  %v1123_v51 = vadd.f32 %v1122_v43, %v1121_v45  ;;  %v1094_v40 = vadd.f32 %v1093_v50, %v1092_v49  ;;  %v1360_v3 = vpack.c.bf16 %v1474_v52, %v1474_v52  ;;  %v1115_v36 = vmul.f32 %v1472_v32, %v1472_v32 }
 0x12b   : > { %1082 = vst.msk [vmem:[%s1834_s14 + $0x10] sm:$0xf] %vm1077_vm8, %v1357_v48  ;;  %v1124_v9 = vsel %vm327_vm2, %v1113_v7, 0.0  ;;  %v1358_v54 = vpack.c.bf16 %v1475_v53, %v1475_v53  ;;  %v1095_v55 = vsel %vm327_vm2, %v1475_v53, 0.0  ;;  %v1114_v56 = vmul.f32 %v1475_v53, %v1475_v53 }
 0x12c   : > { %v1125_v41 = vadd.f32 %v1124_v9, %v1123_v51  ;;  %1085 = vst.msk [vmem:[%s1834_s14 + $0x1c] sm:$0xf] %vm1077_vm8, %v1360_v3  ;;  %v1096_v57 = vadd.f32 %v1095_v55, %v1094_v40  ;;  %v1097_v58 = vsel %vm327_vm2, %v1472_v32, 0.0  ;;  %v1116_v59 = vmul.f32 %v1474_v52, %v1474_v52 }
 0x12d   : > { %1083 = vst.msk [vmem:[%s1834_s14 + $0x14] sm:$0xf] %vm1077_vm8, %v1358_v54  ;;  %v1126_v13 = vsel %vm327_vm2, %v1114_v56, 0.0  ;;  %v1128_v60 = vsel %vm327_vm2, %v1115_v36, 0.0  ;;  %v1099_v61 = vsel %vm327_vm2, %v1474_v52, 0.0 }
 0x12e   : > { %v1098_v27 = vadd.f32 %v1097_v58, %v1096_v57  ;;  %v1127_v44 = vadd.f32 %v1126_v13, %v1125_v41  ;;  %v1130_v0 = vsel %vm327_vm2, %v1116_v59, 0.0 }
 0x130   : > { %v1100_v62 = vadd.f32 %v1099_v61, %v1098_v27  ;;  %v1129_v63 = vadd.f32 %v1128_v60, %v1127_v44 }
 0x132   : > { %v1101_v2 = vrot.slane %v1100_v62, 4  ;;  %v1131_v4 = vadd.f32 %v1130_v0, %v1129_v63 }
 0x134   : > { %v1102_v5 = vadd.f32 %v1101_v2, %v1100_v62  ;;  %v1132_v6 = vrot.slane %v1131_v4, 4 }
 0x136   : > { %v1103_v10 = vrot.slane %v1102_v5, 2  ;;  %v1133_v11 = vadd.f32 %v1132_v6, %v1131_v4 }
 0x138   : > { %v1104_v14 = vadd.f32 %v1103_v10, %v1102_v5  ;;  %v1134_v8 = vrot.slane %v1133_v11, 2 }
 0x13a   : > { %v1105_v15 = vrot.slane %v1104_v14, 1  ;;  %v1135_v16 = vadd.f32 %v1134_v8, %v1133_v11 }
 0x13c   : > { %v1106_v19 = vadd.f32 %v1105_v15, %v1104_v14  ;;  %v1136_v17 = vrot.slane %v1135_v16, 1 }
 0x13e   : > { %1108 = vst.msk [vmem:[%s247_s21] sm:$0x1] %vm1107_vm9, %v1106_v19  ;;  %v1137_v18 = vadd.f32 %v1136_v17, %v1135_v16 }
 0x140   : > { %1138 = vst.msk [vmem:[%s253_s24] sm:$0x1] %vm1107_vm9, %v1137_v18 }
 0x141 PF: > { %s15_s17 = sadd.s32 1, %s1581_s17   ;;  %s1890_s15 = smov %s1577_s16 }
 0x142   : > { %p12_p5 = scmp.ge.s32.totalorder %s15_s17, 4   ;;  %s1891_s16 = smov %s1893_s18 }
 0x144   :  { %14 = sbr.rel (!%p12_p5) target bundleno = 2 (0x2), region = 88 }

// kernel: _lambda_.56
= control target key start
LH: loop header
LB: loop body
LE: loop exit
PB: predicated region body
PF: predicated region fallthrough
CT: control target
= control target key end

     0   :  { %s1609_s15 = smov 0   ;;  %s1611_s16 = smov 0   ;;  %s1886_s0 = inlined_call_operand.vmem [shape: bf16[2,70,4], index: 0, kind: input, shape index: {}]   ;;  %s1887_s1 = inlined_call_operand.vmem [shape: bf16[7,4,8], index: 1, kind: input, shape index: {}]   ;;  %s1888_s2 = inlined_call_operand.vmem [shape: bf16[2,64,8], index: 2, kind: output, shape index: {0}]   ;;  %s1889_s3 = inlined_call_operand.vmem [shape: f32[2,1,1,8], index: 3, kind: output, shape index: {1}]   ;;  %s1890_s4 = inlined_call_operand.vmem [shape: f32[2,1,1,8], index: 4, kind: output, shape index: {2}]  }
   0x1   :  { %s1613_s17 = smov 0  }
   0x2 LB: > { %s27_s18 = sadd.s32 1, %s1578_s16  ;;  %p1295_p0 = scmp.ge.s32.totalorder %s1582_s17, 1  ;;  %s1582_s17 = sphi %s1613_s17, %s15_s17   ;;  %s1578_s16 = sphi %s1611_s16, %s1892_s16   ;;  %s1574_s15 = sphi %s1609_s15, %s1891_s15  }
   0x3   : > { %p29_p1 = scmp.ge.s32.totalorder %s27_s18, 2  ;;  %p185_p2 = scmp.lt.s32.totalorder %s1582_s17, 3 }
   0x5   : > { %s1894_s18 = smov (%p29_p1, %s27_s18), 0  ;;  %p186_p3 = pnand %p1295_p0, %p185_p2 }
   0x6   : > { %v1299_v0 = vld [vmem:[%s1887_s1 + $0x2] sm:$0x3] (!%p186_p3)  ;;  %vm340_vm0 = vcmask (!%p186_p3), 1041408   ;;  %v1633_v1 = vld [vmem:[%s1887_s1 + $0x6] sm:$0x3] (!%p186_p3)  ;;  %p227_p4 = scmp.lt.s32.totalorder (!%p186_p3), %s1574_s15, 1 }
   0x7   : > { %189 = sbr.rel (%p186_p3) target bundleno = 321 (0x141), region = 28  ;;  %1517 = vmatprep.subr.msk.bf16.mxu1 (!%p186_p3), %vm340_vm0, %v1299_v0  ;;  %1520 = vmatprep.subr.msk.bf16.mxu0 (!%p186_p3), %vm340_vm0, %v1633_v1  ;;  %v342_v2 = vsel (!%p186_p3), %vm340_vm0, %v1299_v0, 0  ;;  %v1641_v3 = vsel (!%p186_p3), %vm340_vm0, %v1633_v1, 0  ;;  %v263_v4 = vld [vmem:[%s1887_s1] sm:$0x3] (!%p186_p3)  ;;  %vm327_vm2 = vcmask (!%p186_p3), 31744  }
   0x8   : > { %1398 = vmatpush3.bf16.msra.mxu1 (!%p186_p3), %v342_v2  ;;  %1428 = vmatpush3.bf16.msra.mxu0 (!%p186_p3), %v1641_v3  ;;  %v1325_v5 = vld [vmem:[%s1887_s1 + $0x8] sm:$0x3] (!%p186_p3)  ;;  %vm290_vm1 = vsmask.f32 (!%p186_p3), 7424  ;;  %vm595_vm3 = vsmask.f32 (!%p186_p3), 6400 }
   0x9   : > { %1518 = vmatprep.subr.msk.bf16.mxu1 (!%p186_p3), %vm340_vm0, %v263_v4  ;;  %1522 = vmatprep.subr.msk.bf16.mxu0 (!%p186_p3), %vm340_vm0, %v1325_v5  ;;  %v418_v11 = vsel (!%p186_p3), %vm340_vm0, %v263_v4, 0  ;;  %v742_v14 = vsel (!%p186_p3), %vm340_vm0, %v1325_v5, 0  ;;  %vm719_vm4 = vcmask (!%p186_p3), 1045504   ;;  %v1331_v51 = vld [vmem:[%s1887_s1 + $0xa] sm:$0x3] (!%p186_p3)  ;;  %vm491_vm6 = vcmask (!%p186_p3), 1046528  }
   0xa   : > { %v1313_v52 = vld [vmem:[%s1887_s1 + $0x4] sm:$0x3] (!%p186_p3)  ;;  %v866_v2 = vsel (!%p186_p3), %vm340_vm0, %v1331_v51, 0  ;;  %vm823_vm5 = vsmask.f32 (!%p186_p3), 5376  ;;  %vm947_vm7 = vcmask (!%p186_p3), 1044480  }
   0xb   : > { %vm1077_vm8 = vcmask (!%p186_p3), 60416   ;;  %vm1086_vm9 = vcmask (!%p186_p3), 64512   ;;  %vm1108_vm10 = vcmask (!%p186_p3), 57344  }
   0xe   : > { %s1896_s15 = smov (!%p227_p4, %s1574_s15), 1 }
   0xf   : > { %s1525_s27 = smul.u32 36, %s1896_s15  ;;  %s1353_s11 = sshll.u32 %s1896_s15, 5 }
  0x10   : > { %s1835_s14 = scalar_lea.vmem %s1888_s2, %s1353_s11  ;;  %s247_s21 = scalar_lea.vmem %s1889_s3, %s1896_s15 }
  0x11   : > { %s1658_s30 = scalar_lea.vmem %s1886_s0, %s1525_s27  ;;  %s253_s24 = scalar_lea.vmem %s1890_s4, %s1896_s15 }
  0x12   : > { %v255_v6 = vld [vmem:[%s1658_s30] sm:$0xf]  ;;  %v1662_v7 = vld [vmem:[%s1658_s30 + $0x4] sm:$0xf]  ;;  %v1668_v9 = vld [vmem:[%s1658_s30 + $0x8] sm:$0xff]  }
  0x13   : > { %v1665_v8 = vcombine.low %v255_v6, %v1662_v7  ;;  %v485_v10 = vld [vmem:[%s1658_s30] sm:$0xe]  ;;  %v1676_v13 = vld [vmem:[%s1658_s30 + $0x10] sm:$0xff]   ;;  %v1682_v17 = vshll.u32 %v1668_v9, 16  ;;  %v1685_v18 = vshrl.u32 %v1668_v9, 16  ;;  %v1699_v27 = vld [vmem:[%s1658_s30 + $0x18] sm:$0xff]  }
  0x14   : > { %v1673_v12 = vcombine.low %v485_v10, %v1662_v7  ;;  %v1690_v21 = vshll.u32 %v1676_v13, 16  ;;  %v1693_v22 = vshrl.u32 %v1676_v13, 16  ;;  %v1706_v36 = vld [vmem:[%s1658_s30 + $0x20] ss:$0 sps:$4 sm:$0x11]   ;;  %v1711_v40 = vshll.u32 %v1699_v27, 16 }
  0x15   : > { %v292_v15 = vshrl.u32 %v1665_v8, 16  ;;  %v294_v16 = vshll.u32 %v1665_v8, 16  ;;  %v301_v24 = vrot.slane %v1682_v17, 1  ;;  %v604_v25 = vrot.slane %v1685_v18, 1  ;;  %v713_v37 = vld [vmem:[%s1658_s30] sm:$0xc] }
  0x16   : > { %v597_v19 = vshrl.u32 %v1673_v12, 16  ;;  %v600_v20 = vshll.u32 %v1673_v12, 16  ;;  %v605_v26 = vrot.slane %v1682_v17, 2  ;;  %v309_v30 = vrot.slane %v1690_v21, 1 }
  0x17   : > { %v296_v23 = vrot.slane %v294_v16, 1  ;;  %v608_v31 = vrot.slane %v1693_v22, 1  ;;  %v305_v33 = vor.u32 %v1685_v18, %v301_v24  ;;  %v609_v35 = vrot.slane %v1690_v21, 2  ;;  %v1751_v63 = vld [vmem:[%s1658_s30 + $0x20] ss:$0 sps:$4 sm:$0x33]  }
  0x18   : > { %v599_v28 = vrot.slane %v597_v19, 1  ;;  %v602_v29 = vrot.slane %v600_v20, 2  ;;  %v606_v34 = vor.u32 %v605_v26, %v604_v25  ;;  %v313_v39 = vor.u32 %v1693_v22, %v309_v30 }
  0x19   : > { %v297_v32 = vor.u32 %v296_v23, %v292_v15  ;;  %v1714_v41 = vshrl.u32 %v1699_v27, 16  ;;  %v310_v43 = vsel %vm290_vm1, %v305_v33, %v309_v30  ;;  %v1718_v44 = vor.u32 %v609_v35, %v608_v31 }
  0x1a   : > { %v603_v38 = vor.u32 %v602_v29, %v599_v28  ;;  %v323_v45 = vshll.u32 %v1706_v36, 16  ;;  %v317_v47 = vrot.slane %v1711_v40, 1  ;;  %v1326_v48 = vcombine.low %v713_v37, %v1662_v7 }
  0x1b   : > { %v302_v42 = vsel %vm290_vm1, %v297_v32, %v301_v24  ;;  %v721_v49 = vrot.slane %v1668_v9, 2  ;;  %v611_v50 = vsel %vm595_vm3, %v606_v34, %v1718_v44  ;;  %v723_v59 = vrot.slane %v1676_v13, 2 }
  0x1c   : > { %1399 = vmatprep.mubr.msk.bf16.mxu1 %vm327_vm2, %v302_v42  ;;  %v607_v46 = vsel %vm595_vm3, %v603_v38, %v606_v34  ;;  %v318_v53 = vsel %vm290_vm1, %v313_v39, %v317_v47  ;;  %v321_v54 = vor.u32 %v1714_v41, %v317_v47  ;;  %v325_v55 = vrot.slane %v323_v45, 1 }
  0x1d   : > { %1429 = vmatprep.mubr.msk.bf16.mxu0 %vm327_vm2, %v607_v46  ;;  %1400 = vmatmul.mubr.msk.bf16.vlgmr.msra.gmra.mrb[0].mxu1 %vm327_vm2, %v310_v43  ;;  %v720_v56 = vrot.slane %v1326_v48, 2  ;;  %v725_v60 = vrot.slane %v1699_v27, 2  ;;  %v825_v61 = vshrl.u32 %v1326_v48, 16  ;;  %v828_v62 = vshll.u32 %v1326_v48, 16 }
  0x1e   : > { %1408 = vmatpush3.bf16.msra.mxu1 %v418_v11  ;;  %1430 = vmatmul.mubr.msk.bf16.vlgmr.msra.gmra.mrb[0].mxu0 %vm327_vm2, %v611_v50  ;;  %v326_v58 = vsel %vm290_vm1, %v321_v54, %v325_v55  ;;  %v724_v0 = vsel %vm719_vm4, %v721_v49, %v723_v59  ;;  %v832_v10 = vrot.slane %v1685_v18, 2  ;;  %v833_v11 = vrot.slane %v1682_v17, 3  ;;  %v1772_v18 = vld [vmem:[%s1658_s30 + $0x20] ss:$0 sps:$4 sm:$0x77]  }
  0x1f   : > { %1438 = vmatpush3.bf16.msra.mxu0 %v742_v14  ;;  %1403 = vmatprep.mubr.msk.bf16.mxu1 %vm327_vm2, %v318_v53  ;;  %v722_v57 = vsel %vm719_vm4, %v720_v56, %v721_v49  ;;  %v726_v4 = vsel %vm719_vm4, %v723_v59, %v725_v60  ;;  %v827_v5 = vrot.slane %v825_v61, 2  ;;  %v830_v6 = vrot.slane %v828_v62, 3  ;;  %v1337_v14 = vld [vmem:[%s1887_s1 + $0xc] sm:$0x3] }
  0x20   : > { %1523 = vmatprep.subr.msk.bf16.mxu0 %vm340_vm0, %v1331_v51  ;;  %1519 = vmatprep.subr.msk.bf16.mxu1 %vm340_vm0, %v1313_v52  ;;  %v514_v15 = vsel %vm340_vm0, %v1313_v52, 0  ;;  %v834_v19 = vor.u32 %v833_v11, %v832_v10  ;;  %v836_v20 = vrot.slane %v1693_v22, 2  ;;  %v837_v23 = vrot.slane %v1690_v21, 3 }
  0x21   : > { %1439 = vmatprep.mubr.msk.bf16.mxu0 %vm327_vm2, %v722_v57  ;;  %v831_v16 = vor.u32 %v830_v6, %v827_v5  ;;  %v492_v24 = vrot.slane %v1673_v12, 1  ;;  %v493_v25 = vrot.slane %v1668_v9, 1  ;;  %v840_v28 = vrot.slane %v1714_v41, 2 }
  0x22   : > { %v841_v29 = vrot.slane %v1711_v40, 3  ;;  %v838_v21 = vor.u32 %v837_v23, %v836_v20  ;;  %v845_v12 = vshrl.u32 %v1772_v18, 16  ;;  %v848_v30 = vshll.u32 %v1772_v18, 16 }
  0x23   : > { %v835_v26 = vsel %vm823_vm5, %v831_v16, %v834_v19  ;;  %v494_v22 = vsel %vm491_vm6, %v492_v24, %v493_v25  ;;  %v495_v32 = vrot.slane %v1676_v13, 1  ;;  %v497_v37 = vrot.slane %v1699_v27, 1 }
  0x24   : > { %v842_v31 = vor.u32 %v841_v29, %v840_v28  ;;  %v839_v33 = vsel %vm823_vm5, %v834_v19, %v838_v21  ;;  %v847_v34 = vrot.slane %v845_v12, 2  ;;  %v850_v35 = vrot.slane %v848_v30, 3 }
  0x25   : > { %1404 = vmatmul.mubr.msk.bf16.gmra.mrb[4].mxu1 %vm327_vm2, %v326_v58  ;;  %v970_v38 = vsel %vm340_vm0, %v1337_v14, 0  ;;  %v496_v43 = vsel %vm491_vm6, %v493_v25, %v495_v32  ;;  %v498_v46 = vsel %vm491_vm6, %v495_v32, %v497_v37  ;;  %v612_v47 = vrot.slane %v1714_v41, 1 }
  0x26   : > { %1409 = vmatprep.mubr.msk.bf16.mxu1 %vm327_vm2, %v1665_v8  ;;  %v727_v8 = vrot.slane %v1751_v63, 2  ;;  %v843_v39 = vsel %vm823_vm5, %v838_v21, %v842_v31  ;;  %v851_v45 = vor.u32 %v850_v35, %v847_v34  ;;  %v613_v48 = vrot.slane %v1711_v40, 2 }
  0x27   : > { %v949_v50 = vrot.slane %v1668_v9, 3  ;;  %v620_v41 = vshll.u32 %v1751_v63, 16  ;;  %v953_v54 = vrot.slane %v1699_v27, 3 }
  0x28   : > { %v728_v17 = vsel %vm719_vm4, %v725_v60, %v727_v8  ;;  %v852_v51 = vsel %vm823_vm5, %v842_v31, %v851_v45  ;;  %v614_v52 = vor.u32 %v613_v48, %v612_v47 }
  0x29   : > { %v622_v56 = vrot.slane %v620_v41, 2 }
  0x2a   : > { %1440 = vmatmul.mubr.msk.bf16.vlgmr.msra.gmra.mrb[0].mxu0 %vm327_vm2, %v724_v0 }
  0x2b   : > { %1448 = vmatpush3.bf16.msra.mxu0 %v866_v2  ;;  %1443 = vmatprep.mubr.msk.bf16.mxu0 %vm327_vm2, %v726_v4 }
  0x2c   : > { %1524 = vmatprep.subr.msk.bf16.mxu0 %vm340_vm0, %v1337_v14 }
  0x2d   : > { %1410 = vmatmul.mubr.msk.bf16.vlgmr.msra.gmra.mrb[0].mxu1 %vm327_vm2, %v1668_v9  ;;  %v617_v9 = vshrl.u32 %v1751_v63, 16 }
  0x2e   : > { %1418 = vmatpush3.bf16.msra.mxu1 %v514_v15  ;;  %1413 = vmatprep.mubr.msk.bf16.mxu1 %vm327_vm2, %v1676_v13 }
  0x2f   : > { %1521 = vmatprep.subr.msk.bf16.mxu1 %vm340_vm0, %v1633_v1  ;;  %v941_v1 = vld [vmem:[%s1658_s30] sm:$0x8]  ;;  %v619_v55 = vrot.slane %v617_v9, 1 }
  0x30   : > { %v1338_v42 = vcombine.low %v941_v1, %v1662_v7  ;;  %v499_v7 = vrot.slane %v1706_v36, 1  ;;  %v615_v36 = vsel %vm595_vm3, %v1718_v44, %v614_v52 }
  0x31   : > { %v623_v59 = vor.u32 %v622_v56, %v619_v55 }
  0x32   : > { %1444 = vmatmul.mubr.msk.bf16.gmra.mrb[4].mxu0 %vm327_vm2, %v728_v17  ;;  %v948_v49 = vrot.slane %v1338_v42, 3  ;;  %v500_v40 = vsel %vm491_vm6, %v497_v37, %v499_v7 }
  0x33   : > { %1449 = vmatprep.mubr.msk.bf16.mxu0 %vm327_vm2, %v835_v26 }
  0x34   : > { %v950_v53 = vsel %vm947_vm7, %v948_v49, %v949_v50 }
  0x35   : > { %1414 = vmatmul.mubr.msk.bf16.gmra.mrb[4].mxu1 %vm327_vm2, %v1699_v27  ;;  %v624_v27 = vsel %vm595_vm3, %v614_v52, %v623_v59 }
  0x36   : > { %1419 = vmatprep.mubr.msk.bf16.mxu1 %vm327_vm2, %v494_v22 }
  0x3a   : > { %1450 = vmatmul.mubr.msk.bf16.vlgmr.msra.gmra.mrb[0].mxu0 %vm327_vm2, %v839_v33 }
  0x3b   : > { %1458 = vmatpush3.bf16.msra.mxu0 %v970_v38  ;;  %1453 = vmatprep.mubr.msk.bf16.mxu0 %vm327_vm2, %v843_v39 }
  0x3d   : > { %1420 = vmatmul.mubr.msk.bf16.vlgmr.msra.gmra.mrb[0].mxu1 %vm327_vm2, %v496_v43 }
  0x3e   : > { %1468 = vmatpush3.bf16.msra.mxu1 %v1641_v3  ;;  %1423 = vmatprep.mubr.msk.bf16.mxu1 %vm327_vm2, %v498_v46  ;;  %v951_v3 = vrot.slane %v1676_v13, 3  ;;  %v955_v13 = vrot.slane %v1772_v18, 3 }
  0x40   : > { %v952_v57 = vsel %vm947_vm7, %v949_v50, %v951_v3  ;;  %v954_v58 = vsel %vm947_vm7, %v951_v3, %v953_v54  ;;  %v956_v44 = vsel %vm947_vm7, %v953_v54, %v955_v13 }
  0x42   : > { %1454 = vmatmul.mubr.msk.bf16.gmra.mrb[4].mxu0 %vm327_vm2, %v852_v51 }
  0x43   : > { %1459 = vmatprep.mubr.msk.bf16.mxu0 %vm327_vm2, %v950_v53 }
  0x45   : > { %1424 = vmatmul.mubr.msk.bf16.gmra.mrb[4].mxu1 %vm327_vm2, %v500_v40 }
  0x46   : > { %1433 = vmatprep.mubr.msk.bf16.mxu1 %vm327_vm2, %v615_v36 }
  0x4a   : > { %1460 = vmatmul.mubr.msk.bf16.vlgmr.msra.gmra.mrb[0].mxu0 %vm327_vm2, %v952_v57 }
  0x4b   : > { %1463 = vmatprep.mubr.msk.bf16.mxu0 %vm327_vm2, %v954_v58 }
  0x51   : > { %1434 = vmatmul.mubr.msk.bf16.vlgmr.msra.gmra.mrb[4].mxu1 %vm327_vm2, %v624_v27 }
  0x52   : > { %1464 = vmatmul.mubr.msk.bf16.gmra.mrb[4].mxu0 %vm327_vm2, %v956_v44 }
 0x110   : > { %v1421_v60 = vpop.f32.mrb[0].mxu1 }
 0x111   : > { %v550_v61 = vpop.f32.mrb[1].mxu1 }
 0x112   : > { %v1422_v62 = vpop.f32.mrb[2].mxu1 }
 0x113   : > { %v553_v63 = vpop.f32.mrb[3].mxu1 }
 0x11d   : > { %v1461_v0 = vpop.f32.mrb[0].mxu0 }
 0x11e   : > { %v1469_v2 = vadd.f32 %v1461_v0, %v1421_v60  ;;  %v1006_v4 = vpop.f32.mrb[1].mxu0 }
 0x11f   : > { %v1470_v5 = vadd.f32 %v1006_v4, %v550_v61  ;;  %v1462_v6 = vpop.f32.mrb[2].mxu0 }
 0x120   : > { %v1356_v10 = vpack.c.bf16 %v1469_v2, %v1469_v2  ;;  %v1471_v11 = vadd.f32 %v1462_v6, %v1422_v62  ;;  %v1009_v14 = vpop.f32.mrb[3].mxu0  ;;  %v1112_v19 = vmul.f32 %v1469_v2, %v1469_v2  ;;  %v1090_v29 = vsel %vm1086_vm9, %v1469_v2, 0.0 }
 0x121   : > { %v1354_v8 = vpack.c.bf16 %v1470_v5, %v1470_v5  ;;  %v1110_v15 = vmul.f32 %v1470_v5, %v1470_v5  ;;  %v1472_v16 = vadd.f32 %v1009_v14, %v553_v63  ;;  %v1087_v18 = vsel %vm1086_vm9, %v1470_v5, 0.0 }
 0x122   : > { %1080 = vst.msk [vmem:[%s1835_s14 + $0x8] sm:$0xf] %vm1077_vm8, %v1356_v10  ;;  %v1357_v17 = vpack.c.bf16 %v1471_v11, %v1471_v11  ;;  %v1113_v25 = vmul.f32 %v1471_v11, %v1471_v11  ;;  %v1121_v35 = vsel %vm1086_vm9, %v1112_v19, 0.0  ;;  %v1092_v42 = vsel %vm1086_vm9, %v1471_v11, 0.0 }
 0x123   : > { %1078 = vst.msk [vmem:[%s1835_s14] sm:$0xf] %vm1077_vm8, %v1354_v8  ;;  %v1355_v20 = vpack.c.bf16 %v1472_v16, %v1472_v16  ;;  %v1088_v23 = vsel %vm1086_vm9, %v1472_v16, 0.0  ;;  %v1111_v24 = vmul.f32 %v1472_v16, %v1472_v16  ;;  %v1118_v21 = vsel %vm1086_vm9, %v1110_v15, 0.0 }
 0x124   : > { %1081 = vst.msk [vmem:[%s1835_s14 + $0xc] sm:$0xf] %vm1077_vm8, %v1357_v17  ;;  %v1089_v26 = vadd.f32 %v1088_v23, %v1087_v18  ;;  %v1435_v28 = vpop.f32.mrb[4].mxu1  ;;  %v1123_v43 = vsel %vm1086_vm9, %v1113_v25, 0.0 }
 0x125   : > { %1079 = vst.msk [vmem:[%s1835_s14 + $0x4] sm:$0xf] %vm1077_vm8, %v1355_v20  ;;  %v1119_v22 = vsel %vm1086_vm9, %v1111_v24, 0.0  ;;  %v1465_v12 = vpop.f32.mrb[4].mxu0  ;;  %v690_v30 = vpop.f32.mrb[5].mxu1 }
 0x126   : > { %v1091_v31 = vadd.f32 %v1090_v29, %v1089_v26  ;;  %v1120_v1 = vadd.f32 %v1119_v22, %v1118_v21  ;;  %v1473_v32 = vadd.f32 %v1465_v12, %v1435_v28  ;;  %v1022_v33 = vpop.f32.mrb[5].mxu0  ;;  %v1436_v34 = vpop.f32.mrb[6].mxu1 }
 0x127   : > { %v1474_v37 = vadd.f32 %v1022_v33, %v690_v30  ;;  %v1466_v38 = vpop.f32.mrb[6].mxu0  ;;  %v693_v39 = vpop.f32.mrb[7].mxu1 }
 0x128   : > { %v1122_v45 = vadd.f32 %v1121_v35, %v1120_v1  ;;  %v1360_v46 = vpack.c.bf16 %v1473_v32, %v1473_v32  ;;  %v1025_v47 = vpop.f32.mrb[7].mxu0  ;;  %v1093_v49 = vadd.f32 %v1092_v42, %v1091_v31  ;;  %v1475_v52 = vadd.f32 %v1466_v38, %v1436_v34 }
 0x129   : > { %v1358_v48 = vpack.c.bf16 %v1474_v37, %v1474_v37  ;;  %v1094_v50 = vsel %vm1086_vm9, %v1474_v37, 0.0  ;;  %v1114_v7 = vmul.f32 %v1474_v37, %v1474_v37  ;;  %v1476_v53 = vadd.f32 %v1025_v47, %v693_v39 }
 0x12a   : > { %1084 = vst.msk [vmem:[%s1835_s14 + $0x18] sm:$0xf] %vm1077_vm8, %v1360_v46  ;;  %v1124_v51 = vadd.f32 %v1123_v43, %v1122_v45  ;;  %v1095_v40 = vadd.f32 %v1094_v50, %v1093_v49  ;;  %v1361_v3 = vpack.c.bf16 %v1475_v52, %v1475_v52  ;;  %v1116_v36 = vmul.f32 %v1473_v32, %v1473_v32 }
 0x12b   : > { %1082 = vst.msk [vmem:[%s1835_s14 + $0x10] sm:$0xf] %vm1077_vm8, %v1358_v48  ;;  %v1125_v9 = vsel %vm1086_vm9, %v1114_v7, 0.0  ;;  %v1359_v54 = vpack.c.bf16 %v1476_v53, %v1476_v53  ;;  %v1096_v55 = vsel %vm1086_vm9, %v1476_v53, 0.0  ;;  %v1115_v56 = vmul.f32 %v1476_v53, %v1476_v53 }
 0x12c   : > { %v1126_v41 = vadd.f32 %v1125_v9, %v1124_v51  ;;  %1085 = vst.msk [vmem:[%s1835_s14 + $0x1c] sm:$0xf] %vm1077_vm8, %v1361_v3  ;;  %v1097_v57 = vadd.f32 %v1096_v55, %v1095_v40  ;;  %v1098_v58 = vsel %vm1086_vm9, %v1473_v32, 0.0  ;;  %v1117_v59 = vmul.f32 %v1475_v52, %v1475_v52 }
 0x12d   : > { %1083 = vst.msk [vmem:[%s1835_s14 + $0x14] sm:$0xf] %vm1077_vm8, %v1359_v54  ;;  %v1127_v13 = vsel %vm1086_vm9, %v1115_v56, 0.0  ;;  %v1129_v60 = vsel %vm1086_vm9, %v1116_v36, 0.0  ;;  %v1100_v61 = vsel %vm1086_vm9, %v1475_v52, 0.0 }
 0x12e   : > { %v1099_v27 = vadd.f32 %v1098_v58, %v1097_v57  ;;  %v1128_v44 = vadd.f32 %v1127_v13, %v1126_v41  ;;  %v1131_v0 = vsel %vm1086_vm9, %v1117_v59, 0.0 }
 0x130   : > { %v1101_v62 = vadd.f32 %v1100_v61, %v1099_v27  ;;  %v1130_v63 = vadd.f32 %v1129_v60, %v1128_v44 }
 0x132   : > { %v1102_v2 = vrot.slane %v1101_v62, 4  ;;  %v1132_v4 = vadd.f32 %v1131_v0, %v1130_v63 }
 0x134   : > { %v1103_v5 = vadd.f32 %v1102_v2, %v1101_v62  ;;  %v1133_v6 = vrot.slane %v1132_v4, 4 }
 0x136   : > { %v1104_v10 = vrot.slane %v1103_v5, 2  ;;  %v1134_v11 = vadd.f32 %v1133_v6, %v1132_v4 }
 0x138   : > { %v1105_v14 = vadd.f32 %v1104_v10, %v1103_v5  ;;  %v1135_v8 = vrot.slane %v1134_v11, 2 }
 0x13a   : > { %v1106_v15 = vrot.slane %v1105_v14, 1  ;;  %v1136_v16 = vadd.f32 %v1135_v8, %v1134_v11 }
 0x13c   : > { %v1107_v19 = vadd.f32 %v1106_v15, %v1105_v14  ;;  %v1137_v17 = vrot.slane %v1136_v16, 1 }
 0x13e   : > { %1109 = vst.msk [vmem:[%s247_s21] sm:$0x1] %vm1108_vm10, %v1107_v19  ;;  %v1138_v18 = vadd.f32 %v1137_v17, %v1136_v16 }
 0x140   : > { %1139 = vst.msk [vmem:[%s253_s24] sm:$0x1] %vm1108_vm10, %v1138_v18 }
 0x141 PF: > { %s15_s17 = sadd.s32 1, %s1582_s17   ;;  %s1891_s15 = smov %s1578_s16 }
 0x142   : > { %p12_p5 = scmp.ge.s32.totalorder %s15_s17, 4   ;;  %s1892_s16 = smov %s1894_s18 }
 0x144   :  { %14 = sbr.rel (!%p12_p5) target bundleno = 2 (0x2), region = 88 }

// kernel: _lambda_.62
= control target key start
LH: loop header
LB: loop body
LE: loop exit
PB: predicated region body
PF: predicated region fallthrough
CT: control target
= control target key end

     0   :  { %s609_s12 = smov 0   ;;  %s611_s13 = smov 0   ;;  %s661_s0 = inlined_call_operand.vmem [shape: bf16[2,64,8], index: 0, kind: input, shape index: {}]   ;;  %s662_s1 = inlined_call_operand.vmem [shape: bf16[2,64,8], index: 1, kind: input, shape index: {}]   ;;  %s663_s2 = inlined_call_operand.vmem [shape: f32[2,1,8], index: 2, kind: input, shape index: {}]   ;;  %s664_s3 = inlined_call_operand.vmem [shape: bf16[2,64,8], index: 3, kind: output, shape index: {}]  }
   0x1   :  { %s613_s14 = smov 0  }
   0x2 LB: > { %s25_s15 = sadd.s32 1, %s583_s13  ;;  %p474_p0 = scmp.ge.s32.totalorder %s587_s14, 1  ;;  %s587_s14 = sphi %s613_s14, %s13_s14   ;;  %s583_s13 = sphi %s611_s13, %s666_s13   ;;  %s579_s12 = sphi %s609_s12, %s665_s12  }
   0x3   : > { %p27_p1 = scmp.ge.s32.totalorder %s25_s15, 2  ;;  %p183_p2 = scmp.lt.s32.totalorder %s587_s14, 3 }
   0x5   : > { %s668_s15 = smov (%p27_p1, %s25_s15), 0  ;;  %p184_p3 = pnand %p474_p0, %p183_p2 }
   0x6   : > { %p228_p4 = scmp.lt.s32.totalorder (!%p184_p3), %s579_s12, 1  ;;  %vm347_vm0 = vcmask (!%p184_p3), 60416  }
   0x7   : > { %187 = sbr.rel (%p184_p3) target bundleno = 35 (0x23), region = 32 }
   0xe   : > { %s670_s12 = smov (!%p228_p4, %s579_s12), 1 }
   0xf   : > { %s627_s16 = sshll.u32 %s670_s12, 5  ;;  %s249_s19 = scalar_lea.vmem %s663_s2, %s670_s12 }
  0x10   : > { %s235_s22 = scalar_lea.vmem %s661_s0, %s627_s16  ;;  %s245_s25 = scalar_lea.vmem %s662_s1, %s627_s16  ;;  %v481_v10 = vld [vmem:[%s249_s19] ss:$0 sm:$0xff] }
  0x11   : > { %v504_v0 = vld [vmem:[%s235_s22] sm:$0xff]   ;;  %v535_v2 = vld [vmem:[%s235_s22 + $0x8] sm:$0xff]   ;;  %v536_v8 = vld [vmem:[%s235_s22 + $0x10] sm:$0xff]   ;;  %s258_s28 = scalar_lea.vmem %s664_s3, %s627_s16 }
  0x12   : > { %v520_v1 = vld [vmem:[%s245_s25] sm:$0xff]   ;;  %v505_v3 = vunpack.c.l.bf16 %v504_v0  ;;  %v506_v5 = vunpack.c.h.bf16 %v504_v0  ;;  %v538_v7 = vld [vmem:[%s245_s25 + $0x8] sm:$0xff]   ;;  %v539_v9 = vld [vmem:[%s245_s25 + $0x10] sm:$0xff]   ;;  %v509_v11 = vunpack.c.l.bf16 %v535_v2  ;;  %v510_v13 = vunpack.c.h.bf16 %v535_v2 }
  0x13   : > { %v521_v4 = vunpack.c.l.bf16 %v520_v1  ;;  %v522_v6 = vunpack.c.h.bf16 %v520_v1  ;;  %v525_v12 = vunpack.c.l.bf16 %v538_v7  ;;  %v526_v14 = vunpack.c.h.bf16 %v538_v7  ;;  %v537_v15 = vld [vmem:[%s235_s22 + $0x18] sm:$0xff]  }
  0x14   : > { %v513_v18 = vunpack.c.l.bf16 %v536_v8  ;;  %v529_v19 = vunpack.c.l.bf16 %v539_v9  ;;  %v540_v20 = vld [vmem:[%s245_s25 + $0x18] sm:$0xff]   ;;  %v514_v23 = vunpack.c.h.bf16 %v536_v8  ;;  %v530_v24 = vunpack.c.h.bf16 %v539_v9 }
  0x15   : > { %v292_v16 = vadd.f32 %v521_v4, %v505_v3  ;;  %v293_v17 = vadd.f32 %v522_v6, %v506_v5  ;;  %v294_v21 = vadd.f32 %v525_v12, %v509_v11  ;;  %v295_v22 = vadd.f32 %v526_v14, %v510_v13 }
  0x16   : > { %v296_v27 = vadd.f32 %v529_v19, %v513_v18  ;;  %v517_v28 = vunpack.c.l.bf16 %v537_v15  ;;  %v297_v31 = vadd.f32 %v530_v24, %v514_v23  ;;  %v533_v32 = vunpack.c.l.bf16 %v540_v20 }
  0x17   : > { %v307_v25 = vadd.f32 %v481_v10, %v292_v16  ;;  %v308_v26 = vadd.f32 %v481_v10, %v293_v17  ;;  %v309_v29 = vadd.f32 %v481_v10, %v294_v21  ;;  %v310_v30 = vadd.f32 %v481_v10, %v295_v22 }
  0x18   : > { %v311_v35 = vadd.f32 %v481_v10, %v296_v27  ;;  %v518_v36 = vunpack.c.h.bf16 %v537_v15  ;;  %v312_v39 = vadd.f32 %v481_v10, %v297_v31  ;;  %v298_v40 = vadd.f32 %v533_v32, %v517_v28 }
  0x19   : > { %v495_v33 = vpack.c.bf16 %v307_v25, %v307_v25  ;;  %v496_v34 = vpack.c.bf16 %v308_v26, %v308_v26  ;;  %v497_v37 = vpack.c.bf16 %v309_v29, %v309_v29  ;;  %v498_v38 = vpack.c.bf16 %v310_v30, %v310_v30 }
  0x1a   : > { %v499_v41 = vpack.c.bf16 %v311_v35, %v311_v35  ;;  %v534_v42 = vunpack.c.h.bf16 %v540_v20  ;;  %v500_v43 = vpack.c.bf16 %v312_v39, %v312_v39  ;;  %v313_v44 = vadd.f32 %v481_v10, %v298_v40 }
  0x1b   : > { %348 = vst.msk [vmem:[%s258_s28] sm:$0xf] %vm347_vm0, %v495_v33  ;;  %349 = vst.msk [vmem:[%s258_s28 + $0x4] sm:$0xf] %vm347_vm0, %v496_v34 }
  0x1c   : > { %350 = vst.msk [vmem:[%s258_s28 + $0x8] sm:$0xf] %vm347_vm0, %v497_v37  ;;  %351 = vst.msk [vmem:[%s258_s28 + $0xc] sm:$0xf] %vm347_vm0, %v498_v38  ;;  %v299_v45 = vadd.f32 %v534_v42, %v518_v36  ;;  %v501_v46 = vpack.c.bf16 %v313_v44, %v313_v44 }
  0x1d   : > { %352 = vst.msk [vmem:[%s258_s28 + $0x10] sm:$0xf] %vm347_vm0, %v499_v41  ;;  %353 = vst.msk [vmem:[%s258_s28 + $0x14] sm:$0xf] %vm347_vm0, %v500_v43 }
  0x1e   : > { %v314_v47 = vadd.f32 %v481_v10, %v299_v45  ;;  %354 = vst.msk [vmem:[%s258_s28 + $0x18] sm:$0xf] %vm347_vm0, %v501_v46 }
  0x20   : > { %v502_v48 = vpack.c.bf16 %v314_v47, %v314_v47 }
  0x22   : > { %355 = vst.msk [vmem:[%s258_s28 + $0x1c] sm:$0xf] %vm347_vm0, %v502_v48 }
  0x23 PF: > { %s13_s14 = sadd.s32 1, %s587_s14   ;;  %s665_s12 = smov %s583_s13 }
  0x24   : > { %p10_p5 = scmp.ge.s32.totalorder %s13_s14, 4   ;;  %s666_s13 = smov %s668_s15 }
  0x26   :  { %12 = sbr.rel (!%p10_p5) target bundleno = 2 (0x2), region = 68 }

// kernel: _lambda_.68
= control target key start
LH: loop header
LB: loop body
LE: loop exit
PB: predicated region body
PF: predicated region fallthrough
CT: control target
= control target key end

     0   :  { %vm57_vm0 = vcmask 457728   ;;  %vm64_vm1 = vcmask 1043456   ;;  %vm133_vm2 = vcmask 125952   ;;  %vm138_vm3 = vcmask 130048   ;;  %s298_s1 = inlined_call_operand.vmem [shape: bf16[56,16], index: 1, kind: input, shape index: {}]   ;;  %s299_s0 = inlined_call_operand.vmem [shape: bf16[32,56], index: 0, kind: input, shape index: {}]   ;;  %s300_s2 = inlined_call_operand.vmem [shape: bf16[32,16], index: 2, kind: output, shape index: {0}]   ;;  %s301_s3 = inlined_call_operand.vmem [shape: f32[1,1,16], index: 3, kind: output, shape index: {1}]   ;;  %s302_s4 = inlined_call_operand.vmem [shape: f32[1,1,16], index: 4, kind: output, shape index: {2}]  }
   0x1   :  { %v219_v0 = vld [vmem:[%s298_s1] sm:$0xff]   ;;  %v220_v1 = vld [vmem:[%s298_s1 + $0x8] sm:$0xff]   ;;  %v221_v2 = vld [vmem:[%s298_s1 + $0x10] sm:$0xff]   ;;  %vm152_vm4 = vcmask 122880  }
   0x2   :  { %206 = vmatprep.subr.bf16.mxu0 %v219_v0  ;;  %v223_v3 = vld [vmem:[%s299_s0] sm:$0xff]   ;;  %v222_v4 = vld [vmem:[%s298_s1 + $0x18] ss:$0 sps:$4 sm:$0xff]   ;;  %v224_v6 = vld [vmem:[%s299_s0 + $0x8] sm:$0xff]  }
   0x3   :  { %207 = vmatpush3.bf16.msra.mxu0 %v219_v0  ;;  %214 = vmatprep.mubr.msk.bf16.mxu0 %vm57_vm0, %v223_v3  ;;  %v66_v5 = vsel %vm64_vm1, %v222_v4, 0 }
   0x4   :  { %208 = vmatprep.subr.bf16.mxu0 %v220_v1 }
   0x7   :  { %209 = vmatpush3.bf16.msra.mxu0 %v220_v1 }
   0x8   :  { %210 = vmatprep.subr.bf16.mxu0 %v221_v2 }
   0xb   :  { %211 = vmatpush3.bf16.msra.mxu0 %v221_v2 }
   0xc   :  { %218 = vmatprep.subr.msk.bf16.mxu0 %vm64_vm1, %v222_v4 }
   0xf   :  { %213 = vmatpush3.bf16.msra.mxu0 %v66_v5 }
  0x12   :  { %215 = vmatmul.mubr.msk.bf16.vlgmr.msra.gmra.mrb[0].mxu0 %vm57_vm0, %v224_v6 }
  0xe5   :  { %v216_v7 = vpop.f32.mrb[0].mxu0 }
  0xe6   :  { %v198_v8 = vpack.c.bf16 %v216_v7, %v216_v7  ;;  %v102_v9 = vpop.f32.mrb[1].mxu0  ;;  %v156_v13 = vmul.f32 %v216_v7, %v216_v7  ;;  %v142_v21 = vsel %vm138_vm3, %v216_v7, 0.0 }
  0xe7   :  { %v196_v10 = vpack.c.bf16 %v102_v9, %v102_v9  ;;  %v154_v11 = vmul.f32 %v102_v9, %v102_v9  ;;  %v217_v12 = vpop.f32.mrb[2].mxu0  ;;  %v139_v16 = vsel %vm138_vm3, %v102_v9, 0.0 }
  0xe8   :  { %136 = vst.msk [vmem:[%s300_s2 + $0x8] sm:$0xf] %vm133_vm2, %v198_v8  ;;  %v199_v14 = vpack.c.bf16 %v217_v12, %v217_v12  ;;  %v105_v15 = vpop.f32.mrb[3].mxu0  ;;  %v157_v23 = vmul.f32 %v217_v12, %v217_v12  ;;  %v161_v27 = vsel %vm138_vm3, %v156_v13, 0.0  ;;  %v144_v28 = vsel %vm138_vm3, %v217_v12, 0.0 }
  0xe9   :  { %134 = vst.msk [vmem:[%s300_s2] sm:$0xf] %vm133_vm2, %v196_v10  ;;  %v197_v17 = vpack.c.bf16 %v105_v15, %v105_v15  ;;  %v140_v18 = vsel %vm138_vm3, %v105_v15, 0.0  ;;  %v155_v19 = vmul.f32 %v105_v15, %v105_v15  ;;  %v158_v22 = vsel %vm138_vm3, %v154_v11, 0.0 }
  0xea   :  { %137 = vst.msk [vmem:[%s300_s2 + $0xc] sm:$0xf] %vm133_vm2, %v199_v14  ;;  %v141_v20 = vadd.f32 %v140_v18, %v139_v16  ;;  %v163_v31 = vsel %vm138_vm3, %v157_v23, 0.0 }
  0xeb   :  { %135 = vst.msk [vmem:[%s300_s2 + $0x4] sm:$0xf] %vm133_vm2, %v197_v17  ;;  %v159_v24 = vsel %vm138_vm3, %v155_v19, 0.0 }
  0xec   :  { %v143_v25 = vadd.f32 %v142_v21, %v141_v20  ;;  %v160_v26 = vadd.f32 %v159_v24, %v158_v22 }
  0xee   :  { %v145_v29 = vadd.f32 %v144_v28, %v143_v25  ;;  %v162_v30 = vadd.f32 %v161_v27, %v160_v26 }
  0xf0   :  { %v146_v32 = vrot.slane %v145_v29, 4  ;;  %v164_v33 = vadd.f32 %v163_v31, %v162_v30 }
  0xf2   :  { %v147_v34 = vadd.f32 %v146_v32, %v145_v29  ;;  %v165_v35 = vrot.slane %v164_v33, 4 }
  0xf4   :  { %v148_v36 = vrot.slane %v147_v34, 2  ;;  %v166_v37 = vadd.f32 %v165_v35, %v164_v33 }
  0xf6   :  { %v149_v38 = vadd.f32 %v148_v36, %v147_v34  ;;  %v167_v39 = vrot.slane %v166_v37, 2 }
  0xf8   :  { %v150_v40 = vrot.slane %v149_v38, 1  ;;  %v168_v41 = vadd.f32 %v167_v39, %v166_v37 }
  0xfa   :  { %v151_v42 = vadd.f32 %v150_v40, %v149_v38  ;;  %v169_v43 = vrot.slane %v168_v41, 1 }
  0xfc   :  { %153 = vst.msk [vmem:[%s301_s3] sm:$0x1] %vm152_vm4, %v151_v42  ;;  %v170_v44 = vadd.f32 %v169_v43, %v168_v41 }
  0xfe   :  { %171 = vst.msk [vmem:[%s302_s4] sm:$0x1] %vm152_vm4, %v170_v44 }

// kernel: _lambda_.69
= control target key start
LH: loop header
LB: loop body
LE: loop exit
PB: predicated region body
PF: predicated region fallthrough
CT: control target
= control target key end

     0   :  { %vm64_vm0 = vcmask 125952   ;;  %s136_s0 = inlined_call_operand.vmem [shape: bf16[32,16], index: 0, kind: input, shape index: {}]   ;;  %s137_s1 = inlined_call_operand.vmem [shape: f32[1,16], index: 1, kind: input, shape index: {}]   ;;  %s138_s2 = inlined_call_operand.vmem [shape: f32[1,16], index: 2, kind: input, shape index: {}]   ;;  %s139_s3 = inlined_call_operand.vmem [shape: bf16[32,16], index: 3, kind: output, shape index: {}]  }
   0x1   :  { %v84_v0 = vld [vmem:[%s136_s0] sm:$0xff]   ;;  %v91_v4 = vld [vmem:[%s136_s0 + $0x8] sm:$0xff]  }
   0x2   :  { %v73_v1 = vld [vmem:[%s137_s1] ss:$0 sm:$0xff]  ;;  %v85_v2 = vunpack.c.l.bf16 %v84_v0  ;;  %v86_v3 = vunpack.c.h.bf16 %v84_v0  ;;  %v89_v6 = vunpack.c.l.bf16 %v91_v4  ;;  %v90_v7 = vunpack.c.h.bf16 %v91_v4 }
   0x3   :  { %v74_v5 = vld [vmem:[%s138_s2] ss:$0 sm:$0xff] }
   0x4   :  { %v29_v8 = vmul.f32 %v85_v2, %v73_v1  ;;  %v30_v9 = vmul.f32 %v86_v3, %v73_v1  ;;  %v31_v10 = vmul.f32 %v89_v6, %v73_v1  ;;  %v32_v11 = vmul.f32 %v90_v7, %v73_v1 }
   0x6   :  { %v40_v12 = vadd.f32 %v74_v5, %v29_v8  ;;  %v41_v13 = vadd.f32 %v74_v5, %v30_v9  ;;  %v42_v14 = vadd.f32 %v74_v5, %v31_v10  ;;  %v43_v15 = vadd.f32 %v74_v5, %v32_v11 }
   0x8   :  { %v44_v16 = vmax.f32 %v40_v12, 0.0  ;;  %v45_v17 = vmax.f32 %v41_v13, 0.0  ;;  %v46_v18 = vmax.f32 %v42_v14, 0.0  ;;  %v47_v19 = vmax.f32 %v43_v15, 0.0 }
   0xa   :  { %v79_v20 = vpack.c.bf16 %v44_v16, %v44_v16  ;;  %v80_v21 = vpack.c.bf16 %v45_v17, %v45_v17  ;;  %v81_v22 = vpack.c.bf16 %v46_v18, %v46_v18  ;;  %v82_v23 = vpack.c.bf16 %v47_v19, %v47_v19 }
   0xc   :  { %65 = vst.msk [vmem:[%s139_s3] sm:$0xf] %vm64_vm0, %v79_v20  ;;  %66 = vst.msk [vmem:[%s139_s3 + $0x4] sm:$0xf] %vm64_vm0, %v80_v21 }
   0xd   :  { %67 = vst.msk [vmem:[%s139_s3 + $0x8] sm:$0xf] %vm64_vm0, %v81_v22  ;;  %68 = vst.msk [vmem:[%s139_s3 + $0xc] sm:$0xf] %vm64_vm0, %v82_v23 }

// kernel: _lambda_.70
= control target key start
LH: loop header
LB: loop body
LE: loop exit
PB: predicated region body
PF: predicated region fallthrough
CT: control target
= control target key end

     0   :  { %s1130_s15 = smov 0   ;;  %s1132_s16 = smov 0   ;;  %s1253_s0 = inlined_call_operand.vmem [shape: bf16[2,22,16], index: 0, kind: input, shape index: {}]   ;;  %s1254_s1 = inlined_call_operand.vmem [shape: bf16[7,16,16], index: 1, kind: input, shape index: {}]   ;;  %s1255_s2 = inlined_call_operand.vmem [shape: bf16[2,16,16], index: 2, kind: output, shape index: {0}]   ;;  %s1256_s3 = inlined_call_operand.vmem [shape: f32[2,1,1,16], index: 3, kind: output, shape index: {1}]   ;;  %s1257_s4 = inlined_call_operand.vmem [shape: f32[2,1,1,16], index: 4, kind: output, shape index: {2}]  }
   0x1   :  { %s1134_s17 = smov 0  }
   0x2 LB: > { %s27_s18 = sadd.s32 1, %s1097_s16  ;;  %p916_p0 = scmp.ge.s32.totalorder %s1101_s17, 1  ;;  %s1101_s17 = sphi %s1134_s17, %s15_s17   ;;  %s1097_s16 = sphi %s1132_s16, %s1259_s16   ;;  %s1093_s15 = sphi %s1130_s15, %s1258_s15  }
   0x3   : > { %p29_p1 = scmp.ge.s32.totalorder %s27_s18, 2  ;;  %p185_p2 = scmp.lt.s32.totalorder %s1101_s17, 3 }
   0x5   : > { %s1261_s18 = smov (%p29_p1, %s27_s18), 0  ;;  %p186_p3 = pnand %p916_p0, %p185_p2 }
   0x6   : > { %v1065_v0 = vld [vmem:[%s1254_s1 + $0x18] sm:$0xff] (!%p186_p3)   ;;  %v1103_v1 = vmov (!%p186_p3), 0.0   ;;  %v1066_v2 = vld [vmem:[%s1254_s1 + $0x8] sm:$0xff] (!%p186_p3)   ;;  %vm1104_vm0 = vmmov (!%p186_p3), 0   ;;  %p227_p4 = scmp.lt.s32.totalorder (!%p186_p3), %s1093_s15, 1  ;;  %vm290_vm2 = vcmask (!%p186_p3), 130048  }
   0x7   : > { %189 = sbr.rel (%p186_p3) target bundleno = 299 (0x12b), region = 28  ;;  %992 = vmatprep.subr.bf16.mxu0 (!%p186_p3), %v1103_v1  ;;  %974 = vmatprep.subr.bf16.mxu1 (!%p186_p3), %v1103_v1  ;;  %vm271_vm1 = vsmask.f32 (!%p186_p3), 7424  ;;  %vm454_vm3 = vsmask.f32 (!%p186_p3), 6400  ;;  %v1072_v24 = vld [vmem:[%s1254_s1] sm:$0xff] (!%p186_p3)  }
   0x8   : > { %993 = vmatpush3.bf16.msra.mxu0 (!%p186_p3), %v1065_v0  ;;  %976 = vmatprep.mubr.msk.bf16.mxu1 (!%p186_p3), %vm1104_vm0, %v1103_v1  ;;  %v1071_v27 = vld [vmem:[%s1254_s1 + $0x20] sm:$0xff] (!%p186_p3)   ;;  %vm531_vm4 = vcmask (!%p186_p3), 1045504   ;;  %v1075_v35 = vld [vmem:[%s1254_s1 + $0x10] sm:$0xff] (!%p186_p3)   ;;  %v1074_v38 = vld [vmem:[%s1254_s1 + $0x28] sm:$0xff] (!%p186_p3)   ;;  %vm391_vm5 = vcmask (!%p186_p3), 1046528   ;;  %vm671_vm7 = vcmask (!%p186_p3), 1044480  }
   0x9   : > { %975 = vmatpush3.bf16.msra.mxu1 (!%p186_p3), %v1066_v2  ;;  %994 = vmatprep.mubr.msk.bf16.mxu0 (!%p186_p3), %vm1104_vm0, %v1103_v1  ;;  %vm594_vm6 = vsmask.f32 (!%p186_p3), 5376  ;;  %v1077_v52 = vld [vmem:[%s1254_s1 + $0x30] sm:$0xff] (!%p186_p3)   ;;  %vm735_vm8 = vcmask (!%p186_p3), 125952   ;;  %vm747_vm9 = vcmask (!%p186_p3), 122880  }
   0xa   : > { %998 = vmatprep.subr.bf16.mxu0 (!%p186_p3), %v1103_v1  ;;  %980 = vmatprep.subr.bf16.mxu1 (!%p186_p3), %v1103_v1 }
   0xe   : > { %s1263_s15 = smov (!%p227_p4, %s1093_s15), 1 }
   0xf   : > { %s1038_s23 = smul.u32 12, %s1263_s15  ;;  %s957_s11 = sshll.u32 %s1263_s15, 3 }
  0x10   : > { %s240_s14 = scalar_lea.vmem %s1255_s2, %s957_s11  ;;  %s247_s21 = scalar_lea.vmem %s1256_s3, %s1263_s15 }
  0x11   : > { %s1168_s26 = scalar_lea.vmem %s1253_s0, %s1038_s23  ;;  %s253_s24 = scalar_lea.vmem %s1257_s4, %s1263_s15 }
  0x12   : > { %v255_v3 = vld [vmem:[%s1168_s26] sm:$0xf]  ;;  %v1172_v4 = vld [vmem:[%s1168_s26 + $0x4] sm:$0xf] }
  0x13   : > { %v922_v5 = vcombine.low %v255_v3, %v1172_v4  ;;  %v1176_v6 = vld [vmem:[%s1168_s26 + $0x8] ss:$0 sps:$4 sm:$0x11]   ;;  %v384_v7 = vld [vmem:[%s1168_s26] sm:$0xe] }
  0x14   : > { %v1180_v8 = vcombine.low %v384_v7, %v1172_v4  ;;  %v1070_v9 = vld [vmem:[%s1168_s26 + $0x8] ss:$0 sps:$4 sm:$0x33]   ;;  %v280_v12 = vshll.u32 %v1176_v6, 16  ;;  %v524_v29 = vld [vmem:[%s1168_s26] sm:$0xc] }
  0x15   : > { %v273_v10 = vshrl.u32 %v922_v5, 16  ;;  %v275_v11 = vshll.u32 %v922_v5, 16  ;;  %v464_v15 = vshrl.u32 %v1070_v9, 16  ;;  %v467_v16 = vshll.u32 %v1070_v9, 16  ;;  %v664_v53 = vld [vmem:[%s1168_s26] sm:$0x8] }
  0x16   : > { %v456_v13 = vshrl.u32 %v1180_v8, 16  ;;  %v459_v14 = vshll.u32 %v1180_v8, 16  ;;  %v282_v18 = vrot.slane %v280_v12, 1  ;;  %v940_v31 = vcombine.low %v524_v29, %v1172_v4  ;;  %v1076_v34 = vld [vmem:[%s1168_s26 + $0x8] ss:$0 sps:$4 sm:$0x77]  }
  0x17   : > { %v277_v17 = vrot.slane %v275_v11, 1  ;;  %v466_v21 = vrot.slane %v464_v15, 1  ;;  %v469_v22 = vrot.slane %v467_v16, 2  ;;  %v533_v33 = vrot.slane %v1070_v9, 2 }
  0x18   : > { %v458_v19 = vrot.slane %v456_v13, 1  ;;  %v461_v20 = vrot.slane %v459_v14, 2  ;;  %v532_v32 = vrot.slane %v940_v31, 2  ;;  %v596_v36 = vshrl.u32 %v940_v31, 16 }
  0x19   : > { %v278_v23 = vor.u32 %v277_v17, %v273_v10  ;;  %v470_v26 = vor.u32 %v469_v22, %v466_v21  ;;  %v599_v39 = vshll.u32 %v940_v31, 16  ;;  %v604_v40 = vshrl.u32 %v1076_v34, 16 }
  0x1a   : > { %v462_v25 = vor.u32 %v461_v20, %v458_v19  ;;  %v534_v37 = vsel %vm531_vm4, %v532_v32, %v533_v33  ;;  %v607_v41 = vshll.u32 %v1076_v34, 16  ;;  %v598_v42 = vrot.slane %v596_v36, 2 }
  0x1b   : > { %v283_v28 = vsel %vm271_vm1, %v278_v23, %v282_v18  ;;  %v601_v43 = vrot.slane %v599_v39, 3  ;;  %v606_v44 = vrot.slane %v604_v40, 2  ;;  %v392_v46 = vrot.slane %v1180_v8, 1 }
  0x1c   : > { %977 = vmatmul.mubr.msk.bf16.vlgmr.msra.gmra.mrb[0].mxu1 %vm290_vm2, %v283_v28  ;;  %v471_v30 = vsel %vm454_vm3, %v462_v25, %v470_v26  ;;  %v609_v45 = vrot.slane %v607_v41, 3  ;;  %v393_v47 = vrot.slane %v1176_v6, 1  ;;  %v950_v54 = vcombine.low %v664_v53, %v1172_v4 }
  0x1d   : > { %995 = vmatmul.mubr.msk.bf16.vlgmr.msra.gmra.mrb[0].mxu0 %vm290_vm2, %v471_v30  ;;  %981 = vmatpush3.bf16.msra.mxu1 %v1072_v24  ;;  %v602_v48 = vor.u32 %v601_v43, %v598_v42  ;;  %v673_v56 = vrot.slane %v1076_v34, 3 }
  0x1e   : > { %999 = vmatpush3.bf16.msra.mxu0 %v1071_v27  ;;  %982 = vmatprep.mubr.msk.bf16.mxu1 %vm1104_vm0, %v1103_v1  ;;  %v610_v49 = vor.u32 %v609_v45, %v606_v44  ;;  %v394_v50 = vsel %vm391_vm5, %v392_v46, %v393_v47  ;;  %v672_v55 = vrot.slane %v950_v54, 3 }
  0x1f   : > { %1000 = vmatprep.mubr.msk.bf16.mxu0 %vm1104_vm0, %v1103_v1  ;;  %1004 = vmatprep.subr.bf16.mxu0 %v1103_v1 }
  0x20   : > { %986 = vmatprep.subr.bf16.mxu1 %v1103_v1  ;;  %v611_v51 = vsel %vm594_vm6, %v602_v48, %v610_v49  ;;  %v674_v57 = vsel %vm671_vm7, %v672_v55, %v673_v56 }
  0x28   : > { %983 = vmatmul.mubr.msk.bf16.vlgmr.msra.gmra.mrb[0].mxu1 %vm290_vm2, %v922_v5 }
  0x29   : > { %1001 = vmatmul.mubr.msk.bf16.vlgmr.msra.gmra.mrb[0].mxu0 %vm290_vm2, %v534_v37  ;;  %987 = vmatpush3.bf16.msra.mxu1 %v1075_v35 }
  0x2a   : > { %1005 = vmatpush3.bf16.msra.mxu0 %v1074_v38  ;;  %988 = vmatprep.mubr.msk.bf16.mxu1 %vm1104_vm0, %v1103_v1 }
  0x2b   : > { %1006 = vmatprep.mubr.msk.bf16.mxu0 %vm1104_vm0, %v1103_v1  ;;  %1010 = vmatprep.subr.bf16.mxu0 %v1103_v1 }
  0x34   : > { %989 = vmatmul.mubr.msk.bf16.vlgmr.msra.gmra.mrb[0].mxu1 %vm290_vm2, %v394_v50 }
  0x35   : > { %1007 = vmatmul.mubr.msk.bf16.vlgmr.msra.gmra.mrb[0].mxu0 %vm290_vm2, %v611_v51 }
  0x36   : > { %1011 = vmatpush3.bf16.msra.mxu0 %v1077_v52  ;;  %1012 = vmatprep.mubr.msk.bf16.mxu0 %vm1104_vm0, %v1103_v1 }
  0x41   : > { %1013 = vmatmul.mubr.msk.bf16.vlgmr.msra.gmra.mrb[0].mxu0 %vm290_vm2, %v674_v57 }
 0x107   : > { %v438_v58 = vpop.f32.mrb[0].mxu1 }
 0x108   : > { %v990_v59 = vpop.f32.mrb[1].mxu1 }
 0x109   : > { %v441_v60 = vpop.f32.mrb[2].mxu1 }
 0x10a   : > { %v991_v61 = vpop.f32.mrb[3].mxu1 }
 0x114   : > { %v718_v62 = vpop.f32.mrb[0].mxu0 }
 0x115   : > { %v1016_v63 = vadd.f32 %v718_v62, %v438_v58  ;;  %v1014_v0 = vpop.f32.mrb[1].mxu0 }
 0x116   : > { %v721_v1 = vpop.f32.mrb[2].mxu0 }
 0x117   : > { %v958_v2 = vpack.c.bf16 %v1016_v63, %v1016_v63  ;;  %v749_v3 = vmul.f32 %v1016_v63, %v1016_v63  ;;  %v1017_v4 = vadd.f32 %v721_v1, %v441_v60  ;;  %v1015_v5 = vpop.f32.mrb[3].mxu0  ;;  %v738_v6 = vsel %vm290_vm2, %v1016_v63, 0.0 }
 0x119   : > { %736 = vst.msk [vmem:[%s240_s14] sm:$0xf] %vm735_vm8, %v958_v2  ;;  %v959_v7 = vpack.c.bf16 %v1017_v4, %v1017_v4  ;;  %v739_v8 = vsel %vm290_vm2, %v1017_v4, 0.0  ;;  %v750_v9 = vmul.f32 %v1017_v4, %v1017_v4  ;;  %v751_v11 = vsel %vm290_vm2, %v749_v3, 0.0 }
 0x11a   : > { %v740_v10 = vadd.f32 %v739_v8, %v738_v6 }
 0x11b   : > { %737 = vst.msk [vmem:[%s240_s14 + $0x4] sm:$0xf] %vm735_vm8, %v959_v7  ;;  %v752_v12 = vsel %vm290_vm2, %v750_v9, 0.0 }
 0x11c   : > { %v741_v13 = vrot.slane %v740_v10, 4  ;;  %v753_v14 = vadd.f32 %v752_v12, %v751_v11 }
 0x11e   : > { %v742_v15 = vadd.f32 %v741_v13, %v740_v10  ;;  %v754_v16 = vrot.slane %v753_v14, 4 }
 0x120   : > { %v743_v17 = vrot.slane %v742_v15, 2  ;;  %v755_v18 = vadd.f32 %v754_v16, %v753_v14 }
 0x122   : > { %v744_v19 = vadd.f32 %v743_v17, %v742_v15  ;;  %v756_v20 = vrot.slane %v755_v18, 2 }
 0x124   : > { %v745_v21 = vrot.slane %v744_v19, 1  ;;  %v757_v22 = vadd.f32 %v756_v20, %v755_v18 }
 0x126   : > { %v746_v23 = vadd.f32 %v745_v21, %v744_v19  ;;  %v758_v24 = vrot.slane %v757_v22, 1 }
 0x128   : > { %748 = vst.msk [vmem:[%s247_s21] sm:$0x1] %vm747_vm9, %v746_v23  ;;  %v759_v25 = vadd.f32 %v758_v24, %v757_v22 }
 0x12a   : > { %760 = vst.msk [vmem:[%s253_s24] sm:$0x1] %vm747_vm9, %v759_v25 }
 0x12b PF: > { %s15_s17 = sadd.s32 1, %s1101_s17   ;;  %s1258_s15 = smov %s1097_s16 }
 0x12c   : > { %p12_p5 = scmp.ge.s32.totalorder %s15_s17, 4   ;;  %s1259_s16 = smov %s1261_s18 }
 0x12e   :  { %14 = sbr.rel (!%p12_p5) target bundleno = 2 (0x2), region = 88 }

// kernel: _lambda_.71
= control target key start
LH: loop header
LB: loop body
LE: loop exit
PB: predicated region body
PF: predicated region fallthrough
CT: control target
= control target key end

     0   :  { %s423_s12 = smov 0   ;;  %s425_s13 = smov 0   ;;  %s459_s0 = inlined_call_operand.vmem [shape: bf16[2,16,16], index: 0, kind: input, shape index: {}]   ;;  %s460_s1 = inlined_call_operand.vmem [shape: f32[1,16], index: 1, kind: input, shape index: {}]   ;;  %s461_s2 = inlined_call_operand.vmem [shape: f32[1,16], index: 2, kind: input, shape index: {}]   ;;  %s462_s3 = inlined_call_operand.vmem [shape: bf16[2,16,16], index: 3, kind: output, shape index: {}]  }
   0x1   :  { %s427_s14 = smov 0  }
   0x2 LB: > { %s25_s15 = sadd.s32 1, %s397_s13  ;;  %p336_p0 = scmp.ge.s32.totalorder %s401_s14, 1  ;;  %s401_s14 = sphi %s427_s14, %s13_s14   ;;  %s397_s13 = sphi %s425_s13, %s464_s13   ;;  %s393_s12 = sphi %s423_s12, %s463_s12  }
   0x3   : > { %p27_p1 = scmp.ge.s32.totalorder %s25_s15, 2  ;;  %p158_p2 = scmp.lt.s32.totalorder %s401_s14, 3 }
   0x5   : > { %s466_s15 = smov (%p27_p1, %s25_s15), 0  ;;  %p159_p3 = pnand %p336_p0, %p158_p2 }
   0x6   : > { %p191_p4 = scmp.lt.s32.totalorder (!%p159_p3), %s393_s12, 1  ;;  %v341_v1 = vld [vmem:[%s460_s1] ss:$0 sm:$0xff] (!%p159_p3)  ;;  %vm242_vm0 = vcmask (!%p159_p3), 125952  }
   0x7   : > { %162 = sbr.rel (%p159_p3) target bundleno = 29 (0x1d), region = 32  ;;  %v342_v4 = vld [vmem:[%s461_s2] ss:$0 sm:$0xff] (!%p159_p3) }
   0xe   : > { %s468_s12 = smov (!%p191_p4, %s393_s12), 1 }
   0xf   : > { %s347_s16 = sshll.u32 %s468_s12, 3 }
  0x10   : > { %s198_s19 = scalar_lea.vmem %s459_s0, %s347_s16  ;;  %s208_s26 = scalar_lea.vmem %s462_s3, %s347_s16 }
  0x11   : > { %v352_v0 = vld [vmem:[%s198_s19] sm:$0xff]  }
  0x12   : > { %v353_v2 = vunpack.c.l.bf16 %v352_v0  ;;  %v354_v3 = vunpack.c.h.bf16 %v352_v0 }
  0x14   : > { %v221_v5 = vmul.f32 %v353_v2, %v341_v1  ;;  %v222_v6 = vmul.f32 %v354_v3, %v341_v1 }
  0x16   : > { %v230_v7 = vadd.f32 %v342_v4, %v221_v5  ;;  %v231_v8 = vadd.f32 %v342_v4, %v222_v6 }
  0x18   : > { %v232_v9 = vmax.f32 %v230_v7, 0.0  ;;  %v233_v10 = vmax.f32 %v231_v8, 0.0 }
  0x1a   : > { %v349_v11 = vpack.c.bf16 %v232_v9, %v232_v9  ;;  %v350_v12 = vpack.c.bf16 %v233_v10, %v233_v10 }
  0x1c   : > { %243 = vst.msk [vmem:[%s208_s26] sm:$0xf] %vm242_vm0, %v349_v11  ;;  %244 = vst.msk [vmem:[%s208_s26 + $0x4] sm:$0xf] %vm242_vm0, %v350_v12 }
  0x1d PF: > { %s13_s14 = sadd.s32 1, %s401_s14   ;;  %s463_s12 = smov %s397_s13 }
  0x1e   : > { %p10_p5 = scmp.ge.s32.totalorder %s13_s14, 4   ;;  %s464_s13 = smov %s466_s15 }
  0x20   :  { %12 = sbr.rel (!%p10_p5) target bundleno = 2 (0x2), region = 62 }

// kernel: _lambda_.74
= control target key start
LH: loop header
LB: loop body
LE: loop exit
PB: predicated region body
PF: predicated region fallthrough
CT: control target
= control target key end

     0   :  { %s501_s12 = smov 0   ;;  %s503_s13 = smov 0   ;;  %s540_s0 = inlined_call_operand.vmem [shape: bf16[2,16,16], index: 0, kind: input, shape index: {}]   ;;  %s541_s1 = inlined_call_operand.vmem [shape: bf16[2,16,16], index: 1, kind: input, shape index: {}]   ;;  %s542_s2 = inlined_call_operand.vmem [shape: f32[2,1,16], index: 2, kind: input, shape index: {}]   ;;  %s543_s3 = inlined_call_operand.vmem [shape: bf16[2,16,16], index: 3, kind: output, shape index: {}]  }
   0x1   :  { %s505_s14 = smov 0  }
   0x2 LB: > { %s25_s15 = sadd.s32 1, %s475_s13  ;;  %p408_p0 = scmp.ge.s32.totalorder %s479_s14, 1  ;;  %s479_s14 = sphi %s505_s14, %s13_s14   ;;  %s475_s13 = sphi %s503_s13, %s545_s13   ;;  %s471_s12 = sphi %s501_s12, %s544_s12  }
   0x3   : > { %p27_p1 = scmp.ge.s32.totalorder %s25_s15, 2  ;;  %p183_p2 = scmp.lt.s32.totalorder %s479_s14, 3 }
   0x5   : > { %s547_s15 = smov (%p27_p1, %s25_s15), 0  ;;  %p184_p3 = pnand %p408_p0, %p183_p2 }
   0x6   : > { %p228_p4 = scmp.lt.s32.totalorder (!%p184_p3), %s471_s12, 1  ;;  %vm287_vm0 = vcmask (!%p184_p3), 125952  }
   0x7   : > { %187 = sbr.rel (%p184_p3) target bundleno = 28 (0x1c), region = 32 }
   0xe   : > { %s549_s12 = smov (!%p228_p4, %s471_s12), 1 }
   0xf   : > { %s420_s16 = sshll.u32 %s549_s12, 3  ;;  %s249_s19 = scalar_lea.vmem %s542_s2, %s549_s12 }
  0x10   : > { %s235_s22 = scalar_lea.vmem %s540_s0, %s420_s16  ;;  %s245_s25 = scalar_lea.vmem %s541_s1, %s420_s16  ;;  %v415_v6 = vld [vmem:[%s249_s19] ss:$0 sm:$0xff] }
  0x11   : > { %v426_v0 = vld [vmem:[%s235_s22] sm:$0xff]   ;;  %s258_s28 = scalar_lea.vmem %s543_s3, %s420_s16 }
  0x12   : > { %v430_v1 = vld [vmem:[%s245_s25] sm:$0xff]   ;;  %v427_v2 = vunpack.c.l.bf16 %v426_v0  ;;  %v428_v3 = vunpack.c.h.bf16 %v426_v0 }
  0x13   : > { %v431_v4 = vunpack.c.l.bf16 %v430_v1  ;;  %v432_v5 = vunpack.c.h.bf16 %v430_v1 }
  0x15   : > { %v268_v7 = vadd.f32 %v431_v4, %v427_v2  ;;  %v269_v8 = vadd.f32 %v432_v5, %v428_v3 }
  0x17   : > { %v277_v9 = vadd.f32 %v415_v6, %v268_v7  ;;  %v278_v10 = vadd.f32 %v415_v6, %v269_v8 }
  0x19   : > { %v423_v11 = vpack.c.bf16 %v277_v9, %v277_v9  ;;  %v424_v12 = vpack.c.bf16 %v278_v10, %v278_v10 }
  0x1b   : > { %288 = vst.msk [vmem:[%s258_s28] sm:$0xf] %vm287_vm0, %v423_v11  ;;  %289 = vst.msk [vmem:[%s258_s28 + $0x4] sm:$0xf] %vm287_vm0, %v424_v12 }
  0x1c PF: > { %s13_s14 = sadd.s32 1, %s479_s14   ;;  %s544_s12 = smov %s475_s13 }
  0x1d   : > { %p10_p5 = scmp.ge.s32.totalorder %s13_s14, 4   ;;  %s545_s13 = smov %s547_s15 }
  0x1f   :  { %12 = sbr.rel (!%p10_p5) target bundleno = 2 (0x2), region = 68 }

// kernel: _lambda_.80
= control target key start
LH: loop header
LB: loop body
LE: loop exit
PB: predicated region body
PF: predicated region fallthrough
CT: control target
= control target key end

     0   :  { %v199_v0 = vmov 0   ;;  %vm93_vm0 = vcmask 97280   ;;  %vm97_vm1 = vcmask 1045504   ;;  %vm144_vm2 = vcmask 195584   ;;  %s264_s1 = inlined_call_operand.vmem [shape: bf16[140,24], index: 1, kind: input, shape index: {}]   ;;  %s265_s0 = inlined_call_operand.vmem [shape: bf16[8,140], index: 0, kind: input, shape index: {}]   ;;  %s266_s2 = inlined_call_operand.vmem [shape: bf16[8,24], index: 2, kind: output, shape index: {0}]   ;;  %s267_s3 = inlined_call_operand.vmem [shape: f32[1,1,24], index: 3, kind: output, shape index: {1}]   ;;  %s268_s4 = inlined_call_operand.vmem [shape: f32[1,1,24], index: 4, kind: output, shape index: {2}]  }
   0x1   :  { %101 = vmatprep.subr.bf16.mxu0 %v199_v0  ;;  %v188_v1 = vld [vmem:[%s264_s1] sm:$0xff]   ;;  %v189_v2 = vld [vmem:[%s264_s1 + $0x8] sm:$0xff]   ;;  %v190_v3 = vld [vmem:[%s264_s1 + $0x10] sm:$0xff]   ;;  %vm142_vm3 = vcmask 191488   ;;  %vm152_vm4 = vcmask 188416  }
   0x2   :  { %102 = vmatpush1.bf16.msra.mxu0 %v188_v1  ;;  %v15_v4 = vld [vmem:[%s265_s0] sm:$0xff]  ;;  %v191_v5 = vld [vmem:[%s264_s1 + $0x18] sm:$0xff]   ;;  %v193_v8 = vld [vmem:[%s264_s1 + $0x28] sm:$0xff]  }
   0x3   :  { %103 = vmatprep.subr.bf16.mxu0 %v199_v0  ;;  %v176_v6 = vcombine.high %v15_v4, %v15_v4  ;;  %v192_v7 = vld [vmem:[%s264_s1 + $0x20] sm:$0xff]   ;;  %v194_v9 = vld [vmem:[%s264_s1 + $0x30] sm:$0xff]   ;;  %v195_v10 = vld [vmem:[%s264_s1 + $0x38] sm:$0xff]   ;;  %v175_v13 = vcombine.low %v15_v4, %v15_v4 }
   0x4   :  { %v196_v11 = vld [vmem:[%s264_s1 + $0x40] sm:$0x3f]  }
   0x5   :  { %186 = vmatprep.mubr.msk.bf16.mxu0 %vm93_vm0, %v176_v6  ;;  %v99_v12 = vsel %vm97_vm1, %v196_v11, 0 }
   0x6   :  { %104 = vmatpush1.bf16.msra.mxu0 %v189_v2 }
   0x7   :  { %105 = vmatprep.subr.bf16.mxu0 %v199_v0 }
   0xa   :  { %106 = vmatpush1.bf16.msra.mxu0 %v190_v3 }
   0xb   :  { %107 = vmatprep.subr.bf16.mxu0 %v199_v0 }
   0xe   :  { %108 = vmatpush1.bf16.msra.mxu0 %v191_v5 }
   0xf   :  { %109 = vmatprep.subr.bf16.mxu0 %v199_v0 }
  0x12   :  { %110 = vmatpush1.bf16.msra.mxu0 %v192_v7 }
  0x13   :  { %111 = vmatprep.subr.bf16.mxu0 %v199_v0 }
  0x16   :  { %112 = vmatpush1.bf16.msra.mxu0 %v193_v8 }
  0x17   :  { %113 = vmatprep.subr.bf16.mxu0 %v199_v0 }
  0x1a   :  { %114 = vmatpush1.bf16.msra.mxu0 %v194_v9 }
  0x1b   :  { %115 = vmatprep.subr.bf16.mxu0 %v199_v0 }
  0x1e   :  { %116 = vmatpush1.bf16.msra.mxu0 %v195_v10 }
  0x1f   :  { %117 = vmatprep.subr.bf16.mxu0 %v199_v0 }
  0x22   :  { %118 = vmatpush1.bf16.msra.mxu0 %v99_v12 }
  0x25   :  { %134 = vmatmul.mubr.bf16.vlgmr.msra.gmra.mrb[0].mxu0 %v175_v13 }
  0xf8   :  { %v135_v14 = vpop.f32.mrb[0].mxu0 }
  0xf9   :  { %v141_v15 = vpack.c.bf16 %v135_v14, %v135_v14  ;;  %v145_v16 = vsel %vm144_vm2, %v135_v14, 0.0  ;;  %v154_v17 = vmul.f32 %v135_v14, %v135_v14  ;;  %v137_v18 = vpop.f32.mrb[1].mxu0 }
  0xfa   :  { %v146_v19 = vrot.slane %v145_v16, 4  ;;  %v138_v20 = vpop.f32.mrb[2].mxu0 }
  0xfb   :  { %143 = vst.msk [vmem:[%s266_s2] sm:$0xf] %vm142_vm3, %v141_v15  ;;  %v155_v21 = vsel %vm144_vm2, %v154_v17, 0.0  ;;  %v139_v22 = vpop.f32.mrb[3].mxu0 }
  0xfc   :  { %v147_v23 = vadd.f32 %v146_v19, %v145_v16  ;;  %v156_v24 = vrot.slane %v155_v21, 4 }
  0xfe   :  { %v148_v25 = vrot.slane %v147_v23, 2  ;;  %v157_v26 = vadd.f32 %v156_v24, %v155_v21 }
 0x100   :  { %v149_v27 = vadd.f32 %v148_v25, %v147_v23  ;;  %v158_v28 = vrot.slane %v157_v26, 2 }
 0x102   :  { %v150_v29 = vrot.slane %v149_v27, 1  ;;  %v159_v30 = vadd.f32 %v158_v28, %v157_v26 }
 0x104   :  { %v151_v31 = vadd.f32 %v150_v29, %v149_v27  ;;  %v160_v32 = vrot.slane %v159_v30, 1 }
 0x106   :  { %153 = vst.msk [vmem:[%s267_s3] sm:$0x1] %vm152_vm4, %v151_v31  ;;  %v161_v33 = vadd.f32 %v160_v32, %v159_v30 }
 0x108   :  { %162 = vst.msk [vmem:[%s268_s4] sm:$0x1] %vm152_vm4, %v161_v33 }

// kernel: _lambda_.81
= control target key start
LH: loop header
LB: loop body
LE: loop exit
PB: predicated region body
PF: predicated region fallthrough
CT: control target
= control target key end

     0   :  { %vm34_vm0 = vcmask 191488   ;;  %s74_s0 = inlined_call_operand.vmem [shape: bf16[8,24], index: 0, kind: input, shape index: {}]   ;;  %s75_s1 = inlined_call_operand.vmem [shape: f32[1,24], index: 1, kind: input, shape index: {}]   ;;  %s76_s2 = inlined_call_operand.vmem [shape: f32[1,24], index: 2, kind: input, shape index: {}]   ;;  %s77_s3 = inlined_call_operand.vmem [shape: bf16[8,24], index: 3, kind: output, shape index: {}]  }
   0x1   :  { %v14_v0 = vld [vmem:[%s74_s0] sm:$0xf] }
   0x2   :  { %v40_v1 = vld [vmem:[%s75_s1] ss:$0 sm:$0xff]  ;;  %v15_v2 = vunpack.c.l.bf16 %v14_v0 }
   0x3   :  { %v41_v3 = vld [vmem:[%s76_s2] ss:$0 sm:$0xff] }
   0x4   :  { %v23_v4 = vmul.f32 %v40_v1, %v15_v2 }
   0x6   :  { %v31_v5 = vadd.f32 %v41_v3, %v23_v4 }
   0x8   :  { %v32_v6 = vmax.f32 %v31_v5, 0.0 }
   0xa   :  { %v33_v7 = vpack.c.bf16 %v32_v6, %v32_v6 }
   0xc   :  { %35 = vst.msk [vmem:[%s77_s3] sm:$0xf] %vm34_vm0, %v33_v7 }

// kernel: _lambda_.82
= control target key start
LH: loop header
LB: loop body
LE: loop exit
PB: predicated region body
PF: predicated region fallthrough
CT: control target
= control target key end

     0   :  { %v216_v0 = vmov 0   ;;  %vm106_vm0 = vcmask 326656   ;;  %vm110_vm1 = vcmask 1043456   ;;  %vm157_vm2 = vcmask 195584   ;;  %s287_s1 = inlined_call_operand.vmem [shape: bf16[168,24], index: 1, kind: input, shape index: {}]   ;;  %s288_s0 = inlined_call_operand.vmem [shape: bf16[8,168], index: 0, kind: input, shape index: {}]   ;;  %s289_s2 = inlined_call_operand.vmem [shape: bf16[8,24], index: 2, kind: output, shape index: {0}]   ;;  %s290_s3 = inlined_call_operand.vmem [shape: f32[1,1,24], index: 3, kind: output, shape index: {1}]   ;;  %s291_s4 = inlined_call_operand.vmem [shape: f32[1,1,24], index: 4, kind: output, shape index: {2}]  }
   0x1   :  { %114 = vmatprep.subr.bf16.mxu0 %v216_v0  ;;  %v203_v1 = vld [vmem:[%s287_s1] sm:$0xff]   ;;  %v204_v2 = vld [vmem:[%s287_s1 + $0x8] sm:$0xff]   ;;  %v205_v3 = vld [vmem:[%s287_s1 + $0x10] sm:$0xff]   ;;  %vm155_vm3 = vcmask 191488   ;;  %vm165_vm4 = vcmask 188416  }
   0x2   :  { %115 = vmatpush1.bf16.msra.mxu0 %v203_v1  ;;  %v206_v4 = vld [vmem:[%s287_s1 + $0x18] sm:$0xff]   ;;  %v15_v5 = vld [vmem:[%s288_s0] sm:$0xff]  ;;  %v208_v8 = vld [vmem:[%s287_s1 + $0x28] sm:$0xff]  }
   0x3   :  { %116 = vmatprep.subr.bf16.mxu0 %v216_v0  ;;  %v189_v6 = vcombine.high %v15_v5, %v15_v5  ;;  %v207_v7 = vld [vmem:[%s287_s1 + $0x20] sm:$0xff]   ;;  %v209_v9 = vld [vmem:[%s287_s1 + $0x30] sm:$0xff]   ;;  %v210_v10 = vld [vmem:[%s287_s1 + $0x38] sm:$0xff]   ;;  %v188_v15 = vcombine.low %v15_v5, %v15_v5 }
   0x4   :  { %v211_v11 = vld [vmem:[%s287_s1 + $0x40] sm:$0xff]   ;;  %v212_v12 = vld [vmem:[%s287_s1 + $0x48] sm:$0xff]   ;;  %v213_v13 = vld [vmem:[%s287_s1 + $0x50] ss:$0 sps:$4 sm:$0xff]  }
   0x5   :  { %201 = vmatprep.mubr.msk.bf16.mxu0 %vm106_vm0, %v189_v6  ;;  %v112_v14 = vsel %vm110_vm1, %v213_v13, 0 }
   0x6   :  { %117 = vmatpush1.bf16.msra.mxu0 %v204_v2 }
   0x7   :  { %118 = vmatprep.subr.bf16.mxu0 %v216_v0 }
   0xa   :  { %119 = vmatpush1.bf16.msra.mxu0 %v205_v3 }
   0xb   :  { %120 = vmatprep.subr.bf16.mxu0 %v216_v0 }
   0xe   :  { %121 = vmatpush1.bf16.msra.mxu0 %v206_v4 }
   0xf   :  { %122 = vmatprep.subr.bf16.mxu0 %v216_v0 }
  0x12   :  { %123 = vmatpush1.bf16.msra.mxu0 %v207_v7 }
  0x13   :  { %124 = vmatprep.subr.bf16.mxu0 %v216_v0 }
  0x16   :  { %125 = vmatpush1.bf16.msra.mxu0 %v208_v8 }
  0x17   :  { %126 = vmatprep.subr.bf16.mxu0 %v216_v0 }
  0x1a   :  { %127 = vmatpush1.bf16.msra.mxu0 %v209_v9 }
  0x1b   :  { %128 = vmatprep.subr.bf16.mxu0 %v216_v0 }
  0x1e   :  { %129 = vmatpush1.bf16.msra.mxu0 %v210_v10 }
  0x1f   :  { %130 = vmatprep.subr.bf16.mxu0 %v216_v0 }
  0x22   :  { %131 = vmatpush1.bf16.msra.mxu0 %v211_v11 }
  0x23   :  { %132 = vmatprep.subr.bf16.mxu0 %v216_v0 }
  0x26   :  { %133 = vmatpush1.bf16.msra.mxu0 %v212_v12 }
  0x27   :  { %134 = vmatprep.subr.bf16.mxu0 %v216_v0 }
  0x2a   :  { %135 = vmatpush1.bf16.msra.mxu0 %v112_v14 }
  0x2d   :  { %147 = vmatmul.mubr.bf16.vlgmr.msra.gmra.mrb[0].mxu0 %v188_v15 }
 0x100   :  { %v148_v16 = vpop.f32.mrb[0].mxu0 }
 0x101   :  { %v154_v17 = vpack.c.bf16 %v148_v16, %v148_v16  ;;  %v158_v18 = vsel %vm157_vm2, %v148_v16, 0.0  ;;  %v167_v19 = vmul.f32 %v148_v16, %v148_v16  ;;  %v150_v20 = vpop.f32.mrb[1].mxu0 }
 0x102   :  { %v159_v21 = vrot.slane %v158_v18, 4  ;;  %v151_v22 = vpop.f32.mrb[2].mxu0 }
 0x103   :  { %156 = vst.msk [vmem:[%s289_s2] sm:$0xf] %vm155_vm3, %v154_v17  ;;  %v168_v23 = vsel %vm157_vm2, %v167_v19, 0.0  ;;  %v152_v24 = vpop.f32.mrb[3].mxu0 }
 0x104   :  { %v160_v25 = vadd.f32 %v159_v21, %v158_v18  ;;  %v169_v26 = vrot.slane %v168_v23, 4 }
 0x106   :  { %v161_v27 = vrot.slane %v160_v25, 2  ;;  %v170_v28 = vadd.f32 %v169_v26, %v168_v23 }
 0x108   :  { %v162_v29 = vadd.f32 %v161_v27, %v160_v25  ;;  %v171_v30 = vrot.slane %v170_v28, 2 }
 0x10a   :  { %v163_v31 = vrot.slane %v162_v29, 1  ;;  %v172_v32 = vadd.f32 %v171_v30, %v170_v28 }
 0x10c   :  { %v164_v33 = vadd.f32 %v163_v31, %v162_v29  ;;  %v173_v34 = vrot.slane %v172_v32, 1 }
 0x10e   :  { %166 = vst.msk [vmem:[%s290_s3] sm:$0x1] %vm165_vm4, %v164_v33  ;;  %v174_v35 = vadd.f32 %v173_v34, %v172_v32 }
 0x110   :  { %175 = vst.msk [vmem:[%s291_s4] sm:$0x1] %vm165_vm4, %v174_v35 }

// kernel: _lambda_.86
= control target key start
LH: loop header
LB: loop body
LE: loop exit
PB: predicated region body
PF: predicated region fallthrough
CT: control target
= control target key end

     0   :  { %s432_s12 = smov 0   ;;  %s434_s13 = smov 0   ;;  %s464_s0 = inlined_call_operand.vmem [shape: bf16[2,4,24], index: 0, kind: input, shape index: {}]   ;;  %s465_s1 = inlined_call_operand.vmem [shape: bf16[2,4,24], index: 1, kind: input, shape index: {}]   ;;  %s466_s2 = inlined_call_operand.vmem [shape: f32[2,1,24], index: 2, kind: input, shape index: {}]   ;;  %s467_s3 = inlined_call_operand.vmem [shape: bf16[2,4,24], index: 3, kind: output, shape index: {}]  }
   0x1   :  { %s436_s14 = smov 0  }
   0x2 LB: > { %s25_s15 = sadd.s32 1, %s406_s13  ;;  %p357_p0 = scmp.ge.s32.totalorder %s410_s14, 1  ;;  %s410_s14 = sphi %s436_s14, %s13_s14   ;;  %s406_s13 = sphi %s434_s13, %s469_s13   ;;  %s402_s12 = sphi %s432_s12, %s468_s12  }
   0x3   : > { %p27_p1 = scmp.ge.s32.totalorder %s25_s15, 2  ;;  %p177_p2 = scmp.lt.s32.totalorder %s410_s14, 3 }
   0x5   : > { %s471_s15 = smov (%p27_p1, %s25_s15), 0  ;;  %p178_p3 = pnand %p357_p0, %p177_p2 }
   0x6   : > { %p215_p4 = scmp.lt.s32.totalorder (!%p178_p3), %s402_s12, 1  ;;  %vm253_vm0 = vcmask (!%p178_p3), 189440  }
   0x7   : > { %181 = sbr.rel (%p178_p3) target bundleno = 28 (0x1c), region = 32 }
   0xe   : > { %s473_s12 = smov (!%p215_p4, %s402_s12), 1 }
   0xf   : > { %s358_s16 = sshll.u32 %s473_s12, 1  ;;  %s231_s19 = scalar_lea.vmem %s466_s2, %s473_s12 }
  0x10   : > { %s221_s22 = scalar_lea.vmem %s464_s0, %s358_s16  ;;  %s228_s25 = scalar_lea.vmem %s465_s1, %s358_s16  ;;  %v361_v4 = vld [vmem:[%s231_s19] ss:$0 sm:$0xff] }
  0x11   : > { %v239_v0 = vld [vmem:[%s221_s22] sm:$0x3]  ;;  %s238_s28 = scalar_lea.vmem %s467_s3, %s358_s16 }
  0x12   : > { %v241_v1 = vld [vmem:[%s228_s25] sm:$0x3]  ;;  %v240_v2 = vunpack.c.l.bf16 %v239_v0 }
  0x13   : > { %v242_v3 = vunpack.c.l.bf16 %v241_v1 }
  0x15   : > { %v243_v5 = vadd.f32 %v242_v3, %v240_v2 }
  0x17   : > { %v251_v6 = vadd.f32 %v361_v4, %v243_v5 }
  0x19   : > { %v252_v7 = vpack.c.bf16 %v251_v6, %v251_v6 }
  0x1b   : > { %254 = vst.msk [vmem:[%s238_s28] sm:$0x3] %vm253_vm0, %v252_v7 }
  0x1c PF: > { %s13_s14 = sadd.s32 1, %s410_s14   ;;  %s468_s12 = smov %s406_s13 }
  0x1d   : > { %p10_p5 = scmp.ge.s32.totalorder %s13_s14, 4   ;;  %s469_s13 = smov %s471_s15 }
  0x1f   :  { %12 = sbr.rel (!%p10_p5) target bundleno = 2 (0x2), region = 68 }

// kernel: _lambda_.93
= control target key start
LH: loop header
LB: loop body
LE: loop exit
PB: predicated region body
PF: predicated region fallthrough
CT: control target
= control target key end

     0   :  { %vm34_vm0 = vcmask 257024   ;;  %s74_s0 = inlined_call_operand.vmem [shape: bf16[8,32], index: 0, kind: input, shape index: {}]   ;;  %s75_s1 = inlined_call_operand.vmem [shape: f32[1,32], index: 1, kind: input, shape index: {}]   ;;  %s76_s2 = inlined_call_operand.vmem [shape: f32[1,32], index: 2, kind: input, shape index: {}]   ;;  %s77_s3 = inlined_call_operand.vmem [shape: bf16[8,32], index: 3, kind: output, shape index: {}]  }
   0x1   :  { %v14_v0 = vld [vmem:[%s74_s0] sm:$0xf] }
   0x2   :  { %v40_v1 = vld [vmem:[%s75_s1] ss:$0 sm:$0xff]  ;;  %v15_v2 = vunpack.c.l.bf16 %v14_v0 }
   0x3   :  { %v41_v3 = vld [vmem:[%s76_s2] ss:$0 sm:$0xff] }
   0x4   :  { %v23_v4 = vmul.f32 %v40_v1, %v15_v2 }
   0x6   :  { %v31_v5 = vadd.f32 %v41_v3, %v23_v4 }
   0x8   :  { %v32_v6 = vmax.f32 %v31_v5, 0.0 }
   0xa   :  { %v33_v7 = vpack.c.bf16 %v32_v6, %v32_v6 }
   0xc   :  { %35 = vst.msk [vmem:[%s77_s3] sm:$0xf] %vm34_vm0, %v33_v7 }

// kernel: _lambda_.92
= control target key start
LH: loop header
LB: loop body
LE: loop exit
PB: predicated region body
PF: predicated region fallthrough
CT: control target
= control target key end

     0   :  { %v236_v0 = vmov 0   ;;  %vm122_vm0 = vcmask 556032   ;;  %vm126_vm1 = vcmask 1041408   ;;  %vm173_vm2 = vcmask 261120   ;;  %s313_s1 = inlined_call_operand.vmem [shape: bf16[196,32], index: 1, kind: input, shape index: {}]   ;;  %s314_s0 = inlined_call_operand.vmem [shape: bf16[8,196], index: 0, kind: input, shape index: {}]   ;;  %s315_s2 = inlined_call_operand.vmem [shape: bf16[8,32], index: 2, kind: output, shape index: {0}]   ;;  %s316_s3 = inlined_call_operand.vmem [shape: f32[1,1,32], index: 3, kind: output, shape index: {1}]   ;;  %s317_s4 = inlined_call_operand.vmem [shape: f32[1,1,32], index: 4, kind: output, shape index: {2}]  }
   0x1   :  { %130 = vmatprep.subr.bf16.mxu0 %v236_v0  ;;  %v221_v1 = vld [vmem:[%s313_s1] sm:$0xff]   ;;  %v222_v2 = vld [vmem:[%s313_s1 + $0x8] sm:$0xff]   ;;  %v223_v3 = vld [vmem:[%s313_s1 + $0x10] sm:$0xff]   ;;  %vm171_vm3 = vcmask 257024   ;;  %vm181_vm4 = vcmask 253952  }
   0x2   :  { %131 = vmatpush1.bf16.msra.mxu0 %v221_v1  ;;  %v224_v4 = vld [vmem:[%s313_s1 + $0x18] sm:$0xff]   ;;  %v15_v5 = vld [vmem:[%s314_s0] sm:$0xff]  ;;  %v226_v8 = vld [vmem:[%s313_s1 + $0x28] sm:$0xff]  }
   0x3   :  { %132 = vmatprep.subr.bf16.mxu0 %v236_v0  ;;  %v205_v6 = vcombine.high %v15_v5, %v15_v5  ;;  %v225_v7 = vld [vmem:[%s313_s1 + $0x20] sm:$0xff]   ;;  %v227_v9 = vld [vmem:[%s313_s1 + $0x30] sm:$0xff]   ;;  %v228_v10 = vld [vmem:[%s313_s1 + $0x38] sm:$0xff]   ;;  %v204_v17 = vcombine.low %v15_v5, %v15_v5 }
   0x4   :  { %v229_v11 = vld [vmem:[%s313_s1 + $0x40] sm:$0xff]   ;;  %v230_v12 = vld [vmem:[%s313_s1 + $0x48] sm:$0xff]   ;;  %v231_v13 = vld [vmem:[%s313_s1 + $0x50] sm:$0xff]  }
   0x5   :  { %219 = vmatprep.mubr.msk.bf16.mxu0 %vm122_vm0, %v205_v6  ;;  %v232_v14 = vld [vmem:[%s313_s1 + $0x58] sm:$0xff]   ;;  %v233_v15 = vld [vmem:[%s313_s1 + $0x60] ss:$0 sps:$4 sm:$0x33]  }
   0x6   :  { %133 = vmatpush1.bf16.msra.mxu0 %v222_v2  ;;  %v128_v16 = vsel %vm126_vm1, %v233_v15, 0 }
   0x7   :  { %134 = vmatprep.subr.bf16.mxu0 %v236_v0 }
   0xa   :  { %135 = vmatpush1.bf16.msra.mxu0 %v223_v3 }
   0xb   :  { %136 = vmatprep.subr.bf16.mxu0 %v236_v0 }
   0xe   :  { %137 = vmatpush1.bf16.msra.mxu0 %v224_v4 }
   0xf   :  { %138 = vmatprep.subr.bf16.mxu0 %v236_v0 }
  0x12   :  { %139 = vmatpush1.bf16.msra.mxu0 %v225_v7 }
  0x13   :  { %140 = vmatprep.subr.bf16.mxu0 %v236_v0 }
  0x16   :  { %141 = vmatpush1.bf16.msra.mxu0 %v226_v8 }
  0x17   :  { %142 = vmatprep.subr.bf16.mxu0 %v236_v0 }
  0x1a   :  { %143 = vmatpush1.bf16.msra.mxu0 %v227_v9 }
  0x1b   :  { %144 = vmatprep.subr.bf16.mxu0 %v236_v0 }
  0x1e   :  { %145 = vmatpush1.bf16.msra.mxu0 %v228_v10 }
  0x1f   :  { %146 = vmatprep.subr.bf16.mxu0 %v236_v0 }
  0x22   :  { %147 = vmatpush1.bf16.msra.mxu0 %v229_v11 }
  0x23   :  { %148 = vmatprep.subr.bf16.mxu0 %v236_v0 }
  0x26   :  { %149 = vmatpush1.bf16.msra.mxu0 %v230_v12 }
  0x27   :  { %150 = vmatprep.subr.bf16.mxu0 %v236_v0 }
  0x2a   :  { %151 = vmatpush1.bf16.msra.mxu0 %v231_v13 }
  0x2b   :  { %152 = vmatprep.subr.bf16.mxu0 %v236_v0 }
  0x2e   :  { %153 = vmatpush1.bf16.msra.mxu0 %v232_v14 }
  0x2f   :  { %154 = vmatprep.subr.bf16.mxu0 %v236_v0 }
  0x32   :  { %155 = vmatpush1.bf16.msra.mxu0 %v128_v16 }
  0x35   :  { %163 = vmatmul.mubr.bf16.vlgmr.msra.gmra.mrb[0].mxu0 %v204_v17 }
 0x108   :  { %v164_v18 = vpop.f32.mrb[0].mxu0 }
 0x109   :  { %v170_v19 = vpack.c.bf16 %v164_v18, %v164_v18  ;;  %v174_v20 = vsel %vm173_vm2, %v164_v18, 0.0  ;;  %v183_v21 = vmul.f32 %v164_v18, %v164_v18  ;;  %v166_v22 = vpop.f32.mrb[1].mxu0 }
 0x10a   :  { %v175_v23 = vrot.slane %v174_v20, 4  ;;  %v167_v24 = vpop.f32.mrb[2].mxu0 }
 0x10b   :  { %172 = vst.msk [vmem:[%s315_s2] sm:$0xf] %vm171_vm3, %v170_v19  ;;  %v184_v25 = vsel %vm173_vm2, %v183_v21, 0.0  ;;  %v168_v26 = vpop.f32.mrb[3].mxu0 }
 0x10c   :  { %v176_v27 = vadd.f32 %v175_v23, %v174_v20  ;;  %v185_v28 = vrot.slane %v184_v25, 4 }
 0x10e   :  { %v177_v29 = vrot.slane %v176_v27, 2  ;;  %v186_v30 = vadd.f32 %v185_v28, %v184_v25 }
 0x110   :  { %v178_v31 = vadd.f32 %v177_v29, %v176_v27  ;;  %v187_v32 = vrot.slane %v186_v30, 2 }
 0x112   :  { %v179_v33 = vrot.slane %v178_v31, 1  ;;  %v188_v34 = vadd.f32 %v187_v32, %v186_v30 }
 0x114   :  { %v180_v35 = vadd.f32 %v179_v33, %v178_v31  ;;  %v189_v36 = vrot.slane %v188_v34, 1 }
 0x116   :  { %182 = vst.msk [vmem:[%s316_s3] sm:$0x1] %vm181_vm4, %v180_v35  ;;  %v190_v37 = vadd.f32 %v189_v36, %v188_v34 }
 0x118   :  { %191 = vst.msk [vmem:[%s317_s4] sm:$0x1] %vm181_vm4, %v190_v37 }

// kernel: _lambda_.94
= control target key start
LH: loop header
LB: loop body
LE: loop exit
PB: predicated region body
PF: predicated region fallthrough
CT: control target
= control target key end

     0   :  { %v246_v0 = vmov 0   ;;  %vm134_vm0 = vcmask 785408   ;;  %vm181_vm1 = vcmask 261120   ;;  %vm179_vm2 = vcmask 257024   ;;  %s326_s1 = inlined_call_operand.vmem [shape: bf16[224,32], index: 1, kind: input, shape index: {}]   ;;  %s327_s0 = inlined_call_operand.vmem [shape: bf16[8,224], index: 0, kind: input, shape index: {}]   ;;  %s328_s2 = inlined_call_operand.vmem [shape: bf16[8,32], index: 2, kind: output, shape index: {0}]   ;;  %s329_s3 = inlined_call_operand.vmem [shape: f32[1,1,32], index: 3, kind: output, shape index: {1}]   ;;  %s330_s4 = inlined_call_operand.vmem [shape: f32[1,1,32], index: 4, kind: output, shape index: {2}]  }
   0x1   :  { %138 = vmatprep.subr.bf16.mxu0 %v246_v0  ;;  %v230_v1 = vld [vmem:[%s326_s1] sm:$0xff]   ;;  %v231_v2 = vld [vmem:[%s326_s1 + $0x8] sm:$0xff]   ;;  %v232_v3 = vld [vmem:[%s326_s1 + $0x10] sm:$0xff]   ;;  %vm189_vm3 = vcmask 253952  }
   0x2   :  { %139 = vmatpush1.bf16.msra.mxu0 %v230_v1  ;;  %v233_v4 = vld [vmem:[%s326_s1 + $0x18] sm:$0xff]   ;;  %v234_v5 = vld [vmem:[%s326_s1 + $0x20] sm:$0xff]   ;;  %v235_v8 = vld [vmem:[%s326_s1 + $0x28] sm:$0xff]  }
   0x3   :  { %140 = vmatprep.subr.bf16.mxu0 %v246_v0  ;;  %v15_v6 = vld [vmem:[%s327_s0] sm:$0xff]  ;;  %v236_v9 = vld [vmem:[%s326_s1 + $0x30] sm:$0xff]   ;;  %v237_v10 = vld [vmem:[%s326_s1 + $0x38] sm:$0xff]  }
   0x4   :  { %v213_v7 = vcombine.high %v15_v6, %v15_v6  ;;  %v238_v11 = vld [vmem:[%s326_s1 + $0x40] sm:$0xff]   ;;  %v239_v12 = vld [vmem:[%s326_s1 + $0x48] sm:$0xff]   ;;  %v240_v13 = vld [vmem:[%s326_s1 + $0x50] sm:$0xff]   ;;  %v212_v17 = vcombine.low %v15_v6, %v15_v6 }
   0x5   :  { %v241_v14 = vld [vmem:[%s326_s1 + $0x58] sm:$0xff]   ;;  %v242_v15 = vld [vmem:[%s326_s1 + $0x60] sm:$0xff]   ;;  %v243_v16 = vld [vmem:[%s326_s1 + $0x68] sm:$0xff]  }
   0x6   :  { %141 = vmatpush1.bf16.msra.mxu0 %v231_v2  ;;  %228 = vmatprep.mubr.msk.bf16.mxu0 %vm134_vm0, %v213_v7 }
   0x7   :  { %142 = vmatprep.subr.bf16.mxu0 %v246_v0 }
   0xa   :  { %143 = vmatpush1.bf16.msra.mxu0 %v232_v3 }
   0xb   :  { %144 = vmatprep.subr.bf16.mxu0 %v246_v0 }
   0xe   :  { %145 = vmatpush1.bf16.msra.mxu0 %v233_v4 }
   0xf   :  { %146 = vmatprep.subr.bf16.mxu0 %v246_v0 }
  0x12   :  { %147 = vmatpush1.bf16.msra.mxu0 %v234_v5 }
  0x13   :  { %148 = vmatprep.subr.bf16.mxu0 %v246_v0 }
  0x16   :  { %149 = vmatpush1.bf16.msra.mxu0 %v235_v8 }
  0x17   :  { %150 = vmatprep.subr.bf16.mxu0 %v246_v0 }
  0x1a   :  { %151 = vmatpush1.bf16.msra.mxu0 %v236_v9 }
  0x1b   :  { %152 = vmatprep.subr.bf16.mxu0 %v246_v0 }
  0x1e   :  { %153 = vmatpush1.bf16.msra.mxu0 %v237_v10 }
  0x1f   :  { %154 = vmatprep.subr.bf16.mxu0 %v246_v0 }
  0x22   :  { %155 = vmatpush1.bf16.msra.mxu0 %v238_v11 }
  0x23   :  { %156 = vmatprep.subr.bf16.mxu0 %v246_v0 }
  0x26   :  { %157 = vmatpush1.bf16.msra.mxu0 %v239_v12 }
  0x27   :  { %158 = vmatprep.subr.bf16.mxu0 %v246_v0 }
  0x2a   :  { %159 = vmatpush1.bf16.msra.mxu0 %v240_v13 }
  0x2b   :  { %160 = vmatprep.subr.bf16.mxu0 %v246_v0 }
  0x2e   :  { %161 = vmatpush1.bf16.msra.mxu0 %v241_v14 }
  0x2f   :  { %162 = vmatprep.subr.bf16.mxu0 %v246_v0 }
  0x32   :  { %163 = vmatpush1.bf16.msra.mxu0 %v242_v15 }
  0x33   :  { %164 = vmatprep.subr.bf16.mxu0 %v246_v0 }
  0x36   :  { %165 = vmatpush1.bf16.msra.mxu0 %v243_v16 }
  0x39   :  { %171 = vmatmul.mubr.bf16.vlgmr.msra.gmra.mrb[0].mxu0 %v212_v17 }
 0x10c   :  { %v172_v18 = vpop.f32.mrb[0].mxu0 }
 0x10d   :  { %v178_v19 = vpack.c.bf16 %v172_v18, %v172_v18  ;;  %v182_v20 = vsel %vm181_vm1, %v172_v18, 0.0  ;;  %v191_v21 = vmul.f32 %v172_v18, %v172_v18  ;;  %v174_v22 = vpop.f32.mrb[1].mxu0 }
 0x10e   :  { %v183_v23 = vrot.slane %v182_v20, 4  ;;  %v175_v24 = vpop.f32.mrb[2].mxu0 }
 0x10f   :  { %180 = vst.msk [vmem:[%s328_s2] sm:$0xf] %vm179_vm2, %v178_v19  ;;  %v192_v25 = vsel %vm181_vm1, %v191_v21, 0.0  ;;  %v176_v26 = vpop.f32.mrb[3].mxu0 }
 0x110   :  { %v184_v27 = vadd.f32 %v183_v23, %v182_v20  ;;  %v193_v28 = vrot.slane %v192_v25, 4 }
 0x112   :  { %v185_v29 = vrot.slane %v184_v27, 2  ;;  %v194_v30 = vadd.f32 %v193_v28, %v192_v25 }
 0x114   :  { %v186_v31 = vadd.f32 %v185_v29, %v184_v27  ;;  %v195_v32 = vrot.slane %v194_v30, 2 }
 0x116   :  { %v187_v33 = vrot.slane %v186_v31, 1  ;;  %v196_v34 = vadd.f32 %v195_v32, %v194_v30 }
 0x118   :  { %v188_v35 = vadd.f32 %v187_v33, %v186_v31  ;;  %v197_v36 = vrot.slane %v196_v34, 1 }
 0x11a   :  { %190 = vst.msk [vmem:[%s329_s3] sm:$0x1] %vm189_vm3, %v188_v35  ;;  %v198_v37 = vadd.f32 %v197_v36, %v196_v34 }
 0x11c   :  { %199 = vst.msk [vmem:[%s330_s4] sm:$0x1] %vm189_vm3, %v198_v37 }

// kernel: _lambda_.98
= control target key start
LH: loop header
LB: loop body
LE: loop exit
PB: predicated region body
PF: predicated region fallthrough
CT: control target
= control target key end

     0   :  { %s406_s12 = smov 0   ;;  %s408_s13 = smov 0   ;;  %s442_s0 = inlined_call_operand.vmem [shape: bf16[2,1,32], index: 0, kind: input, shape index: {}]   ;;  %s443_s1 = inlined_call_operand.vmem [shape: bf16[2,1,32], index: 1, kind: input, shape index: {}]   ;;  %s444_s2 = inlined_call_operand.vmem [shape: f32[2,1,32], index: 2, kind: input, shape index: {}]   ;;  %s445_s3 = inlined_call_operand.vmem [shape: bf16[2,1,32], index: 3, kind: output, shape index: {}]  }
   0x1   :  { %s410_s14 = smov 0  }
   0x2 LB: > { %s25_s15 = sadd.s32 1, %s380_s13  ;;  %p335_p0 = scmp.ge.s32.totalorder %s384_s14, 1  ;;  %s384_s14 = sphi %s410_s14, %s13_s14   ;;  %s380_s13 = sphi %s408_s13, %s447_s13   ;;  %s376_s12 = sphi %s406_s12, %s446_s12  }
   0x3   : > { %p27_p1 = scmp.ge.s32.totalorder %s25_s15, 2  ;;  %p175_p2 = scmp.lt.s32.totalorder %s384_s14, 3 }
   0x5   : > { %s449_s15 = smov (%p27_p1, %s25_s15), 0  ;;  %p176_p3 = pnand %p335_p0, %p175_p2 }
   0x6   : > { %p210_p4 = scmp.lt.s32.totalorder (!%p176_p3), %s376_s12, 1  ;;  %vm239_vm0 = vcmask (!%p176_p3), 253952   ;;  %vm240_vm1 = vsmask.f32 (!%p176_p3), 256 }
   0x7   : > { %179 = sbr.rel (%p176_p3) target bundleno = 28 (0x1c), region = 32  ;;  %vm241_vm2 = vmand (!%p176_p3), %vm239_vm0, %vm240_vm1 }
   0xe   : > { %s451_s12 = smov (!%p210_p4, %s376_s12), 1 }
   0xf   : > { %s215_s18 = scalar_lea.vmem %s442_s0, %s451_s12  ;;  %s221_s21 = scalar_lea.vmem %s443_s1, %s451_s12 }
  0x10   : > { %s224_s24 = scalar_lea.vmem %s444_s2, %s451_s12  ;;  %v231_v0 = vld [vmem:[%s215_s18] sm:$0x1]  ;;  %s230_s27 = scalar_lea.vmem %s445_s3, %s451_s12 }
  0x11   : > { %v233_v1 = vld [vmem:[%s221_s21] sm:$0x1]  ;;  %v232_v2 = vunpack.c.l.bf16 %v231_v0 }
  0x12   : > { %v234_v3 = vunpack.c.l.bf16 %v233_v1  ;;  %v236_v4 = vld [vmem:[%s224_s24] sm:$0x1] }
  0x13   : > { %v242_v7 = vld [vmem:[%s230_s27] sm:$0x1] }
  0x14   : > { %v235_v5 = vadd.f32 %v234_v3, %v232_v2 }
  0x16   : > { %v237_v6 = vadd.f32 %v236_v4, %v235_v5 }
  0x18   : > { %v238_v8 = vpack.c.bf16 %v237_v6, %v237_v6 }
  0x1a   : > { %v243_v9 = vsel %vm241_vm2, %v238_v8, %v242_v7 }
  0x1b   : > { %244 = vst [vmem:[%s230_s27] sm:$0x1] %v243_v9 }
  0x1c PF: > { %s13_s14 = sadd.s32 1, %s384_s14   ;;  %s446_s12 = smov %s380_s13 }
  0x1d   : > { %p10_p5 = scmp.ge.s32.totalorder %s13_s14, 4   ;;  %s447_s13 = smov %s449_s15 }
  0x1f   :  { %12 = sbr.rel (!%p10_p5) target bundleno = 2 (0x2), region = 68 }

// kernel: _lambda_.104
= control target key start
LH: loop header
LB: loop body
LE: loop exit
PB: predicated region body
PF: predicated region fallthrough
CT: control target
= control target key end

     0   :  { %v430_v0 = vmov 0   ;;  %vm226_vm0 = vcmask 64512   ;;  %vm230_vm1 = vcmask 1043456   ;;  %vm317_vm2 = vcmask 195584   ;;  %s555_s1 = inlined_call_operand.vmem [shape: bf16[392,24], index: 1, kind: input, shape index: {}]   ;;  %s556_s0 = inlined_call_operand.vmem [shape: bf16[8,392], index: 0, kind: input, shape index: {}]   ;;  %s557_s2 = inlined_call_operand.vmem [shape: bf16[8,24], index: 2, kind: output, shape index: {0}]   ;;  %s558_s3 = inlined_call_operand.vmem [shape: f32[1,1,24], index: 3, kind: output, shape index: {1}]   ;;  %s559_s4 = inlined_call_operand.vmem [shape: f32[1,1,24], index: 4, kind: output, shape index: {2}]  }
   0x1   :  { %274 = vmatprep.subr.bf16.mxu1 %v430_v0  ;;  %v401_v1 = vld [vmem:[%s555_s1 + $0x40] sm:$0xff]   ;;  %v404_v4 = vld [vmem:[%s555_s1 + $0x48] sm:$0xff]   ;;  %v407_v7 = vld [vmem:[%s555_s1 + $0x50] sm:$0xff]   ;;  %vm315_vm3 = vcmask 191488   ;;  %vm325_vm4 = vcmask 188416  }
   0x2   :  { %v402_v2 = vld [vmem:[%s555_s1 + $0x80] sm:$0xff]   ;;  %378 = vmatprep.subr.bf16.mxu0 %v401_v1  ;;  %v405_v5 = vld [vmem:[%s555_s1 + $0x88] sm:$0xff]   ;;  %v408_v8 = vld [vmem:[%s555_s1 + $0x90] sm:$0xff]  }
   0x3   :  { %v403_v3 = vld [vmem:[%s555_s1] sm:$0xff]   ;;  %275 = vmatpush1.bf16.msra.mxu1 %v402_v2  ;;  %v406_v6 = vld [vmem:[%s555_s1 + $0x8] sm:$0xff]   ;;  %v409_v9 = vld [vmem:[%s555_s1 + $0x10] sm:$0xff]  }
   0x4   :  { %379 = vmatpush3.bf16.msra.mxu0 %v403_v3  ;;  %276 = vmatprep.subr.bf16.mxu1 %v430_v0  ;;  %v410_v10 = vld [vmem:[%s555_s1 + $0x58] sm:$0xff]   ;;  %v413_v13 = vld [vmem:[%s555_s1 + $0x60] sm:$0xff]   ;;  %v416_v16 = vld [vmem:[%s555_s1 + $0x68] sm:$0xff]  }
   0x5   :  { %380 = vmatprep.subr.bf16.mxu0 %v404_v4  ;;  %v411_v11 = vld [vmem:[%s555_s1 + $0x98] sm:$0xff]   ;;  %v414_v14 = vld [vmem:[%s555_s1 + $0xa0] sm:$0xff]   ;;  %v417_v17 = vld [vmem:[%s555_s1 + $0xa8] sm:$0xff]  }
   0x6   :  { %v412_v12 = vld [vmem:[%s555_s1 + $0x18] sm:$0xff]   ;;  %v415_v15 = vld [vmem:[%s555_s1 + $0x20] sm:$0xff]   ;;  %v418_v18 = vld [vmem:[%s555_s1 + $0x28] sm:$0xff]  }
   0x7   :  { %277 = vmatpush1.bf16.msra.mxu1 %v405_v5  ;;  %v419_v19 = vld [vmem:[%s555_s1 + $0x70] sm:$0xff]   ;;  %v15_v22 = vld [vmem:[%s556_s0] sm:$0xff]  ;;  %v422_v23 = vld [vmem:[%s555_s1 + $0x78] sm:$0xff]  }
   0x8   :  { %381 = vmatpush3.bf16.msra.mxu0 %v406_v6  ;;  %278 = vmatprep.subr.bf16.mxu1 %v430_v0  ;;  %v420_v20 = vld [vmem:[%s555_s1 + $0xb0] sm:$0xff]   ;;  %v349_v24 = vcombine.high %v15_v22, %v15_v22  ;;  %v16_v25 = vld [vmem:[%s556_s0 + $0x8] sm:$0xff]  ;;  %v423_v27 = vld [vmem:[%s555_s1 + $0xb8] sm:$0xff]   ;;  %v348_v30 = vcombine.low %v15_v22, %v15_v22 }
   0x9   :  { %382 = vmatprep.subr.bf16.mxu0 %v407_v7  ;;  %v421_v21 = vld [vmem:[%s555_s1 + $0x30] sm:$0xff]   ;;  %v351_v26 = vcombine.high %v16_v25, %v16_v25  ;;  %v424_v28 = vld [vmem:[%s555_s1 + $0x38] sm:$0xff]   ;;  %v427_v29 = vld [vmem:[%s555_s1 + $0xc0] ss:$0 sps:$4 sm:$0xff]   ;;  %v350_v32 = vcombine.low %v16_v25, %v16_v25 }
   0xa   :  { %266 = vmatprep.mubr.bf16.mxu0 %v349_v24  ;;  %v232_v31 = vsel %vm230_vm1, %v427_v29, 0 }
   0xb   :  { %279 = vmatpush1.bf16.msra.mxu1 %v408_v8  ;;  %377 = vmatprep.mubr.msk.bf16.mxu1 %vm226_vm0, %v351_v26 }
   0xc   :  { %383 = vmatpush3.bf16.msra.mxu0 %v409_v9  ;;  %280 = vmatprep.subr.bf16.mxu1 %v430_v0 }
   0xd   :  { %384 = vmatprep.subr.bf16.mxu0 %v410_v10 }
   0xf   :  { %281 = vmatpush1.bf16.msra.mxu1 %v411_v11 }
  0x10   :  { %385 = vmatpush3.bf16.msra.mxu0 %v412_v12  ;;  %282 = vmatprep.subr.bf16.mxu1 %v430_v0 }
  0x11   :  { %386 = vmatprep.subr.bf16.mxu0 %v413_v13 }
  0x13   :  { %283 = vmatpush1.bf16.msra.mxu1 %v414_v14 }
  0x14   :  { %387 = vmatpush3.bf16.msra.mxu0 %v415_v15  ;;  %284 = vmatprep.subr.bf16.mxu1 %v430_v0 }
  0x15   :  { %388 = vmatprep.subr.bf16.mxu0 %v416_v16 }
  0x17   :  { %285 = vmatpush1.bf16.msra.mxu1 %v417_v17 }
  0x18   :  { %389 = vmatpush3.bf16.msra.mxu0 %v418_v18  ;;  %286 = vmatprep.subr.bf16.mxu1 %v430_v0 }
  0x19   :  { %390 = vmatprep.subr.bf16.mxu0 %v419_v19 }
  0x1b   :  { %287 = vmatpush1.bf16.msra.mxu1 %v420_v20 }
  0x1c   :  { %391 = vmatpush3.bf16.msra.mxu0 %v421_v21  ;;  %288 = vmatprep.subr.bf16.mxu1 %v430_v0 }
  0x1d   :  { %392 = vmatprep.subr.bf16.mxu0 %v422_v23 }
  0x1f   :  { %289 = vmatpush1.bf16.msra.mxu1 %v423_v27 }
  0x20   :  { %393 = vmatpush3.bf16.msra.mxu0 %v424_v28  ;;  %290 = vmatprep.subr.bf16.mxu1 %v430_v0 }
  0x23   :  { %267 = vmatmul.mubr.bf16.vlgmr.msra.gmra.mrb[0].mxu0 %v348_v30  ;;  %291 = vmatpush1.bf16.msra.mxu1 %v232_v31 }
  0x26   :  { %307 = vmatmul.mubr.bf16.vlgmr.msra.gmra.mrb[0].mxu1 %v350_v32 }
  0xf6   :  { %v394_v33 = vpop.f32.mrb[0].mxu0 }
  0xf7   :  { %v395_v34 = vpop.f32.mrb[1].mxu0 }
  0xf8   :  { %v396_v35 = vadd.f32 %v395_v34, %v394_v33  ;;  %v397_v36 = vpop.f32.mrb[2].mxu0 }
  0xf9   :  { %v398_v37 = vpop.f32.mrb[3].mxu0  ;;  %v308_v38 = vpop.f32.mrb[0].mxu1 }
  0xfa   :  { %v309_v39 = vadd.f32 %v396_v35, %v308_v38  ;;  %v310_v40 = vpop.f32.mrb[1].mxu1 }
  0xfb   :  { %v311_v41 = vpop.f32.mrb[2].mxu1 }
  0xfc   :  { %v314_v42 = vpack.c.bf16 %v309_v39, %v309_v39  ;;  %v318_v43 = vsel %vm317_vm2, %v309_v39, 0.0  ;;  %v327_v44 = vmul.f32 %v309_v39, %v309_v39  ;;  %v312_v45 = vpop.f32.mrb[3].mxu1 }
  0xfd   :  { %v319_v46 = vrot.slane %v318_v43, 4 }
  0xfe   :  { %316 = vst.msk [vmem:[%s557_s2] sm:$0xf] %vm315_vm3, %v314_v42  ;;  %v328_v47 = vsel %vm317_vm2, %v327_v44, 0.0 }
  0xff   :  { %v320_v48 = vadd.f32 %v319_v46, %v318_v43  ;;  %v329_v49 = vrot.slane %v328_v47, 4 }
 0x101   :  { %v321_v50 = vrot.slane %v320_v48, 2  ;;  %v330_v51 = vadd.f32 %v329_v49, %v328_v47 }
 0x103   :  { %v322_v52 = vadd.f32 %v321_v50, %v320_v48  ;;  %v331_v53 = vrot.slane %v330_v51, 2 }
 0x105   :  { %v323_v54 = vrot.slane %v322_v52, 1  ;;  %v332_v55 = vadd.f32 %v331_v53, %v330_v51 }
 0x107   :  { %v324_v56 = vadd.f32 %v323_v54, %v322_v52  ;;  %v333_v57 = vrot.slane %v332_v55, 1 }
 0x109   :  { %326 = vst.msk [vmem:[%s558_s3] sm:$0x1] %vm325_vm4, %v324_v56  ;;  %v334_v58 = vadd.f32 %v333_v57, %v332_v55 }
 0x10b   :  { %335 = vst.msk [vmem:[%s559_s4] sm:$0x1] %vm325_vm4, %v334_v58 }

// kernel: _lambda_.106
= control target key start
LH: loop header
LB: loop body
LE: loop exit
PB: predicated region body
PF: predicated region fallthrough
CT: control target
= control target key end

     0   :  { %s1325_s15 = smov 0   ;;  %s1327_s16 = smov 0   ;;  %s1518_s0 = inlined_call_operand.vmem [shape: bf16[2,22,40], index: 0, kind: input, shape index: {}]   ;;  %s1519_s1 = inlined_call_operand.vmem [shape: bf16[7,40,16], index: 1, kind: input, shape index: {}]   ;;  %s1520_s2 = inlined_call_operand.vmem [shape: bf16[2,16,16], index: 2, kind: output, shape index: {0}]   ;;  %s1521_s3 = inlined_call_operand.vmem [shape: f32[2,1,1,16], index: 3, kind: output, shape index: {1}]   ;;  %s1522_s4 = inlined_call_operand.vmem [shape: f32[2,1,1,16], index: 4, kind: output, shape index: {2}]  }
   0x1   :  { %s1329_s17 = smov 0  }
   0x2 LB: > { %s27_s18 = sadd.s32 1, %s1292_s16  ;;  %p1023_p0 = scmp.ge.s32.totalorder %s1296_s17, 1  ;;  %s1296_s17 = sphi %s1329_s17, %s15_s17   ;;  %s1292_s16 = sphi %s1327_s16, %s1524_s16   ;;  %s1288_s15 = sphi %s1325_s15, %s1523_s15  }
   0x3   : > { %p29_p1 = scmp.ge.s32.totalorder %s27_s18, 2  ;;  %p185_p2 = scmp.lt.s32.totalorder %s1296_s17, 3 }
   0x5   : > { %s1526_s18 = smov (%p29_p1, %s27_s18), 0  ;;  %p186_p3 = pnand %p1023_p0, %p185_p2 }
   0x6   : > { %v1246_v0 = vld [vmem:[%s1519_s1 + $0x3c] sm:$0xff] (!%p186_p3)   ;;  %v1298_v1 = vmov (!%p186_p3), 0.0   ;;  %v1247_v2 = vld [vmem:[%s1519_s1 + $0x14] sm:$0xff] (!%p186_p3)   ;;  %vm309_vm0 = vcmask (!%p186_p3), 1043456   ;;  %v1248_v3 = vld [vmem:[%s1519_s1 + $0x44] sm:$0xff] (!%p186_p3)   ;;  %p227_p4 = scmp.lt.s32.totalorder (!%p186_p3), %s1288_s15, 1 }
   0x7   : > { %189 = sbr.rel (%p186_p3) target bundleno = 299 (0x12b), region = 28  ;;  %1157 = vmatprep.subr.bf16.mxu0 (!%p186_p3), %v1298_v1  ;;  %1127 = vmatprep.subr.bf16.mxu1 (!%p186_p3), %v1298_v1  ;;  %v1249_v4 = vld [vmem:[%s1519_s1 + $0x1c] sm:$0xff] (!%p186_p3)   ;;  %v1250_v5 = vld [vmem:[%s1519_s1 + $0x4c] ss:$0 sps:$4 sm:$0xff] (!%p186_p3)   ;;  %vm1299_vm1 = vmmov (!%p186_p3), 0   ;;  %vm305_vm3 = vcmask (!%p186_p3), 326656  }
   0x8   : > { %1158 = vmatpush3.bf16.msra.mxu0 (!%p186_p3), %v1246_v0  ;;  %1128 = vmatpush3.bf16.msra.mxu1 (!%p186_p3), %v1247_v2  ;;  %v1251_v6 = vld [vmem:[%s1519_s1 + $0x24] ss:$0 sps:$4 sm:$0xff] (!%p186_p3)   ;;  %v540_v7 = vsel (!%p186_p3), %vm309_vm0, %v1250_v5, 0  ;;  %vm277_vm2 = vsmask.f32 (!%p186_p3), 7424  ;;  %v1256_v30 = vld [vmem:[%s1519_s1 + $0x50] sm:$0xff] (!%p186_p3)  }
   0x9   : > { %1159 = vmatprep.subr.bf16.mxu0 (!%p186_p3), %v1298_v1  ;;  %1129 = vmatprep.subr.bf16.mxu1 (!%p186_p3), %v1298_v1  ;;  %v311_v8 = vsel (!%p186_p3), %vm309_vm0, %v1251_v6, 0  ;;  %vm503_vm4 = vsmask.f32 (!%p186_p3), 6400  ;;  %v1257_v31 = vld [vmem:[%s1519_s1] sm:$0xff] (!%p186_p3)   ;;  %v1259_v37 = vld [vmem:[%s1519_s1 + $0x8] sm:$0xff] (!%p186_p3)   ;;  %v1258_v39 = vld [vmem:[%s1519_s1 + $0x58] sm:$0xff] (!%p186_p3)  }
   0xa   : > { %1133 = vmatprep.mubr.msk.bf16.mxu1 (!%p186_p3), %vm1299_vm1, %v1298_v1  ;;  %1163 = vmatprep.mubr.msk.bf16.mxu0 (!%p186_p3), %vm1299_vm1, %v1298_v1  ;;  %v1261_v40 = vld [vmem:[%s1519_s1 + $0x10] ss:$0 sps:$4 sm:$0xff] (!%p186_p3)   ;;  %v1260_v41 = vld [vmem:[%s1519_s1 + $0x60] ss:$0 sps:$4 sm:$0xff] (!%p186_p3)   ;;  %vm595_vm5 = vcmask (!%p186_p3), 1045504   ;;  %v1264_v48 = vld [vmem:[%s1519_s1 + $0x28] sm:$0xff] (!%p186_p3)  }
   0xb   : > { %v372_v44 = vsel (!%p186_p3), %vm309_vm0, %v1261_v40, 0  ;;  %v618_v46 = vsel (!%p186_p3), %vm309_vm0, %v1260_v41, 0  ;;  %v1263_v49 = vld [vmem:[%s1519_s1 + $0x64] sm:$0xff] (!%p186_p3)   ;;  %v1265_v54 = vld [vmem:[%s1519_s1 + $0x6c] sm:$0xff] (!%p186_p3)   ;;  %v1268_v56 = vld [vmem:[%s1519_s1 + $0x38] ss:$0 sps:$4 sm:$0xff] (!%p186_p3)  }
   0xc   : > { %1160 = vmatpush3.bf16.msra.mxu0 (!%p186_p3), %v1248_v3  ;;  %1130 = vmatpush3.bf16.msra.mxu1 (!%p186_p3), %v1249_v4  ;;  %v1266_v55 = vld [vmem:[%s1519_s1 + $0x30] sm:$0xff] (!%p186_p3)   ;;  %v448_v0 = vsel (!%p186_p3), %vm309_vm0, %v1268_v56, 0  ;;  %vm425_vm6 = vcmask (!%p186_p3), 1046528   ;;  %vm673_vm7 = vsmask.f32 (!%p186_p3), 5376  ;;  %vm765_vm8 = vcmask (!%p186_p3), 1044480  }
   0xd   : > { %1161 = vmatprep.subr.bf16.mxu0 (!%p186_p3), %v1298_v1  ;;  %1131 = vmatprep.subr.bf16.mxu1 (!%p186_p3), %v1298_v1  ;;  %v1267_v61 = vld [vmem:[%s1519_s1 + $0x74] ss:$0 sps:$4 sm:$0xff] (!%p186_p3)   ;;  %vm841_vm9 = vcmask (!%p186_p3), 125952   ;;  %vm844_vm10 = vcmask (!%p186_p3), 130048   ;;  %vm854_vm11 = vcmask (!%p186_p3), 122880  }
   0xe   : > { %s1528_s15 = smov (!%p227_p4, %s1288_s15), 1  ;;  %v710_v4 = vsel %vm309_vm0, %v1267_v61, 0 }
   0xf   : > { %s1219_s5 = smul.u32 12, %s1528_s15  ;;  %s247_s27 = scalar_lea.vmem %s1521_s3, %s1528_s15 }
  0x10   : > { %1162 = vmatpush3.bf16.msra.mxu0 %v540_v7  ;;  %1132 = vmatpush3.bf16.msra.mxu1 %v311_v8  ;;  %v1270_v7 = vld [vmem:[%s1519_s1 + $0x78] sm:$0xff]   ;;  %s253_s30 = scalar_lea.vmem %s1522_s4, %s1528_s15 }
  0x11   : > { %s1379_s8 = scalar_lea.vmem %s1518_s0, %s1219_s5  ;;  %1167 = vmatprep.subr.bf16.mxu0 %v1298_v1  ;;  %1137 = vmatprep.subr.bf16.mxu1 %v1298_v1 }
  0x12   : > { %v255_v9 = vld [vmem:[%s1379_s8] sm:$0xf]  ;;  %v1383_v10 = vld [vmem:[%s1379_s8 + $0x4] sm:$0xf] }
  0x13   : > { %v1387_v11 = vcombine.low %v255_v9, %v1383_v10  ;;  %v1390_v12 = vld [vmem:[%s1379_s8 + $0x8] ss:$0 sps:$4 sm:$0x11]   ;;  %v415_v13 = vld [vmem:[%s1379_s8] sm:$0xe] }
  0x14   : > { %v1395_v14 = vcombine.low %v415_v13, %v1383_v10  ;;  %v1255_v15 = vld [vmem:[%s1379_s8 + $0x8] ss:$0 sps:$4 sm:$0x33]   ;;  %v286_v18 = vshll.u32 %v1390_v12, 16  ;;  %v585_v34 = vld [vmem:[%s1379_s8] sm:$0xc] }
  0x15   : > { %v279_v16 = vshrl.u32 %v1387_v11, 16  ;;  %v281_v17 = vshll.u32 %v1387_v11, 16  ;;  %v513_v21 = vshrl.u32 %v1255_v15, 16  ;;  %v516_v22 = vshll.u32 %v1255_v15, 16  ;;  %v755_v8 = vld [vmem:[%s1379_s8] sm:$0x8] }
  0x16   : > { %v505_v19 = vshrl.u32 %v1395_v14, 16  ;;  %v508_v20 = vshll.u32 %v1395_v14, 16  ;;  %v288_v24 = vrot.slane %v286_v18, 1  ;;  %v1067_v38 = vcombine.low %v585_v34, %v1383_v10  ;;  %v1435_v45 = vld [vmem:[%s1379_s8 + $0x8] ss:$0 sps:$4 sm:$0x77]  }
  0x17   : > { %v283_v23 = vrot.slane %v281_v17, 1  ;;  %v515_v27 = vrot.slane %v513_v21, 1  ;;  %v518_v28 = vrot.slane %v516_v22, 2  ;;  %v597_v43 = vrot.slane %v1255_v15, 2  ;;  %v1271_v9 = vld [vmem:[%s1519_s1 + $0x80] sm:$0xff]   ;;  %s1096_s8 = sshll.u32 %s1528_s15, 3 }
  0x18   : > { %v507_v25 = vrot.slane %v505_v19, 1  ;;  %v510_v26 = vrot.slane %v508_v20, 2  ;;  %v596_v42 = vrot.slane %v1067_v38, 2  ;;  %v675_v50 = vshrl.u32 %v1067_v38, 16  ;;  %s240_s24 = scalar_lea.vmem %s1520_s2, %s1096_s8 }
  0x19   : > { %v284_v29 = vor.u32 %v283_v23, %v279_v16  ;;  %v519_v33 = vor.u32 %v518_v28, %v515_v27  ;;  %v678_v51 = vshll.u32 %v1067_v38, 16  ;;  %v683_v52 = vshrl.u32 %v1435_v45, 16 }
  0x1a   : > { %v511_v32 = vor.u32 %v510_v26, %v507_v25  ;;  %v598_v47 = vsel %vm595_vm5, %v596_v42, %v597_v43  ;;  %v686_v53 = vshll.u32 %v1435_v45, 16  ;;  %v677_v57 = vrot.slane %v675_v50, 2 }
  0x1b   : > { %v289_v35 = vsel %vm277_vm2, %v284_v29, %v288_v24  ;;  %v680_v58 = vrot.slane %v678_v51, 3  ;;  %v685_v59 = vrot.slane %v683_v52, 2  ;;  %v426_v62 = vrot.slane %v1395_v14, 1 }
  0x1c   : > { %1134 = vmatmul.mubr.msk.bf16.vlgmr.msra.gmra.mrb[0].mxu1 %vm305_vm3, %v289_v35  ;;  %v520_v36 = vsel %vm503_vm4, %v511_v32, %v519_v33  ;;  %v688_v60 = vrot.slane %v686_v53, 3  ;;  %v427_v63 = vrot.slane %v1390_v12, 1  ;;  %v1272_v12 = vld [vmem:[%s1519_s1 + $0x88] ss:$0 sps:$4 sm:$0xff]   ;;  %v767_v14 = vrot.slane %v1435_v45, 3 }
  0x1d   : > { %1164 = vmatmul.mubr.msk.bf16.vlgmr.msra.gmra.mrb[0].mxu0 %vm305_vm3, %v520_v36  ;;  %1138 = vmatpush3.bf16.msra.mxu1 %v1257_v31  ;;  %v681_v2 = vor.u32 %v680_v58, %v677_v57  ;;  %v788_v15 = vsel %vm309_vm0, %v1272_v12, 0 }
  0x1e   : > { %1168 = vmatpush3.bf16.msra.mxu0 %v1256_v30  ;;  %1139 = vmatprep.subr.bf16.mxu1 %v1298_v1  ;;  %v689_v3 = vor.u32 %v688_v60, %v685_v59  ;;  %v428_v5 = vsel %vm425_vm6, %v426_v62, %v427_v63 }
  0x1f   : > { %1169 = vmatprep.subr.bf16.mxu0 %v1298_v1  ;;  %1143 = vmatprep.mubr.msk.bf16.mxu1 %vm1299_vm1, %v1298_v1 }
  0x20   : > { %1173 = vmatprep.mubr.msk.bf16.mxu0 %vm1299_vm1, %v1298_v1  ;;  %v690_v6 = vsel %vm673_vm7, %v681_v2, %v689_v3 }
  0x21   : > { %1140 = vmatpush3.bf16.msra.mxu1 %v1259_v37 }
  0x22   : > { %1170 = vmatpush3.bf16.msra.mxu0 %v1258_v39  ;;  %1141 = vmatprep.subr.bf16.mxu1 %v1298_v1 }
  0x23   : > { %1171 = vmatprep.subr.bf16.mxu0 %v1298_v1 }
  0x25   : > { %1142 = vmatpush3.bf16.msra.mxu1 %v372_v44 }
  0x26   : > { %1172 = vmatpush3.bf16.msra.mxu0 %v618_v46  ;;  %1147 = vmatprep.subr.bf16.mxu1 %v1298_v1 }
  0x27   : > { %1177 = vmatprep.subr.bf16.mxu0 %v1298_v1 }
  0x28   : > { %1144 = vmatmul.mubr.msk.bf16.vlgmr.msra.gmra.mrb[0].mxu1 %vm305_vm3, %v1387_v11  ;;  %v1087_v11 = vcombine.low %v755_v8, %v1383_v10 }
  0x29   : > { %1174 = vmatmul.mubr.msk.bf16.vlgmr.msra.gmra.mrb[0].mxu0 %vm305_vm3, %v598_v47  ;;  %1148 = vmatpush3.bf16.msra.mxu1 %v1264_v48 }
  0x2a   : > { %1178 = vmatpush3.bf16.msra.mxu0 %v1263_v49  ;;  %1149 = vmatprep.subr.bf16.mxu1 %v1298_v1  ;;  %v766_v13 = vrot.slane %v1087_v11, 3 }
  0x2b   : > { %1179 = vmatprep.subr.bf16.mxu0 %v1298_v1  ;;  %1153 = vmatprep.mubr.msk.bf16.mxu1 %vm1299_vm1, %v1298_v1 }
  0x2c   : > { %1183 = vmatprep.mubr.msk.bf16.mxu0 %vm1299_vm1, %v1298_v1  ;;  %v768_v16 = vsel %vm765_vm8, %v766_v13, %v767_v14 }
  0x2d   : > { %1150 = vmatpush3.bf16.msra.mxu1 %v1266_v55 }
  0x2e   : > { %1180 = vmatpush3.bf16.msra.mxu0 %v1265_v54  ;;  %1151 = vmatprep.subr.bf16.mxu1 %v1298_v1 }
  0x2f   : > { %1181 = vmatprep.subr.bf16.mxu0 %v1298_v1 }
  0x31   : > { %1152 = vmatpush3.bf16.msra.mxu1 %v448_v0 }
  0x32   : > { %1182 = vmatpush3.bf16.msra.mxu0 %v710_v4 }
  0x33   : > { %1187 = vmatprep.subr.bf16.mxu0 %v1298_v1 }
  0x34   : > { %1154 = vmatmul.mubr.msk.bf16.vlgmr.msra.gmra.mrb[0].mxu1 %vm305_vm3, %v428_v5 }
  0x35   : > { %1184 = vmatmul.mubr.msk.bf16.vlgmr.msra.gmra.mrb[0].mxu0 %vm305_vm3, %v690_v6 }
  0x36   : > { %1188 = vmatpush3.bf16.msra.mxu0 %v1270_v7  ;;  %1193 = vmatprep.mubr.msk.bf16.mxu0 %vm1299_vm1, %v1298_v1 }
  0x37   : > { %1189 = vmatprep.subr.bf16.mxu0 %v1298_v1 }
  0x3a   : > { %1190 = vmatpush3.bf16.msra.mxu0 %v1271_v9 }
  0x3b   : > { %1191 = vmatprep.subr.bf16.mxu0 %v1298_v1 }
  0x3e   : > { %1192 = vmatpush3.bf16.msra.mxu0 %v788_v15 }
  0x41   : > { %1194 = vmatmul.mubr.msk.bf16.vlgmr.msra.gmra.mrb[0].mxu0 %vm305_vm3, %v768_v16 }
 0x107   : > { %v484_v10 = vpop.f32.mrb[0].mxu1 }
 0x108   : > { %v1155_v17 = vpop.f32.mrb[1].mxu1 }
 0x109   : > { %v487_v18 = vpop.f32.mrb[2].mxu1 }
 0x10a   : > { %v1156_v19 = vpop.f32.mrb[3].mxu1 }
 0x114   : > { %v824_v20 = vpop.f32.mrb[0].mxu0 }
 0x115   : > { %v1197_v21 = vadd.f32 %v824_v20, %v484_v10  ;;  %v1195_v22 = vpop.f32.mrb[1].mxu0 }
 0x116   : > { %v827_v1 = vpop.f32.mrb[2].mxu0 }
 0x117   : > { %v1097_v23 = vpack.c.bf16 %v1197_v21, %v1197_v21  ;;  %v856_v24 = vmul.f32 %v1197_v21, %v1197_v21  ;;  %v1198_v25 = vadd.f32 %v827_v1, %v487_v18  ;;  %v1196_v26 = vpop.f32.mrb[3].mxu0  ;;  %v845_v27 = vsel %vm844_vm10, %v1197_v21, 0.0 }
 0x119   : > { %842 = vst.msk [vmem:[%s240_s24] sm:$0xf] %vm841_vm9, %v1097_v23  ;;  %v1098_v28 = vpack.c.bf16 %v1198_v25, %v1198_v25  ;;  %v846_v29 = vsel %vm844_vm10, %v1198_v25, 0.0  ;;  %v857_v30 = vmul.f32 %v1198_v25, %v1198_v25  ;;  %v858_v32 = vsel %vm844_vm10, %v856_v24, 0.0 }
 0x11a   : > { %v847_v31 = vadd.f32 %v846_v29, %v845_v27 }
 0x11b   : > { %843 = vst.msk [vmem:[%s240_s24 + $0x4] sm:$0xf] %vm841_vm9, %v1098_v28  ;;  %v859_v33 = vsel %vm844_vm10, %v857_v30, 0.0 }
 0x11c   : > { %v848_v34 = vrot.slane %v847_v31, 4  ;;  %v860_v35 = vadd.f32 %v859_v33, %v858_v32 }
 0x11e   : > { %v849_v36 = vadd.f32 %v848_v34, %v847_v31  ;;  %v861_v37 = vrot.slane %v860_v35, 4 }
 0x120   : > { %v850_v38 = vrot.slane %v849_v36, 2  ;;  %v862_v39 = vadd.f32 %v861_v37, %v860_v35 }
 0x122   : > { %v851_v40 = vadd.f32 %v850_v38, %v849_v36  ;;  %v863_v41 = vrot.slane %v862_v39, 2 }
 0x124   : > { %v852_v42 = vrot.slane %v851_v40, 1  ;;  %v864_v43 = vadd.f32 %v863_v41, %v862_v39 }
 0x126   : > { %v853_v44 = vadd.f32 %v852_v42, %v851_v40  ;;  %v865_v45 = vrot.slane %v864_v43, 1 }
 0x128   : > { %855 = vst.msk [vmem:[%s247_s27] sm:$0x1] %vm854_vm11, %v853_v44  ;;  %v866_v46 = vadd.f32 %v865_v45, %v864_v43 }
 0x12a   : > { %867 = vst.msk [vmem:[%s253_s30] sm:$0x1] %vm854_vm11, %v866_v46 }
 0x12b PF: > { %s15_s17 = sadd.s32 1, %s1296_s17   ;;  %s1523_s15 = smov %s1292_s16 }
 0x12c   : > { %p12_p5 = scmp.ge.s32.totalorder %s15_s17, 4   ;;  %s1524_s16 = smov %s1526_s18 }
 0x12e   :  { %14 = sbr.rel (!%p12_p5) target bundleno = 2 (0x2), region = 88 }

// kernel: _lambda_.111
= control target key start
LH: loop header
LB: loop body
LE: loop exit
PB: predicated region body
PF: predicated region fallthrough
CT: control target
= control target key end

     0   :  { %s464_s16 = smov 0   ;;  %s466_s17 = smov 0   ;;  %s505_s0 = inlined_call_operand.vmem [shape: bf16[2,64,1], index: 0, kind: input, shape index: {}]   ;;  %s506_s1 = inlined_call_operand.<no memory space> [shape: f32[1,1], index: 1, kind: input, shape index: {}]   ;;  %s507_s3 = inlined_call_operand.vmem [shape: f32[2,64,1], index: 3, kind: output, shape index: {}]   ;;  %s508_s2 = inlined_call_operand.<no memory space> [shape: f32[1,1], index: 2, kind: input, shape index: {}]  }
   0x1   :  { %v8_v0 = vstv %s506_s1  ;;  %v10_v1 = vstv %s508_s2  ;;  %s468_s18 = smov 0  }
   0x2   :  { %9 = vst [vmem:[#allocation2] sm:$0x1] %v8_v0  ;;  %11 = vst [vmem:[#allocation3] sm:$0x1] %v10_v1 }
   0x3 LB: > { %s29_s1 = sadd.s32 1, %s432_s17  ;;  %p360_p0 = scmp.ge.s32.totalorder %s436_s18, 1  ;;  %s436_s18 = sphi %s468_s18, %s17_s18   ;;  %s432_s17 = sphi %s466_s17, %s510_s17   ;;  %s428_s16 = sphi %s464_s16, %s509_s16  }
   0x4   : > { %p31_p1 = scmp.ge.s32.totalorder %s29_s1, 2  ;;  %p162_p2 = scmp.lt.s32.totalorder %s436_s18, 3 }
   0x6   : > { %s512_s1 = smov (%p31_p1, %s29_s1), 0  ;;  %p163_p3 = pnand %p360_p0, %p162_p2 }
   0x7   : > { %p195_p4 = scmp.lt.s32.totalorder (!%p163_p3), %s428_s16, 1  ;;  %vm260_vm0 = vcmask (!%p163_p3), 7168  }
   0x8   : > { %166 = sbr.rel (%p163_p3) target bundleno = 29 (0x1d), region = 32 }
   0x9   : > { %v365_v2 = vld [vmem:[#allocation2] ss:$0 sm:$0xff] (!%p163_p3)  ;;  %v366_v11 = vld [vmem:[#allocation3] ss:$0 sm:$0xff] (!%p163_p3) }
   0xf   : > { %s514_s16 = smov (!%p195_p4, %s428_s16), 1 }
  0x10   : > { %s369_s2 = sshll.u32 %s514_s16, 5  ;;  %s370_s22 = sshll.u32 %s514_s16, 6 }
  0x11   : > { %s202_s21 = scalar_lea.vmem %s505_s0, %s369_s2  ;;  %s212_s25 = scalar_lea.vmem %s507_s3, %s370_s22 }
  0x12   : > { %v372_v3 = vld [vmem:[%s202_s21] sm:$0xff]   ;;  %v387_v4 = vld [vmem:[%s202_s21 + $0x8] sm:$0xff]   ;;  %v388_v5 = vld [vmem:[%s202_s21 + $0x10] sm:$0xff]  }
  0x13   : > { %v373_v6 = vunpack.c.l.bf16 %v372_v3  ;;  %v374_v7 = vunpack.c.h.bf16 %v372_v3  ;;  %v377_v8 = vunpack.c.l.bf16 %v387_v4  ;;  %v378_v9 = vunpack.c.h.bf16 %v387_v4  ;;  %v389_v10 = vld [vmem:[%s202_s21 + $0x18] sm:$0xff]  }
  0x14   : > { %v381_v12 = vunpack.c.l.bf16 %v388_v5  ;;  %v382_v13 = vunpack.c.h.bf16 %v388_v5  ;;  %v385_v14 = vunpack.c.l.bf16 %v389_v10  ;;  %v386_v15 = vunpack.c.h.bf16 %v389_v10 }
  0x15   : > { %v237_v16 = vmul.f32 %v373_v6, %v365_v2  ;;  %v238_v17 = vmul.f32 %v374_v7, %v365_v2  ;;  %v239_v18 = vmul.f32 %v377_v8, %v365_v2  ;;  %v240_v19 = vmul.f32 %v378_v9, %v365_v2 }
  0x16   : > { %v241_v20 = vmul.f32 %v381_v12, %v365_v2  ;;  %v242_v21 = vmul.f32 %v382_v13, %v365_v2  ;;  %v243_v22 = vmul.f32 %v385_v14, %v365_v2  ;;  %v244_v23 = vmul.f32 %v386_v15, %v365_v2 }
  0x17   : > { %v252_v24 = vadd.f32 %v366_v11, %v237_v16  ;;  %v253_v25 = vadd.f32 %v366_v11, %v238_v17  ;;  %v254_v26 = vadd.f32 %v366_v11, %v239_v18  ;;  %v255_v27 = vadd.f32 %v366_v11, %v240_v19 }
  0x18   : > { %v256_v28 = vadd.f32 %v366_v11, %v241_v20  ;;  %v257_v29 = vadd.f32 %v366_v11, %v242_v21  ;;  %v258_v30 = vadd.f32 %v366_v11, %v243_v22  ;;  %v259_v31 = vadd.f32 %v366_v11, %v244_v23 }
  0x19   : > { %261 = vst.msk [vmem:[%s212_s25] sm:$0xff] %vm260_vm0, %v252_v24  ;;  %262 = vst.msk [vmem:[%s212_s25 + $0x8] sm:$0xff] %vm260_vm0, %v253_v25 }
  0x1a   : > { %263 = vst.msk [vmem:[%s212_s25 + $0x10] sm:$0xff] %vm260_vm0, %v254_v26  ;;  %264 = vst.msk [vmem:[%s212_s25 + $0x18] sm:$0xff] %vm260_vm0, %v255_v27 }
  0x1b   : > { %265 = vst.msk [vmem:[%s212_s25 + $0x20] sm:$0xff] %vm260_vm0, %v256_v28  ;;  %266 = vst.msk [vmem:[%s212_s25 + $0x28] sm:$0xff] %vm260_vm0, %v257_v29 }
  0x1c   : > { %267 = vst.msk [vmem:[%s212_s25 + $0x30] sm:$0xff] %vm260_vm0, %v258_v30  ;;  %268 = vst.msk [vmem:[%s212_s25 + $0x38] sm:$0xff] %vm260_vm0, %v259_v31 }
  0x1d PF: > { %s17_s18 = sadd.s32 1, %s436_s18   ;;  %s509_s16 = smov %s432_s17 }
  0x1e   : > { %p14_p5 = scmp.ge.s32.totalorder %s17_s18, 4   ;;  %s510_s17 = smov %s512_s1 }
  0x20   :  { %16 = sbr.rel (!%p14_p5) target bundleno = 3 (0x3), region = 62 }

// kernel: _lambda_.108
= control target key start
LH: loop header
LB: loop body
LE: loop exit
PB: predicated region body
PF: predicated region fallthrough
CT: control target
= control target key end

     0   :  { %s1749_s15 = smov 0   ;;  %s1751_s16 = smov 0   ;;  %s2057_s0 = inlined_call_operand.vmem [shape: bf16[2,70,24], index: 0, kind: input, shape index: {}]   ;;  %s2058_s1 = inlined_call_operand.vmem [shape: bf16[7,24,8], index: 1, kind: input, shape index: {}]   ;;  %s2059_s2 = inlined_call_operand.vmem [shape: bf16[2,64,8], index: 2, kind: output, shape index: {0}]   ;;  %s2060_s3 = inlined_call_operand.vmem [shape: f32[2,1,1,8], index: 3, kind: output, shape index: {1}]   ;;  %s2061_s4 = inlined_call_operand.vmem [shape: f32[2,1,1,8], index: 4, kind: output, shape index: {2}]  }
   0x1   :  { %s1753_s17 = smov 0  }
   0x2 LB: > { %s27_s18 = sadd.s32 1, %s1718_s16  ;;  %p1372_p0 = scmp.ge.s32.totalorder %s1722_s17, 1  ;;  %s1722_s17 = sphi %s1753_s17, %s15_s17   ;;  %s1718_s16 = sphi %s1751_s16, %s2063_s16   ;;  %s1714_s15 = sphi %s1749_s15, %s2062_s15  }
   0x3   : > { %p29_p1 = scmp.ge.s32.totalorder %s27_s18, 2  ;;  %p185_p2 = scmp.lt.s32.totalorder %s1722_s17, 3 }
   0x5   : > { %s2065_s18 = smov (%p29_p1, %s27_s18), 0  ;;  %p186_p3 = pnand %p1372_p0, %p185_p2 }
   0x6   : > { %v1676_v0 = vld [vmem:[%s2058_s1 + $0xc] sm:$0xff] (!%p186_p3)   ;;  %vm353_vm0 = vcmask (!%p186_p3), 1043456   ;;  %v1773_v1 = vld [vmem:[%s2058_s1 + $0x24] sm:$0xff] (!%p186_p3)   ;;  %p227_p4 = scmp.lt.s32.totalorder (!%p186_p3), %s1714_s15, 1  ;;  %v1678_v2 = vld [vmem:[%s2058_s1 + $0x14] ss:$0 sps:$4 sm:$0xff] (!%p186_p3)  }
   0x7   : > { %189 = sbr.rel (%p186_p3) target bundleno = 321 (0x141), region = 28  ;;  %1507 = vmatprep.subr.bf16.mxu1 (!%p186_p3), %v1676_v0  ;;  %1543 = vmatprep.subr.bf16.mxu0 (!%p186_p3), %v1773_v1  ;;  %v1782_v3 = vld [vmem:[%s2058_s1 + $0x2c] ss:$0 sps:$4 sm:$0xff] (!%p186_p3)   ;;  %v355_v4 = vsel (!%p186_p3), %vm353_vm0, %v1678_v2, 0  ;;  %v1682_v5 = vld [vmem:[%s2058_s1] sm:$0xff] (!%p186_p3)   ;;  %v1802_v7 = vld [vmem:[%s2058_s1 + $0x30] sm:$0xff] (!%p186_p3)  }
   0x8   : > { %1508 = vmatpush3.bf16.msra.mxu1 (!%p186_p3), %v1676_v0  ;;  %1544 = vmatpush3.bf16.msra.mxu0 (!%p186_p3), %v1773_v1  ;;  %v1796_v6 = vsel (!%p186_p3), %vm353_vm0, %v1782_v3, 0  ;;  %vm294_vm1 = vsmask.f32 (!%p186_p3), 7424  ;;  %vm630_vm2 = vsmask.f32 (!%p186_p3), 6400  ;;  %vm340_vm3 = vcmask (!%p186_p3), 195584  }
   0x9   : > { %1643 = vmatprep.subr.msk.bf16.mxu1 (!%p186_p3), %vm353_vm0, %v1678_v2  ;;  %1646 = vmatprep.subr.msk.bf16.mxu0 (!%p186_p3), %vm353_vm0, %v1782_v3  ;;  %v1688_v36 = vld [vmem:[%s2058_s1 + $0x8] ss:$0 sps:$4 sm:$0xff] (!%p186_p3)   ;;  %v1686_v48 = vld [vmem:[%s2058_s1 + $0x38] ss:$0 sps:$4 sm:$0xff] (!%p186_p3)   ;;  %vm765_vm4 = vcmask (!%p186_p3), 1045504   ;;  %v1691_v61 = vld [vmem:[%s2058_s1 + $0x3c] sm:$0xff] (!%p186_p3)  }
   0xa   : > { %v440_v57 = vsel (!%p186_p3), %vm353_vm0, %v1688_v36, 0  ;;  %v1692_v58 = vld [vmem:[%s2058_s1 + $0x18] sm:$0xff] (!%p186_p3)   ;;  %v797_v59 = vsel (!%p186_p3), %vm353_vm0, %v1686_v48, 0  ;;  %vm880_vm5 = vsmask.f32 (!%p186_p3), 5376  ;;  %vm515_vm6 = vcmask (!%p186_p3), 1046528  }
   0xb   : > { %vm1015_vm7 = vcmask (!%p186_p3), 1044480   ;;  %vm1154_vm8 = vcmask (!%p186_p3), 60416   ;;  %vm1163_vm9 = vcmask (!%p186_p3), 64512   ;;  %vm1185_vm10 = vcmask (!%p186_p3), 57344  }
   0xc   : > { %1510 = vmatpush3.bf16.msra.mxu1 (!%p186_p3), %v355_v4  ;;  %1546 = vmatpush3.bf16.msra.mxu0 (!%p186_p3), %v1796_v6 }
   0xd   : > { %1519 = vmatprep.subr.bf16.mxu1 (!%p186_p3), %v1682_v5  ;;  %1555 = vmatprep.subr.bf16.mxu0 (!%p186_p3), %v1802_v7 }
   0xe   : > { %s2067_s15 = smov (!%p227_p4, %s1714_s15), 1 }
   0xf   : > { %s1651_s29 = smul.u32 36, %s2067_s15  ;;  %s247_s9 = scalar_lea.vmem %s2060_s3, %s2067_s15 }
  0x10   : > { %s253_s12 = scalar_lea.vmem %s2061_s4, %s2067_s15 }
  0x11   : > { %s1807_s8 = scalar_lea.vmem %s2057_s0, %s1651_s29  ;;  %s1456_s29 = sshll.u32 %s2067_s15, 5 }
  0x12   : > { %v255_v8 = vld [vmem:[%s1807_s8] sm:$0xf]  ;;  %v1812_v9 = vld [vmem:[%s1807_s8 + $0x4] sm:$0xf]  ;;  %v1818_v11 = vld [vmem:[%s1807_s8 + $0x8] sm:$0xff]   ;;  %s2006_s6 = scalar_lea.vmem %s2059_s2, %s1456_s29 }
  0x13   : > { %v1815_v10 = vcombine.low %v255_v8, %v1812_v9  ;;  %v507_v12 = vld [vmem:[%s1807_s8] sm:$0xe]  ;;  %v1826_v14 = vld [vmem:[%s1807_s8 + $0x10] sm:$0xff]   ;;  %v1831_v17 = vshll.u32 %v1818_v11, 16  ;;  %v1834_v18 = vshrl.u32 %v1818_v11, 16  ;;  %v1848_v27 = vld [vmem:[%s1807_s8 + $0x18] sm:$0xff]  }
  0x14   : > { %v1823_v13 = vcombine.low %v507_v12, %v1812_v9  ;;  %v1839_v21 = vshll.u32 %v1826_v14, 16  ;;  %v1842_v22 = vshrl.u32 %v1826_v14, 16  ;;  %v1858_v37 = vld [vmem:[%s1807_s8 + $0x20] ss:$0 sps:$4 sm:$0x11]   ;;  %v1863_v41 = vshll.u32 %v1848_v27, 16 }
  0x15   : > { %v296_v15 = vshrl.u32 %v1815_v10, 16  ;;  %v298_v16 = vshll.u32 %v1815_v10, 16  ;;  %v305_v24 = vrot.slane %v1831_v17, 1  ;;  %v639_v25 = vrot.slane %v1834_v18, 1  ;;  %v757_v38 = vld [vmem:[%s1807_s8] sm:$0xc] }
  0x16   : > { %v632_v19 = vshrl.u32 %v1823_v13, 16  ;;  %v635_v20 = vshll.u32 %v1823_v13, 16  ;;  %v640_v26 = vrot.slane %v1831_v17, 2  ;;  %v313_v30 = vrot.slane %v1839_v21, 1  ;;  %v1693_v12 = vld [vmem:[%s2058_s1 + $0x44] ss:$0 sps:$4 sm:$0xff]  }
  0x17   : > { %v300_v23 = vrot.slane %v298_v16, 1  ;;  %v643_v31 = vrot.slane %v1842_v22, 1  ;;  %v309_v33 = vor.u32 %v1834_v18, %v305_v24  ;;  %v644_v35 = vrot.slane %v1839_v21, 2  ;;  %v1911_v8 = vld [vmem:[%s1807_s8 + $0x20] ss:$0 sps:$4 sm:$0x33]  }
  0x18   : > { %v634_v28 = vrot.slane %v632_v19, 1  ;;  %v637_v29 = vrot.slane %v635_v20, 2  ;;  %v641_v34 = vor.u32 %v640_v26, %v639_v25  ;;  %v317_v40 = vor.u32 %v1842_v22, %v313_v30 }
  0x19   : > { %v301_v32 = vor.u32 %v300_v23, %v296_v15  ;;  %v1866_v42 = vshrl.u32 %v1848_v27, 16  ;;  %v314_v44 = vsel %vm294_vm1, %v309_v33, %v313_v30  ;;  %v1870_v45 = vor.u32 %v644_v35, %v643_v31  ;;  %v1941_v33 = vld [vmem:[%s1807_s8 + $0x20] ss:$0 sps:$4 sm:$0x77]  }
  0x1a   : > { %v638_v39 = vor.u32 %v637_v29, %v634_v28  ;;  %v327_v46 = vshll.u32 %v1858_v37, 16  ;;  %v321_v49 = vrot.slane %v1863_v41, 1  ;;  %v1419_v50 = vcombine.low %v757_v38, %v1812_v9 }
  0x1b   : > { %v306_v43 = vsel %vm294_vm1, %v301_v32, %v305_v24  ;;  %v767_v51 = vrot.slane %v1818_v11, 2  ;;  %v646_v52 = vsel %vm630_vm2, %v641_v34, %v1870_v45  ;;  %v769_v63 = vrot.slane %v1826_v14, 2 }
  0x1c   : > { %1511 = vmatprep.mubr.msk.bf16.mxu1 %vm340_vm3, %v306_v43  ;;  %v642_v47 = vsel %vm630_vm2, %v638_v39, %v641_v34  ;;  %v322_v53 = vsel %vm294_vm1, %v317_v40, %v321_v49  ;;  %v325_v54 = vor.u32 %v1866_v42, %v321_v49  ;;  %v329_v55 = vrot.slane %v327_v46, 1  ;;  %v1007_v40 = vld [vmem:[%s1807_s8] sm:$0x8] }
  0x1d   : > { %1547 = vmatprep.mubr.msk.bf16.mxu0 %vm340_vm3, %v642_v47  ;;  %1512 = vmatmul.mubr.msk.bf16.vlgmr.msra.gmra.mrb[0].mxu1 %vm340_vm3, %v314_v44  ;;  %v766_v56 = vrot.slane %v1419_v50, 2  ;;  %v771_v0 = vrot.slane %v1848_v27, 2  ;;  %v882_v2 = vshrl.u32 %v1419_v50, 16  ;;  %v885_v4 = vshll.u32 %v1419_v50, 16  ;;  %v1697_v50 = vld [vmem:[%s2058_s1 + $0x50] ss:$0 sps:$4 sm:$0xff]  }
  0x1e   : > { %1520 = vmatpush3.bf16.msra.mxu1 %v1682_v5  ;;  %1548 = vmatmul.mubr.msk.bf16.vlgmr.msra.gmra.mrb[0].mxu0 %vm340_vm3, %v646_v52  ;;  %v330_v62 = vsel %vm294_vm1, %v325_v54, %v329_v55  ;;  %v770_v5 = vsel %vm765_vm4, %v767_v51, %v769_v63  ;;  %v889_v19 = vrot.slane %v1834_v18, 2  ;;  %v890_v20 = vrot.slane %v1831_v17, 3  ;;  %v1696_v17 = vld [vmem:[%s2058_s1 + $0x48] sm:$0xff]  }
  0x1f   : > { %1556 = vmatpush3.bf16.msra.mxu0 %v1802_v7  ;;  %1515 = vmatprep.mubr.msk.bf16.mxu1 %vm340_vm3, %v322_v53  ;;  %v768_v60 = vsel %vm765_vm4, %v766_v56, %v767_v51  ;;  %v772_v7 = vsel %vm765_vm4, %v769_v63, %v771_v0  ;;  %v884_v15 = vrot.slane %v882_v2, 2  ;;  %v887_v16 = vrot.slane %v885_v4, 3 }
  0x20   : > { %1648 = vmatprep.subr.msk.bf16.mxu0 %vm353_vm0, %v1686_v48  ;;  %1644 = vmatprep.subr.msk.bf16.mxu1 %vm353_vm0, %v1688_v36  ;;  %v773_v23 = vrot.slane %v1911_v8, 2  ;;  %v932_v24 = vsel %vm353_vm0, %v1693_v12, 0  ;;  %v891_v18 = vor.u32 %v890_v20, %v889_v19  ;;  %v893_v28 = vrot.slane %v1842_v22, 2 }
  0x21   : > { %1559 = vmatprep.mubr.msk.bf16.mxu0 %vm340_vm3, %v768_v60  ;;  %v888_v25 = vor.u32 %v887_v16, %v884_v15  ;;  %v894_v30 = vrot.slane %v1839_v21, 3  ;;  %v516_v31 = vrot.slane %v1823_v13, 1  ;;  %v517_v32 = vrot.slane %v1818_v11, 1 }
  0x22   : > { %1522 = vmatpush3.bf16.msra.mxu1 %v440_v57  ;;  %v774_v29 = vsel %vm765_vm4, %v771_v0, %v773_v23  ;;  %v897_v22 = vrot.slane %v1866_v42, 2  ;;  %v898_v35 = vrot.slane %v1863_v41, 3  ;;  %v902_v36 = vshrl.u32 %v1941_v33, 16 }
  0x23   : > { %1558 = vmatpush3.bf16.msra.mxu0 %v797_v59  ;;  %1531 = vmatprep.subr.bf16.mxu1 %v1692_v58  ;;  %v892_v34 = vsel %vm880_vm5, %v888_v25, %v891_v18  ;;  %v895_v21 = vor.u32 %v894_v30, %v893_v28  ;;  %v518_v13 = vsel %vm515_vm6, %v516_v31, %v517_v32  ;;  %v905_v38 = vshll.u32 %v1941_v33, 16 }
  0x24   : > { %1567 = vmatprep.subr.bf16.mxu0 %v1691_v61  ;;  %v899_v39 = vor.u32 %v898_v35, %v897_v22  ;;  %v519_v43 = vrot.slane %v1826_v14, 1  ;;  %v904_v46 = vrot.slane %v902_v36, 2  ;;  %v521_v48 = vrot.slane %v1848_v27, 1 }
  0x25   : > { %1516 = vmatmul.mubr.msk.bf16.gmra.mrb[4].mxu1 %vm340_vm3, %v330_v62  ;;  %v896_v44 = vsel %vm880_vm5, %v891_v18, %v895_v21  ;;  %v907_v47 = vrot.slane %v905_v38, 3  ;;  %v1439_v51 = vcombine.low %v1007_v40, %v1812_v9  ;;  %v647_v55 = vrot.slane %v1866_v42, 1 }
  0x26   : > { %1523 = vmatprep.mubr.msk.bf16.mxu1 %vm340_vm3, %v1815_v10  ;;  %v1695_v10 = vld [vmem:[%s2058_s1 + $0x20] ss:$0 sps:$4 sm:$0xff]   ;;  %v900_v49 = vsel %vm880_vm5, %v895_v21, %v899_v39  ;;  %v520_v52 = vsel %vm515_vm6, %v517_v32, %v519_v43  ;;  %v522_v54 = vsel %vm515_vm6, %v519_v43, %v521_v48  ;;  %v648_v56 = vrot.slane %v1863_v41, 2 }
  0x27   : > { %v547_v26 = vsel %vm353_vm0, %v1695_v10, 0  ;;  %v908_v53 = vor.u32 %v907_v47, %v904_v46  ;;  %v1047_v57 = vsel %vm353_vm0, %v1697_v50, 0  ;;  %v1017_v9 = vrot.slane %v1818_v11, 3 }
  0x28   : > { %v523_v59 = vrot.slane %v1858_v37, 1  ;;  %v649_v41 = vor.u32 %v648_v56, %v647_v55  ;;  %v1019_v37 = vrot.slane %v1826_v14, 3  ;;  %v1021_v62 = vrot.slane %v1848_v27, 3 }
  0x29   : > { %v909_v42 = vsel %vm880_vm5, %v899_v39, %v908_v53 }
  0x2a   : > { %1560 = vmatmul.mubr.msk.bf16.vlgmr.msra.gmra.mrb[0].mxu0 %vm340_vm3, %v770_v5  ;;  %v1020_v0 = vsel %vm1015_vm7, %v1017_v9, %v1019_v37  ;;  %v1022_v2 = vsel %vm1015_vm7, %v1019_v37, %v1021_v62 }
  0x2b   : > { %1568 = vmatpush3.bf16.msra.mxu0 %v1691_v61  ;;  %1563 = vmatprep.mubr.msk.bf16.mxu0 %vm340_vm3, %v772_v7  ;;  %v655_v61 = vshll.u32 %v1911_v8, 16 }
  0x2c   : > { %1649 = vmatprep.subr.msk.bf16.mxu0 %vm353_vm0, %v1693_v12 }
  0x2d   : > { %1524 = vmatmul.mubr.msk.bf16.vlgmr.msra.gmra.mrb[0].mxu1 %vm340_vm3, %v1818_v11  ;;  %v524_v11 = vsel %vm515_vm6, %v521_v48, %v523_v59 }
  0x2e   : > { %1532 = vmatpush3.bf16.msra.mxu1 %v1692_v58  ;;  %1527 = vmatprep.mubr.msk.bf16.mxu1 %vm340_vm3, %v1826_v14  ;;  %v1016_v58 = vrot.slane %v1439_v51, 3  ;;  %v1023_v14 = vrot.slane %v1941_v33, 3 }
  0x2f   : > { %1570 = vmatpush3.bf16.msra.mxu0 %v932_v24  ;;  %1645 = vmatprep.subr.msk.bf16.mxu1 %vm353_vm0, %v1695_v10 }
  0x30   : > { %1579 = vmatprep.subr.bf16.mxu0 %v1696_v17  ;;  %v1018_v60 = vsel %vm1015_vm7, %v1016_v58, %v1017_v9 }
  0x32   : > { %1564 = vmatmul.mubr.msk.bf16.gmra.mrb[4].mxu0 %vm340_vm3, %v774_v29  ;;  %1534 = vmatpush3.bf16.msra.mxu1 %v547_v26 }
  0x33   : > { %1571 = vmatprep.mubr.msk.bf16.mxu0 %vm340_vm3, %v892_v34  ;;  %1591 = vmatprep.subr.bf16.mxu1 %v1773_v1 }
  0x35   : > { %1528 = vmatmul.mubr.msk.bf16.gmra.mrb[4].mxu1 %vm340_vm3, %v1848_v27 }
  0x36   : > { %1535 = vmatprep.mubr.msk.bf16.mxu1 %vm340_vm3, %v518_v13 }
  0x3a   : > { %1572 = vmatmul.mubr.msk.bf16.vlgmr.msra.gmra.mrb[0].mxu0 %vm340_vm3, %v896_v44 }
  0x3b   : > { %1580 = vmatpush3.bf16.msra.mxu0 %v1696_v17  ;;  %1575 = vmatprep.mubr.msk.bf16.mxu0 %vm340_vm3, %v900_v49 }
  0x3c   : > { %1650 = vmatprep.subr.msk.bf16.mxu0 %vm353_vm0, %v1697_v50 }
  0x3d   : > { %1536 = vmatmul.mubr.msk.bf16.vlgmr.msra.gmra.mrb[0].mxu1 %vm340_vm3, %v520_v52 }
  0x3e   : > { %1593 = vmatpush3.bf16.msra.mxu1 %v1773_v1  ;;  %1539 = vmatprep.mubr.msk.bf16.mxu1 %vm340_vm3, %v522_v54  ;;  %v652_v1 = vshrl.u32 %v1911_v8, 16 }
  0x3f   : > { %1582 = vmatpush3.bf16.msra.mxu0 %v1047_v57  ;;  %1647 = vmatprep.subr.msk.bf16.mxu1 %vm353_vm0, %v1782_v3  ;;  %v650_v3 = vsel %vm630_vm2, %v1870_v45, %v649_v41  ;;  %v1024_v45 = vsel %vm1015_vm7, %v1021_v62, %v1023_v14 }
  0x40   : > { %v654_v63 = vrot.slane %v652_v1, 1 }
  0x42   : > { %1576 = vmatmul.mubr.msk.bf16.gmra.mrb[4].mxu0 %vm340_vm3, %v909_v42  ;;  %1594 = vmatpush3.bf16.msra.mxu1 %v1796_v6  ;;  %v657_v6 = vrot.slane %v655_v61, 2 }
  0x43   : > { %1583 = vmatprep.mubr.msk.bf16.mxu0 %vm340_vm3, %v1018_v60 }
  0x44   : > { %v658_v4 = vor.u32 %v657_v6, %v654_v63 }
  0x45   : > { %1540 = vmatmul.mubr.msk.bf16.gmra.mrb[4].mxu1 %vm340_vm3, %v524_v11 }
  0x46   : > { %1551 = vmatprep.mubr.msk.bf16.mxu1 %vm340_vm3, %v650_v3  ;;  %v659_v27 = vsel %vm630_vm2, %v649_v41, %v658_v4 }
  0x4a   : > { %1584 = vmatmul.mubr.msk.bf16.vlgmr.msra.gmra.mrb[0].mxu0 %vm340_vm3, %v1020_v0 }
  0x4b   : > { %1587 = vmatprep.mubr.msk.bf16.mxu0 %vm340_vm3, %v1022_v2 }
  0x51   : > { %1552 = vmatmul.mubr.msk.bf16.vlgmr.msra.gmra.mrb[4].mxu1 %vm340_vm3, %v659_v27 }
  0x52   : > { %1588 = vmatmul.mubr.msk.bf16.gmra.mrb[4].mxu0 %vm340_vm3, %v1024_v45 }
 0x110   : > { %v1537_v5 = vpop.f32.mrb[0].mxu1 }
 0x111   : > { %v583_v7 = vpop.f32.mrb[1].mxu1 }
 0x112   : > { %v1538_v8 = vpop.f32.mrb[2].mxu1 }
 0x113   : > { %v586_v12 = vpop.f32.mrb[3].mxu1 }
 0x11d   : > { %v1585_v15 = vpop.f32.mrb[0].mxu0 }
 0x11e   : > { %v1595_v16 = vadd.f32 %v1585_v15, %v1537_v5  ;;  %v1083_v19 = vpop.f32.mrb[1].mxu0 }
 0x11f   : > { %v1596_v20 = vadd.f32 %v1083_v19, %v583_v7  ;;  %v1586_v10 = vpop.f32.mrb[2].mxu0 }
 0x120   : > { %v1459_v23 = vpack.c.bf16 %v1595_v16, %v1595_v16  ;;  %v1597_v24 = vadd.f32 %v1586_v10, %v1538_v8  ;;  %v1086_v25 = vpop.f32.mrb[3].mxu0  ;;  %v1189_v28 = vmul.f32 %v1595_v16, %v1595_v16  ;;  %v1167_v21 = vsel %vm1163_vm9, %v1595_v16, 0.0 }
 0x121   : > { %v1457_v18 = vpack.c.bf16 %v1596_v20, %v1596_v20  ;;  %v1187_v17 = vmul.f32 %v1596_v20, %v1596_v20  ;;  %v1598_v26 = vadd.f32 %v1086_v25, %v586_v12  ;;  %v1164_v30 = vsel %vm1163_vm9, %v1596_v20, 0.0 }
 0x122   : > { %1157 = vst.msk [vmem:[%s2006_s6 + $0x8] sm:$0xf] %vm1154_vm8, %v1459_v23  ;;  %v1460_v29 = vpack.c.bf16 %v1597_v24, %v1597_v24  ;;  %v1190_v34 = vmul.f32 %v1597_v24, %v1597_v24  ;;  %v1198_v48 = vsel %vm1163_vm9, %v1189_v28, 0.0  ;;  %v1169_v52 = vsel %vm1163_vm9, %v1597_v24, 0.0 }
 0x123   : > { %1155 = vst.msk [vmem:[%s2006_s6] sm:$0xf] %vm1154_vm8, %v1457_v18  ;;  %v1458_v31 = vpack.c.bf16 %v1598_v26, %v1598_v26  ;;  %v1165_v32 = vsel %vm1163_vm9, %v1598_v26, 0.0  ;;  %v1188_v33 = vmul.f32 %v1598_v26, %v1598_v26  ;;  %v1195_v13 = vsel %vm1163_vm9, %v1187_v17, 0.0 }
 0x124   : > { %1158 = vst.msk [vmem:[%s2006_s6 + $0xc] sm:$0xf] %vm1154_vm8, %v1460_v29  ;;  %v1166_v22 = vadd.f32 %v1165_v32, %v1164_v30  ;;  %v1553_v35 = vpop.f32.mrb[4].mxu1  ;;  %v1200_v53 = vsel %vm1163_vm9, %v1190_v34, 0.0 }
 0x125   : > { %1156 = vst.msk [vmem:[%s2006_s6 + $0x4] sm:$0xf] %vm1154_vm8, %v1458_v31  ;;  %v1196_v36 = vsel %vm1163_vm9, %v1188_v33, 0.0  ;;  %v1589_v38 = vpop.f32.mrb[4].mxu0  ;;  %v734_v39 = vpop.f32.mrb[5].mxu1 }
 0x126   : > { %v1168_v40 = vadd.f32 %v1167_v21, %v1166_v22  ;;  %v1197_v43 = vadd.f32 %v1196_v36, %v1195_v13  ;;  %v1599_v44 = vadd.f32 %v1589_v38, %v1553_v35  ;;  %v1099_v46 = vpop.f32.mrb[5].mxu0  ;;  %v1554_v47 = vpop.f32.mrb[6].mxu1 }
 0x127   : > { %v1600_v49 = vadd.f32 %v1099_v46, %v734_v39  ;;  %v1590_v50 = vpop.f32.mrb[6].mxu0  ;;  %v737_v51 = vpop.f32.mrb[7].mxu1 }
 0x128   : > { %v1199_v54 = vadd.f32 %v1198_v48, %v1197_v43  ;;  %v1463_v55 = vpack.c.bf16 %v1599_v44, %v1599_v44  ;;  %v1102_v56 = vpop.f32.mrb[7].mxu0  ;;  %v1170_v58 = vadd.f32 %v1169_v52, %v1168_v40  ;;  %v1601_v41 = vadd.f32 %v1590_v50, %v1554_v47 }
 0x129   : > { %v1461_v57 = vpack.c.bf16 %v1600_v49, %v1600_v49  ;;  %v1171_v9 = vsel %vm1163_vm9, %v1600_v49, 0.0  ;;  %v1191_v59 = vmul.f32 %v1600_v49, %v1600_v49  ;;  %v1602_v60 = vadd.f32 %v1102_v56, %v737_v51 }
 0x12a   : > { %1161 = vst.msk [vmem:[%s2006_s6 + $0x18] sm:$0xf] %vm1154_vm8, %v1463_v55  ;;  %v1201_v42 = vadd.f32 %v1200_v53, %v1199_v54  ;;  %v1172_v11 = vadd.f32 %v1171_v9, %v1170_v58  ;;  %v1464_v37 = vpack.c.bf16 %v1601_v41, %v1601_v41  ;;  %v1193_v3 = vmul.f32 %v1599_v44, %v1599_v44 }
 0x12b   : > { %1159 = vst.msk [vmem:[%s2006_s6 + $0x10] sm:$0xf] %vm1154_vm8, %v1461_v57  ;;  %v1202_v1 = vsel %vm1163_vm9, %v1191_v59, 0.0  ;;  %v1462_v62 = vpack.c.bf16 %v1602_v60, %v1602_v60  ;;  %v1173_v63 = vsel %vm1163_vm9, %v1602_v60, 0.0  ;;  %v1192_v6 = vmul.f32 %v1602_v60, %v1602_v60 }
 0x12c   : > { %v1203_v61 = vadd.f32 %v1202_v1, %v1201_v42  ;;  %1162 = vst.msk [vmem:[%s2006_s6 + $0x1c] sm:$0xf] %vm1154_vm8, %v1464_v37  ;;  %v1174_v0 = vadd.f32 %v1173_v63, %v1172_v11  ;;  %v1175_v2 = vsel %vm1163_vm9, %v1599_v44, 0.0  ;;  %v1194_v4 = vmul.f32 %v1601_v41, %v1601_v41 }
 0x12d   : > { %1160 = vst.msk [vmem:[%s2006_s6 + $0x14] sm:$0xf] %vm1154_vm8, %v1462_v62  ;;  %v1204_v14 = vsel %vm1163_vm9, %v1192_v6, 0.0  ;;  %v1206_v5 = vsel %vm1163_vm9, %v1193_v3, 0.0  ;;  %v1177_v7 = vsel %vm1163_vm9, %v1601_v41, 0.0 }
 0x12e   : > { %v1176_v27 = vadd.f32 %v1175_v2, %v1174_v0  ;;  %v1205_v45 = vadd.f32 %v1204_v14, %v1203_v61  ;;  %v1208_v15 = vsel %vm1163_vm9, %v1194_v4, 0.0 }
 0x130   : > { %v1178_v8 = vadd.f32 %v1177_v7, %v1176_v27  ;;  %v1207_v12 = vadd.f32 %v1206_v5, %v1205_v45 }
 0x132   : > { %v1179_v16 = vrot.slane %v1178_v8, 4  ;;  %v1209_v19 = vadd.f32 %v1208_v15, %v1207_v12 }
 0x134   : > { %v1180_v20 = vadd.f32 %v1179_v16, %v1178_v8  ;;  %v1210_v10 = vrot.slane %v1209_v19, 4 }
 0x136   : > { %v1181_v23 = vrot.slane %v1180_v20, 2  ;;  %v1211_v24 = vadd.f32 %v1210_v10, %v1209_v19 }
 0x138   : > { %v1182_v25 = vadd.f32 %v1181_v23, %v1180_v20  ;;  %v1212_v18 = vrot.slane %v1211_v24, 2 }
 0x13a   : > { %v1183_v17 = vrot.slane %v1182_v25, 1  ;;  %v1213_v26 = vadd.f32 %v1212_v18, %v1211_v24 }
 0x13c   : > { %v1184_v28 = vadd.f32 %v1183_v17, %v1182_v25  ;;  %v1214_v29 = vrot.slane %v1213_v26, 1 }
 0x13e   : > { %1186 = vst.msk [vmem:[%s247_s9] sm:$0x1] %vm1185_vm10, %v1184_v28  ;;  %v1215_v30 = vadd.f32 %v1214_v29, %v1213_v26 }
 0x140   : > { %1216 = vst.msk [vmem:[%s253_s12] sm:$0x1] %vm1185_vm10, %v1215_v30 }
 0x141 PF: > { %s15_s17 = sadd.s32 1, %s1722_s17   ;;  %s2062_s15 = smov %s1718_s16 }
 0x142   : > { %p12_p5 = scmp.ge.s32.totalorder %s15_s17, 4   ;;  %s2063_s16 = smov %s2065_s18 }
 0x144   :  { %14 = sbr.rel (!%p12_p5) target bundleno = 2 (0x2), region = 88 }

// kernel: _lambda_.110
= control target key start
LH: loop header
LB: loop body
LE: loop exit
PB: predicated region body
PF: predicated region fallthrough
CT: control target
= control target key end

     0   :  { %10 = vsyncpa [#allocation3], 0  ;;  %s2142_s0 = inlined_call_operand.vmem [shape: bf16[2,70,8], index: 0, kind: input, shape index: {}]   ;;  %s2143_s1 = inlined_call_operand.vmem [shape: bf16[7,8,1], index: 1, kind: input, shape index: {}]   ;;  %s2144_s2 = inlined_call_operand.vmem [shape: bf16[2,64,1], index: 2, kind: output, shape index: {0}]   ;;  %s2145_s3 = inlined_call_operand.hbm [shape: f32[2,1,1,1], index: 3, kind: output, shape index: {1}]   ;;  %s2146_s4 = inlined_call_operand.hbm [shape: f32[2,1,1,1], index: 4, kind: output, shape index: {2}]  }
   0x1   :  { %12 = vsyncpa [#allocation3 + $0x1], 0 }
   0x2   :  { %13 = vsyncpa [#allocation5], 0 }
   0x3   :  { %15 = vsyncpa [#allocation5 + $0x1], 0  ;;  %s1751_s15 = smov 0   ;;  %s1753_s16 = smov 0  }
   0x4   :  { %s1755_s17 = smov 0   ;;  %s1757_s18 = smov 0  }
   0x5   :  { %s1759_s19 = smov 0   ;;  %s1761_s20 = smov 0  }
   0x6 LB: > { %s1305_s21 = sadd.s32 4294967295, %s1722_s20   ;;  %s1306_s22 = sadd.s32 4294967294, %s1722_s20   ;;  %s1722_s20 = sphi %s1761_s20, %s21_s20   ;;  %s1718_s19 = sphi %s1759_s19, %s2153_s19   ;;  %s1714_s18 = sphi %s1757_s18, %s2152_s18   ;;  %s1710_s17 = sphi %s1755_s17, %s2151_s17   ;;  %s1706_s16 = sphi %s1753_s16, %s2150_s16   ;;  %s1702_s15 = sphi %s1751_s15, %s2149_s15  }
   0x7   : > { %s33_s23 = sadd.s32 1, %s1718_s19  ;;  %s117_s24 = sadd.s32 1, %s1710_s17 }
   0x8   : > { %p35_p0 = scmp.ge.s32.totalorder %s33_s23, 2  ;;  %p127_p1 = scmp.ne.s32.totalorder %s1710_s17, %s1706_s16 }
   0x9   : > { %p128_p2 = scmp.eq.s32.totalorder %s1305_s21, 1  ;;  %p133_p3 = scmp.ne.s32.totalorder %s1706_s16, %s1702_s15 }
   0xa   : > { %s2155_s23 = smov (%p35_p0, %s33_s23), 0  ;;  %p134_p5 = scmp.eq.s32.totalorder %s1306_s22, 1 }
   0xb   : > { %p1791_p4 = por %p128_p2, %p127_p1  ;;  %s112_s26 = ssub.s32 %s1718_s19, %s2155_s23 }
   0xc   : > { %p1309_p6 = scmp.ge.s32.totalorder %s1722_s20, 1  ;;  %p115_p7 = scmp.eq.s32.totalorder %s112_s26, 0 }
   0xd   : > { %p1798_p8 = por %p134_p5, %p133_p3  ;;  %p191_p9 = scmp.lt.s32.totalorder %s1722_s20, 3 }
   0xe   : > { %s1804_s28 = scalar_select %p115_p7, %s1710_s17, %s117_s24  }
   0xf   : > { %p192_p10 = pnand %p1309_p6, %p191_p9 }
  0x10   : > { %v1313_v0 = vld [vmem:[%s2143_s1 + $0x4] sm:$0xf] (!%p192_p10)  ;;  %vm330_vm0 = vcmask (!%p192_p10), 1043456   ;;  %v1812_v1 = vld [vmem:[%s2143_s1 + $0xc] sm:$0xf] (!%p192_p10)  ;;  %p229_p11 = scmp.lt.s32.totalorder (!%p192_p10), %s1714_s18, 1 }
  0x11   : > { %195 = sbr.rel (%p192_p10) target bundleno = 366 (0x16e), region = 28  ;;  %1533 = vmatprep.subr.msk.bf16.mxu1 (!%p192_p10), %vm330_vm0, %v1313_v0  ;;  %1536 = vmatprep.subr.msk.bf16.mxu0 (!%p192_p10), %vm330_vm0, %v1812_v1  ;;  %v332_v2 = vsel (!%p192_p10), %vm330_vm0, %v1313_v0, 0  ;;  %v1821_v3 = vsel (!%p192_p10), %vm330_vm0, %v1812_v1, 0  ;;  %v253_v4 = vld [vmem:[%s2143_s1] sm:$0xf] (!%p192_p10)  ;;  %vm317_vm2 = vcmask (!%p192_p10), 64512  }
  0x12   : > { %1414 = vmatpush3.bf16.msra.mxu1 (!%p192_p10), %v332_v2  ;;  %1444 = vmatpush3.bf16.msra.mxu0 (!%p192_p10), %v1821_v3  ;;  %v1339_v5 = vld [vmem:[%s2143_s1 + $0x10] sm:$0xf] (!%p192_p10)  ;;  %vm280_vm1 = vsmask.f32 (!%p192_p10), 7424  ;;  %vm585_vm3 = vsmask.f32 (!%p192_p10), 6400 }
  0x13   : > { %1534 = vmatprep.subr.msk.bf16.mxu1 (!%p192_p10), %vm330_vm0, %v253_v4  ;;  %1538 = vmatprep.subr.msk.bf16.mxu0 (!%p192_p10), %vm330_vm0, %v1339_v5  ;;  %v408_v11 = vsel (!%p192_p10), %vm330_vm0, %v253_v4, 0  ;;  %v732_v14 = vsel (!%p192_p10), %vm330_vm0, %v1339_v5, 0  ;;  %vm709_vm4 = vcmask (!%p192_p10), 1045504   ;;  %v1345_v51 = vld [vmem:[%s2143_s1 + $0x14] sm:$0xf] (!%p192_p10)  ;;  %vm481_vm6 = vcmask (!%p192_p10), 1046528  }
  0x14   : > { %v1327_v52 = vld [vmem:[%s2143_s1 + $0x8] sm:$0xf] (!%p192_p10)  ;;  %v856_v2 = vsel (!%p192_p10), %vm330_vm0, %v1345_v51, 0  ;;  %vm813_vm5 = vsmask.f32 (!%p192_p10), 5376  ;;  %vm937_vm7 = vcmask (!%p192_p10), 1044480  }
  0x15   : > { %vm1067_vm8 = vcmask (!%p192_p10), 3072   ;;  %vm1076_vm9 = vcmask (!%p192_p10), 7168   ;;  %s1365_s11 = sshll.u32 (!%p192_p10), %s1714_s18, 4  ;;  %vm1098_vm10 = vcmask (!%p192_p10), 0   ;;  %s1724_s8 = smov (!%p192_p10), [#allocation2]  }
  0x16   : > { %s2061_s26 = scalar_lea.hbm (!%p192_p10), %s2145_s3, %s1365_s11  ;;  %s2069_s30 = scalar_lea.hbm (!%p192_p10), %s2146_s4, %s1365_s11 }
  0x17   : > { %s1616_s9 = sshll.u32 (!%p192_p10), %s1724_s8, 4  ;;  %s1617_s9 = int_to_ptr.vmem [resolvable:$false] %s1616_s9 }
  0x18   : > { %s1825_s7 = scalar_select %p229_p11, %s1714_s18, 1 }
  0x1a   : > { %s1541_s12 = smul.u32 36, %s1825_s7  ;;  %s1369_s6 = sshll.u32 %s1825_s7, 5 }
  0x1b   : > { %s2016_s10 = scalar_lea.vmem %s2144_s2, %s1369_s6  ;;  %s2051_s7 = sand.u32 1, %s1706_s16  }
  0x1c   : > { %s1839_s21 = scalar_lea.vmem %s2142_s0, %s1541_s12  ;;  %s222_s12 = scalar_lea.vmem [#allocation2], %s2051_s7 }
  0x1d   : > { %v245_v6 = vld [vmem:[%s1839_s21] sm:$0xf]  ;;  %v1843_v7 = vld [vmem:[%s1839_s21 + $0x4] sm:$0xf]  ;;  %v1849_v9 = vld [vmem:[%s1839_s21 + $0x8] sm:$0xff]   ;;  %s1161_s13 = sshll.u32 %s222_s12, 4  ;;  %s2063_s13 = int_to_ptr.vmem [resolvable:$true] %s1161_s13 }
  0x1e   : > { %v1846_v8 = vcombine.low %v245_v6, %v1843_v7  ;;  %v475_v10 = vld [vmem:[%s1839_s21] sm:$0xe]  ;;  %v1857_v13 = vld [vmem:[%s1839_s21 + $0x10] sm:$0xff]   ;;  %v1863_v17 = vshll.u32 %v1849_v9, 16  ;;  %v1866_v18 = vshrl.u32 %v1849_v9, 16  ;;  %v1880_v27 = vld [vmem:[%s1839_s21 + $0x18] sm:$0xff]   ;;  %p1619_p1 = scmp.lt.s32.totalorder %s2063_s13, %s1617_s9 }
  0x1f   : > { %v1854_v12 = vcombine.low %v475_v10, %v1843_v7  ;;  %v1871_v21 = vshll.u32 %v1857_v13, 16  ;;  %v1874_v22 = vshrl.u32 %v1857_v13, 16  ;;  %v1887_v36 = vld [vmem:[%s1839_s21 + $0x20] ss:$0 sps:$4 sm:$0x11]   ;;  %v1892_v40 = vshll.u32 %v1880_v27, 16 }
  0x20   : > { %v282_v15 = vshrl.u32 %v1846_v8, 16  ;;  %v284_v16 = vshll.u32 %v1846_v8, 16  ;;  %v291_v24 = vrot.slane %v1863_v17, 1  ;;  %v594_v25 = vrot.slane %v1866_v18, 1  ;;  %v703_v37 = vld [vmem:[%s1839_s21] sm:$0xc] }
  0x21   : > { %v587_v19 = vshrl.u32 %v1854_v12, 16  ;;  %v590_v20 = vshll.u32 %v1854_v12, 16  ;;  %v595_v26 = vrot.slane %v1863_v17, 2  ;;  %v299_v30 = vrot.slane %v1871_v21, 1  ;;  %s228_s14 = scalar_lea.vmem [#allocation4], %s2051_s7  ;;  %s1140_s5 = scalar_lea.sflag [#allocation3], %s2051_s7 }
  0x22   : > { %v286_v23 = vrot.slane %v284_v16, 1  ;;  %v598_v31 = vrot.slane %v1874_v22, 1  ;;  %v295_v33 = vor.u32 %v1866_v18, %v291_v24  ;;  %v599_v35 = vrot.slane %v1871_v21, 2  ;;  %v1932_v63 = vld [vmem:[%s1839_s21 + $0x20] ss:$0 sps:$4 sm:$0x33]  }
  0x23   : > { %v589_v28 = vrot.slane %v587_v19, 1  ;;  %v592_v29 = vrot.slane %v590_v20, 2  ;;  %v596_v34 = vor.u32 %v595_v26, %v594_v25  ;;  %v303_v39 = vor.u32 %v1874_v22, %v299_v30  ;;  %s1612_s6 = scalar_lea.vmem %s2063_s13, 16 }
  0x24   : > { %v287_v32 = vor.u32 %v286_v23, %v282_v15  ;;  %v1895_v41 = vshrl.u32 %v1880_v27, 16  ;;  %v300_v43 = vsel %vm280_vm1, %v295_v33, %v299_v30  ;;  %v1899_v44 = vor.u32 %v599_v35, %v598_v31  ;;  %p1613_p12 = scmp.ne.s32.totalorder %s2063_s13, %s1612_s6 }
  0x25   : > { %v593_v38 = vor.u32 %v592_v29, %v589_v28  ;;  %v313_v45 = vshll.u32 %v1887_v36, 16  ;;  %v307_v47 = vrot.slane %v1892_v40, 1  ;;  %v1340_v48 = vcombine.low %v703_v37, %v1843_v7 }
  0x26   : > { %v292_v42 = vsel %vm280_vm1, %v287_v32, %v291_v24  ;;  %v711_v49 = vrot.slane %v1849_v9, 2  ;;  %v601_v50 = vsel %vm585_vm3, %v596_v34, %v1899_v44  ;;  %v713_v59 = vrot.slane %v1857_v13, 2  ;;  %p1614_p13 = pnand %p1613_p12, %p1791_p4 }
  0x27   : > { %1415 = vmatprep.mubr.msk.bf16.mxu1 %vm317_vm2, %v292_v42  ;;  %v597_v46 = vsel %vm585_vm3, %v593_v38, %v596_v34  ;;  %v308_v53 = vsel %vm280_vm1, %v303_v39, %v307_v47  ;;  %v311_v54 = vor.u32 %v1895_v41, %v307_v47  ;;  %v315_v55 = vrot.slane %v313_v45, 1 }
  0x28   : > { %1445 = vmatprep.mubr.msk.bf16.mxu0 %vm317_vm2, %v597_v46  ;;  %1416 = vmatmul.mubr.msk.bf16.vlgmr.msra.gmra.mrb[0].mxu1 %vm317_vm2, %v300_v43  ;;  %v710_v56 = vrot.slane %v1340_v48, 2  ;;  %v715_v60 = vrot.slane %v1880_v27, 2  ;;  %v815_v61 = vshrl.u32 %v1340_v48, 16  ;;  %v818_v62 = vshll.u32 %v1340_v48, 16  ;;  %p1615_p0 = pneg %p1614_p13 }
  0x29   : > { %1424 = vmatpush3.bf16.msra.mxu1 %v408_v11  ;;  %1446 = vmatmul.mubr.msk.bf16.vlgmr.msra.gmra.mrb[0].mxu0 %vm317_vm2, %v601_v50  ;;  %v316_v58 = vsel %vm280_vm1, %v311_v54, %v315_v55  ;;  %v714_v0 = vsel %vm709_vm4, %v711_v49, %v713_v59  ;;  %v822_v10 = vrot.slane %v1866_v18, 2  ;;  %v823_v11 = vrot.slane %v1863_v17, 3  ;;  %v1953_v18 = vld [vmem:[%s1839_s21 + $0x20] ss:$0 sps:$4 sm:$0x77]  }
  0x2a   : > { %1454 = vmatpush3.bf16.msra.mxu0 %v732_v14  ;;  %1419 = vmatprep.mubr.msk.bf16.mxu1 %vm317_vm2, %v308_v53  ;;  %v712_v57 = vsel %vm709_vm4, %v710_v56, %v711_v49  ;;  %v716_v4 = vsel %vm709_vm4, %v713_v59, %v715_v60  ;;  %v817_v5 = vrot.slane %v815_v61, 2  ;;  %v820_v6 = vrot.slane %v818_v62, 3  ;;  %v1351_v14 = vld [vmem:[%s2143_s1 + $0x18] sm:$0xf] }
  0x2b   : > { %1539 = vmatprep.subr.msk.bf16.mxu0 %vm330_vm0, %v1345_v51  ;;  %1535 = vmatprep.subr.msk.bf16.mxu1 %vm330_vm0, %v1327_v52  ;;  %v504_v15 = vsel %vm330_vm0, %v1327_v52, 0  ;;  %v824_v19 = vor.u32 %v823_v11, %v822_v10  ;;  %v826_v20 = vrot.slane %v1874_v22, 2  ;;  %v827_v23 = vrot.slane %v1871_v21, 3 }
  0x2c   : > { %1455 = vmatprep.mubr.msk.bf16.mxu0 %vm317_vm2, %v712_v57  ;;  %v821_v16 = vor.u32 %v820_v6, %v817_v5  ;;  %v482_v24 = vrot.slane %v1854_v12, 1  ;;  %v483_v25 = vrot.slane %v1849_v9, 1  ;;  %v830_v28 = vrot.slane %v1895_v41, 2 }
  0x2d   : > { %v831_v29 = vrot.slane %v1892_v40, 3  ;;  %v828_v21 = vor.u32 %v827_v23, %v826_v20  ;;  %v835_v12 = vshrl.u32 %v1953_v18, 16  ;;  %v838_v30 = vshll.u32 %v1953_v18, 16 }
  0x2e   : > { %v825_v26 = vsel %vm813_vm5, %v821_v16, %v824_v19  ;;  %v484_v22 = vsel %vm481_vm6, %v482_v24, %v483_v25  ;;  %v485_v32 = vrot.slane %v1857_v13, 1  ;;  %v487_v37 = vrot.slane %v1880_v27, 1 }
  0x2f   : > { %v832_v31 = vor.u32 %v831_v29, %v830_v28  ;;  %v829_v33 = vsel %vm813_vm5, %v824_v19, %v828_v21  ;;  %v837_v34 = vrot.slane %v835_v12, 2  ;;  %v840_v35 = vrot.slane %v838_v30, 3 }
  0x30   : > { %1420 = vmatmul.mubr.msk.bf16.gmra.mrb[4].mxu1 %vm317_vm2, %v316_v58  ;;  %v960_v38 = vsel %vm330_vm0, %v1351_v14, 0  ;;  %v486_v43 = vsel %vm481_vm6, %v483_v25, %v485_v32  ;;  %v488_v46 = vsel %vm481_vm6, %v485_v32, %v487_v37  ;;  %v602_v47 = vrot.slane %v1895_v41, 1 }
  0x31   : > { %1425 = vmatprep.mubr.msk.bf16.mxu1 %vm317_vm2, %v1846_v8  ;;  %v717_v8 = vrot.slane %v1932_v63, 2  ;;  %v833_v39 = vsel %vm813_vm5, %v828_v21, %v832_v31  ;;  %v841_v45 = vor.u32 %v840_v35, %v837_v34  ;;  %v603_v48 = vrot.slane %v1892_v40, 2 }
  0x32   : > { %v939_v50 = vrot.slane %v1849_v9, 3  ;;  %v610_v41 = vshll.u32 %v1932_v63, 16  ;;  %v943_v54 = vrot.slane %v1880_v27, 3 }
  0x33   : > { %v718_v17 = vsel %vm709_vm4, %v715_v60, %v717_v8  ;;  %v842_v51 = vsel %vm813_vm5, %v832_v31, %v841_v45  ;;  %v604_v52 = vor.u32 %v603_v48, %v602_v47 }
  0x34   : > { %v612_v56 = vrot.slane %v610_v41, 2 }
  0x35   : > { %1456 = vmatmul.mubr.msk.bf16.vlgmr.msra.gmra.mrb[0].mxu0 %vm317_vm2, %v714_v0 }
  0x36   : > { %1464 = vmatpush3.bf16.msra.mxu0 %v856_v2  ;;  %1459 = vmatprep.mubr.msk.bf16.mxu0 %vm317_vm2, %v716_v4 }
  0x37   : > { %1540 = vmatprep.subr.msk.bf16.mxu0 %vm330_vm0, %v1351_v14 }
  0x38   : > { %1426 = vmatmul.mubr.msk.bf16.vlgmr.msra.gmra.mrb[0].mxu1 %vm317_vm2, %v1849_v9  ;;  %v607_v9 = vshrl.u32 %v1932_v63, 16 }
  0x39   : > { %1434 = vmatpush3.bf16.msra.mxu1 %v504_v15  ;;  %1429 = vmatprep.mubr.msk.bf16.mxu1 %vm317_vm2, %v1857_v13 }
  0x3a   : > { %1537 = vmatprep.subr.msk.bf16.mxu1 %vm330_vm0, %v1812_v1  ;;  %v931_v1 = vld [vmem:[%s1839_s21] sm:$0x8]  ;;  %v609_v55 = vrot.slane %v607_v9, 1  ;;  %s1175_s21 = sshll.u32 %s228_s14, 4  ;;  %s2071_s21 = int_to_ptr.vmem [resolvable:$true] %s1175_s21 }
  0x3b   : > { %v1352_v42 = vcombine.low %v931_v1, %v1843_v7  ;;  %v489_v7 = vrot.slane %v1887_v36, 1  ;;  %v605_v36 = vsel %vm585_vm3, %v1899_v44, %v604_v52 }
  0x3c   : > { %v613_v59 = vor.u32 %v612_v56, %v609_v55 }
  0x3d   : > { %1460 = vmatmul.mubr.msk.bf16.gmra.mrb[4].mxu0 %vm317_vm2, %v718_v17  ;;  %v938_v49 = vrot.slane %v1352_v42, 3  ;;  %v490_v40 = vsel %vm481_vm6, %v487_v37, %v489_v7 }
  0x3e   : > { %1465 = vmatprep.mubr.msk.bf16.mxu0 %vm317_vm2, %v825_v26 }
  0x3f   : > { %v940_v53 = vsel %vm937_vm7, %v938_v49, %v939_v50 }
  0x40   : > { %1430 = vmatmul.mubr.msk.bf16.gmra.mrb[4].mxu1 %vm317_vm2, %v1880_v27  ;;  %v614_v27 = vsel %vm585_vm3, %v604_v52, %v613_v59 }
  0x41   : > { %1435 = vmatprep.mubr.msk.bf16.mxu1 %vm317_vm2, %v484_v22 }
  0x45   : > { %1466 = vmatmul.mubr.msk.bf16.vlgmr.msra.gmra.mrb[0].mxu0 %vm317_vm2, %v829_v33 }
  0x46   : > { %1474 = vmatpush3.bf16.msra.mxu0 %v960_v38  ;;  %1469 = vmatprep.mubr.msk.bf16.mxu0 %vm317_vm2, %v833_v39 }
  0x48   : > { %1436 = vmatmul.mubr.msk.bf16.vlgmr.msra.gmra.mrb[0].mxu1 %vm317_vm2, %v486_v43 }
  0x49   : > { %1484 = vmatpush3.bf16.msra.mxu1 %v1821_v3  ;;  %1439 = vmatprep.mubr.msk.bf16.mxu1 %vm317_vm2, %v488_v46  ;;  %v941_v3 = vrot.slane %v1857_v13, 3  ;;  %v945_v13 = vrot.slane %v1953_v18, 3 }
  0x4b   : > { %v942_v57 = vsel %vm937_vm7, %v939_v50, %v941_v3  ;;  %v944_v58 = vsel %vm937_vm7, %v941_v3, %v943_v54  ;;  %v946_v44 = vsel %vm937_vm7, %v943_v54, %v945_v13 }
  0x4d   : > { %1470 = vmatmul.mubr.msk.bf16.gmra.mrb[4].mxu0 %vm317_vm2, %v842_v51 }
  0x4e   : > { %1475 = vmatprep.mubr.msk.bf16.mxu0 %vm317_vm2, %v940_v53 }
  0x50   : > { %1440 = vmatmul.mubr.msk.bf16.gmra.mrb[4].mxu1 %vm317_vm2, %v490_v40 }
  0x51   : > { %1449 = vmatprep.mubr.msk.bf16.mxu1 %vm317_vm2, %v605_v36 }
  0x55   : > { %1476 = vmatmul.mubr.msk.bf16.vlgmr.msra.gmra.mrb[0].mxu0 %vm317_vm2, %v942_v57 }
  0x56   : > { %1479 = vmatprep.mubr.msk.bf16.mxu0 %vm317_vm2, %v944_v58 }
  0x5c   : > { %1450 = vmatmul.mubr.msk.bf16.vlgmr.msra.gmra.mrb[4].mxu1 %vm317_vm2, %v614_v27 }
  0x5d   : > { %1480 = vmatmul.mubr.msk.bf16.gmra.mrb[4].mxu0 %vm317_vm2, %v946_v44 }
 0x11b   : > { %v1437_v60 = vpop.f32.mrb[0].mxu1 }
 0x11c   : > { %v540_v61 = vpop.f32.mrb[1].mxu1 }
 0x11d   : > { %v1438_v62 = vpop.f32.mrb[2].mxu1 }
 0x11e   : > { %v543_v63 = vpop.f32.mrb[3].mxu1 }
 0x128   : > { %v1477_v0 = vpop.f32.mrb[0].mxu0 }
 0x129   : > { %v1485_v2 = vadd.f32 %v1477_v0, %v1437_v60  ;;  %v996_v4 = vpop.f32.mrb[1].mxu0 }
 0x12a   : > { %v1486_v5 = vadd.f32 %v996_v4, %v540_v61  ;;  %v1478_v6 = vpop.f32.mrb[2].mxu0 }
 0x12b   : > { %v1372_v10 = vpack.c.bf16 %v1485_v2, %v1485_v2  ;;  %v1487_v11 = vadd.f32 %v1478_v6, %v1438_v62  ;;  %v999_v14 = vpop.f32.mrb[3].mxu0  ;;  %v1102_v19 = vmul.f32 %v1485_v2, %v1485_v2  ;;  %v1080_v29 = vsel %vm1076_vm9, %v1485_v2, 0.0 }
 0x12c   : > { %v1370_v8 = vpack.c.bf16 %v1486_v5, %v1486_v5  ;;  %v1100_v15 = vmul.f32 %v1486_v5, %v1486_v5  ;;  %v1488_v16 = vadd.f32 %v999_v14, %v543_v63  ;;  %v1077_v18 = vsel %vm1076_vm9, %v1486_v5, 0.0 }
 0x12d   : > { %1070 = vst.msk [vmem:[%s2016_s10 + $0x8] sm:$0xf] %vm1067_vm8, %v1372_v10  ;;  %v1373_v17 = vpack.c.bf16 %v1487_v11, %v1487_v11  ;;  %v1103_v25 = vmul.f32 %v1487_v11, %v1487_v11  ;;  %v1111_v35 = vsel %vm1076_vm9, %v1102_v19, 0.0  ;;  %v1082_v42 = vsel %vm1076_vm9, %v1487_v11, 0.0 }
 0x12e   : > { %1068 = vst.msk [vmem:[%s2016_s10] sm:$0xf] %vm1067_vm8, %v1370_v8  ;;  %v1371_v20 = vpack.c.bf16 %v1488_v16, %v1488_v16  ;;  %v1078_v23 = vsel %vm1076_vm9, %v1488_v16, 0.0  ;;  %v1101_v24 = vmul.f32 %v1488_v16, %v1488_v16  ;;  %v1108_v21 = vsel %vm1076_vm9, %v1100_v15, 0.0 }
 0x12f   : > { %1071 = vst.msk [vmem:[%s2016_s10 + $0xc] sm:$0xf] %vm1067_vm8, %v1373_v17  ;;  %v1079_v26 = vadd.f32 %v1078_v23, %v1077_v18  ;;  %v1451_v28 = vpop.f32.mrb[4].mxu1  ;;  %v1113_v43 = vsel %vm1076_vm9, %v1103_v25, 0.0 }
 0x130   : > { %1069 = vst.msk [vmem:[%s2016_s10 + $0x4] sm:$0xf] %vm1067_vm8, %v1371_v20  ;;  %v1109_v22 = vsel %vm1076_vm9, %v1101_v24, 0.0  ;;  %v1481_v12 = vpop.f32.mrb[4].mxu0  ;;  %v680_v30 = vpop.f32.mrb[5].mxu1 }
 0x131   : > { %v1081_v31 = vadd.f32 %v1080_v29, %v1079_v26  ;;  %v1110_v1 = vadd.f32 %v1109_v22, %v1108_v21  ;;  %v1489_v32 = vadd.f32 %v1481_v12, %v1451_v28  ;;  %v1012_v33 = vpop.f32.mrb[5].mxu0  ;;  %v1452_v34 = vpop.f32.mrb[6].mxu1 }
 0x132   : > { %v1490_v37 = vadd.f32 %v1012_v33, %v680_v30  ;;  %v1482_v38 = vpop.f32.mrb[6].mxu0  ;;  %v683_v39 = vpop.f32.mrb[7].mxu1 }
 0x133   : > { %v1112_v45 = vadd.f32 %v1111_v35, %v1110_v1  ;;  %v1376_v46 = vpack.c.bf16 %v1489_v32, %v1489_v32  ;;  %v1015_v47 = vpop.f32.mrb[7].mxu0  ;;  %v1083_v49 = vadd.f32 %v1082_v42, %v1081_v31  ;;  %v1491_v52 = vadd.f32 %v1482_v38, %v1452_v34 }
 0x134   : > { %v1374_v48 = vpack.c.bf16 %v1490_v37, %v1490_v37  ;;  %v1084_v50 = vsel %vm1076_vm9, %v1490_v37, 0.0  ;;  %v1104_v7 = vmul.f32 %v1490_v37, %v1490_v37  ;;  %v1492_v53 = vadd.f32 %v1015_v47, %v683_v39 }
 0x135   : > { %1074 = vst.msk [vmem:[%s2016_s10 + $0x18] sm:$0xf] %vm1067_vm8, %v1376_v46  ;;  %v1114_v51 = vadd.f32 %v1113_v43, %v1112_v45  ;;  %v1085_v40 = vadd.f32 %v1084_v50, %v1083_v49  ;;  %v1377_v3 = vpack.c.bf16 %v1491_v52, %v1491_v52  ;;  %v1106_v36 = vmul.f32 %v1489_v32, %v1489_v32 }
 0x136   : > { %1072 = vst.msk [vmem:[%s2016_s10 + $0x10] sm:$0xf] %vm1067_vm8, %v1374_v48  ;;  %v1115_v9 = vsel %vm1076_vm9, %v1104_v7, 0.0  ;;  %v1375_v54 = vpack.c.bf16 %v1492_v53, %v1492_v53  ;;  %v1086_v55 = vsel %vm1076_vm9, %v1492_v53, 0.0  ;;  %v1105_v56 = vmul.f32 %v1492_v53, %v1492_v53 }
 0x137   : > { %v1116_v41 = vadd.f32 %v1115_v9, %v1114_v51  ;;  %1075 = vst.msk [vmem:[%s2016_s10 + $0x1c] sm:$0xf] %vm1067_vm8, %v1377_v3  ;;  %v1087_v57 = vadd.f32 %v1086_v55, %v1085_v40  ;;  %v1088_v58 = vsel %vm1076_vm9, %v1489_v32, 0.0  ;;  %v1107_v59 = vmul.f32 %v1491_v52, %v1491_v52 }
 0x138   : > { %1073 = vst.msk [vmem:[%s2016_s10 + $0x14] sm:$0xf] %vm1067_vm8, %v1375_v54  ;;  %v1117_v13 = vsel %vm1076_vm9, %v1105_v56, 0.0  ;;  %v1119_v60 = vsel %vm1076_vm9, %v1106_v36, 0.0  ;;  %v1090_v61 = vsel %vm1076_vm9, %v1491_v52, 0.0  ;;  %s1618_s10 = scalar_lea.vmem %s1617_s9, 32 }
 0x139   : > { %v1089_v27 = vadd.f32 %v1088_v58, %v1087_v57  ;;  %v1118_v44 = vadd.f32 %v1117_v13, %v1116_v41  ;;  %v1121_v0 = vsel %vm1076_vm9, %v1107_v59, 0.0  ;;  %p1620_p2 = scmp.lt.s32.totalorder %s1618_s10, %s1612_s6 }
 0x13b   : > { %v1091_v62 = vadd.f32 %v1090_v61, %v1089_v27  ;;  %v1120_v63 = vadd.f32 %v1119_v60, %v1118_v44  ;;  %p1621_p3 = por %p1620_p2, %p1619_p1 }
 0x13d   : > { %v1092_v2 = vrot.slane %v1091_v62, 4  ;;  %v1122_v4 = vadd.f32 %v1121_v0, %v1120_v63  ;;  %p1622_p5 = pnand %p1621_p3, %p1615_p0 }
 0x13f   : > { %v1093_v5 = vadd.f32 %v1092_v2, %v1091_v62  ;;  %v1123_v6 = vrot.slane %v1122_v4, 4 }
 0x141   : > { %v1094_v10 = vrot.slane %v1093_v5, 2  ;;  %v1124_v11 = vadd.f32 %v1123_v6, %v1122_v4 }
 0x143   : > { %v1095_v14 = vadd.f32 %v1094_v10, %v1093_v5  ;;  %v1125_v8 = vrot.slane %v1124_v11, 2 }
 0x145   : > { %v1096_v15 = vrot.slane %v1095_v14, 1  ;;  %v1126_v16 = vadd.f32 %v1125_v8, %v1124_v11 }
 0x147   : > { %v1097_v19 = vadd.f32 %v1096_v15, %v1095_v14  ;;  %v1127_v17 = vrot.slane %v1126_v16, 1 }
 0x149   : > { %1099 = vst.msk [vmem:[%s222_s12] sm:$0x1] %vm1098_vm10, %v1097_v19  ;;  %v1128_v18 = vadd.f32 %v1127_v17, %v1126_v16 }
 0x14a   : > { %1625 = shalt.err (!%p1622_p5)
}
 0x14b   : > { %s1626_s11 = scalar_lea.hbm %s2061_s26, 16  ;;  %s1630_s24 = scalar_lea.hbm %s2145_s3, 32 }
 0x14c   : > { %p1627_p6 = scmp.ne.s32.totalorder %s2061_s26, %s1626_s11  ;;  %p1631_p10 = scmp.lt.u32.totalorder %s2061_s26, %s2145_s3 }
 0x14d   : > { %p1632_p11 = scmp.lt.u32.totalorder %s1630_s24, %s1626_s11  ;;  %p1634_p13 = scmp.lt.u32.totalorder %s1626_s11, %s2061_s26 }
 0x14e   : > { %p1628_p7 = pnand %p1627_p6, %p1791_p4 }
 0x14f   : > { %p1633_p12 = por %p1632_p11, %p1631_p10 }
 0x150   : > { %p1629_p9 = pneg %p1628_p7 }
 0x151   : > { %p1635_p0 = por %p1634_p13, %p1633_p12 }
 0x153   : > { %p1636_p1 = pnand %p1635_p0, %p1629_p9 }
 0x155   : > { %1639 = shalt.err (!%p1636_p1)
}
 0x156   : > { %1542 = dma.vmem_to_hbm [thread:$0]  (%p1791_p4), %s2063_s13, 16, %s2061_s26, %s1140_s5   ;;  %1129 = vst.msk [vmem:[%s228_s14] sm:$0x1] %vm1098_vm10, %v1128_v18 }
 0x157   : > { %s1144_s6 = scalar_lea.sflag [#allocation5], %s2051_s7  ;;  %s1640_s8 = scalar_lea.vmem %s2071_s21, 16 }
 0x158   : > { %p1641_p2 = scmp.ne.s32.totalorder %s2071_s21, %s1640_s8  ;;  %s1725_s9 = smov [#allocation4]  }
 0x159   : > { %s1644_s10 = sshll.u32 %s1725_s9, 4  ;;  %s1645_s10 = int_to_ptr.vmem [resolvable:$false] %s1644_s10 }
 0x15a   : > { %p1642_p3 = pnand %p1641_p2, %p1791_p4  ;;  %s1646_s11 = scalar_lea.vmem %s1645_s10, 32 }
 0x15b   : > { %p1647_p6 = scmp.lt.s32.totalorder %s2071_s21, %s1645_s10  ;;  %p1648_p7 = scmp.lt.s32.totalorder %s1646_s11, %s1640_s8 }
 0x15c   : > { %p1643_p5 = pneg %p1642_p3 }
 0x15d   : > { %p1649_p9 = por %p1648_p7, %p1647_p6 }
 0x15f   : > { %p1650_p10 = pnand %p1649_p9, %p1643_p5 }
 0x161   : > { %1653 = shalt.err (!%p1650_p10)
}
 0x162   : > { %s1654_s7 = scalar_lea.hbm %s2069_s30, 16  ;;  %s1658_s26 = scalar_lea.hbm %s2146_s4, 32 }
 0x163   : > { %p1655_p11 = scmp.ne.s32.totalorder %s2069_s30, %s1654_s7  ;;  %p1659_p0 = scmp.lt.u32.totalorder %s2069_s30, %s2146_s4 }
 0x164   : > { %p1660_p1 = scmp.lt.u32.totalorder %s1658_s26, %s1654_s7  ;;  %p1662_p3 = scmp.lt.u32.totalorder %s1654_s7, %s2069_s30 }
 0x165   : > { %p1656_p12 = pnand %p1655_p11, %p1791_p4 }
 0x166   : > { %p1661_p2 = por %p1660_p1, %p1659_p0 }
 0x167   : > { %p1657_p13 = pneg %p1656_p12 }
 0x168   : > { %p1663_p5 = por %p1662_p3, %p1661_p2 }
 0x16a   : > { %p1664_p6 = pnand %p1663_p5, %p1657_p13 }
 0x16c   : > { %1667 = shalt.err (!%p1664_p6)
}
 0x16d   : > { %1543 = dma.vmem_to_hbm [thread:$0]  (%p1791_p4), %s2071_s21, 16, %s2069_s30, %s1144_s6  }
 0x16e PF: > { %p1553_p7 = scmp.ge.s32.totalorder %s1722_s20, 2  ;;  %s1199_s22 = sand.u32 1, %s1702_s15  }
 0x16f   : > { %s1200_s24 = scalar_lea.sflag [#allocation3], %s1199_s22 }
 0x170   : > { %p1547_p9 = pnand %p1553_p7, %p1798_p8 }
 0x172   : > { %1693 = dma.done.wait (!%p1547_p9), %s1200_s24, 16  }
 0x173   : > { %1695 = vsyncadd (!%p1547_p9), %s1200_s24, 4294967280  ;;  %s1208_s18 = scalar_lea.sflag [#allocation5], %s1199_s22 }
 0x174   : > { %1697 = dma.done.wait (!%p1547_p9), %s1208_s18, 16  }
 0x175   : > { %1699 = vsyncadd (!%p1547_p9), %s1208_s18, 4294967280  ;;  %s21_s20 = sadd.s32 1, %s1722_s20   ;;  %s2149_s15 = smov %s1706_s16 }
 0x176   : > { %p18_p10 = scmp.ge.s32.totalorder %s21_s20, 4   ;;  %s2150_s16 = smov %s1710_s17 }
 0x177   : > { %s2151_s17 = smov %s1804_s28  ;;  %s2152_s18 = smov %s1718_s19 }
 0x178   : > { %s2153_s19 = smov %s2155_s23  ;;  %20 = sbr.rel (!%p18_p10) target bundleno = 6 (0x6), region = 98 }
 0x17f   :  { %1212 = vsyncpa [#allocation3], 1 }
 0x180   :  { %1214 = vsyncpa [#allocation3 + $0x1], 1 }
 0x181   :  { %1215 = vsyncpa [#allocation5], 1 }
 0x182   :  { %1217 = vsyncpa [#allocation5 + $0x1], 1 }

</bundles_post_ra>
